<compile_context>
chip_gen: v7x
topology: tpu7x:2x2x1
jax: 0.10.0
libtpu: 0.0.40
codegen_flags: <defaults>
</compile_context>

<pallas_src>
import functools

import jax
import jax.numpy as jnp
import numpy as np
from jax.experimental import pallas as pl
from jax.experimental.pallas import tpu as pltpu


# ---------------------------------------------------------------------------
# In-kernel helpers
# ---------------------------------------------------------------------------
def _im2col_3x3(xpad_ref, H, W, Cin):
    """Concatenate the 9 shifted (H,W,Cin) windows along channels -> (H*W, 9*Cin).

    Tap order is (dy, dx) row-major, matching the tap-major (9*Cin, Cout) weight.
    """
    cols = []
    for dy in range(3):
        for dx in range(3):
            cols.append(xpad_ref[dy:dy + H, dx:dx + W, :].reshape(H * W, Cin))
    return jnp.concatenate(cols, axis=1)


# ---------------------------------------------------------------------------
# Kernel 1: 3x3 same-pad conv (no bias) + per-channel affine norm, fused.
# ---------------------------------------------------------------------------
def _conv3x3_bn_kernel(x_ref, w_ref, scale_ref, shift_ref, o_ref, xpad_ref):
    # x_ref    : (1, H, W, Cin)   unpadded input tile (one batch element)
    # w_ref    : (9*Cin, Cout)    tap-major conv weight
    # scale_ref: (1, Cout)        folded norm scale
    # shift_ref: (1, Cout)        folded norm shift
    # o_ref    : (1, H, W, Cout)
    # xpad_ref : VMEM scratch (H+2, W+2, Cin) -- zero-bordered halo buffer
    H, W = o_ref.shape[1], o_ref.shape[2]
    Cin = x_ref.shape[3]
    Cout = o_ref.shape[3]

    # In-kernel halo: zero the scratch (cheap, keeps borders 0 regardless of
    # which core runs which grid step), then fill the interior.
    xpad_ref[...] = jnp.zeros_like(xpad_ref)
    xpad_ref[1:H + 1, 1:W + 1, :] = x_ref[0]

    patches = _im2col_3x3(xpad_ref, H, W, Cin)            # (H*W, 9*Cin)
    y = jnp.dot(patches, w_ref[...], preferred_element_type=jnp.float32)
    y = y * scale_ref[0] + shift_ref[0]
    o_ref[0] = y.reshape(H, W, Cout).astype(o_ref.dtype)


def conv3x3_bn(x_nhwc, w_taps, scale, shift):
    """x_nhwc: (N,H,W,Cin), w_taps: (9,Cin,Cout), scale/shift: (Cout,)."""
    N, H, W, Cin = x_nhwc.shape
    Cout = w_taps.shape[-1]
    w = w_taps.reshape(9 * Cin, Cout)
    scale2 = scale.reshape(1, Cout).astype(jnp.float32)
    shift2 = shift.reshape(1, Cout).astype(jnp.float32)

    return pl.pallas_call(
        _conv3x3_bn_kernel,
        out_shape=jax.ShapeDtypeStruct((N, H, W, Cout), jnp.float32),
        grid_spec=pltpu.PrefetchScalarGridSpec(
            num_scalar_prefetch=0,
            grid=(N,),
            in_specs=[
                pl.BlockSpec((1, H, W, Cin), lambda n: (n, 0, 0, 0)),
                pl.BlockSpec((9 * Cin, Cout), lambda n: (0, 0)),
                pl.BlockSpec((1, Cout), lambda n: (0, 0)),
                pl.BlockSpec((1, Cout), lambda n: (0, 0)),
            ],
            out_specs=pl.BlockSpec((1, H, W, Cout), lambda n: (n, 0, 0, 0)),
            scratch_shapes=[pltpu.VMEM((H + 2, W + 2, Cin), jnp.float32)],
        ),
        compiler_params=pltpu.CompilerParams(
            dimension_semantics=("parallel",)),
    )(x_nhwc, w, scale2, shift2)


# ---------------------------------------------------------------------------
# Kernel 2: 3x3 conv + affine norm + 1x1 classifier (bias), fully fused.
# Classifier output is lane-padded to a multiple of 128 for dense stores.
# ---------------------------------------------------------------------------
def _conv3x3_bn_cls_kernel(x_ref, w_ref, scale_ref, shift_ref, wc_ref, bc_ref,
                           o_ref, xpad_ref):
    # x_ref : (1, H, W, Cin);  w_ref: (9*Cin, Cmid);  scale/shift: (1, Cmid)
    # wc_ref: (Cmid, Ccls_pad); bc_ref: (1, Ccls_pad); o_ref: (1, H, W, Ccls_pad)
    H, W = x_ref.shape[1], x_ref.shape[2]
    Cin = x_ref.shape[3]
    Ccls = o_ref.shape[3]

    xpad_ref[...] = jnp.zeros_like(xpad_ref)
    xpad_ref[1:H + 1, 1:W + 1, :] = x_ref[0]

    patches = _im2col_3x3(xpad_ref, H, W, Cin)            # (H*W, 9*Cin)
    h = jnp.dot(patches, w_ref[...], preferred_element_type=jnp.float32)
    h = h * scale_ref[0] + shift_ref[0]                   # (H*W, Cmid), stays in VMEM
    logits = jnp.dot(h, wc_ref[...],
                     preferred_element_type=jnp.float32) + bc_ref[0]
    o_ref[0] = logits.reshape(H, W, Ccls).astype(o_ref.dtype)


def conv3x3_bn_cls(x_nhwc, w_taps, scale, shift, wc_pad, bc_pad):
    """x_nhwc: (N,H,W,Cin), w_taps: (9,Cin,Cmid), wc_pad: (Cmid,Ccls_pad)."""
    N, H, W, Cin = x_nhwc.shape
    Cmid = w_taps.shape[-1]
    Ccls = wc_pad.shape[-1]
    w = w_taps.reshape(9 * Cin, Cmid)
    scale2 = scale.reshape(1, Cmid).astype(jnp.float32)
    shift2 = shift.reshape(1, Cmid).astype(jnp.float32)
    bc2 = bc_pad.reshape(1, Ccls).astype(jnp.float32)

    return pl.pallas_call(
        _conv3x3_bn_cls_kernel,
        out_shape=jax.ShapeDtypeStruct((N, H, W, Ccls), jnp.float32),
        grid_spec=pltpu.PrefetchScalarGridSpec(
            num_scalar_prefetch=0,
            grid=(N,),
            in_specs=[
                pl.BlockSpec((1, H, W, Cin), lambda n: (n, 0, 0, 0)),
                pl.BlockSpec((9 * Cin, Cmid), lambda n: (0, 0)),
                pl.BlockSpec((1, Cmid), lambda n: (0, 0)),
                pl.BlockSpec((1, Cmid), lambda n: (0, 0)),
                pl.BlockSpec((Cmid, Ccls), lambda n: (0, 0)),
                pl.BlockSpec((1, Ccls), lambda n: (0, 0)),
            ],
            out_specs=pl.BlockSpec((1, H, W, Ccls), lambda n: (n, 0, 0, 0)),
            scratch_shapes=[pltpu.VMEM((H + 2, W + 2, Cin), jnp.float32)],
        ),
        compiler_params=pltpu.CompilerParams(
            dimension_semantics=("parallel",)),
    )(x_nhwc, w, scale2, shift2, wc_pad, bc2)


# ---------------------------------------------------------------------------
# Parameter setup + forward-pass glue (plain JAX).
# ---------------------------------------------------------------------------
def make_params(key, channels, mid, num_classes, eps=1e-5):
    ks = jax.random.split(key, 12)
    # Conv weights in PyTorch layout (Cout, Cin, kH, kW), then transposed to
    # tap-major (9, Cin, Cout).
    w1 = jax.random.normal(ks[0], (mid, channels, 3, 3), jnp.float32) * 0.05
    w2 = jax.random.normal(ks[1], (mid, mid, 3, 3), jnp.float32) * 0.05
    wc = jax.random.normal(ks[2], (num_classes, mid, 1, 1), jnp.float32) * 0.05
    bc = jax.random.normal(ks[3], (num_classes,), jnp.float32) * 0.05

    # BatchNorm2d (eval-mode) folded into per-channel scale/shift.
    # TODO(synk): training-mode batch statistics (reduction over N,H,W) not implemented.
    def bn_fold(kg, kb, km, kv, c):
        gamma = 1.0 + 0.1 * jax.random.normal(kg, (c,), jnp.float32)
        beta = 0.1 * jax.random.normal(kb, (c,), jnp.float32)
        mean = 0.1 * jax.random.normal(km, (c,), jnp.float32)
        var = jnp.abs(1.0 + 0.1 * jax.random.normal(kv, (c,), jnp.float32))
        scale = gamma / jnp.sqrt(var + eps)
        shift = beta - mean * scale
        return scale, shift

    p = {}
    p['w1'] = jnp.transpose(w1, (2, 3, 1, 0)).reshape(9, channels, mid)
    p['w2'] = jnp.transpose(w2, (2, 3, 1, 0)).reshape(9, mid, mid)
    p['wc'] = jnp.transpose(wc[:, :, 0, 0], (1, 0))       # (mid, num_classes)
    p['bc'] = bc
    # Lane-dense classifier: zero-pad Cout up to a multiple of 128; the wrapper
    # slices logits[..., :num_classes] back after the kernel.
    cpad = ((num_classes + 127) // 128) * 128
    p['wc_pad'] = jnp.zeros((mid, cpad), jnp.float32).at[:, :num_classes].set(p['wc'])
    p['bc_pad'] = jnp.zeros((cpad,), jnp.float32).at[:num_classes].set(bc)
    p['s1'], p['t1'] = bn_fold(ks[4], ks[5], ks[6], ks[7], mid)
    p['s2'], p['t2'] = bn_fold(ks[8], ks[9], ks[10], ks[11], mid)
    return p


@functools.partial(jax.jit, static_argnums=(2,))
def pseudo_labeler_forward(params, x_nchw, num_classes):
    # NCHW -> NHWC for the kernels.
    x = jnp.transpose(x_nchw, (0, 2, 3, 1))
    x1 = conv3x3_bn(x, params['w1'], params['s1'], params['t1'])
    logits_pad = conv3x3_bn_cls(x1, params['w2'], params['s2'], params['t2'],
                                params['wc_pad'], params['bc_pad'])
    logits = logits_pad[..., :num_classes]
    # Back to NCHW to match the PyTorch module's output convention.
    return jnp.transpose(logits, (0, 3, 1, 2))


# Pure-JAX reference (lax conv) for a correctness spot check.
def _reference(params, x_nchw, channels, mid, num_classes):
    def conv3x3(x, w_taps, cin, cout):
        w = w_taps.reshape(3, 3, cin, cout)  # HWIO
        return jax.lax.conv_general_dilated(
            x, w, window_strides=(1, 1), padding='SAME',
            dimension_numbers=('NCHW', 'HWIO', 'NCHW'))
    x1 = conv3x3(x_nchw, params['w1'], channels, mid)
    x1 = x1 * params['s1'][None, :, None, None] + params['t1'][None, :, None, None]
    x2 = conv3x3(x1, params['w2'], mid, mid)
    x2 = x2 * params['s2'][None, :, None, None] + params['t2'][None, :, None, None]
    w = params['wc'].reshape(1, 1, mid, num_classes)
    out = jax.lax.conv_general_dilated(
        x2, w, window_strides=(1, 1), padding='SAME',
        dimension_numbers=('NCHW', 'HWIO', 'NCHW'))
    return out + params['bc'][None, :, None, None]


if __name__ == "__main__":
    # Small shapes consistent with the module (channels scaled down from 2048).
    N, CH, H, W = 2, 32, 16, 16
    MID, NUM_CLASSES = 256, 21

    key = jax.random.PRNGKey(0)
    kx, kp = jax.random.split(key)
    x = jax.random.normal(kx, (N, CH, H, W), jnp.float32)
    params = make_params(kp, CH, MID, NUM_CLASSES)

    out = pseudo_labeler_forward(params, x, NUM_CLASSES)
    out = jax.block_until_ready(out)

    ref = _reference(params, x, CH, MID, NUM_CLASSES)
    assert out.shape == (N, NUM_CLASSES, H, W), out.shape
    np.testing.assert_allclose(np.asarray(out), np.asarray(ref),
                               rtol=1e-4, atol=1e-3)
    print("KERNEL_OK")
</pallas_src>

<mosaic_0001>
module attributes {stable_mosaic.version = 11 : i64} {
  func.func @_conv3x3_bn_cls_kernel(%arg0: i32, %arg1: memref<1x16x16x256xf32, #tpu.memory_space<vmem>>, %arg2: memref<2304x256xf32, #tpu.memory_space<vmem>>, %arg3: memref<1x256xf32, #tpu.memory_space<vmem>>, %arg4: memref<1x256xf32, #tpu.memory_space<vmem>>, %arg5: memref<256x128xf32, #tpu.memory_space<vmem>>, %arg6: memref<1x128xf32, #tpu.memory_space<vmem>>, %arg7: memref<1x16x16x128xf32, #tpu.memory_space<vmem>>, %arg8: memref<18x18x256xf32, #tpu.memory_space<vmem>>) attributes {dimension_semantics = [#tpu.dimension_semantics<parallel>], iteration_bounds = array<i64: 2>, scalar_prefetch = 0 : i64, scratch_operands = 1 : i64, tpu.core_type = #tpu.core_type<tc>, window_params = [{transform_indices = @transform_0, window_bounds = array<i64: 1, 16, 16, 256>}, {pipeline_mode = #tpu.pipeline_mode<synchronous>, transform_indices = @transform_1, window_bounds = array<i64: 2304, 256>}, {pipeline_mode = #tpu.pipeline_mode<synchronous>, transform_indices = @transform_2, window_bounds = array<i64: 1, 256>}, {pipeline_mode = #tpu.pipeline_mode<synchronous>, transform_indices = @transform_3, window_bounds = array<i64: 1, 256>}, {pipeline_mode = #tpu.pipeline_mode<synchronous>, transform_indices = @transform_4, window_bounds = array<i64: 256, 128>}, {pipeline_mode = #tpu.pipeline_mode<synchronous>, transform_indices = @transform_5, window_bounds = array<i64: 1, 128>}, {transform_indices = @transform_6, window_bounds = array<i64: 1, 16, 16, 128>}]} {
    %cst = arith.constant 0.000000e+00 : f32
    %0 = vector.broadcast %cst : f32 to vector<18x18x256xf32>
    %c0 = arith.constant 0 : index
    %c0_0 = arith.constant 0 : index
    %c0_1 = arith.constant 0 : index
    %1 = vector.load %arg8[%c0, %c0_0, %c0_1] : memref<18x18x256xf32, #tpu.memory_space<vmem>>, vector<18x18x256xf32>
    tpu.vector_store %arg8[%c0, %c0_0, %c0_1], %0 {strides = array<i32>} : memref<18x18x256xf32, #tpu.memory_space<vmem>>, vector<18x18x256xf32>,
    %c0_2 = arith.constant 0 : index
    %c0_3 = arith.constant 0 : index
    %c0_4 = arith.constant 0 : index
    %c0_5 = arith.constant 0 : index
    %2 = vector.load %arg1[%c0_2, %c0_3, %c0_4, %c0_5] : memref<1x16x16x256xf32, #tpu.memory_space<vmem>>, vector<1x16x16x256xf32>
    %3 = vector.shape_cast %2 : vector<1x16x16x256xf32> to vector<16x16x256xf32>
    %c1 = arith.constant 1 : index
    %c1_6 = arith.constant 1 : index
    %c0_7 = arith.constant 0 : index
    %4 = vector.load %arg8[%c1, %c1_6, %c0_7] : memref<18x18x256xf32, #tpu.memory_space<vmem>>, vector<16x16x256xf32>
    tpu.vector_store %arg8[%c1, %c1_6, %c0_7], %3 {strides = array<i32>} : memref<18x18x256xf32, #tpu.memory_space<vmem>>, vector<16x16x256xf32>,
    %c0_8 = arith.constant 0 : index
    %c0_9 = arith.constant 0 : index
    %c0_10 = arith.constant 0 : index
    %5 = vector.load %arg8[%c0_8, %c0_9, %c0_10] : memref<18x18x256xf32, #tpu.memory_space<vmem>>, vector<16x16x256xf32>
    %6 = vector.shape_cast %5 : vector<16x16x256xf32> to vector<256x256xf32>
    %c0_11 = arith.constant 0 : index
    %c1_12 = arith.constant 1 : index
    %c0_13 = arith.constant 0 : index
    %7 = vector.load %arg8[%c0_11, %c1_12, %c0_13] : memref<18x18x256xf32, #tpu.memory_space<vmem>>, vector<16x16x256xf32>
    %8 = vector.shape_cast %7 : vector<16x16x256xf32> to vector<256x256xf32>
    %c0_14 = arith.constant 0 : index
    %c2 = arith.constant 2 : index
    %c0_15 = arith.constant 0 : index
    %9 = vector.load %arg8[%c0_14, %c2, %c0_15] : memref<18x18x256xf32, #tpu.memory_space<vmem>>, vector<16x16x256xf32>
    %10 = vector.shape_cast %9 : vector<16x16x256xf32> to vector<256x256xf32>
    %c1_16 = arith.constant 1 : index
    %c0_17 = arith.constant 0 : index
    %c0_18 = arith.constant 0 : index
    %11 = vector.load %arg8[%c1_16, %c0_17, %c0_18] : memref<18x18x256xf32, #tpu.memory_space<vmem>>, vector<16x16x256xf32>
    %12 = vector.shape_cast %11 : vector<16x16x256xf32> to vector<256x256xf32>
    %c1_19 = arith.constant 1 : index
    %c1_20 = arith.constant 1 : index
    %c0_21 = arith.constant 0 : index
    %13 = vector.load %arg8[%c1_19, %c1_20, %c0_21] : memref<18x18x256xf32, #tpu.memory_space<vmem>>, vector<16x16x256xf32>
    %14 = vector.shape_cast %13 : vector<16x16x256xf32> to vector<256x256xf32>
    %c1_22 = arith.constant 1 : index
    %c2_23 = arith.constant 2 : index
    %c0_24 = arith.constant 0 : index
    %15 = vector.load %arg8[%c1_22, %c2_23, %c0_24] : memref<18x18x256xf32, #tpu.memory_space<vmem>>, vector<16x16x256xf32>
    %16 = vector.shape_cast %15 : vector<16x16x256xf32> to vector<256x256xf32>
    %c2_25 = arith.constant 2 : index
    %c0_26 = arith.constant 0 : index
    %c0_27 = arith.constant 0 : index
    %17 = vector.load %arg8[%c2_25, %c0_26, %c0_27] : memref<18x18x256xf32, #tpu.memory_space<vmem>>, vector<16x16x256xf32>
    %18 = vector.shape_cast %17 : vector<16x16x256xf32> to vector<256x256xf32>
    %c2_28 = arith.constant 2 : index
    %c1_29 = arith.constant 1 : index
    %c0_30 = arith.constant 0 : index
    %19 = vector.load %arg8[%c2_28, %c1_29, %c0_30] : memref<18x18x256xf32, #tpu.memory_space<vmem>>, vector<16x16x256xf32>
    %20 = vector.shape_cast %19 : vector<16x16x256xf32> to vector<256x256xf32>
    %c2_31 = arith.constant 2 : index
    %c2_32 = arith.constant 2 : index
    %c0_33 = arith.constant 0 : index
    %21 = vector.load %arg8[%c2_31, %c2_32, %c0_33] : memref<18x18x256xf32, #tpu.memory_space<vmem>>, vector<16x16x256xf32>
    %22 = vector.shape_cast %21 : vector<16x16x256xf32> to vector<256x256xf32>
    %23 = tpu.concatenate %6, %8, %10, %12, %14, %16, %18, %20, %22 in 1 : vector<256x256xf32>, vector<256x256xf32>, vector<256x256xf32>, vector<256x256xf32>, vector<256x256xf32>, vector<256x256xf32>, vector<256x256xf32>, vector<256x256xf32>, vector<256x256xf32> -> vector<256x2304xf32>
    %c0_34 = arith.constant 0 : index
    %c0_35 = arith.constant 0 : index
    %24 = vector.load %arg2[%c0_34, %c0_35] : memref<2304x256xf32, #tpu.memory_space<vmem>>, vector<2304x256xf32>
    %cst_36 = arith.constant dense<0.000000e+00> : vector<256x256xf32>
    %25 = tpu.matmul %23, %24, %cst_36 {dimension_numbers = #tpu.dot_dimension_numbers<[1], [0], [0], [1], [0, 0, 1, 1], [], []>} : vector<256x2304xf32>, vector<2304x256xf32>, vector<256x256xf32> -> vector<256x256xf32>
    %c0_37 = arith.constant 0 : index
    %c0_38 = arith.constant 0 : index
    %26 = vector.load %arg3[%c0_37, %c0_38] : memref<1x256xf32, #tpu.memory_space<vmem>>, vector<1x256xf32>
    %27 = vector.shape_cast %26 : vector<1x256xf32> to vector<256xf32>
    %28 = vector.shape_cast %27 : vector<256xf32> to vector<1x256xf32>
    %29 = vector.broadcast %28 : vector<1x256xf32> to vector<256x256xf32>
    %30 = arith.mulf %25, %29 : vector<256x256xf32>
    %c0_39 = arith.constant 0 : index
    %c0_40 = arith.constant 0 : index
    %31 = vector.load %arg4[%c0_39, %c0_40] : memref<1x256xf32, #tpu.memory_space<vmem>>, vector<1x256xf32>
    %32 = vector.shape_cast %31 : vector<1x256xf32> to vector<256xf32>
    %33 = vector.shape_cast %32 : vector<256xf32> to vector<1x256xf32>
    %34 = vector.broadcast %33 : vector<1x256xf32> to vector<256x256xf32>
    %35 = arith.addf %30, %34 : vector<256x256xf32>
    %c0_41 = arith.constant 0 : index
    %c0_42 = arith.constant 0 : index
    %36 = vector.load %arg5[%c0_41, %c0_42] : memref<256x128xf32, #tpu.memory_space<vmem>>, vector<256x128xf32>
    %cst_43 = arith.constant dense<0.000000e+00> : vector<256x128xf32>
    %37 = tpu.matmul %35, %36, %cst_43 {dimension_numbers = #tpu.dot_dimension_numbers<[1], [0], [0], [1], [0, 0, 1, 1], [], []>} : vector<256x256xf32>, vector<256x128xf32>, vector<256x128xf32> -> vector<256x128xf32>
    %c0_44 = arith.constant 0 : index
    %c0_45 = arith.constant 0 : index
    %38 = vector.load %arg6[%c0_44, %c0_45] : memref<1x128xf32, #tpu.memory_space<vmem>>, vector<1x128xf32>
    %39 = vector.shape_cast %38 : vector<1x128xf32> to vector<128xf32>
    %40 = vector.shape_cast %39 : vector<128xf32> to vector<1x128xf32>
    %41 = vector.broadcast %40 : vector<1x128xf32> to vector<256x128xf32>
    %42 = arith.addf %37, %41 : vector<256x128xf32>
    %43 = vector.shape_cast %42 : vector<256x128xf32> to vector<16x16x128xf32>
    %c0_46 = arith.constant 0 : index
    %c0_47 = arith.constant 0 : index
    %c0_48 = arith.constant 0 : index
    %c0_49 = arith.constant 0 : index
    %44 = vector.load %arg7[%c0_46, %c0_47, %c0_48, %c0_49] : memref<1x16x16x128xf32, #tpu.memory_space<vmem>>, vector<1x16x16x128xf32>
    %45 = vector.shape_cast %44 : vector<1x16x16x128xf32> to vector<16x16x128xf32>
    %46 = vector.shape_cast %43 : vector<16x16x128xf32> to vector<1x16x16x128xf32>
    tpu.vector_store %arg7[%c0_46, %c0_47, %c0_48, %c0_49], %46 {strides = array<i32>} : memref<1x16x16x128xf32, #tpu.memory_space<vmem>>, vector<1x16x16x128xf32>,
    return
  }
  func.func @transform_0(%arg0: i32) -> (i32, i32, i32, i32) {
    %c0_i32 = arith.constant 0 : i32
    %c0_i32_0 = arith.constant 0 : i32
    %c0_i32_1 = arith.constant 0 : i32
    %c0_i32_2 = arith.constant 0 : i32
    return %arg0, %c0_i32, %c0_i32_0, %c0_i32_1 : i32, i32, i32, i32
  }
  func.func @transform_1(%arg0: i32) -> (i32, i32) {
    %c0_i32 = arith.constant 0 : i32
    %c0_i32_0 = arith.constant 0 : i32
    %c0_i32_1 = arith.constant 0 : i32
    return %c0_i32, %c0_i32_0 : i32, i32
  }
  func.func @transform_2(%arg0: i32) -> (i32, i32) {
    %c0_i32 = arith.constant 0 : i32
    %c0_i32_0 = arith.constant 0 : i32
    %c0_i32_1 = arith.constant 0 : i32
    return %c0_i32, %c0_i32_0 : i32, i32
  }
  func.func @transform_3(%arg0: i32) -> (i32, i32) {
    %c0_i32 = arith.constant 0 : i32
    %c0_i32_0 = arith.constant 0 : i32
    %c0_i32_1 = arith.constant 0 : i32
    return %c0_i32, %c0_i32_0 : i32, i32
  }
  func.func @transform_4(%arg0: i32) -> (i32, i32) {
    %c0_i32 = arith.constant 0 : i32
    %c0_i32_0 = arith.constant 0 : i32
    %c0_i32_1 = arith.constant 0 : i32
    return %c0_i32, %c0_i32_0 : i32, i32
  }
  func.func @transform_5(%arg0: i32) -> (i32, i32) {
    %c0_i32 = arith.constant 0 : i32
    %c0_i32_0 = arith.constant 0 : i32
    %c0_i32_1 = arith.constant 0 : i32
    return %c0_i32, %c0_i32_0 : i32, i32
  }
  func.func @transform_6(%arg0: i32) -> (i32, i32, i32, i32) {
    %c0_i32 = arith.constant 0 : i32
    %c0_i32_0 = arith.constant 0 : i32
    %c0_i32_1 = arith.constant 0 : i32
    %c0_i32_2 = arith.constant 0 : i32
    return %arg0, %c0_i32, %c0_i32_0, %c0_i32_1 : i32, i32, i32, i32
  }
}

module attributes {stable_mosaic.version = 11 : i64} {
  func.func @_conv3x3_bn_kernel(%arg0: i32, %arg1: memref<1x16x16x32xf32, #tpu.memory_space<vmem>>, %arg2: memref<288x256xf32, #tpu.memory_space<vmem>>, %arg3: memref<1x256xf32, #tpu.memory_space<vmem>>, %arg4: memref<1x256xf32, #tpu.memory_space<vmem>>, %arg5: memref<1x16x16x256xf32, #tpu.memory_space<vmem>>, %arg6: memref<18x18x32xf32, #tpu.memory_space<vmem>>) attributes {dimension_semantics = [#tpu.dimension_semantics<parallel>], iteration_bounds = array<i64: 2>, scalar_prefetch = 0 : i64, scratch_operands = 1 : i64, tpu.core_type = #tpu.core_type<tc>, window_params = [{transform_indices = @transform_0, window_bounds = array<i64: 1, 16, 16, 32>}, {pipeline_mode = #tpu.pipeline_mode<synchronous>, transform_indices = @transform_1, window_bounds = array<i64: 288, 256>}, {pipeline_mode = #tpu.pipeline_mode<synchronous>, transform_indices = @transform_2, window_bounds = array<i64: 1, 256>}, {pipeline_mode = #tpu.pipeline_mode<synchronous>, transform_indices = @transform_3, window_bounds = array<i64: 1, 256>}, {transform_indices = @transform_4, window_bounds = array<i64: 1, 16, 16, 256>}]} {
    %cst = arith.constant 0.000000e+00 : f32
    %0 = vector.broadcast %cst : f32 to vector<18x18x32xf32>
    %c0 = arith.constant 0 : index
    %c0_0 = arith.constant 0 : index
    %c0_1 = arith.constant 0 : index
    %1 = vector.load %arg6[%c0, %c0_0, %c0_1] : memref<18x18x32xf32, #tpu.memory_space<vmem>>, vector<18x18x32xf32>
    tpu.vector_store %arg6[%c0, %c0_0, %c0_1], %0 {strides = array<i32>} : memref<18x18x32xf32, #tpu.memory_space<vmem>>, vector<18x18x32xf32>,
    %c0_2 = arith.constant 0 : index
    %c0_3 = arith.constant 0 : index
    %c0_4 = arith.constant 0 : index
    %c0_5 = arith.constant 0 : index
    %2 = vector.load %arg1[%c0_2, %c0_3, %c0_4, %c0_5] : memref<1x16x16x32xf32, #tpu.memory_space<vmem>>, vector<1x16x16x32xf32>
    %3 = vector.shape_cast %2 : vector<1x16x16x32xf32> to vector<16x16x32xf32>
    %c1 = arith.constant 1 : index
    %c1_6 = arith.constant 1 : index
    %c0_7 = arith.constant 0 : index
    %4 = vector.load %arg6[%c1, %c1_6, %c0_7] : memref<18x18x32xf32, #tpu.memory_space<vmem>>, vector<16x16x32xf32>
    tpu.vector_store %arg6[%c1, %c1_6, %c0_7], %3 {strides = array<i32>} : memref<18x18x32xf32, #tpu.memory_space<vmem>>, vector<16x16x32xf32>,
    %c0_8 = arith.constant 0 : index
    %c0_9 = arith.constant 0 : index
    %c0_10 = arith.constant 0 : index
    %5 = vector.load %arg6[%c0_8, %c0_9, %c0_10] : memref<18x18x32xf32, #tpu.memory_space<vmem>>, vector<16x16x32xf32>
    %6 = vector.shape_cast %5 : vector<16x16x32xf32> to vector<256x32xf32>
    %c0_11 = arith.constant 0 : index
    %c1_12 = arith.constant 1 : index
    %c0_13 = arith.constant 0 : index
    %7 = vector.load %arg6[%c0_11, %c1_12, %c0_13] : memref<18x18x32xf32, #tpu.memory_space<vmem>>, vector<16x16x32xf32>
    %8 = vector.shape_cast %7 : vector<16x16x32xf32> to vector<256x32xf32>
    %c0_14 = arith.constant 0 : index
    %c2 = arith.constant 2 : index
    %c0_15 = arith.constant 0 : index
    %9 = vector.load %arg6[%c0_14, %c2, %c0_15] : memref<18x18x32xf32, #tpu.memory_space<vmem>>, vector<16x16x32xf32>
    %10 = vector.shape_cast %9 : vector<16x16x32xf32> to vector<256x32xf32>
    %c1_16 = arith.constant 1 : index
    %c0_17 = arith.constant 0 : index
    %c0_18 = arith.constant 0 : index
    %11 = vector.load %arg6[%c1_16, %c0_17, %c0_18] : memref<18x18x32xf32, #tpu.memory_space<vmem>>, vector<16x16x32xf32>
    %12 = vector.shape_cast %11 : vector<16x16x32xf32> to vector<256x32xf32>
    %c1_19 = arith.constant 1 : index
    %c1_20 = arith.constant 1 : index
    %c0_21 = arith.constant 0 : index
    %13 = vector.load %arg6[%c1_19, %c1_20, %c0_21] : memref<18x18x32xf32, #tpu.memory_space<vmem>>, vector<16x16x32xf32>
    %14 = vector.shape_cast %13 : vector<16x16x32xf32> to vector<256x32xf32>
    %c1_22 = arith.constant 1 : index
    %c2_23 = arith.constant 2 : index
    %c0_24 = arith.constant 0 : index
    %15 = vector.load %arg6[%c1_22, %c2_23, %c0_24] : memref<18x18x32xf32, #tpu.memory_space<vmem>>, vector<16x16x32xf32>
    %16 = vector.shape_cast %15 : vector<16x16x32xf32> to vector<256x32xf32>
    %c2_25 = arith.constant 2 : index
    %c0_26 = arith.constant 0 : index
    %c0_27 = arith.constant 0 : index
    %17 = vector.load %arg6[%c2_25, %c0_26, %c0_27] : memref<18x18x32xf32, #tpu.memory_space<vmem>>, vector<16x16x32xf32>
    %18 = vector.shape_cast %17 : vector<16x16x32xf32> to vector<256x32xf32>
    %c2_28 = arith.constant 2 : index
    %c1_29 = arith.constant 1 : index
    %c0_30 = arith.constant 0 : index
    %19 = vector.load %arg6[%c2_28, %c1_29, %c0_30] : memref<18x18x32xf32, #tpu.memory_space<vmem>>, vector<16x16x32xf32>
    %20 = vector.shape_cast %19 : vector<16x16x32xf32> to vector<256x32xf32>
    %c2_31 = arith.constant 2 : index
    %c2_32 = arith.constant 2 : index
    %c0_33 = arith.constant 0 : index
    %21 = vector.load %arg6[%c2_31, %c2_32, %c0_33] : memref<18x18x32xf32, #tpu.memory_space<vmem>>, vector<16x16x32xf32>
    %22 = vector.shape_cast %21 : vector<16x16x32xf32> to vector<256x32xf32>
    %23 = tpu.concatenate %6, %8, %10, %12, %14, %16, %18, %20, %22 in 1 : vector<256x32xf32>, vector<256x32xf32>, vector<256x32xf32>, vector<256x32xf32>, vector<256x32xf32>, vector<256x32xf32>, vector<256x32xf32>, vector<256x32xf32>, vector<256x32xf32> -> vector<256x288xf32>
    %c0_34 = arith.constant 0 : index
    %c0_35 = arith.constant 0 : index
    %24 = vector.load %arg2[%c0_34, %c0_35] : memref<288x256xf32, #tpu.memory_space<vmem>>, vector<288x256xf32>
    %cst_36 = arith.constant dense<0.000000e+00> : vector<256x256xf32>
    %25 = tpu.matmul %23, %24, %cst_36 {dimension_numbers = #tpu.dot_dimension_numbers<[1], [0], [0], [1], [0, 0, 1, 1], [], []>} : vector<256x288xf32>, vector<288x256xf32>, vector<256x256xf32> -> vector<256x256xf32>
    %c0_37 = arith.constant 0 : index
    %c0_38 = arith.constant 0 : index
    %26 = vector.load %arg3[%c0_37, %c0_38] : memref<1x256xf32, #tpu.memory_space<vmem>>, vector<1x256xf32>
    %27 = vector.shape_cast %26 : vector<1x256xf32> to vector<256xf32>
    %28 = vector.shape_cast %27 : vector<256xf32> to vector<1x256xf32>
    %29 = vector.broadcast %28 : vector<1x256xf32> to vector<256x256xf32>
    %30 = arith.mulf %25, %29 : vector<256x256xf32>
    %c0_39 = arith.constant 0 : index
    %c0_40 = arith.constant 0 : index
    %31 = vector.load %arg4[%c0_39, %c0_40] : memref<1x256xf32, #tpu.memory_space<vmem>>, vector<1x256xf32>
    %32 = vector.shape_cast %31 : vector<1x256xf32> to vector<256xf32>
    %33 = vector.shape_cast %32 : vector<256xf32> to vector<1x256xf32>
    %34 = vector.broadcast %33 : vector<1x256xf32> to vector<256x256xf32>
    %35 = arith.addf %30, %34 : vector<256x256xf32>
    %36 = vector.shape_cast %35 : vector<256x256xf32> to vector<16x16x256xf32>
    %c0_41 = arith.constant 0 : index
    %c0_42 = arith.constant 0 : index
    %c0_43 = arith.constant 0 : index
    %c0_44 = arith.constant 0 : index
    %37 = vector.load %arg5[%c0_41, %c0_42, %c0_43, %c0_44] : memref<1x16x16x256xf32, #tpu.memory_space<vmem>>, vector<1x16x16x256xf32>
    %38 = vector.shape_cast %37 : vector<1x16x16x256xf32> to vector<16x16x256xf32>
    %39 = vector.shape_cast %36 : vector<16x16x256xf32> to vector<1x16x16x256xf32>
    tpu.vector_store %arg5[%c0_41, %c0_42, %c0_43, %c0_44], %39 {strides = array<i32>} : memref<1x16x16x256xf32, #tpu.memory_space<vmem>>, vector<1x16x16x256xf32>,
    return
  }
  func.func @transform_0(%arg0: i32) -> (i32, i32, i32, i32) {
    %c0_i32 = arith.constant 0 : i32
    %c0_i32_0 = arith.constant 0 : i32
    %c0_i32_1 = arith.constant 0 : i32
    %c0_i32_2 = arith.constant 0 : i32
    return %arg0, %c0_i32, %c0_i32_0, %c0_i32_1 : i32, i32, i32, i32
  }
  func.func @transform_1(%arg0: i32) -> (i32, i32) {
    %c0_i32 = arith.constant 0 : i32
    %c0_i32_0 = arith.constant 0 : i32
    %c0_i32_1 = arith.constant 0 : i32
    return %c0_i32, %c0_i32_0 : i32, i32
  }
  func.func @transform_2(%arg0: i32) -> (i32, i32) {
    %c0_i32 = arith.constant 0 : i32
    %c0_i32_0 = arith.constant 0 : i32
    %c0_i32_1 = arith.constant 0 : i32
    return %c0_i32, %c0_i32_0 : i32, i32
  }
  func.func @transform_3(%arg0: i32) -> (i32, i32) {
    %c0_i32 = arith.constant 0 : i32
    %c0_i32_0 = arith.constant 0 : i32
    %c0_i32_1 = arith.constant 0 : i32
    return %c0_i32, %c0_i32_0 : i32, i32
  }
  func.func @transform_4(%arg0: i32) -> (i32, i32, i32, i32) {
    %c0_i32 = arith.constant 0 : i32
    %c0_i32_0 = arith.constant 0 : i32
    %c0_i32_1 = arith.constant 0 : i32
    %c0_i32_2 = arith.constant 0 : i32
    return %arg0, %c0_i32, %c0_i32_0, %c0_i32_1 : i32, i32, i32, i32
  }
}

</mosaic_0001>

<bundles_post_ra>
// kernel: pseudo_labeler_forward.2
= control target key start
LH: loop header
LB: loop body
LE: loop exit
PB: predicated region body
PF: predicated region fallthrough
CT: control target
= control target key end

     0   :  { %9 = vsyncpa [#allocation4], 0  ;;  %s4998_s0 = inlined_call_operand.hbm [shape: f32[2,16,16,32], index: 0, kind: input, shape index: {}]   ;;  %s4999_s1 = inlined_call_operand.hbm [shape: f32[288,256], index: 1, kind: input, shape index: {}]   ;;  %s5000_s2 = inlined_call_operand.hbm [shape: f32[1,256], index: 2, kind: input, shape index: {}]   ;;  %s5001_s3 = inlined_call_operand.hbm [shape: f32[1,256], index: 3, kind: input, shape index: {}]   ;;  %s5002_s4 = inlined_call_operand.vmem [shape: f32[2,16,16,256], index: 4, kind: output, shape index: {}]  }
   0x1   :  { %11 = vsyncpa [#allocation4 + $0x1], 0 }
   0x2   :  { %12 = vsyncpa [#allocation6], 0 }
   0x3   :  { %13 = vsyncpa [#allocation9], 0  ;;  %s3565_s15 = smov 0   ;;  %s3567_s16 = smov 0  }
   0x4   :  { %s3569_s17 = smov 0   ;;  %s3571_s18 = smov 0  }
   0x5 LB: > { %s3584_s19 = sadd.s32 4294967295, %s3526_s18   ;;  %p39_p0 = scmp.ne.s32.totalorder %s3518_s16, %s3514_s15  ;;  %s3526_s18 = sphi %s3571_s18, %s5020_s18   ;;  %s3522_s17 = sphi %s3569_s17, %s5019_s17   ;;  %s3518_s16 = sphi %s3567_s16, %s5018_s16   ;;  %s3514_s15 = sphi %s3565_s15, %s5017_s15  }
   0x6   : > { %p5003_p1 = scmp.eq.s32.totalorder %s3584_s19, 0  ;;  %p2625_p2 = scmp.ge.s32.totalorder %s3526_s18, 1 }
   0x7   : > { %p139_p3 = scmp.lt.s32.totalorder %s3526_s18, 3  ;;  %s3528_s22 = smov [#allocation5]  }
   0x8   : > { %p3592_p4 = por %p5003_p1, %p39_p0  ;;  %s151_s23 = sshll.u32 %s3528_s22, 4  ;;  %s3600_s23 = int_to_ptr.vmem [resolvable:$true] %s151_s23 }
   0x9   : > { %p3596_p5 = pnand %p2625_p2, %p139_p3  ;;  %s3529_s25 = smov [#allocation7]  }
   0xa   : > { %s5006_s20 = scalar_select %p3592_p4, 1, 0 }
   0xb   : > { %s5007_s21 = scalar_select %p3596_p5, 1, 0 }
   0xc   : > { %p2826_p6 = pneg %p3596_p5  ;;  %s165_s26 = sshll.u32 %s3529_s25, 4  ;;  %s3610_s26 = int_to_ptr.vmem [resolvable:$true] %s165_s26 }
   0xd   : > { %s3530_s27 = smov [#allocation8]   ;;  %s3370_s5 = scalar_lea.hbm %s4999_s1, 9216 }
   0xe   : > { %p3606_p7 = pnand %p2826_p6, %p5003_p1  ;;  %s3612_s28 = sshll.u32 %s3530_s27, 4  ;;  %s177_s28 = int_to_ptr.vmem [resolvable:$true] %s3612_s28 }
   0xf   : > { %p3371_p8 = scmp.ne.s32.totalorder %s4999_s1, %s3370_s5  ;;  %p3377_p12 = scmp.lt.u32.totalorder %s3370_s5, %s4999_s1 }
  0x10   : > { %p3622_p9 = pneg %p3606_p7 }
  0x12   : > { %p3373_p10 = pnand %p3622_p9, %p3371_p8 }
  0x14   : > { %p3374_p11 = pneg %p3373_p10 }
  0x16   : > { %p3379_p13 = pnand %p3377_p12, %p3374_p11 }
  0x18   : > { %3382 = shalt.err (!%p3379_p13)
}
  0x19   : > { %s3383_s11 = scalar_lea.vmem %s3600_s23, 9216  ;;  %p3391_p6 = scmp.lt.s32.totalorder %s3600_s23, %s3600_s23 }
  0x1a   : > { %p3384_p0 = scmp.ne.s32.totalorder %s3600_s23, %s3383_s11  ;;  %p3392_p1 = scmp.lt.s32.totalorder %s3383_s11, %s3383_s11 }
  0x1c   : > { %p3386_p2 = pnand %p3384_p0, %p3622_p9  ;;  %p3393_p8 = por %p3392_p1, %p3391_p6 }
  0x1e   : > { %p3387_p3 = pneg %p3386_p2 }
  0x20   : > { %p3394_p10 = pnand %p3393_p8, %p3387_p3 }
  0x22   : > { %3397 = shalt.err (!%p3394_p10)
}
  0x23   : > { %s3531_s12 = smov 256   ;;  %s3532_s13 = smov 16  }
  0x24   : > { %2829 = dma.hbm_to_vmem [thread:$0]  (!%p3606_p7), %s4999_s1, 9216, %s3600_s23, [#allocation6], %s3531_s12, %s3531_s12, %s3532_s13  }
  0x25   : > { %s3398_s27 = scalar_lea.hbm %s5000_s2, 32 }
  0x26   : > { %p3399_p1 = scmp.ne.s32.totalorder %s5000_s2, %s3398_s27  ;;  %p3405_p13 = scmp.lt.u32.totalorder %s3398_s27, %s5000_s2 }
  0x28   : > { %p3401_p11 = pnand %p3399_p1, %p3622_p9 }
  0x2a   : > { %p3402_p12 = pneg %p3401_p11 }
  0x2c   : > { %p3407_p0 = pnand %p3405_p13, %p3402_p12 }
  0x2e   : > { %3410 = shalt.err (!%p3407_p0)
}
  0x2f   : > { %s3411_s23 = scalar_lea.vmem %s3610_s26, 32  ;;  %p3419_p8 = scmp.lt.s32.totalorder %s3610_s26, %s3610_s26 }
  0x30   : > { %p3412_p2 = scmp.ne.s32.totalorder %s3610_s26, %s3411_s23  ;;  %p3420_p10 = scmp.lt.s32.totalorder %s3411_s23, %s3411_s23 }
  0x32   : > { %p3414_p3 = pnand %p3412_p2, %p3622_p9  ;;  %p3421_p1 = por %p3420_p10, %p3419_p8 }
  0x34   : > { %p3415_p6 = pneg %p3414_p3 }
  0x36   : > { %p3422_p11 = pnand %p3421_p1, %p3415_p6 }
  0x38   : > { %3425 = shalt.err (!%p3422_p11)
}
  0x39   : > { %2832 = dma.hbm_to_vmem [thread:$0]  (!%p3606_p7), %s5000_s2, 32, %s3610_s26, [#allocation6]  }
  0x3a   : > { %s3426_s12 = scalar_lea.hbm %s5001_s3, 32 }
  0x3b   : > { %p3427_p12 = scmp.ne.s32.totalorder %s5001_s3, %s3426_s12  ;;  %p3433_p2 = scmp.lt.u32.totalorder %s3426_s12, %s5001_s3 }
  0x3d   : > { %p3429_p13 = pnand %p3427_p12, %p3622_p9 }
  0x3f   : > { %p3430_p0 = pneg %p3429_p13 }
  0x41   : > { %p3435_p3 = pnand %p3433_p2, %p3430_p0 }
  0x43   : > { %3438 = shalt.err (!%p3435_p3)
}
  0x44   : > { %s3439_s25 = scalar_lea.vmem %s177_s28, 32  ;;  %p3447_p1 = scmp.lt.s32.totalorder %s177_s28, %s177_s28 }
  0x45   : > { %p3440_p6 = scmp.ne.s32.totalorder %s177_s28, %s3439_s25  ;;  %p3448_p11 = scmp.lt.s32.totalorder %s3439_s25, %s3439_s25 }
  0x47   : > { %p3442_p8 = pnand %p3440_p6, %p3622_p9  ;;  %p3449_p4 = por %p3448_p11, %p3447_p1 }
  0x49   : > { %p3443_p10 = pneg %p3442_p8 }
  0x4b   : > { %p3450_p5 = pnand %p3449_p4, %p3443_p10 }
  0x4d   : > { %3453 = shalt.err (!%p3450_p5)
}
  0x4e   : > { %2835 = dma.hbm_to_vmem [thread:$0]  (!%p3606_p7), %s5001_s3, 32, %s177_s28, [#allocation9]  }
  0x4f   : > { %s3686_s8 = sadd.s32 1, %s3526_s18   ;;  %s26_s30 = sadd.s32 1, %s3522_s17 }
  0x50   : > { %s23_s29 = ssub.s32 %s3526_s18, %s3686_s8  ;;  %p33_p5 = scmp.ne.s32.totalorder %s3522_s17, %s3518_s16 }
  0x51   : > { %p24_p4 = scmp.eq.s32.totalorder %s23_s29, 0  ;;  %p34_p9 = scmp.eq.s32.totalorder %s3526_s18, 0 }
  0x52   : > { %p2843_p12 = scmp.lt.s32.totalorder %s3526_s18, 2  ;;  %s187_s5 = sand.u32 1, %s3522_s17  }
  0x53   : > { %s3696_s24 = scalar_select %p24_p4, %s3522_s17, %s26_s30  }
  0x54   : > { %p35_p13 = por %p34_p9, %p33_p5  ;;  %s2630_s6 = sshll.u32 %s187_s5, 8 }
  0x55   : > { %s2674_s23 = sshll.u32 %s3526_s18, 12  ;;  %s191_s28 = scalar_lea.vmem [#allocation3], %s2630_s6 }
  0x56   : > { %s3703_s10 = scalar_lea.hbm %s4998_s0, %s2674_s23  ;;  %s198_s11 = sshll.u32 %s191_s28, 4  ;;  %s3705_s11 = int_to_ptr.vmem [resolvable:$true] %s198_s11 }
  0x57   : > { %p3707_p7 = pnand %p2843_p12, %p35_p13  ;;  %s3711_s18 = scalar_lea.sflag [#allocation4], %s187_s5 }
  0x58   : > { %s3454_s13 = scalar_lea.hbm %s3703_s10, 4096  ;;  %s3459_s22 = scalar_lea.hbm %s4998_s0, 8192 }
  0x59   : > { %p3455_p0 = scmp.ne.s32.totalorder %s3703_s10, %s3454_s13  ;;  %p3456_p2 = pneg %p3707_p7 }
  0x5a   : > { %p3460_p8 = scmp.lt.u32.totalorder %s3703_s10, %s4998_s0  ;;  %p3461_p10 = scmp.lt.u32.totalorder %s3459_s22, %s3454_s13 }
  0x5b   : > { %p3457_p3 = pnand %p3456_p2, %p3455_p0  ;;  %p3463_p11 = scmp.lt.u32.totalorder %s3454_s13, %s3703_s10 }
  0x5c   : > { %p3462_p1 = por %p3461_p10, %p3460_p8 }
  0x5d   : > { %p3458_p6 = pneg %p3457_p3 }
  0x5e   : > { %p3464_p4 = por %p3463_p11, %p3462_p1 }
  0x60   : > { %p3465_p5 = pnand %p3464_p4, %p3458_p6 }
  0x62   : > { %3468 = shalt.err (!%p3465_p5)
}
  0x63   : > { %s3469_s27 = scalar_lea.vmem %s3705_s11, 4096  ;;  %s3533_s29 = smov [#allocation3]  }
  0x64   : > { %p3470_p9 = scmp.ne.s32.totalorder %s3705_s11, %s3469_s27  ;;  %s3474_s30 = sshll.u32 %s3533_s29, 4  ;;  %s3475_s30 = int_to_ptr.vmem [resolvable:$false] %s3474_s30 }
  0x65   : > { %s3476_s5 = scalar_lea.vmem %s3475_s30, 8192  ;;  %p3477_p0 = scmp.lt.s32.totalorder %s3705_s11, %s3475_s30 }
  0x66   : > { %p3472_p12 = pnand %p3470_p9, %p3456_p2  ;;  %p3478_p3 = scmp.lt.s32.totalorder %s3476_s5, %s3469_s27 }
  0x68   : > { %p3473_p13 = pneg %p3472_p12  ;;  %p3479_p8 = por %p3478_p3, %p3477_p0 }
  0x6a   : > { %p3480_p10 = pnand %p3479_p8, %p3473_p13 }
  0x6c   : > { %3483 = shalt.err (!%p3480_p10)
}
  0x6d   : > { %s3534_s6 = smov 128   ;;  %s3535_s23 = smov 8  }
  0x6e   : > { %2839 = dma.hbm_to_vmem [thread:$0]  (!%p3707_p7), %s3703_s10, 4096, %s3705_s11, %s3711_s18, %s3534_s6, %s3534_s6, %s3535_s23  }
  0x6f   : > { %p5011_p2 = scmp.ne.s32.totalorder %s5007_s21, 0 }
  0x70   : > { %s212_s7 = sand.u32 (!%p5011_p2), 1, %s3518_s16   ;;  %p5012_p6 = scmp.ne.s32.totalorder (!%p5011_p2), %s5006_s20, 0 }
  0x71   : > { %210 = sbr.rel (%p5011_p2) target bundleno = 694 (0x2b6), region = 36  ;;  %s2634_s9 = sshll.u32 (!%p5011_p2), %s212_s7, 8 }
  0x72   : > { %s213_s28 = scalar_lea.sflag (!%p5011_p2), [#allocation4], %s212_s7  ;;  %s3742_s13 = scalar_lea.vmem (!%p5011_p2), [#allocation3], %s2634_s9 }
  0x78   : > { %3501 = dma.done.wait (%p5012_p6), %s213_s28, 4096  }
  0x79   : > { %3503 = vsyncadd (%p5012_p6), %s213_s28, 4294963200  ;;  %p5013_p1 = scmp.eq.s32.totalorder %s3584_s19, 0 }
  0x7b   : > { %3505 = dma.done.wait (%p5013_p1), [#allocation6], 9248   ;;  %p5014_p7 = pmov %p5013_p1 }
  0x7c   : > { %p5015_p11 = pmov %p5013_p1 }
  0x7d   : > { %3507 = vsyncadd (%p5014_p7), [#allocation6], 4294958048 }
  0x7e   : > { %3509 = dma.done.wait (%p5015_p11), [#allocation9], 32   ;;  %p5016_p4 = pmov %p5013_p1 }
  0x7f   : > { %vm258_vm0 = vcmask 261120   ;;  %vm261_vm1 = vcmask 254976   ;;  %v3536_v0 = vmov 0.0   ;;  %v314_v1 = vld [vmem:[%s3742_s13] sm:$0xff]  ;;  %v315_v2 = vld [vmem:[%s3742_s13 + $0x8] sm:$0xff]  ;;  %v316_v3 = vld [vmem:[%s3742_s13 + $0x10] sm:$0xff] }
  0x80   : > { %3511 = vsyncadd (%p5016_p4), [#allocation9], 4294967264  ;;  %259 = vst.msk [vmem:[#allocation2] sm:$0xff] %vm258_vm0, %v3536_v0  ;;  %2119 = vmatprep.mubr.f32.mxu0 %v3536_v0  ;;  %v317_v4 = vld [vmem:[%s3742_s13 + $0x18] sm:$0xff]  ;;  %v318_v5 = vld [vmem:[%s3742_s13 + $0x20] sm:$0xff]  ;;  %s3537_s20 = smov 32  }
  0x81   : > { %260 = vst.msk [vmem:[#allocation2 + $0x8] sm:$0xff] %vm258_vm0, %v3536_v0  ;;  %263 = vst.msk [vmem:[#allocation2 + $0x18] sm:$0xff] %vm258_vm0, %v3536_v0  ;;  %v319_v6 = vld [vmem:[%s3742_s13 + $0x28] sm:$0xff]  ;;  %v320_v7 = vld [vmem:[%s3742_s13 + $0x30] sm:$0xff]  ;;  %s3538_s21 = smov 96   ;;  %s3539_s10 = smov 64  }
  0x82   : > { %264 = vst.msk [vmem:[#allocation2 + $0x20] sm:$0xff] %vm258_vm0, %v3536_v0  ;;  %266 = vst.msk [vmem:[#allocation2 + $0x30] sm:$0xff] %vm258_vm0, %v3536_v0  ;;  %v321_v8 = vld [vmem:[%s3742_s13 + $0x38] sm:$0xff]  ;;  %v322_v10 = vld [vmem:[%s3742_s13 + $0x40] sm:$0xff]  ;;  %vm1468_vm2 = vcmask 523264   ;;  %vm1501_vm3 = vcmask 785408  }
  0x83   : > { %265 = vst.msk [vmem:[#allocation2 + $0x28] sm:$0x3] %vm261_vm1, %v3536_v0  ;;  %262 = vst.msk [vmem:[#allocation2 + $0x10] sm:$0x3] %vm261_vm1, %v3536_v0  ;;  %v323_v11 = vld [vmem:[%s3742_s13 + $0x48] sm:$0xff]  ;;  %v324_v12 = vld [vmem:[%s3742_s13 + $0x50] sm:$0xff] }
  0x84   : > { %267 = vst.msk [vmem:[#allocation2 + $0x38] sm:$0xff] %vm258_vm0, %v3536_v0  ;;  %269 = vst.msk [vmem:[#allocation2 + $0x48] sm:$0xff] %vm258_vm0, %v3536_v0  ;;  %v325_v13 = vld [vmem:[%s3742_s13 + $0x58] sm:$0xff]  ;;  %v1631_v14 = vld [vmem:[#allocation5 + $0x8] sm:$0xff]  ;;  %p253_p5 = scmp.lt.s32.totalorder %s3584_s19, 1 }
  0x85   : > { %268 = vst.msk [vmem:[#allocation2 + $0x40] sm:$0x3] %vm261_vm1, %v3536_v0  ;;  %271 = vst.msk [vmem:[#allocation2 + $0x58] sm:$0x3] %vm261_vm1, %v3536_v0  ;;  %v1633_v15 = vld [vmem:[#allocation5 + $0x18] sm:$0xff]  ;;  %v1630_v18 = vld [vmem:[#allocation5] sm:$0xff] }
  0x86   : > { %270 = vst.msk [vmem:[#allocation2 + $0x50] sm:$0xff] %vm258_vm0, %v3536_v0  ;;  %272 = vst.msk [vmem:[#allocation2 + $0x60] sm:$0xff] %vm258_vm0, %v3536_v0  ;;  %v2676_v17 = vpack.c.bf16 %v1633_v15, %v1631_v14  ;;  %v1632_v19 = vld [vmem:[#allocation5 + $0x10] sm:$0xff]  ;;  %v326_v20 = vld [vmem:[%s3742_s13 + $0x60] sm:$0xff]  ;;  %s5022_s19 = smov (!%p253_p5, %s3584_s19), 1 }
  0x87   : > { %273 = vst.msk [vmem:[#allocation2 + $0x68] sm:$0xff] %vm258_vm0, %v3536_v0  ;;  %275 = vst.msk [vmem:[#allocation2 + $0x78] sm:$0xff] %vm258_vm0, %v3536_v0  ;;  %v2678_v22 = vpack.c.bf16 %v1632_v19, %v1630_v18  ;;  %v1635_v23 = vld [vmem:[#allocation5 + $0x28] sm:$0xff]  ;;  %v1637_v24 = vld [vmem:[#allocation5 + $0x38] sm:$0xff]  ;;  %s2675_s11 = sshll.u32 %s5022_s19, 9 }
  0x88   : > { %274 = vst.msk [vmem:[#allocation2 + $0x70] sm:$0x3] %vm261_vm1, %v3536_v0  ;;  %277 = vst.msk [vmem:[#allocation2 + $0x88] sm:$0x3] %vm261_vm1, %v3536_v0  ;;  %v411_v9 = vld [vmem:[#allocation2 + $0x1] sm:$0xff]  ;;  %2677 = vmatprep.subr.bf16.mxu1 %v2676_v17  ;;  %v2680_v28 = vpack.c.bf16 %v1637_v24, %v1635_v23  ;;  %v1634_v44 = vld [vmem:[#allocation5 + $0x20] sm:$0xff]  ;;  %s4682_s14 = scalar_lea.vmem %s5002_s4, %s2675_s11 }
  0x89   : > { %276 = vst.msk [vmem:[#allocation2 + $0x80] sm:$0xff] %vm258_vm0, %v3536_v0  ;;  %278 = vst.msk [vmem:[#allocation2 + $0x90] sm:$0xff] %vm258_vm0, %v3536_v0  ;;  %v443_v16 = vld [vmem:[#allocation2 + $0x2] sm:$0xff]  ;;  %2679 = vmatpush1.bf16.msra.mxu1 %v2678_v22  ;;  %v1639_v52 = vld [vmem:[#allocation5 + $0x48] sm:$0xff] }
  0x8a   : > { %279 = vst.msk [vmem:[#allocation2 + $0x98] sm:$0xff] %vm258_vm0, %v3536_v0  ;;  %281 = vst.msk [vmem:[#allocation2 + $0xa8] sm:$0xff] %vm258_vm0, %v3536_v0  ;;  %v412_v21 = vld [vmem:[#allocation2 + $0x9] sm:$0xff]  ;;  %2681 = vmatprep.subr.bf16.mxu1 %v2680_v28  ;;  %v1636_v50 = vld [vmem:[#allocation5 + $0x30] sm:$0xff] }
  0x8b   : > { %280 = vst.msk [vmem:[#allocation2 + $0xa0] sm:$0x3] %vm261_vm1, %v3536_v0  ;;  %283 = vst.msk [vmem:[#allocation2 + $0xb8] sm:$0x3] %vm261_vm1, %v3536_v0  ;;  %v444_v35 = vld [vmem:[#allocation2 + $0xa] sm:$0xff]  ;;  %v2682_v51 = vpack.c.bf16 %v1636_v50, %v1634_v44  ;;  %v327_v54 = vld [vmem:[%s3742_s13 + $0x68] sm:$0xff] }
  0x8c   : > { %282 = vst.msk [vmem:[#allocation2 + $0xb0] sm:$0xff] %vm258_vm0, %v3536_v0  ;;  %284 = vst.msk [vmem:[#allocation2 + $0xc0] sm:$0xff] %vm258_vm0, %v3536_v0  ;;  %v1641_v53 = vld [vmem:[#allocation5 + $0x58] sm:$0xff]  ;;  %v1638_v56 = vld [vmem:[#allocation5 + $0x40] sm:$0xff] }
  0x8d   : > { %285 = vst.msk [vmem:[#allocation2 + $0xc8] sm:$0xff] %vm258_vm0, %v3536_v0  ;;  %287 = vst.msk [vmem:[#allocation2 + $0xd8] sm:$0xff] %vm258_vm0, %v3536_v0  ;;  %v2684_v55 = vpack.c.bf16 %v1641_v53, %v1639_v52  ;;  %v1640_v57 = vld [vmem:[#allocation5 + $0x50] sm:$0xff]  ;;  %v1643_v58 = vld [vmem:[#allocation5 + $0x68] sm:$0xff]  ;;  %2683 = vmatpush1.bf16.msra.mxu1 %v2682_v51 }
  0x8e   : > { %286 = vst.msk [vmem:[#allocation2 + $0xd0] sm:$0x3] %vm261_vm1, %v3536_v0  ;;  %289 = vst.msk [vmem:[#allocation2 + $0xe8] sm:$0x3] %vm261_vm1, %v3536_v0  ;;  %v1645_v61 = vld [vmem:[#allocation5 + $0x78] sm:$0xff]  ;;  %v330_v14 = vld [vmem:[%s3742_s13 + $0x80] sm:$0xff] }
  0x8f   : > { %288 = vst.msk [vmem:[#allocation2 + $0xe0] sm:$0xff] %vm258_vm0, %v3536_v0  ;;  %290 = vst.msk [vmem:[#allocation2 + $0xf0] sm:$0xff] %vm258_vm0, %v3536_v0  ;;  %2685 = vmatprep.subr.bf16.mxu1 %v2684_v55  ;;  %v1648_v17 = vld [vmem:[#allocation5 + $0x90] sm:$0xff]  ;;  %v1651_v18 = vld [vmem:[#allocation5 + $0xa8] sm:$0xff] }
  0x90   : > { %291 = vst.msk [vmem:[#allocation2 + $0xf8] sm:$0xff] %vm258_vm0, %v3536_v0  ;;  %293 = vst.msk [vmem:[#allocation2 + $0x108] sm:$0xff] %vm258_vm0, %v3536_v0  ;;  %v1653_v19 = vld [vmem:[#allocation5 + $0xb8] sm:$0xff]  ;;  %v1652_v28 = vld [vmem:[#allocation5 + $0xb0] sm:$0xff] }
  0x91   : > { %292 = vst.msk [vmem:[#allocation2 + $0x100] sm:$0x3] %vm261_vm1, %v3536_v0  ;;  %295 = vst.msk [vmem:[#allocation2 + $0x118] sm:$0x3] %vm261_vm1, %v3536_v0  ;;  %v1659_v44 = vld [vmem:[#allocation5 + $0xe8] sm:$0xff]  ;;  %v1660_v55 = vld [vmem:[#allocation5 + $0xf0] sm:$0xff] }
  0x92   : > { %294 = vst.msk [vmem:[#allocation2 + $0x110] sm:$0xff] %vm258_vm0, %v3536_v0  ;;  %296 = vst.msk [vmem:[#allocation2 + $0x120] sm:$0xff] %vm258_vm0, %v3536_v0 }
  0x93   : > { %297 = vst.msk [vmem:[#allocation2 + $0x128] sm:$0xff] %vm258_vm0, %v3536_v0  ;;  %299 = vst.msk [vmem:[#allocation2 + $0x138] sm:$0xff] %vm258_vm0, %v3536_v0 }
  0x94   : > { %298 = vst.msk [vmem:[#allocation2 + $0x130] sm:$0x3] %vm261_vm1, %v3536_v0  ;;  %301 = vst.msk [vmem:[#allocation2 + $0x148] sm:$0x3] %vm261_vm1, %v3536_v0 }
  0x95   : > { %300 = vst.msk [vmem:[#allocation2 + $0x140] sm:$0xff] %vm258_vm0, %v3536_v0  ;;  %302 = vst.msk [vmem:[#allocation2 + $0x150] sm:$0xff] %vm258_vm0, %v3536_v0 }
  0x96   : > { %303 = vst.msk [vmem:[#allocation2 + $0x158] sm:$0xff] %vm258_vm0, %v3536_v0  ;;  %305 = vst.msk [vmem:[#allocation2 + $0x168] sm:$0xff] %vm258_vm0, %v3536_v0 }
  0x97   : > { %304 = vst.msk [vmem:[#allocation2 + $0x160] sm:$0x3] %vm261_vm1, %v3536_v0  ;;  %307 = vst.msk [vmem:[#allocation2 + $0x178] sm:$0x3] %vm261_vm1, %v3536_v0 }
  0x98   : > { %306 = vst.msk [vmem:[#allocation2 + $0x170] sm:$0xff] %vm258_vm0, %v3536_v0  ;;  %308 = vst.msk [vmem:[#allocation2 + $0x180] sm:$0xff] %vm258_vm0, %v3536_v0 }
  0x99   : > { %309 = vst.msk [vmem:[#allocation2 + $0x188] sm:$0xff] %vm258_vm0, %v3536_v0  ;;  %311 = vst.msk [vmem:[#allocation2 + $0x198] sm:$0xff] %vm258_vm0, %v3536_v0 }
  0x9a   : > { %310 = vst.msk [vmem:[#allocation2 + $0x190] sm:$0x3] %vm261_vm1, %v3536_v0  ;;  %313 = vst.msk [vmem:[#allocation2 + $0x1a8] sm:$0x3] %vm261_vm1, %v3536_v0 }
  0x9b   : > { %312 = vst.msk [vmem:[#allocation2 + $0x1a0] sm:$0xff] %vm258_vm0, %v3536_v0  ;;  %347 = vst.msk [vmem:[#allocation2 + $0x19] sm:$0xff] %vm258_vm0, %v314_v1  ;;  %v2686_v1 = vpack.c.bf16 %v1640_v57, %v1638_v56  ;;  %v1663_v56 = vld [vmem:[#allocation5 + $0x108] sm:$0xff]  ;;  %v1665_v57 = vld [vmem:[#allocation5 + $0x118] sm:$0xff] }
  0x9c   : > { %348 = vst.msk [vmem:[#allocation2 + $0x21] sm:$0xff] %vm258_vm0, %v315_v2  ;;  %349 = vst.msk [vmem:[#allocation2 + $0x31] sm:$0xff] %vm258_vm0, %v316_v3  ;;  %v328_v2 = vld [vmem:[%s3742_s13 + $0x70] sm:$0xff]  ;;  %v2688_v3 = vpack.c.bf16 %v1645_v61, %v1643_v58 }
  0x9d   : > { %350 = vst.msk [vmem:[#allocation2 + $0x39] sm:$0xff] %vm258_vm0, %v317_v4  ;;  %351 = vst.msk [vmem:[#allocation2 + $0x49] sm:$0xff] %vm258_vm0, %v318_v5  ;;  %v1642_v4 = vld [vmem:[#allocation5 + $0x60] sm:$0xff]  ;;  %v1644_v5 = vld [vmem:[#allocation5 + $0x70] sm:$0xff]  ;;  %2687 = vmatpush1.bf16.msra.mxu1 %v2686_v1 }
  0x9e   : > { %352 = vst.msk [vmem:[#allocation2 + $0x51] sm:$0xff] %vm258_vm0, %v319_v6  ;;  %353 = vst.msk [vmem:[#allocation2 + $0x61] sm:$0xff] %vm258_vm0, %v320_v7  ;;  %v1647_v6 = vld [vmem:[#allocation5 + $0x88] sm:$0xff]  ;;  %v1649_v7 = vld [vmem:[#allocation5 + $0x98] sm:$0xff]  ;;  %2689 = vmatprep.subr.bf16.mxu1 %v2688_v3 }
  0x9f   : > { %354 = vst.msk [vmem:[#allocation2 + $0x69] sm:$0xff] %vm258_vm0, %v321_v8  ;;  %355 = vst.msk [vmem:[#allocation2 + $0x79] sm:$0xff] %vm258_vm0, %v322_v10  ;;  %v329_v8 = vld [vmem:[%s3742_s13 + $0x78] sm:$0xff]  ;;  %v2692_v15 = vpack.c.bf16 %v1649_v7, %v1647_v6  ;;  %v1662_v3 = vld [vmem:[#allocation5 + $0x100] sm:$0xff] }
  0xa0   : > { %356 = vst.msk [vmem:[#allocation2 + $0x81] sm:$0xff] %vm258_vm0, %v323_v11  ;;  %357 = vst.msk [vmem:[#allocation2 + $0x91] sm:$0xff] %vm258_vm0, %v324_v12  ;;  %v1669_v6 = vld [vmem:[#allocation5 + $0x138] sm:$0xff] }
  0xa1   : > { %358 = vst.msk [vmem:[#allocation2 + $0x99] sm:$0xff] %vm258_vm0, %v325_v13  ;;  %359 = vst.msk [vmem:[#allocation2 + $0xa9] sm:$0xff] %vm258_vm0, %v326_v20  ;;  %v2690_v13 = vpack.c.bf16 %v1644_v5, %v1642_v4  ;;  %v1664_v4 = vld [vmem:[#allocation5 + $0x110] sm:$0xff]  ;;  %v1667_v5 = vld [vmem:[#allocation5 + $0x128] sm:$0xff] }
  0xa2   : > { %v475_v26 = vld [vmem:[#allocation2 + $0x18] sm:$0xff]  ;;  %360 = vst.msk [vmem:[#allocation2 + $0xb1] sm:$0xff] %vm258_vm0, %v327_v54  ;;  %361 = vst.msk [vmem:[#allocation2 + $0xc1] sm:$0xff] %vm258_vm0, %v328_v2  ;;  %v1658_v54 = vld [vmem:[#allocation5 + $0xe0] sm:$0xff]  ;;  %v2708_v2 = vpack.c.bf16 %v1665_v57, %v1663_v56 }
  0xa3   : > { %v539_v25 = vld [vmem:[#allocation2 + $0x1a] sm:$0xff]  ;;  %v3891_v27 = vld [vmem:[#allocation2 + $0x31] sm:$0xff]  ;;  %v3894_v32 = vld [vmem:[#allocation2 + $0x22] sm:$0xff]  ;;  %362 = vst.msk [vmem:[#allocation2 + $0xc9] sm:$0xff] %vm258_vm0, %v329_v8  ;;  %2691 = vmatpush1.bf16.msra.mxu1 %v2690_v13  ;;  %v2706_v1 = vpack.c.bf16 %v1660_v55, %v1658_v54 }
  0xa4   : > { %v2890_v29 = vpack.i.bf16 %v411_v9, %v539_v25  ;;  %v2900_v30 = vpack.i.bf16 %v475_v26, %v3891_v27  ;;  %v572_v31 = vld [vmem:[#allocation2 + $0x30] sm:$0xff]  ;;  %v2905_v34 = vpack.i.bf16 %v412_v21, %v3894_v32  ;;  %v3899_v36 = vld [vmem:[#allocation2 + $0x38] sm:$0xff]  ;;  %v476_v37 = vld [vmem:[#allocation2 + $0x20] sm:$0xff]  ;;  %363 = vst.msk [vmem:[#allocation2 + $0xd9] sm:$0xff] %vm258_vm0, %v330_v14  ;;  %2693 = vmatprep.subr.bf16.mxu1 %v2692_v15 }
  0xa5   : > { %v2895_v33 = vpack.i.bf16 %v443_v16, %v572_v31  ;;  %v3901_v38 = vld [vmem:[#allocation2 + $0x39] sm:$0xff]  ;;  %v2910_v39 = vpack.i.bf16 %v444_v35, %v3899_v36  ;;  %v3911_v43 = vld [vmem:[#allocation2 + $0x48] sm:$0xff]  ;;  %v3931_v62 = vld [vmem:[#allocation2 + $0x50] sm:$0xff]  ;;  %v2710_v15 = vpack.c.bf16 %v1664_v4, %v1662_v3 }
  0xa6   : > { %2891 = vrot.lane.b32.xlu0 %v2890_v29, %s3537_s20  ;;  %2901 = vrot.lane.b32.xlu1 %v2900_v30, %s3538_s21  ;;  %v2915_v40 = vpack.i.bf16 %v476_v37, %v3901_v38  ;;  %v3907_v41 = vld [vmem:[#allocation2 + $0x19] sm:$0xff]  ;;  %v2925_v46 = vpack.i.bf16 %v539_v25, %v3911_v43  ;;  %v3918_v47 = vld [vmem:[#allocation2 + $0x49] sm:$0xff]  ;;  %v3920_v48 = vld [vmem:[#allocation2 + $0x21] sm:$0xff]  ;;  %v2940_v9 = vpack.i.bf16 %v3894_v32, %v3931_v62 }
  0xa7   : > { %v3909_v42 = vld [vmem:[#allocation2 + $0x32] sm:$0xff]  ;;  %v3922_v49 = vld [vmem:[#allocation2 + $0x3a] sm:$0xff]  ;;  %v2930_v59 = vpack.i.bf16 %v572_v31, %v3918_v47  ;;  %v3945_v11 = vld [vmem:[#allocation2 + $0x4a] sm:$0xff]  ;;  %v2696_v25 = vpack.c.bf16 %v1653_v19, %v1651_v18  ;;  %v2712_v18 = vpack.c.bf16 %v1669_v6, %v1667_v5 }
  0xa8   : > { %v2920_v45 = vpack.i.bf16 %v3907_v41, %v3909_v42  ;;  %v2935_v60 = vpack.i.bf16 %v3920_v48, %v3922_v49  ;;  %v3933_v63 = vld [vmem:[#allocation2 + $0x51] sm:$0xff]  ;;  %v3947_v12 = vld [vmem:[#allocation2 + $0x60] sm:$0xff]  ;;  %v2950_v20 = vpack.i.bf16 %v3891_v27, %v3945_v11  ;;  %v1657_v31 = vld [vmem:[#allocation5 + $0xd8] sm:$0xff] }
  0xa9   : > { %v2945_v10 = vpack.i.bf16 %v3899_v36, %v3933_v63  ;;  %v1646_v16 = vld [vmem:[#allocation5 + $0x80] sm:$0xff]  ;;  %v2955_v21 = vpack.i.bf16 %v3909_v42, %v3947_v12  ;;  %v3957_v22 = vld [vmem:[#allocation2 + $0x61] sm:$0xff]  ;;  %v331_v29 = vld [vmem:[%s3742_s13 + $0x88] sm:$0xff] }
  0xaa   : > { %2896 = vrot.lane.b32.xlu0 %v2895_v33, %s3539_s10  ;;  %2906 = vrot.lane.b32.xlu1 %v2905_v34, %s3537_s20  ;;  %v3959_v23 = vld [vmem:[#allocation2 + $0x52] sm:$0xff]  ;;  %v2694_v24 = vpack.c.bf16 %v1648_v17, %v1646_v16  ;;  %364 = vst.msk [vmem:[#allocation2 + $0xe1] sm:$0xff] %vm258_vm0, %v331_v29  ;;  %v2960_v27 = vpack.i.bf16 %v3911_v43, %v3957_v22  ;;  %v3969_v33 = vld [vmem:[#allocation2 + $0x68] sm:$0xff]  ;;  %v1668_v19 = vld [vmem:[#allocation5 + $0x130] sm:$0xff] }
  0xab   : > { %v1650_v26 = vld [vmem:[#allocation5 + $0xa0] sm:$0xff]  ;;  %v1655_v30 = vld [vmem:[#allocation5 + $0xc8] sm:$0xff]  ;;  %v2965_v32 = vpack.i.bf16 %v3901_v38, %v3959_v23  ;;  %v2970_v38 = vpack.i.bf16 %v3922_v49, %v3969_v33  ;;  %v3982_v50 = vld [vmem:[#allocation2 + $0x62] sm:$0xff] }
  0xac   : > { %v3971_v34 = vld [vmem:[#allocation2 + $0x69] sm:$0xff]  ;;  %2695 = vmatpush1.bf16.msra.mxu1 %v2694_v24  ;;  %v2698_v35 = vpack.c.bf16 %v1652_v28, %v1650_v26  ;;  %v2700_v36 = vpack.c.bf16 %v1657_v31, %v1655_v30  ;;  %v3984_v51 = vld [vmem:[#allocation2 + $0x78] sm:$0xff]  ;;  %v2980_v58 = vpack.i.bf16 %v3918_v47, %v3982_v50  ;;  %v4007_v14 = vld [vmem:[#allocation2 + $0x81] sm:$0xff] }
  0xad   : > { %2697 = vmatprep.subr.bf16.mxu1 %v2696_v25  ;;  %v1654_v37 = vld [vmem:[#allocation5 + $0xc0] sm:$0xff]  ;;  %v2975_v43 = vpack.i.bf16 %v3931_v62, %v3971_v34  ;;  %v3994_v61 = vld [vmem:[#allocation2 + $0x79] sm:$0xff]  ;;  %v1697_v7 = vld [vmem:[#allocation5 + $0x218] sm:$0xff]  ;;  %v3005_v28 = vpack.i.bf16 %v3969_v33, %v4007_v14 }
  0xae   : > { %2911 = vrot.lane.b32.xlu0 %v2910_v39, %s3539_s10  ;;  %2916 = vrot.lane.b32.xlu1 %v2915_v40, %s3538_s21  ;;  %v1656_v39 = vld [vmem:[#allocation5 + $0xd0] sm:$0xff]  ;;  %v3996_v62 = vld [vmem:[#allocation2 + $0x6a] sm:$0xff]  ;;  %v1695_v47 = vld [vmem:[#allocation5 + $0x208] sm:$0xff]  ;;  %v2990_v8 = vpack.i.bf16 %v3947_v12, %v3994_v61 }
  0xaf   : > { %v332_v40 = vld [vmem:[%s3742_s13 + $0x90] sm:$0xff]  ;;  %v2702_v52 = vpack.c.bf16 %v1656_v39, %v1654_v37  ;;  %v2740_v13 = vpack.c.bf16 %v1697_v7, %v1695_v47  ;;  %v1666_v16 = vld [vmem:[#allocation5 + $0x120] sm:$0xff]  ;;  %v335_v17 = vld [vmem:[%s3742_s13 + $0xa8] sm:$0xff] }
  0xb0   : > { %365 = vst.msk [vmem:[#allocation2 + $0xf1] sm:$0xff] %vm258_vm0, %v332_v40  ;;  %2699 = vmatpush1.bf16.msra.mxu1 %v2698_v35  ;;  %368 = vst.msk [vmem:[#allocation2 + $0x111] sm:$0xff] %vm258_vm0, %v335_v17  ;;  %v1696_v12 = vld [vmem:[#allocation5 + $0x210] sm:$0xff]  ;;  %v1673_v24 = vld [vmem:[#allocation5 + $0x158] sm:$0xff] }
  0xb1   : > { %2701 = vmatprep.subr.bf16.mxu1 %v2700_v36  ;;  %2741 = vmatprep.subr.bf16.mxu0 %v2740_v13  ;;  %v1699_v25 = vld [vmem:[#allocation5 + $0x228] sm:$0xff]  ;;  %v4019_v30 = vld [vmem:[#allocation2 + $0x90] sm:$0xff]  ;;  %v1701_v31 = vld [vmem:[#allocation5 + $0x238] sm:$0xff] }
  0xb2   : > { %2921 = vrot.lane.b32.xlu0 %v2920_v45, %s3537_s20  ;;  %2926 = vrot.lane.b32.xlu1 %v2925_v46, %s3539_s10  ;;  %v1661_v45 = vld [vmem:[#allocation5 + $0xf8] sm:$0xff]  ;;  %v4017_v29 = vld [vmem:[#allocation2 + $0x7a] sm:$0xff]  ;;  %v2744_v36 = vpack.c.bf16 %v1701_v31, %v1699_v25  ;;  %v1698_v37 = vld [vmem:[#allocation5 + $0x220] sm:$0xff] }
  0xb3   : > { %v333_v46 = vld [vmem:[%s3742_s13 + $0x98] sm:$0xff]  ;;  %v2704_v53 = vpack.c.bf16 %v1661_v45, %v1659_v44  ;;  %v1672_v35 = vld [vmem:[#allocation5 + $0x150] sm:$0xff]  ;;  %v1675_v40 = vld [vmem:[#allocation5 + $0x168] sm:$0xff] }
  0xb4   : > { %366 = vst.msk [vmem:[#allocation2 + $0xf9] sm:$0xff] %vm258_vm0, %v333_v46  ;;  %2703 = vmatpush1.bf16.msra.mxu1 %v2702_v52  ;;  %v1700_v44 = vld [vmem:[#allocation5 + $0x230] sm:$0xff]  ;;  %v1677_v33 = vld [vmem:[#allocation5 + $0x178] sm:$0xff]  ;;  %v338_v46 = vld [vmem:[%s3742_s13 + $0xc0] sm:$0xff]  ;;  %v3010_v52 = vpack.i.bf16 %v3957_v22, %v4017_v29 }
  0xb5   : > { %2705 = vmatprep.subr.bf16.mxu1 %v2704_v53  ;;  %v336_v45 = vld [vmem:[%s3742_s13 + $0xb0] sm:$0xff]  ;;  %v3015_v53 = vpack.i.bf16 %v3982_v50, %v4019_v30  ;;  %371 = vst.msk [vmem:[#allocation2 + $0x139] sm:$0xff] %vm258_vm0, %v338_v46  ;;  %v4033_v54 = vld [vmem:[#allocation2 + $0x91] sm:$0xff]  ;;  %v2720_v57 = vpack.c.bf16 %v1677_v33, %v1675_v40  ;;  %v341_v47 = vld [vmem:[%s3742_s13 + $0xd8] sm:$0xff] }
  0xb6   : > { %2931 = vrot.lane.b32.xlu0 %v2930_v59, %s3538_s21  ;;  %2936 = vrot.lane.b32.xlu1 %v2935_v60, %s3537_s20  ;;  %v2985_v59 = vpack.i.bf16 %v3945_v11, %v3984_v51  ;;  %v334_v60 = vld [vmem:[%s3742_s13 + $0xa0] sm:$0xff]  ;;  %369 = vst.msk [vmem:[#allocation2 + $0x121] sm:$0xff] %vm258_vm0, %v336_v45  ;;  %v4035_v55 = vld [vmem:[#allocation2 + $0x82] sm:$0xff]  ;;  %v339_v22 = vld [vmem:[%s3742_s13 + $0xc8] sm:$0xff] }
  0xb7   : > { %367 = vst.msk [vmem:[#allocation2 + $0x109] sm:$0xff] %vm258_vm0, %v334_v60  ;;  %v1679_v50 = vld [vmem:[#allocation5 + $0x188] sm:$0xff]  ;;  %v1681_v60 = vld [vmem:[#allocation5 + $0x198] sm:$0xff]  ;;  %372 = vst.msk [vmem:[#allocation2 + $0x141] sm:$0xff] %vm258_vm0, %v339_v22  ;;  %v3025_v3 = vpack.i.bf16 %v3971_v34, %v4035_v55 }
  0xb8   : > { %2707 = vmatpush1.bf16.msra.mxu1 %v2706_v1  ;;  %v340_v1 = vld [vmem:[%s3742_s13 + $0xd0] sm:$0xff]  ;;  %v4046_v4 = vld [vmem:[#allocation2 + $0x98] sm:$0xff]  ;;  %v342_v7 = vld [vmem:[%s3742_s13 + $0xe0] sm:$0xff]  ;;  %374 = vst.msk [vmem:[#allocation2 + $0x159] sm:$0xff] %vm258_vm0, %v341_v47 }
  0xb9   : > { %2709 = vmatprep.subr.bf16.mxu1 %v2708_v2  ;;  %v3020_v2 = vpack.i.bf16 %v3984_v51, %v4033_v54  ;;  %373 = vst.msk [vmem:[#allocation2 + $0x151] sm:$0xff] %vm258_vm0, %v340_v1  ;;  %v4049_v5 = vld [vmem:[#allocation2 + $0x99] sm:$0xff]  ;;  %375 = vst.msk [vmem:[#allocation2 + $0x169] sm:$0xff] %vm258_vm0, %v342_v7  ;;  %v1685_v13 = vld [vmem:[#allocation5 + $0x1b8] sm:$0xff] }
  0xba   : > { %2941 = vrot.lane.b32.xlu0 %v2940_v9, %s3539_s10  ;;  %2946 = vrot.lane.b32.xlu1 %v2945_v10, %s3538_s21  ;;  %v2995_v9 = vpack.i.bf16 %v3933_v63, %v3996_v62  ;;  %v4005_v10 = vld [vmem:[#allocation2 + $0x80] sm:$0xff]  ;;  %v1683_v34 = vld [vmem:[#allocation5 + $0x1a8] sm:$0xff]  ;;  %v4066_v17 = vld [vmem:[#allocation2 + $0xa8] sm:$0xff] }
  0xbb   : > { %v3000_v26 = vpack.i.bf16 %v3959_v23, %v4005_v10  ;;  %v1680_v51 = vld [vmem:[#allocation5 + $0x190] sm:$0xff]  ;;  %v1686_v31 = vld [vmem:[#allocation5 + $0x1c0] sm:$0xff]  ;;  %v345_v40 = vld [vmem:[%s3742_s13 + $0xf8] sm:$0xff] }
  0xbc   : > { %2711 = vmatpush1.bf16.msra.mxu1 %v2710_v15  ;;  %v3035_v15 = vpack.i.bf16 %v4005_v10, %v4049_v5  ;;  %v4080_v25 = vld [vmem:[#allocation2 + $0x9a] sm:$0xff]  ;;  %v1690_v45 = vld [vmem:[#allocation5 + $0x1e0] sm:$0xff]  ;;  %378 = vst.msk [vmem:[#allocation2 + $0x189] sm:$0xff] %vm258_vm0, %v345_v40 }
  0xbd   : > { %2713 = vmatprep.subr.bf16.mxu1 %v2712_v18  ;;  %v1692_v33 = vld [vmem:[#allocation5 + $0x1f0] sm:$0xff] }
  0xbe   : > { %2951 = vrot.lane.b32.xlu0 %v2950_v20, %s3537_s20  ;;  %2956 = vrot.lane.b32.xlu1 %v2955_v21, %s3539_s10  ;;  %v1694_v20 = vld [vmem:[#allocation5 + $0x200] sm:$0xff]  ;;  %v1671_v21 = vld [vmem:[#allocation5 + $0x148] sm:$0xff]  ;;  %v2738_v46 = vpack.c.bf16 %v1692_v33, %v1690_v45 }
  0xbf   : > { %v2742_v63 = vpack.c.bf16 %v1696_v12, %v1694_v20  ;;  %v2716_v39 = vpack.c.bf16 %v1673_v24, %v1671_v21  ;;  %v1682_v20 = vld [vmem:[#allocation5 + $0x1a0] sm:$0xff]  ;;  %v1684_v12 = vld [vmem:[#allocation5 + $0x1b0] sm:$0xff]  ;;  %v1689_v21 = vld [vmem:[#allocation5 + $0x1d8] sm:$0xff]  ;;  %v3045_v24 = vpack.i.bf16 %v4017_v29, %v4066_v17 }
  0xc0   : > { %v1691_v29 = vld [vmem:[#allocation5 + $0x1e8] sm:$0xff]  ;;  %v4172_v45 = vld [vmem:[#allocation2 + $0x110] sm:$0xff] }
  0xc1   : > { %2743 = vmatpush1.bf16.msra.mxu0 %v2742_v63  ;;  %v4078_v63 = vld [vmem:[#allocation2 + $0xa9] sm:$0xff]  ;;  %v618_v7 = vld [vmem:[#allocation2 + $0xd9] sm:$0xff]  ;;  %v4174_v33 = vld [vmem:[#allocation2 + $0x111] sm:$0xff] }
  0xc2   : > { %2961 = vrot.lane.b32.xlu0 %v2960_v27, %s3538_s21  ;;  %2966 = vrot.lane.b32.xlu1 %v2965_v32, %s3537_s20  ;;  %v2714_v27 = vpack.c.bf16 %v1668_v19, %v1666_v16  ;;  %v1670_v32 = vld [vmem:[#allocation5 + $0x140] sm:$0xff]  ;;  %v2728_v19 = vpack.c.bf16 %v1685_v13, %v1683_v34  ;;  %v587_v13 = vld [vmem:[#allocation2 + $0xe0] sm:$0xff] }
  0xc3   : > { %2745 = vmatprep.subr.bf16.mxu0 %v2744_v36  ;;  %v2718_v56 = vpack.c.bf16 %v1672_v35, %v1670_v32  ;;  %v4064_v16 = vld [vmem:[#allocation2 + $0x92] sm:$0xff]  ;;  %v344_v32 = vld [vmem:[%s3742_s13 + $0xf0] sm:$0xff]  ;;  %v3050_v35 = vpack.i.bf16 %v4019_v30, %v4078_v63 }
  0xc4   : > { %2715 = vmatpush1.bf16.msra.mxu1 %v2714_v27  ;;  %v3040_v10 = vpack.i.bf16 %v3994_v61, %v4064_v16  ;;  %v1688_v61 = vld [vmem:[#allocation5 + $0x1d0] sm:$0xff]  ;;  %v1693_v27 = vld [vmem:[#allocation5 + $0x1f8] sm:$0xff]  ;;  %377 = vst.msk [vmem:[#allocation2 + $0x181] sm:$0xff] %vm258_vm0, %v344_v32  ;;  %v583_v36 = vld [vmem:[#allocation2 + $0xb0] sm:$0xff] }
  0xc5   : > { %2717 = vmatprep.subr.bf16.mxu1 %v2716_v39  ;;  %v2734_v39 = vpack.c.bf16 %v1688_v61, %v1686_v31  ;;  %v640_v30 = vld [vmem:[#allocation2 + $0x62] sm:$0xff]  ;;  %v650_v32 = vld [vmem:[#allocation2 + $0xda] sm:$0xff] }
  0xc6   : > { %2971 = vrot.lane.b32.xlu0 %v2970_v38, %s3539_s10  ;;  %2976 = vrot.lane.b32.xlu1 %v2975_v43, %s3538_s21  ;;  %v2746_v38 = vpack.c.bf16 %v1700_v44, %v1698_v37  ;;  %v337_v43 = vld [vmem:[%s3742_s13 + $0xb8] sm:$0xff]  ;;  %v4094_v37 = vld [vmem:[#allocation2 + $0xb1] sm:$0xff]  ;;  %v2736_v44 = vpack.c.bf16 %v1693_v27, %v1691_v29 }
  0xc7   : > { %370 = vst.msk [vmem:[#allocation2 + $0x129] sm:$0xff] %vm258_vm0, %v337_v43  ;;  %v584_v43 = vld [vmem:[#allocation2 + $0xc0] sm:$0xff]  ;;  %v557_v29 = vld [vmem:[#allocation2 + $0xf2] sm:$0xff]  ;;  %v4155_v27 = vld [vmem:[#allocation2 + $0x108] sm:$0xff] }
  0xc8   : > { %2747 = vmatpush1.bf16.msra.mxu0 %v2746_v38  ;;  %2719 = vmatpush1.bf16.msra.mxu1 %v2718_v56  ;;  %v3065_v38 = vpack.i.bf16 %v4046_v4, %v4094_v37  ;;  %v616_v56 = vld [vmem:[#allocation2 + $0xc1] sm:$0xff] }
  0xc9   : > { %2721 = vmatprep.subr.bf16.mxu1 %v2720_v57  ;;  %v552_v57 = vld [vmem:[#allocation2 + $0xb2] sm:$0xff] }
  0xca   : > { %2981 = vrot.lane.b32.xlu0 %v2980_v58, %s3537_s20  ;;  %2986 = vrot.lane.b32.xlu1 %v2985_v59, %s3539_s10  ;;  %v1674_v58 = vld [vmem:[#allocation5 + $0x160] sm:$0xff]  ;;  %v1676_v59 = vld [vmem:[#allocation5 + $0x170] sm:$0xff]  ;;  %v3085_v22 = vpack.i.bf16 %v4049_v5, %v552_v57 }
  0xcb   : > { %v2722_v6 = vpack.c.bf16 %v1676_v59, %v1674_v58  ;;  %2640 = vmatmul.mubr.msk.f32.vlgmr.msra.gmra.mrb[0].mxu0 %vm258_vm0, %v3909_v42  ;;  %v3030_v42 = vpack.i.bf16 %v3996_v62, %v4046_v4  ;;  %v1687_v62 = vld [vmem:[#allocation5 + $0x1c8] sm:$0xff]  ;;  %v3080_v59 = vpack.i.bf16 %v4066_v17, %v616_v56 }
  0xcc   : > { %2125 = vmatprep.mubr.f32.mxu0 %v3536_v0  ;;  %v642_v58 = vld [vmem:[#allocation2 + $0x7a] sm:$0xff]  ;;  %v644_v5 = vld [vmem:[#allocation2 + $0x92] sm:$0xff] }
  0xcd   : > { %2723 = vmatpush1.bf16.msra.mxu1 %v2722_v6  ;;  %v586_v4 = vld [vmem:[#allocation2 + $0xd8] sm:$0xff] }
  0xce   : > { %2991 = vrot.lane.b32.xlu0 %v2990_v8, %s3538_s21  ;;  %2996 = vrot.lane.b32.xlu1 %v2995_v9, %s3537_s20  ;;  %v2724_v8 = vpack.c.bf16 %v1681_v60, %v1679_v50  ;;  %v1678_v9 = vld [vmem:[#allocation5 + $0x180] sm:$0xff]  ;;  %v585_v50 = vld [vmem:[#allocation2 + $0xc8] sm:$0xff] }
  0xcf   : > { %v2726_v18 = vpack.c.bf16 %v1680_v51, %v1678_v9  ;;  %2641 = vmatmul.mubr.msk.f32.gmra.mrb[2].mxu0 %vm258_vm0, %v3922_v49  ;;  %v343_v49 = vld [vmem:[%s3742_s13 + $0xe8] sm:$0xff]  ;;  %v643_v60 = vld [vmem:[#allocation2 + $0x82] sm:$0xff]  ;;  %v3090_v1 = vpack.i.bf16 %v4080_v25, %v585_v50  ;;  %v3110_v51 = vpack.i.bf16 %v584_v43, %v618_v7 }
  0xd0   : > { %2725 = vmatprep.subr.bf16.mxu1 %v2724_v8  ;;  %2131 = vmatprep.mubr.f32.mxu0 %v3536_v0  ;;  %376 = vst.msk [vmem:[#allocation2 + $0x171] sm:$0xff] %vm258_vm0, %v343_v49  ;;  %v554_v8 = vld [vmem:[#allocation2 + $0xca] sm:$0xff]  ;;  %v645_v9 = vld [vmem:[#allocation2 + $0x9a] sm:$0xff] }
  0xd1   : > { %2727 = vmatpush1.bf16.msra.mxu1 %v2726_v18  ;;  %v3115_v34 = vpack.i.bf16 %v4094_v37, %v554_v8  ;;  %v555_v18 = vld [vmem:[#allocation2 + $0xda] sm:$0xff] }
  0xd2   : > { %3001 = vrot.lane.b32.xlu0 %v3000_v26, %s3539_s10  ;;  %3006 = vrot.lane.b32.xlu1 %v3005_v28, %s3538_s21  ;;  %v2730_v26 = vpack.c.bf16 %v1684_v12, %v1682_v20  ;;  %v2732_v28 = vpack.c.bf16 %v1689_v21, %v1687_v62  ;;  %v647_v20 = vld [vmem:[#allocation2 + $0xb2] sm:$0xff]  ;;  %v3130_v12 = vpack.i.bf16 %v616_v56, %v555_v18  ;;  %v4164_v37 = vld [vmem:[#allocation2 + $0xfa] sm:$0xff] }
  0xd3   : > { %2642 = vmatmul.mubr.msk.f32.gmra.mrb[4].mxu0 %vm258_vm0, %v3945_v11  ;;  %2729 = vmatprep.subr.bf16.mxu1 %v2728_v19  ;;  %v3055_v11 = vpack.i.bf16 %v4007_v14, %v4080_v25  ;;  %v3060_v14 = vpack.i.bf16 %v4035_v55, %v583_v36  ;;  %v3075_v55 = vpack.i.bf16 %v4064_v16, %v584_v43  ;;  %v588_v19 = vld [vmem:[#allocation2 + $0xf0] sm:$0xff]  ;;  %v589_v25 = vld [vmem:[#allocation2 + $0xf8] sm:$0xff]  ;;  %v4184_v43 = vld [vmem:[#allocation2 + $0x120] sm:$0xff] }
  0xd4   : > { %2137 = vmatprep.mubr.f32.mxu0 %v3536_v0  ;;  %v3120_v16 = vpack.i.bf16 %v552_v57, %v587_v13  ;;  %v4141_v21 = vld [vmem:[#allocation2 + $0xf1] sm:$0xff]  ;;  %v3150_v31 = vpack.i.bf16 %v554_v8, %v589_v25 }
  0xd5   : > { %2731 = vmatpush1.bf16.msra.mxu1 %v2730_v26  ;;  %v3140_v49 = vpack.i.bf16 %v586_v4, %v4141_v21  ;;  %v4148_v26 = vld [vmem:[#allocation2 + $0xf9] sm:$0xff] }
  0xd6   : > { %3011 = vrot.lane.b32.xlu0 %v3010_v52, %s3537_s20  ;;  %3016 = vrot.lane.b32.xlu1 %v3015_v53, %s3539_s10  ;;  %v641_v52 = vld [vmem:[#allocation2 + $0x6a] sm:$0xff]  ;;  %v3155_v61 = vpack.i.bf16 %v587_v13, %v4148_v26 }
  0xd7   : > { %2643 = vmatmul.mubr.msk.f32.gmra.mrb[6].mxu0 %vm258_vm0, %v3959_v23  ;;  %2733 = vmatprep.subr.bf16.mxu1 %v2732_v28  ;;  %v551_v23 = vld [vmem:[#allocation2 + $0xaa] sm:$0xff] }
  0xd8   : > { %2143 = vmatprep.mubr.f32.mxu0 %v3536_v0  ;;  %v3070_v53 = vpack.i.bf16 %v4033_v54, %v551_v23  ;;  %v617_v54 = vld [vmem:[#allocation2 + $0xc9] sm:$0xff]  ;;  %v3105_v47 = vpack.i.bf16 %v551_v23, %v586_v4 }
  0xd9   : > { %2735 = vmatpush1.bf16.msra.mxu1 %v2734_v39  ;;  %v649_v28 = vld [vmem:[#allocation2 + $0xca] sm:$0xff]  ;;  %v651_v39 = vld [vmem:[#allocation2 + $0xe2] sm:$0xff] }
  0xda   : > { %3021 = vrot.lane.b32.xlu0 %v3020_v2, %s3538_s21  ;;  %3026 = vrot.lane.b32.xlu1 %v3025_v3, %s3537_s20  ;;  %v3095_v2 = vpack.i.bf16 %v583_v36, %v617_v54  ;;  %v553_v3 = vld [vmem:[#allocation2 + $0xc2] sm:$0xff]  ;;  %v4182_v23 = vld [vmem:[#allocation2 + $0x10a] sm:$0xff] }
  0xdb   : > { %2644 = vmatmul.mubr.msk.f32.gmra.mrb[8].mxu0 %vm258_vm0, %v640_v30  ;;  %2737 = vmatprep.subr.bf16.mxu1 %v2736_v44  ;;  %v3100_v6 = vpack.i.bf16 %v4078_v63, %v553_v3  ;;  %v3135_v62 = vpack.i.bf16 %v553_v3, %v588_v19  ;;  %v4162_v36 = vld [vmem:[#allocation2 + $0x109] sm:$0xff]  ;;  %v652_v30 = vld [vmem:[#allocation2 + $0xf2] sm:$0xff] }
  0xdc   : > { %2149 = vmatprep.mubr.f32.mxu0 %v3536_v0  ;;  %v3170_v40 = vpack.i.bf16 %v588_v19, %v4162_v36  ;;  %v4215_v19 = vld [vmem:[#allocation2 + $0x129] sm:$0xff] }
  0xdd   : > { %2739 = vmatpush1.bf16.msra.mxu1 %v2738_v46 }
  0xde   : > { %3031 = vrot.lane.b32.xlu0 %v3030_v42, %s3539_s10  ;;  %3036 = vrot.lane.b32.xlu1 %v3035_v15, %s3538_s21  ;;  %v619_v42 = vld [vmem:[#allocation2 + $0xe1] sm:$0xff]  ;;  %v646_v15 = vld [vmem:[#allocation2 + $0xaa] sm:$0xff] }
  0xdf   : > { %2645 = vmatmul.mubr.msk.f32.gmra.mrb[10].mxu0 %vm258_vm0, %v641_v52  ;;  %v3125_v17 = vpack.i.bf16 %v585_v50, %v619_v42  ;;  %v3175_v44 = vpack.i.bf16 %v619_v42, %v4164_v37  ;;  %v4210_v42 = vld [vmem:[#allocation2 + $0x128] sm:$0xff] }
  0xe0   : > { %2155 = vmatprep.mubr.f32.mxu0 %v3536_v0 }
  0xe2   : > { %3041 = vrot.lane.b32.xlu0 %v3040_v10, %s3537_s20  ;;  %3046 = vrot.lane.b32.xlu1 %v3045_v24, %s3539_s10  ;;  %v556_v10 = vld [vmem:[#allocation2 + $0xe2] sm:$0xff] }
  0xe3   : > { %2646 = vmatmul.mubr.msk.f32.gmra.mrb[12].mxu0 %vm258_vm0, %v642_v58  ;;  %v648_v24 = vld [vmem:[#allocation2 + $0xc2] sm:$0xff]  ;;  %v3145_v63 = vpack.i.bf16 %v617_v54, %v556_v10  ;;  %v3190_v58 = vpack.i.bf16 %v4141_v21, %v4182_v23 }
  0xe4   : > { %2161 = vmatprep.mubr.f32.mxu0 %v3536_v0 }
  0xe6   : > { %3051 = vrot.lane.b32.xlu0 %v3050_v35, %s3538_s21  ;;  %3056 = vrot.lane.b32.xlu1 %v3055_v11, %s3537_s20  ;;  %v3160_v35 = vpack.i.bf16 %v618_v7, %v557_v29  ;;  %v3165_v11 = vpack.i.bf16 %v555_v18, %v4155_v27 }
  0xe7   : > { %2647 = vmatmul.mubr.msk.f32.gmra.mrb[14].mxu0 %vm258_vm0, %v643_v60 }
  0xe8   : > { %2167 = vmatprep.mubr.f32.mxu0 %v3536_v0 }
  0xea   : > { %3061 = vrot.lane.b32.xlu0 %v3060_v14, %s3539_s10  ;;  %3066 = vrot.lane.b32.xlu1 %v3065_v38, %s3538_s21  ;;  %v3180_v14 = vpack.i.bf16 %v556_v10, %v4172_v45  ;;  %v3185_v38 = vpack.i.bf16 %v589_v25, %v4174_v33 }
  0xeb   : > { %2648 = vmatmul.mubr.msk.f32.gmra.mrb[16].mxu0 %vm258_vm0, %v644_v5 }
  0xec   : > { %2173 = vmatprep.mubr.f32.mxu0 %v3536_v0 }
  0xee   : > { %3071 = vrot.lane.b32.xlu0 %v3070_v53, %s3537_s20  ;;  %3076 = vrot.lane.b32.xlu1 %v3075_v55, %s3539_s10  ;;  %v653_v53 = vld [vmem:[#allocation2 + $0xfa] sm:$0xff] }
  0xef   : > { %2649 = vmatmul.mubr.msk.f32.gmra.mrb[18].mxu0 %vm258_vm0, %v645_v9  ;;  %v4188_v55 = vld [vmem:[#allocation2 + $0x121] sm:$0xff] }
  0xf0   : > { %2179 = vmatprep.mubr.f32.mxu0 %v3536_v0  ;;  %v3200_v60 = vpack.i.bf16 %v4155_v27, %v4188_v55 }
  0xf2   : > { %3081 = vrot.lane.b32.xlu0 %v3080_v59, %s3538_s21  ;;  %3086 = vrot.lane.b32.xlu1 %v3085_v22, %s3537_s20  ;;  %v3195_v59 = vpack.i.bf16 %v557_v29, %v4184_v43  ;;  %v379_v22 = vld [vmem:[#allocation2] sm:$0xff] }
  0xf3   : > { %2650 = vmatmul.mubr.msk.f32.gmra.mrb[20].mxu0 %vm258_vm0, %v646_v15  ;;  %v380_v15 = vld [vmem:[#allocation2 + $0x8] sm:$0xff] }
  0xf4   : > { %2185 = vmatprep.mubr.f32.mxu0 %v3536_v0 }
  0xf6   : > { %3091 = vrot.lane.b32.xlu0 %v3090_v1, %s3539_s10  ;;  %3096 = vrot.lane.b32.xlu1 %v3095_v2, %s3538_s21  ;;  %v4198_v1 = vld [vmem:[#allocation2 + $0x112] sm:$0xff]  ;;  %v654_v2 = vld [vmem:[#allocation2 + $0x10a] sm:$0xff] }
  0xf7   : > { %2651 = vmatmul.mubr.msk.f32.gmra.mrb[22].mxu0 %vm258_vm0, %v647_v20  ;;  %v3205_v13 = vpack.i.bf16 %v4148_v26, %v4198_v1  ;;  %v655_v20 = vld [vmem:[#allocation2 + $0x112] sm:$0xff] }
  0xf8   : > { %2191 = vmatprep.mubr.f32.mxu0 %v3536_v0 }
  0xfa   : > { %3101 = vrot.lane.b32.xlu0 %v3100_v6, %s3537_s20  ;;  %3106 = vrot.lane.b32.xlu1 %v3105_v47, %s3539_s10 }
  0xfb   : > { %2652 = vmatmul.mubr.msk.f32.gmra.mrb[24].mxu0 %vm258_vm0, %v648_v24 }
  0xfc   : > { %2197 = vmatprep.mubr.f32.mxu0 %v3536_v0 }
  0xfe   : > { %3111 = vrot.lane.b32.xlu0 %v3110_v51, %s3538_s21  ;;  %3116 = vrot.lane.b32.xlu1 %v3115_v34, %s3537_s20 }
  0xff   : > { %2653 = vmatmul.mubr.msk.f32.gmra.mrb[26].mxu0 %vm258_vm0, %v649_v28  ;;  %v3215_v28 = vpack.i.bf16 %v4172_v45, %v4215_v19 }
 0x100   : > { %2203 = vmatprep.mubr.f32.mxu0 %v3536_v0 }
 0x102   : > { %3121 = vrot.lane.b32.xlu0 %v3120_v16, %s3539_s10  ;;  %3126 = vrot.lane.b32.xlu1 %v3125_v17, %s3538_s21 }
 0x103   : > { %2654 = vmatmul.mubr.msk.f32.gmra.mrb[28].mxu0 %vm258_vm0, %v650_v32 }
 0x104   : > { %2209 = vmatprep.mubr.f32.mxu0 %v3536_v0 }
 0x106   : > { %3131 = vrot.lane.b32.xlu0 %v3130_v12, %s3537_s20  ;;  %3136 = vrot.lane.b32.xlu1 %v3135_v62, %s3539_s10 }
 0x107   : > { %2655 = vmatmul.mubr.msk.f32.gmra.mrb[30].mxu0 %vm258_vm0, %v651_v39 }
 0x108   : > { %2215 = vmatprep.mubr.f32.mxu0 %v3536_v0 }
 0x10a   : > { %3141 = vrot.lane.b32.xlu0 %v3140_v49, %s3538_s21  ;;  %3146 = vrot.lane.b32.xlu1 %v3145_v63, %s3537_s20  ;;  %v3210_v49 = vpack.i.bf16 %v4164_v37, %v4210_v42  ;;  %v656_v37 = vld [vmem:[#allocation2 + $0x122] sm:$0xff] }
 0x10b   : > { %2656 = vmatmul.mubr.msk.f32.gmra.mrb[32].mxu0 %vm258_vm0, %v652_v30 }
 0x10c   : > { %2221 = vmatprep.mubr.f32.mxu0 %v3536_v0 }
 0x10e   : > { %3151 = vrot.lane.b32.xlu0 %v3150_v31, %s3539_s10  ;;  %3156 = vrot.lane.b32.xlu1 %v3155_v61, %s3538_s21  ;;  %v4229_v31 = vld [vmem:[#allocation2 + $0x122] sm:$0xff]  ;;  %v509_v61 = vld [vmem:[#allocation2 + $0x31] sm:$0xff] }
 0x10f   : > { %2657 = vmatmul.mubr.msk.f32.gmra.mrb[34].mxu0 %vm258_vm0, %v653_v53  ;;  %v3220_v30 = vpack.i.bf16 %v4162_v36, %v4229_v31 }
 0x110   : > { %2227 = vmatprep.mubr.f32.mxu0 %v3536_v0 }
 0x112   : > { %3161 = vrot.lane.b32.xlu0 %v3160_v35, %s3537_s20  ;;  %3166 = vrot.lane.b32.xlu1 %v3165_v11, %s3539_s10  ;;  %v4234_v35 = vld [vmem:[#allocation2 + $0x138] sm:$0xff] }
 0x113   : > { %2658 = vmatmul.mubr.msk.f32.gmra.mrb[36].mxu0 %vm258_vm0, %v654_v2  ;;  %v381_v11 = vld [vmem:[#allocation2 + $0x18] sm:$0xff] }
 0x114   : > { %2233 = vmatprep.mubr.f32.mxu0 %v3536_v0 }
 0x116   : > { %3171 = vrot.lane.b32.xlu0 %v3170_v40, %s3538_s21  ;;  %3176 = vrot.lane.b32.xlu1 %v3175_v44, %s3537_s20 }
 0x117   : > { %2659 = vmatmul.mubr.msk.f32.gmra.mrb[38].mxu0 %vm258_vm0, %v655_v20  ;;  %v4277_v20 = vld [vmem:[#allocation2 + $0x13a] sm:$0xff] }
 0x118   : > { %v2892_v46 = vpop.permute.xlu0 %2891  ;;  %v2902_v52 = vpop.permute.xlu1 %2901  ;;  %2239 = vmatprep.mubr.f32.mxu0 %v3536_v0 }
 0x119   : > { %v2894_v56 = vunpack.i.h.bf16 %v2892_v46  ;;  %v2893_v57 = vunpack.i.l.bf16 %v2892_v46  ;;  %v2904_v3 = vunpack.i.h.bf16 %v2902_v52  ;;  %v2903_v4 = vunpack.i.l.bf16 %v2902_v52 }
 0x11a   : > { %3181 = vrot.lane.b32.xlu0 %v3180_v14, %s3539_s10  ;;  %3186 = vrot.lane.b32.xlu1 %v3185_v38, %s3538_s21  ;;  %v4240_v14 = vld [vmem:[#allocation2 + $0x139] sm:$0xff]  ;;  %v3225_v38 = vpack.i.bf16 %v4182_v23, %v4234_v35 }
 0x11b   : > { %v1534_v8 = vsel %vm258_vm0, %v3907_v41, %v2893_v57  ;;  %v1436_v9 = vsel %vm258_vm0, %v379_v22, %v2894_v56  ;;  %2660 = vmatmul.mubr.msk.f32.gmra.mrb[40].mxu0 %vm258_vm0, %v656_v37  ;;  %v4248_v57 = vld [vmem:[#allocation2 + $0x12a] sm:$0xff] }
 0x11c   : > { %v2897_v50 = vpop.permute.xlu0 %2896  ;;  %v2907_v54 = vpop.permute.xlu1 %2906  ;;  %2245 = vmatprep.mubr.f32.mxu0 %v3536_v0  ;;  %v657_v22 = vld [vmem:[#allocation2 + $0x12a] sm:$0xff] }
 0x11d   : > { %v2899_v5 = vunpack.i.h.bf16 %v2897_v50  ;;  %v2898_v6 = vunpack.i.l.bf16 %v2897_v50  ;;  %v2909_v47 = vunpack.i.h.bf16 %v2907_v54  ;;  %v2908_v7 = vunpack.i.l.bf16 %v2907_v54 }
 0x11e   : > { %3191 = vrot.lane.b32.xlu0 %v3190_v58, %s3537_s20  ;;  %3196 = vrot.lane.b32.xlu1 %v3195_v59, %s3539_s10  ;;  %v3230_v59 = vpack.i.bf16 %v4184_v43, %v4240_v14  ;;  %v4261_v43 = vld [vmem:[#allocation2 + $0x140] sm:$0xff] }
 0x11f   : > { %v1566_v51 = vsel %vm1468_vm2, %v1534_v8, %v2898_v6  ;;  %v1469_v34 = vsel %vm1468_vm2, %v1436_v9, %v2899_v5  ;;  %v1535_v24 = vsel %vm258_vm0, %v3920_v48, %v2908_v7  ;;  %v1437_v63 = vsel %vm258_vm0, %v380_v15, %v2909_v47  ;;  %v510_v5 = vld [vmem:[#allocation2 + $0x39] sm:$0xff]  ;;  %v4263_v8 = vld [vmem:[#allocation2 + $0x141] sm:$0xff]  ;;  %2661 = vmatmul.mubr.msk.f32.gmra.mrb[42].mxu0 %vm258_vm0, %v657_v22 }
 0x120   : > { %v2912_v16 = vpop.permute.xlu0 %2911  ;;  %v2917_v17 = vpop.permute.xlu1 %2916  ;;  %v1598_v18 = vsel %vm1501_vm3, %v1566_v51, %v2903_v4  ;;  %v1502_v41 = vsel %vm1501_vm3, %v1469_v34, %v2904_v3  ;;  %v3235_v4 = vpack.i.bf16 %v4174_v33, %v4248_v57  ;;  %v382_v6 = vld [vmem:[#allocation2 + $0x20] sm:$0xff]  ;;  %2251 = vmatprep.mubr.f32.mxu0 %v3536_v0  ;;  %v3240_v15 = vpack.i.bf16 %v4198_v1, %v4261_v43  ;;  %v4281_v1 = vld [vmem:[#allocation2 + $0x150] sm:$0xff] }
 0x121   : > { %v2914_v12 = vunpack.i.h.bf16 %v2912_v16  ;;  %v2913_v62 = vunpack.i.l.bf16 %v2912_v16  ;;  %v2919_v21 = vunpack.i.h.bf16 %v2917_v17  ;;  %v2918_v10 = vunpack.i.l.bf16 %v2917_v17  ;;  %1862 = vmatprep.mubr.f32.mxu1 %v1598_v18  ;;  %v4315_v22 = vld [vmem:[#allocation2 + $0x159] sm:$0xff] }
 0x122   : > { %3201 = vrot.lane.b32.xlu0 %v3200_v60, %s3538_s21  ;;  %1863 = vmatmul.mubr.f32.vlgmr.msra.gmra.mrb[0].mxu1 %v1502_v41  ;;  %v3245_v41 = vpack.i.bf16 %v4210_v42, %v4263_v8 }
 0x123   : > { %3206 = vrot.lane.b32.xlu1 %v3205_v13, %s3537_s20  ;;  %v1567_v25 = vsel %vm1468_vm2, %v1535_v24, %v2913_v62  ;;  %v1470_v26 = vsel %vm1468_vm2, %v1437_v63, %v2914_v12  ;;  %v511_v24 = vld [vmem:[#allocation2 + $0x49] sm:$0xff]  ;;  %2662 = vmatmul.mubr.msk.f32.gmra.mrb[44].mxu0 %vm258_vm0, %v4277_v20 }
 0x124   : > { %v2922_v48 = vpop.permute.xlu0 %2921  ;;  %v2927_v29 = vpop.permute.xlu1 %2926  ;;  %v1599_v27 = vsel %vm1501_vm3, %v1567_v25, %v2918_v10  ;;  %v1503_v32 = vsel %vm1501_vm3, %v1470_v26, %v2919_v21  ;;  %2257 = vmatprep.mubr.f32.mxu0 %v3536_v0 }
 0x125   : > { %v2924_v39 = vunpack.i.h.bf16 %v2922_v48  ;;  %v2923_v40 = vunpack.i.l.bf16 %v2922_v48  ;;  %1868 = vmatprep.mubr.f32.mxu1 %v1599_v27  ;;  %v2929_v44 = vunpack.i.h.bf16 %v2927_v29  ;;  %v2928_v45 = vunpack.i.l.bf16 %v2927_v29 }
 0x126   : > { %3211 = vrot.lane.b32.xlu0 %v3210_v49, %s3539_s10  ;;  %1869 = vmatmul.mubr.f32.gmra.mrb[2].mxu1 %v1503_v32  ;;  %v383_v49 = vld [vmem:[#allocation2 + $0x30] sm:$0xff]  ;;  %v3255_v48 = vpack.i.bf16 %v4229_v31, %v4281_v1  ;;  %v4296_v32 = vld [vmem:[#allocation2 + $0x142] sm:$0xff] }
 0x127   : > { %3216 = vrot.lane.b32.xlu1 %v3215_v28, %s3538_s21  ;;  %v1536_v46 = vsel %vm258_vm0, %v509_v61, %v2923_v40  ;;  %v1438_v52 = vsel %vm258_vm0, %v381_v11, %v2924_v39  ;;  %v3250_v28 = vpack.i.bf16 %v4188_v55, %v4277_v20  ;;  %v4289_v61 = vld [vmem:[#allocation2 + $0x151] sm:$0xff]  ;;  %2663 = vmatmul.mubr.msk.f32.gmra.mrb[46].mxu0 %vm258_vm0, %v4296_v32 }
 0x128   : > { %v2932_v53 = vpop.permute.xlu0 %2931  ;;  %v2937_v56 = vpop.permute.xlu1 %2936  ;;  %v1568_v54 = vsel %vm1468_vm2, %v1536_v46, %v2928_v45  ;;  %v1471_v60 = vsel %vm1468_vm2, %v1438_v52, %v2929_v44  ;;  %v3260_v40 = vpack.i.bf16 %v4234_v35, %v4289_v61  ;;  %2263 = vmatprep.mubr.f32.mxu0 %v3536_v0  ;;  %v3265_v35 = vpack.i.bf16 %v4215_v19, %v4296_v32 }
 0x129   : > { %v2934_v36 = vunpack.i.h.bf16 %v2932_v53  ;;  %v2933_v58 = vunpack.i.l.bf16 %v2932_v53  ;;  %v2939_v50 = vunpack.i.h.bf16 %v2937_v56  ;;  %v2938_v23 = vunpack.i.l.bf16 %v2937_v56  ;;  %v4311_v53 = vld [vmem:[#allocation2 + $0x158] sm:$0xff] }
 0x12a   : > { %3221 = vrot.lane.b32.xlu0 %v3220_v30, %s3537_s20  ;;  %v384_v56 = vld [vmem:[#allocation2 + $0x38] sm:$0xff] }
 0x12b   : > { %3226 = vrot.lane.b32.xlu1 %v3225_v38, %s3539_s10  ;;  %v1600_v2 = vsel %vm1501_vm3, %v1568_v54, %v2933_v58  ;;  %v1504_v3 = vsel %vm1501_vm3, %v1471_v60, %v2934_v36  ;;  %v1537_v33 = vsel %vm258_vm0, %v510_v5, %v2938_v23  ;;  %v1439_v16 = vsel %vm258_vm0, %v382_v6, %v2939_v50  ;;  %v512_v38 = vld [vmem:[#allocation2 + $0x51] sm:$0xff] }
 0x12c   : > { %v2942_v47 = vpop.permute.xlu0 %2941  ;;  %1874 = vmatprep.mubr.f32.mxu1 %v1600_v2  ;;  %v2947_v7 = vpop.permute.xlu1 %2946  ;;  %v4313_v36 = vld [vmem:[#allocation2 + $0x152] sm:$0xff]  ;;  %v3270_v2 = vpack.i.bf16 %v4248_v57, %v4311_v53  ;;  %v3275_v6 = vpack.i.bf16 %v4261_v43, %v4315_v22  ;;  %v4334_v57 = vld [vmem:[#allocation2 + $0x168] sm:$0xff] }
 0x12d   : > { %v2944_v9 = vunpack.i.h.bf16 %v2942_v47  ;;  %v2943_v51 = vunpack.i.l.bf16 %v2942_v47  ;;  %v2949_v34 = vunpack.i.h.bf16 %v2947_v7  ;;  %v2948_v13 = vunpack.i.l.bf16 %v2947_v7  ;;  %1875 = vmatmul.mubr.f32.gmra.mrb[4].mxu1 %v1504_v3  ;;  %2664 = vmatmul.mubr.msk.f32.gmra.mrb[48].mxu0 %vm258_vm0, %v4313_v36  ;;  %v4330_v47 = vld [vmem:[#allocation2 + $0x15a] sm:$0xff] }
 0x12e   : > { %3231 = vrot.lane.b32.xlu0 %v3230_v59, %s3538_s21  ;;  %2269 = vmatprep.mubr.f32.mxu0 %v3536_v0 }
 0x12f   : > { %3236 = vrot.lane.b32.xlu1 %v3235_v4, %s3537_s20  ;;  %v1569_v17 = vsel %vm1468_vm2, %v1537_v33, %v2943_v51  ;;  %v1472_v18 = vsel %vm1468_vm2, %v1439_v16, %v2944_v9  ;;  %v385_v33 = vld [vmem:[#allocation2 + $0x48] sm:$0xff] }
 0x130   : > { %v2952_v12 = vpop.permute.xlu0 %2951  ;;  %v2957_v62 = vpop.permute.xlu1 %2956  ;;  %v1601_v21 = vsel %vm1501_vm3, %v1569_v17, %v2948_v13  ;;  %v1505_v10 = vsel %vm1501_vm3, %v1472_v18, %v2949_v34  ;;  %v513_v13 = vld [vmem:[#allocation2 + $0x61] sm:$0xff]  ;;  %v3280_v18 = vpack.i.bf16 %v4240_v14, %v4313_v36 }
 0x131   : > { %v2954_v63 = vunpack.i.h.bf16 %v2952_v12  ;;  %v2953_v25 = vunpack.i.l.bf16 %v2952_v12  ;;  %1880 = vmatprep.mubr.f32.mxu1 %v1601_v21  ;;  %v2959_v42 = vunpack.i.h.bf16 %v2957_v62  ;;  %v2958_v26 = vunpack.i.l.bf16 %v2957_v62  ;;  %2665 = vmatmul.mubr.msk.f32.gmra.mrb[50].mxu0 %vm258_vm0, %v4330_v47 }
 0x132   : > { %3241 = vrot.lane.b32.xlu0 %v3240_v15, %s3539_s10  ;;  %1881 = vmatmul.mubr.f32.gmra.mrb[6].mxu1 %v1505_v10  ;;  %v3285_v12 = vpack.i.bf16 %v4277_v20, %v4334_v57  ;;  %v4349_v10 = vld [vmem:[#allocation2 + $0x16a] sm:$0xff] }
 0x133   : > { %3246 = vrot.lane.b32.xlu1 %v3245_v41, %s3538_s21  ;;  %v1538_v29 = vsel %vm258_vm0, %v511_v24, %v2953_v25  ;;  %v1440_v27 = vsel %vm258_vm0, %v383_v49, %v2954_v63  ;;  %2275 = vmatprep.mubr.f32.mxu0 %v3536_v0  ;;  %v4342_v41 = vld [vmem:[#allocation2 + $0x169] sm:$0xff] }
 0x134   : > { %v2962_v11 = vpop.permute.xlu0 %2961  ;;  %v2967_v37 = vpop.permute.xlu1 %2966  ;;  %v1570_v45 = vsel %vm1468_vm2, %v1538_v29, %v2958_v26  ;;  %v1473_v30 = vsel %vm1468_vm2, %v1440_v27, %v2959_v42  ;;  %v3290_v25 = vpack.i.bf16 %v4281_v1, %v4342_v41  ;;  %v3295_v1 = vpack.i.bf16 %v4263_v8, %v4330_v47 }
 0x135   : > { %v2964_v39 = vunpack.i.h.bf16 %v2962_v11  ;;  %v2963_v55 = vunpack.i.l.bf16 %v2962_v11  ;;  %v2969_v44 = vunpack.i.h.bf16 %v2967_v37  ;;  %v2968_v31 = vunpack.i.l.bf16 %v2967_v37  ;;  %2666 = vmatmul.mubr.msk.f32.gmra.mrb[52].mxu0 %vm258_vm0, %v4349_v10  ;;  %v4364_v11 = vld [vmem:[#allocation2 + $0x170] sm:$0xff] }
 0x136   : > { %3251 = vrot.lane.b32.xlu0 %v3250_v28, %s3537_s20  ;;  %2281 = vmatprep.mubr.f32.mxu0 %v3536_v0  ;;  %v386_v37 = vld [vmem:[#allocation2 + $0x50] sm:$0xff] }
 0x137   : > { %3256 = vrot.lane.b32.xlu1 %v3255_v48, %s3539_s10  ;;  %v1602_v46 = vsel %vm1501_vm3, %v1570_v45, %v2963_v55  ;;  %v1506_v52 = vsel %vm1501_vm3, %v1473_v30, %v2964_v39  ;;  %v1539_v19 = vsel %vm258_vm0, %v512_v38, %v2968_v31  ;;  %v1441_v3 = vsel %vm258_vm0, %v384_v56, %v2969_v44  ;;  %v514_v48 = vld [vmem:[#allocation2 + $0x69] sm:$0xff]  ;;  %v4366_v39 = vld [vmem:[#allocation2 + $0x172] sm:$0xff] }
 0x138   : > { %v2972_v58 = vpop.permute.xlu0 %2971  ;;  %1886 = vmatprep.mubr.f32.mxu1 %v1602_v46  ;;  %v2977_v59 = vpop.permute.xlu1 %2976  ;;  %v4368_v44 = vld [vmem:[#allocation2 + $0x171] sm:$0xff]  ;;  %v3300_v46 = vpack.i.bf16 %v4296_v32, %v4364_v11  ;;  %v4387_v32 = vld [vmem:[#allocation2 + $0x180] sm:$0xff] }
 0x139   : > { %v2974_v50 = vunpack.i.h.bf16 %v2972_v58  ;;  %v2973_v23 = vunpack.i.l.bf16 %v2972_v58  ;;  %v2979_v54 = vunpack.i.h.bf16 %v2977_v59  ;;  %v2978_v60 = vunpack.i.l.bf16 %v2977_v59  ;;  %1887 = vmatmul.mubr.f32.gmra.mrb[8].mxu1 %v1506_v52  ;;  %2667 = vmatmul.mubr.msk.f32.gmra.mrb[54].mxu0 %vm258_vm0, %v4366_v39  ;;  %v4383_v59 = vld [vmem:[#allocation2 + $0x182] sm:$0xff] }
 0x13a   : > { %3261 = vrot.lane.b32.xlu0 %v3260_v40, %s3538_s21  ;;  %2287 = vmatprep.mubr.f32.mxu0 %v3536_v0  ;;  %v3305_v58 = vpack.i.bf16 %v4311_v53, %v4368_v44 }
 0x13b   : > { %3266 = vrot.lane.b32.xlu1 %v3265_v35, %s3537_s20  ;;  %v1571_v4 = vsel %vm1468_vm2, %v1539_v19, %v2973_v23  ;;  %v1474_v5 = vsel %vm1468_vm2, %v1441_v3, %v2974_v50  ;;  %v515_v19 = vld [vmem:[#allocation2 + $0x79] sm:$0xff] }
 0x13c   : > { %v2982_v7 = vpop.permute.xlu0 %2981  ;;  %v2987_v9 = vpop.permute.xlu1 %2986  ;;  %v1603_v51 = vsel %vm1501_vm3, %v1571_v4, %v2978_v60  ;;  %v1507_v34 = vsel %vm1501_vm3, %v1474_v5, %v2979_v54 }
 0x13d   : > { %v2984_v15 = vunpack.i.h.bf16 %v2982_v7  ;;  %v2983_v16 = vunpack.i.l.bf16 %v2982_v7  ;;  %1892 = vmatprep.mubr.f32.mxu1 %v1603_v51  ;;  %v2989_v43 = vunpack.i.h.bf16 %v2987_v9  ;;  %v2988_v17 = vunpack.i.l.bf16 %v2987_v9  ;;  %2668 = vmatmul.mubr.msk.f32.gmra.mrb[56].mxu0 %vm258_vm0, %v4383_v59  ;;  %v4395_v7 = vld [vmem:[#allocation2 + $0x181] sm:$0xff] }
 0x13e   : > { %3271 = vrot.lane.b32.xlu0 %v3270_v2, %s3539_s10  ;;  %1893 = vmatmul.mubr.f32.gmra.mrb[10].mxu1 %v1507_v34  ;;  %v387_v2 = vld [vmem:[#allocation2 + $0x60] sm:$0xff]  ;;  %v3315_v9 = vpack.i.bf16 %v4313_v36, %v4387_v32 }
 0x13f   : > { %3276 = vrot.lane.b32.xlu1 %v3275_v6, %s3538_s21  ;;  %v1540_v62 = vsel %vm258_vm0, %v513_v13, %v2983_v16  ;;  %v1442_v21 = vsel %vm258_vm0, %v385_v33, %v2984_v15  ;;  %2293 = vmatprep.mubr.f32.mxu0 %v3536_v0  ;;  %v3310_v6 = vpack.i.bf16 %v4289_v61, %v4349_v10  ;;  %v4402_v13 = vld [vmem:[#allocation2 + $0x18a] sm:$0xff] }
 0x140   : > { %v2992_v24 = vpop.permute.xlu0 %2991  ;;  %v2997_v49 = vpop.permute.xlu1 %2996  ;;  %v1572_v26 = vsel %vm1468_vm2, %v1540_v62, %v2988_v17  ;;  %v1475_v28 = vsel %vm1468_vm2, %v1442_v21, %v2989_v43  ;;  %v3320_v43 = vpack.i.bf16 %v4334_v57, %v4395_v7  ;;  %v516_v57 = vld [vmem:[#allocation2 + $0x81] sm:$0xff] }
 0x141   : > { %v2994_v63 = vunpack.i.h.bf16 %v2992_v24  ;;  %v2993_v14 = vunpack.i.l.bf16 %v2992_v24  ;;  %v2999_v42 = vunpack.i.h.bf16 %v2997_v49  ;;  %v2998_v20 = vunpack.i.l.bf16 %v2997_v49  ;;  %2669 = vmatmul.mubr.msk.f32.gmra.mrb[58].mxu0 %vm258_vm0, %v4402_v13  ;;  %v4417_v49 = vld [vmem:[#allocation2 + $0x188] sm:$0xff] }
 0x142   : > { %3281 = vrot.lane.b32.xlu0 %v3280_v18, %s3537_s20  ;;  %2299 = vmatprep.mubr.f32.mxu0 %v3536_v0  ;;  %v3325_v24 = vpack.i.bf16 %v4315_v22, %v4366_v39  ;;  %v3330_v22 = vpack.i.bf16 %v4330_v47, %v4417_v49  ;;  %v389_v47 = vld [vmem:[#allocation2 + $0x78] sm:$0xff] }
 0x143   : > { %3286 = vrot.lane.b32.xlu1 %v3285_v12, %s3539_s10  ;;  %v1604_v29 = vsel %vm1501_vm3, %v1572_v26, %v2993_v14  ;;  %v1508_v27 = vsel %vm1501_vm3, %v1475_v28, %v2994_v63  ;;  %v1541_v8 = vsel %vm258_vm0, %v514_v48, %v2998_v20  ;;  %v1443_v52 = vsel %vm258_vm0, %v386_v37, %v2999_v42  ;;  %v388_v63 = vld [vmem:[#allocation2 + $0x68] sm:$0xff] }
 0x144   : > { %v3002_v55 = vpop.permute.xlu0 %3001  ;;  %1898 = vmatprep.mubr.f32.mxu1 %v1604_v29  ;;  %v3007_v40 = vpop.permute.xlu1 %3006  ;;  %v4419_v42 = vld [vmem:[#allocation2 + $0x189] sm:$0xff] }
 0x145   : > { %v3004_v31 = vunpack.i.h.bf16 %v3002_v55  ;;  %v3003_v45 = vunpack.i.l.bf16 %v3002_v55  ;;  %v3009_v30 = vunpack.i.h.bf16 %v3007_v40  ;;  %v3008_v38 = vunpack.i.l.bf16 %v3007_v40  ;;  %1899 = vmatmul.mubr.f32.gmra.mrb[12].mxu1 %v1508_v27  ;;  %v602_v40 = vld [vmem:[#allocation2 + $0x198] sm:$0xff] }
 0x146   : > { %3291 = vrot.lane.b32.xlu0 %v3290_v25, %s3538_s21  ;;  %v3335_v55 = vpack.i.bf16 %v4364_v11, %v4419_v42  ;;  %v3340_v11 = vpack.i.bf16 %v4342_v41, %v4383_v59 }
 0x147   : > { %3296 = vrot.lane.b32.xlu1 %v3295_v1, %s3537_s20  ;;  %v1573_v35 = vsel %vm1468_vm2, %v1541_v8, %v3003_v45  ;;  %v1476_v56 = vsel %vm1468_vm2, %v1443_v52, %v3004_v31  ;;  %v517_v8 = vld [vmem:[#allocation2 + $0x91] sm:$0xff] }
 0x148   : > { %v3012_v50 = vpop.permute.xlu0 %3011  ;;  %v3017_v23 = vpop.permute.xlu1 %3016  ;;  %v1605_v54 = vsel %vm1501_vm3, %v1573_v35, %v3008_v38  ;;  %v1509_v60 = vsel %vm1501_vm3, %v1476_v56, %v3009_v30 }
 0x149   : > { %v3014_v3 = vunpack.i.h.bf16 %v3012_v50  ;;  %v3013_v4 = vunpack.i.l.bf16 %v3012_v50  ;;  %1904 = vmatprep.mubr.f32.mxu1 %v1605_v54  ;;  %v3019_v53 = vunpack.i.h.bf16 %v3017_v23  ;;  %v3018_v5 = vunpack.i.l.bf16 %v3017_v23  ;;  %v634_v50 = vld [vmem:[#allocation2 + $0x199] sm:$0xff] }
 0x14a   : > { %3301 = vrot.lane.b32.xlu0 %v3300_v46, %s3539_s10  ;;  %1905 = vmatmul.mubr.f32.gmra.mrb[14].mxu1 %v1509_v60  ;;  %v666_v46 = vld [vmem:[#allocation2 + $0x19a] sm:$0xff]  ;;  %v3345_v23 = vpack.i.bf16 %v4349_v10, %v602_v40 }
 0x14b   : > { %3306 = vrot.lane.b32.xlu1 %v3305_v58, %s3538_s21  ;;  %v1542_v51 = vsel %vm258_vm0, %v515_v19, %v3013_v4  ;;  %v1444_v34 = vsel %vm258_vm0, %v387_v2, %v3014_v3  ;;  %2670 = vmatmul.mubr.msk.f32.gmra.mrb[60].mxu0 %vm258_vm0, %v666_v46  ;;  %v667_v3 = vld [vmem:[#allocation2 + $0x1a2] sm:$0xff]  ;;  %v392_v46 = vld [vmem:[#allocation2 + $0x98] sm:$0xff] }
 0x14c   : > { %v3022_v33 = vpop.permute.xlu0 %3021  ;;  %v3027_v15 = vpop.permute.xlu1 %3026  ;;  %v1574_v18 = vsel %vm1468_vm2, %v1542_v51, %v3018_v5  ;;  %v1477_v12 = vsel %vm1468_vm2, %v1444_v34, %v3019_v53  ;;  %2305 = vmatprep.mubr.f32.mxu0 %v3536_v0  ;;  %v3350_v5 = vpack.i.bf16 %v4387_v32, %v634_v50  ;;  %v3355_v51 = vpack.i.bf16 %v4368_v44, %v4402_v13  ;;  %v518_v32 = vld [vmem:[#allocation2 + $0x99] sm:$0xff] }
 0x14d   : > { %v3024_v16 = vunpack.i.h.bf16 %v3022_v33  ;;  %v3023_v61 = vunpack.i.l.bf16 %v3022_v33  ;;  %v3029_v17 = vunpack.i.h.bf16 %v3027_v15  ;;  %v3028_v36 = vunpack.i.l.bf16 %v3027_v15  ;;  %v603_v34 = vld [vmem:[#allocation2 + $0x1a0] sm:$0xff] }
 0x14e   : > { %3311 = vrot.lane.b32.xlu0 %v3310_v6, %s3537_s20  ;;  %v390_v33 = vld [vmem:[#allocation2 + $0x80] sm:$0xff] }
 0x14f   : > { %3316 = vrot.lane.b32.xlu1 %v3315_v9, %s3539_s10  ;;  %v1606_v62 = vsel %vm1501_vm3, %v1574_v18, %v3023_v61  ;;  %v1510_v21 = vsel %vm1501_vm3, %v1477_v12, %v3024_v16  ;;  %v1543_v29 = vsel %vm258_vm0, %v516_v57, %v3028_v36  ;;  %v1445_v27 = vsel %vm258_vm0, %v388_v63, %v3029_v17  ;;  %v635_v61 = vld [vmem:[#allocation2 + $0x1a1] sm:$0xff] }
 0x150   : > { %v3032_v14 = vpop.permute.xlu0 %3031  ;;  %1910 = vmatprep.mubr.f32.mxu1 %v1606_v62  ;;  %v3037_v25 = vpop.permute.xlu1 %3036  ;;  %2671 = vmatmul.mubr.msk.f32.gmra.mrb[62].mxu0 %vm258_vm0, %v667_v3  ;;  %v3360_v62 = vpack.i.bf16 %v4366_v39, %v603_v34 }
 0x151   : > { %v3034_v20 = vunpack.i.h.bf16 %v3032_v14  ;;  %v3033_v26 = vunpack.i.l.bf16 %v3032_v14  ;;  %v3039_v28 = vunpack.i.h.bf16 %v3037_v25  ;;  %v3038_v48 = vunpack.i.l.bf16 %v3037_v25  ;;  %1911 = vmatmul.mubr.f32.gmra.mrb[16].mxu1 %v1510_v21 }
 0x152   : > { %3321 = vrot.lane.b32.xlu0 %v3320_v43, %s3538_s21 }
 0x153   : > { %3326 = vrot.lane.b32.xlu1 %v3325_v24, %s3537_s20  ;;  %v1575_v1 = vsel %vm1468_vm2, %v1543_v29, %v3033_v26  ;;  %v1478_v37 = vsel %vm1468_vm2, %v1445_v27, %v3034_v20  ;;  %v3365_v24 = vpack.i.bf16 %v4417_v49, %v635_v61  ;;  %v519_v20 = vld [vmem:[#allocation2 + $0xa9] sm:$0xff] }
 0x154   : > { %v3042_v31 = vpop.permute.xlu0 %3041  ;;  %v3047_v45 = vpop.permute.xlu1 %3046  ;;  %v1607_v30 = vsel %vm1501_vm3, %v1575_v1, %v3038_v48  ;;  %v1511_v38 = vsel %vm1501_vm3, %v1478_v37, %v3039_v28  ;;  %v391_v26 = vld [vmem:[#allocation2 + $0x90] sm:$0xff] }
 0x155   : > { %v3044_v52 = vunpack.i.h.bf16 %v3042_v31  ;;  %v3043_v35 = vunpack.i.l.bf16 %v3042_v31  ;;  %1916 = vmatprep.mubr.f32.mxu1 %v1607_v30  ;;  %v3049_v56 = vunpack.i.h.bf16 %v3047_v45  ;;  %v3048_v58 = vunpack.i.l.bf16 %v3047_v45 }
 0x156   : > { %3331 = vrot.lane.b32.xlu0 %v3330_v22, %s3539_s10  ;;  %1917 = vmatmul.mubr.f32.gmra.mrb[18].mxu1 %v1511_v38 }
 0x157   : > { %3336 = vrot.lane.b32.xlu1 %v3335_v55, %s3538_s21  ;;  %v1544_v54 = vsel %vm258_vm0, %v517_v8, %v3043_v35  ;;  %v1446_v60 = vsel %vm258_vm0, %v389_v47, %v3044_v52  ;;  %v520_v47 = vld [vmem:[#allocation2 + $0xb1] sm:$0xff] }
 0x158   : > { %v3052_v19 = vpop.permute.xlu0 %3051  ;;  %v3057_v2 = vpop.permute.xlu1 %3056  ;;  %v1576_v10 = vsel %vm1468_vm2, %v1544_v54, %v3048_v58  ;;  %v1479_v6 = vsel %vm1468_vm2, %v1446_v60, %v3049_v56 }
 0x159   : > { %v3054_v4 = vunpack.i.h.bf16 %v3052_v19  ;;  %v3053_v53 = vunpack.i.l.bf16 %v3052_v19  ;;  %v3059_v41 = vunpack.i.h.bf16 %v3057_v2  ;;  %v3058_v59 = vunpack.i.l.bf16 %v3057_v2 }
 0x15a   : > { %3341 = vrot.lane.b32.xlu0 %v3340_v11, %s3537_s20 }
 0x15b   : > { %3346 = vrot.lane.b32.xlu1 %v3345_v23, %s3539_s10  ;;  %v1608_v0 = vsel %vm1501_vm3, %v1576_v10, %v3053_v53  ;;  %v1512_v9 = vsel %vm1501_vm3, %v1479_v6, %v3054_v4  ;;  %v1545_v12 = vsel %vm258_vm0, %v518_v32, %v3058_v59  ;;  %v1447_v44 = vsel %vm258_vm0, %v390_v33, %v3059_v41  ;;  %v393_v41 = vld [vmem:[#allocation2 + $0xa8] sm:$0xff] }
 0x15c   : > { %v3062_v15 = vpop.permute.xlu0 %3061  ;;  %1922 = vmatprep.mubr.f32.mxu1 %v1608_v0  ;;  %v3067_v16 = vpop.permute.xlu1 %3066 }
 0x15d   : > { %v3064_v43 = vunpack.i.h.bf16 %v3062_v15  ;;  %v3063_v17 = vunpack.i.l.bf16 %v3062_v15  ;;  %v3069_v36 = vunpack.i.h.bf16 %v3067_v16  ;;  %v3068_v18 = vunpack.i.l.bf16 %v3067_v16  ;;  %1923 = vmatmul.mubr.f32.gmra.mrb[20].mxu1 %v1512_v9 }
 0x15e   : > { %3351 = vrot.lane.b32.xlu0 %v3350_v5, %s3538_s21  ;;  %v521_v5 = vld [vmem:[#allocation2 + $0xc1] sm:$0xff] }
 0x15f   : > { %3356 = vrot.lane.b32.xlu1 %v3355_v51, %s3537_s20  ;;  %v1577_v13 = vsel %vm1468_vm2, %v1545_v12, %v3063_v17  ;;  %v1480_v21 = vsel %vm1468_vm2, %v1447_v44, %v3064_v43  ;;  %v522_v12 = vld [vmem:[#allocation2 + $0xc9] sm:$0xff] }
 0x160   : > { %v3072_v57 = vpop.permute.xlu0 %3071  ;;  %v3077_v63 = vpop.permute.xlu1 %3076  ;;  %v1609_v14 = vsel %vm1501_vm3, %v1577_v13, %v3068_v18  ;;  %v1513_v25 = vsel %vm1501_vm3, %v1480_v21, %v3069_v36 }
 0x161   : > { %v3074_v28 = vunpack.i.h.bf16 %v3072_v57  ;;  %v3073_v39 = vunpack.i.l.bf16 %v3072_v57  ;;  %1928 = vmatprep.mubr.f32.mxu1 %v1609_v14  ;;  %v3079_v48 = vunpack.i.h.bf16 %v3077_v63  ;;  %v3078_v29 = vunpack.i.l.bf16 %v3077_v63 }
 0x162   : > { %3361 = vrot.lane.b32.xlu0 %v3360_v62, %s3539_s10  ;;  %1929 = vmatmul.mubr.f32.gmra.mrb[22].mxu1 %v1513_v25  ;;  %v394_v62 = vld [vmem:[#allocation2 + $0xb0] sm:$0xff] }
 0x163   : > { %3366 = vrot.lane.b32.xlu1 %v3365_v24, %s3538_s21  ;;  %v1546_v49 = vsel %vm258_vm0, %v519_v20, %v3073_v39  ;;  %v1448_v22 = vsel %vm258_vm0, %v391_v26, %v3074_v28 }
 0x164   : > { %v3082_v27 = vpop.permute.xlu0 %3081  ;;  %v3087_v1 = vpop.permute.xlu1 %3086  ;;  %v1578_v45 = vsel %vm1468_vm2, %v1546_v49, %v3078_v29  ;;  %v1481_v30 = vsel %vm1468_vm2, %v1448_v22, %v3079_v48  ;;  %v523_v49 = vld [vmem:[#allocation2 + $0xd9] sm:$0xff] }
 0x165   : > { %v3084_v37 = vunpack.i.h.bf16 %v3082_v27  ;;  %v3083_v55 = vunpack.i.l.bf16 %v3082_v27  ;;  %v3089_v40 = vunpack.i.h.bf16 %v3087_v1  ;;  %v3088_v31 = vunpack.i.l.bf16 %v3087_v1  ;;  %v395_v22 = vld [vmem:[#allocation2 + $0xc0] sm:$0xff] }
 0x167   : > { %v1610_v38 = vsel %vm1501_vm3, %v1578_v45, %v3083_v55  ;;  %v1514_v8 = vsel %vm1501_vm3, %v1481_v30, %v3084_v37  ;;  %v1547_v23 = vsel %vm258_vm0, %v520_v47, %v3088_v31  ;;  %v1449_v54 = vsel %vm258_vm0, %v392_v46, %v3089_v40 }
 0x168   : > { %v3092_v52 = vpop.permute.xlu0 %3091  ;;  %1934 = vmatprep.mubr.f32.mxu1 %v1610_v38  ;;  %v3097_v35 = vpop.permute.xlu1 %3096 }
 0x169   : > { %v3094_v56 = vunpack.i.h.bf16 %v3092_v52  ;;  %v3093_v58 = vunpack.i.l.bf16 %v3092_v52  ;;  %v3099_v11 = vunpack.i.h.bf16 %v3097_v35  ;;  %v3098_v50 = vunpack.i.l.bf16 %v3097_v35  ;;  %1935 = vmatmul.mubr.f32.gmra.mrb[24].mxu1 %v1514_v8 }
 0x16b   : > { %v1579_v60 = vsel %vm1468_vm2, %v1547_v23, %v3093_v58  ;;  %v1482_v19 = vsel %vm1468_vm2, %v1449_v54, %v3094_v56 }
 0x16c   : > { %v3102_v2 = vpop.permute.xlu0 %3101  ;;  %v3107_v3 = vpop.permute.xlu1 %3106  ;;  %v1611_v4 = vsel %vm1501_vm3, %v1579_v60, %v3098_v50  ;;  %v1515_v53 = vsel %vm1501_vm3, %v1482_v19, %v3099_v11  ;;  %v524_v11 = vld [vmem:[#allocation2 + $0xe1] sm:$0xff] }
 0x16d   : > { %v3104_v59 = vunpack.i.h.bf16 %v3102_v2  ;;  %v3103_v10 = vunpack.i.l.bf16 %v3102_v2  ;;  %1940 = vmatprep.mubr.f32.mxu1 %v1611_v4  ;;  %v3109_v6 = vunpack.i.h.bf16 %v3107_v3  ;;  %v3108_v0 = vunpack.i.l.bf16 %v3107_v3  ;;  %v396_v50 = vld [vmem:[#allocation2 + $0xc8] sm:$0xff] }
 0x16e   : > { %1941 = vmatmul.mubr.f32.gmra.mrb[26].mxu1 %v1515_v53 }
 0x16f   : > { %v1548_v9 = vsel %vm258_vm0, %v521_v5, %v3103_v10  ;;  %v1450_v51 = vsel %vm258_vm0, %v393_v41, %v3104_v59 }
 0x170   : > { %v3112_v32 = vpop.permute.xlu0 %3111  ;;  %v3117_v34 = vpop.permute.xlu1 %3116  ;;  %v1580_v43 = vsel %vm1468_vm2, %v1548_v9, %v3108_v0  ;;  %v1483_v17 = vsel %vm1468_vm2, %v1450_v51, %v3109_v6  ;;  %v525_v9 = vld [vmem:[#allocation2 + $0xf1] sm:$0xff] }
 0x171   : > { %v3114_v33 = vunpack.i.h.bf16 %v3112_v32  ;;  %v3113_v15 = vunpack.i.l.bf16 %v3112_v32  ;;  %v3119_v16 = vunpack.i.h.bf16 %v3117_v34  ;;  %v3118_v61 = vunpack.i.l.bf16 %v3117_v34  ;;  %v397_v51 = vld [vmem:[#allocation2 + $0xd8] sm:$0xff] }
 0x173   : > { %v1612_v36 = vsel %vm1501_vm3, %v1580_v43, %v3113_v15  ;;  %v1516_v18 = vsel %vm1501_vm3, %v1483_v17, %v3114_v33  ;;  %v1549_v14 = vsel %vm258_vm0, %v522_v12, %v3118_v61  ;;  %v1451_v25 = vsel %vm258_vm0, %v394_v62, %v3119_v16 }
 0x174   : > { %v3122_v44 = vpop.permute.xlu0 %3121  ;;  %1946 = vmatprep.mubr.f32.mxu1 %v1612_v36  ;;  %v3127_v13 = vpop.permute.xlu1 %3126 }
 0x175   : > { %v3124_v21 = vunpack.i.h.bf16 %v3122_v44  ;;  %v3123_v24 = vunpack.i.l.bf16 %v3122_v44  ;;  %v3129_v57 = vunpack.i.h.bf16 %v3127_v13  ;;  %v3128_v63 = vunpack.i.l.bf16 %v3127_v13  ;;  %1947 = vmatmul.mubr.f32.gmra.mrb[28].mxu1 %v1516_v18 }
 0x177   : > { %v1581_v20 = vsel %vm1468_vm2, %v1549_v14, %v3123_v24  ;;  %v1484_v26 = vsel %vm1468_vm2, %v1451_v25, %v3124_v21 }
 0x178   : > { %v3132_v28 = vpop.permute.xlu0 %3131  ;;  %v3137_v39 = vpop.permute.xlu1 %3136  ;;  %v1613_v48 = vsel %vm1501_vm3, %v1581_v20, %v3128_v63  ;;  %v1517_v29 = vsel %vm1501_vm3, %v1484_v26, %v3129_v57  ;;  %v526_v57 = vld [vmem:[#allocation2 + $0xf9] sm:$0xff] }
 0x179   : > { %v3134_v27 = vunpack.i.h.bf16 %v3132_v28  ;;  %v3133_v1 = vunpack.i.l.bf16 %v3132_v28  ;;  %1952 = vmatprep.mubr.f32.mxu1 %v1613_v48  ;;  %v3139_v37 = vunpack.i.h.bf16 %v3137_v39  ;;  %v3138_v55 = vunpack.i.l.bf16 %v3137_v39  ;;  %v398_v63 = vld [vmem:[#allocation2 + $0xe0] sm:$0xff] }
 0x17a   : > { %1953 = vmatmul.mubr.f32.gmra.mrb[30].mxu1 %v1517_v29 }
 0x17b   : > { %v1550_v40 = vsel %vm258_vm0, %v523_v49, %v3133_v1  ;;  %v1452_v31 = vsel %vm258_vm0, %v395_v22, %v3134_v27 }
 0x17c   : > { %v3142_v45 = vpop.permute.xlu0 %3141  ;;  %v3147_v30 = vpop.permute.xlu1 %3146  ;;  %v1582_v52 = vsel %vm1468_vm2, %v1550_v40, %v3138_v55  ;;  %v1485_v35 = vsel %vm1468_vm2, %v1452_v31, %v3139_v37  ;;  %v527_v40 = vld [vmem:[#allocation2 + $0x109] sm:$0xff] }
 0x17d   : > { %v3144_v38 = vunpack.i.h.bf16 %v3142_v45  ;;  %v3143_v8 = vunpack.i.l.bf16 %v3142_v45  ;;  %v3149_v47 = vunpack.i.h.bf16 %v3147_v30  ;;  %v3148_v46 = vunpack.i.l.bf16 %v3147_v30  ;;  %v399_v31 = vld [vmem:[#allocation2 + $0xf0] sm:$0xff] }
 0x17f   : > { %v1614_v56 = vsel %vm1501_vm3, %v1582_v52, %v3143_v8  ;;  %v1518_v58 = vsel %vm1501_vm3, %v1485_v35, %v3144_v38  ;;  %v1551_v4 = vsel %vm258_vm0, %v524_v11, %v3148_v46  ;;  %v1453_v53 = vsel %vm258_vm0, %v396_v50, %v3149_v47 }
 0x180   : > { %v3152_v23 = vpop.permute.xlu0 %3151  ;;  %1958 = vmatprep.mubr.f32.mxu1 %v1614_v56  ;;  %v3157_v54 = vpop.permute.xlu1 %3156 }
 0x181   : > { %v3154_v60 = vunpack.i.h.bf16 %v3152_v23  ;;  %v3153_v19 = vunpack.i.l.bf16 %v3152_v23  ;;  %v3159_v2 = vunpack.i.h.bf16 %v3157_v54  ;;  %v3158_v3 = vunpack.i.l.bf16 %v3157_v54  ;;  %1959 = vmatmul.mubr.f32.gmra.mrb[32].mxu1 %v1518_v58 }
 0x183   : > { %v1583_v5 = vsel %vm1468_vm2, %v1551_v4, %v3153_v19  ;;  %v1486_v41 = vsel %vm1468_vm2, %v1453_v53, %v3154_v60 }
 0x184   : > { %v3162_v59 = vpop.permute.xlu0 %3161  ;;  %v3167_v10 = vpop.permute.xlu1 %3166  ;;  %v1615_v6 = vsel %vm1501_vm3, %v1583_v5, %v3158_v3  ;;  %v1519_v0 = vsel %vm1501_vm3, %v1486_v41, %v3159_v2  ;;  %v528_v2 = vld [vmem:[#allocation2 + $0x111] sm:$0xff] }
 0x185   : > { %v3164_v32 = vunpack.i.h.bf16 %v3162_v59  ;;  %v3163_v34 = vunpack.i.l.bf16 %v3162_v59  ;;  %1964 = vmatprep.mubr.f32.mxu1 %v1615_v6  ;;  %v3169_v33 = vunpack.i.h.bf16 %v3167_v10  ;;  %v3168_v15 = vunpack.i.l.bf16 %v3167_v10  ;;  %v400_v3 = vld [vmem:[#allocation2 + $0xf8] sm:$0xff] }
 0x186   : > { %1965 = vmatmul.mubr.f32.gmra.mrb[34].mxu1 %v1519_v0 }
 0x187   : > { %v1552_v16 = vsel %vm258_vm0, %v525_v9, %v3163_v34  ;;  %v1454_v61 = vsel %vm258_vm0, %v397_v51, %v3164_v32 }
 0x188   : > { %v3172_v43 = vpop.permute.xlu0 %3171  ;;  %v3177_v17 = vpop.permute.xlu1 %3176  ;;  %v1584_v44 = vsel %vm1468_vm2, %v1552_v16, %v3168_v15  ;;  %v1487_v13 = vsel %vm1468_vm2, %v1454_v61, %v3169_v33  ;;  %v529_v15 = vld [vmem:[#allocation2 + $0x121] sm:$0xff] }
 0x189   : > { %v3174_v36 = vunpack.i.h.bf16 %v3172_v43  ;;  %v3173_v18 = vunpack.i.l.bf16 %v3172_v43  ;;  %v3179_v12 = vunpack.i.h.bf16 %v3177_v17  ;;  %v3178_v62 = vunpack.i.l.bf16 %v3177_v17  ;;  %v401_v16 = vld [vmem:[#allocation2 + $0x108] sm:$0xff] }
 0x18b   : > { %v1616_v21 = vsel %vm1501_vm3, %v1584_v44, %v3173_v18  ;;  %v1520_v24 = vsel %vm1501_vm3, %v1487_v13, %v3174_v36  ;;  %v1553_v48 = vsel %vm258_vm0, %v526_v57, %v3178_v62  ;;  %v1455_v29 = vsel %vm258_vm0, %v398_v63, %v3179_v12 }
 0x18c   : > { %v3182_v14 = vpop.permute.xlu0 %3181  ;;  %1970 = vmatprep.mubr.f32.mxu1 %v1616_v21  ;;  %v3187_v25 = vpop.permute.xlu1 %3186 }
 0x18d   : > { %v3184_v20 = vunpack.i.h.bf16 %v3182_v14  ;;  %v3183_v26 = vunpack.i.l.bf16 %v3182_v14  ;;  %v3189_v28 = vunpack.i.h.bf16 %v3187_v25  ;;  %v3188_v39 = vunpack.i.l.bf16 %v3187_v25  ;;  %1971 = vmatmul.mubr.f32.gmra.mrb[36].mxu1 %v1520_v24 }
 0x18f   : > { %v1585_v49 = vsel %vm1468_vm2, %v1553_v48, %v3183_v26  ;;  %v1488_v22 = vsel %vm1468_vm2, %v1455_v29, %v3184_v20 }
 0x190   : > { %v3192_v27 = vpop.permute.xlu0 %3191  ;;  %v3197_v1 = vpop.permute.xlu1 %3196  ;;  %v1617_v37 = vsel %vm1501_vm3, %v1585_v49, %v3188_v39  ;;  %v1521_v55 = vsel %vm1501_vm3, %v1488_v22, %v3189_v28  ;;  %v530_v28 = vld [vmem:[#allocation2 + $0x129] sm:$0xff] }
 0x191   : > { %v3194_v45 = vunpack.i.h.bf16 %v3192_v27  ;;  %v3193_v30 = vunpack.i.l.bf16 %v3192_v27  ;;  %1976 = vmatprep.mubr.f32.mxu1 %v1617_v37  ;;  %v3199_v38 = vunpack.i.h.bf16 %v3197_v1  ;;  %v3198_v8 = vunpack.i.l.bf16 %v3197_v1  ;;  %v402_v39 = vld [vmem:[#allocation2 + $0x110] sm:$0xff] }
 0x192   : > { %1977 = vmatmul.mubr.f32.gmra.mrb[38].mxu1 %v1521_v55 }
 0x193   : > { %v1554_v47 = vsel %vm258_vm0, %v527_v40, %v3193_v30  ;;  %v1456_v46 = vsel %vm258_vm0, %v399_v31, %v3194_v45 }
 0x194   : > { %v3202_v52 = vpop.permute.xlu0 %3201  ;;  %v1586_v23 = vsel %vm1468_vm2, %v1554_v47, %v3198_v8  ;;  %v1489_v54 = vsel %vm1468_vm2, %v1456_v46, %v3199_v38  ;;  %v531_v8 = vld [vmem:[#allocation2 + $0x139] sm:$0xff] }
 0x195   : > { %v3204_v35 = vunpack.i.h.bf16 %v3202_v52  ;;  %v3203_v56 = vunpack.i.l.bf16 %v3202_v52  ;;  %v3207_v58 = vpop.permute.xlu1 %3206  ;;  %v403_v47 = vld [vmem:[#allocation2 + $0x120] sm:$0xff] }
 0x196   : > { %v3209_v11 = vunpack.i.h.bf16 %v3207_v58  ;;  %v3208_v50 = vunpack.i.l.bf16 %v3207_v58 }
 0x197   : > { %v1618_v60 = vsel %vm1501_vm3, %v1586_v23, %v3203_v56  ;;  %v1522_v19 = vsel %vm1501_vm3, %v1489_v54, %v3204_v35 }
 0x198   : > { %v3212_v4 = vpop.permute.xlu0 %3211  ;;  %1982 = vmatprep.mubr.f32.mxu1 %v1618_v60  ;;  %v1555_v6 = vsel %vm258_vm0, %v528_v2, %v3208_v50  ;;  %v1457_v0 = vsel %vm258_vm0, %v400_v3, %v3209_v11 }
 0x199   : > { %v3214_v53 = vunpack.i.h.bf16 %v3212_v4  ;;  %v3213_v5 = vunpack.i.l.bf16 %v3212_v4  ;;  %v3217_v41 = vpop.permute.xlu1 %3216  ;;  %1983 = vmatmul.mubr.f32.gmra.mrb[40].mxu1 %v1522_v19 }
 0x19a   : > { %v3219_v59 = vunpack.i.h.bf16 %v3217_v41  ;;  %v3218_v10 = vunpack.i.l.bf16 %v3217_v41 }
 0x19b   : > { %v1587_v9 = vsel %vm1468_vm2, %v1555_v6, %v3213_v5  ;;  %v1490_v51 = vsel %vm1468_vm2, %v1457_v0, %v3214_v53  ;;  %v532_v0 = vld [vmem:[#allocation2 + $0x141] sm:$0xff] }
 0x19c   : > { %v3222_v32 = vpop.permute.xlu0 %3221  ;;  %v1619_v34 = vsel %vm1501_vm3, %v1587_v9, %v3218_v10  ;;  %v1523_v33 = vsel %vm1501_vm3, %v1490_v51, %v3219_v59  ;;  %v404_v9 = vld [vmem:[#allocation2 + $0x128] sm:$0xff] }
 0x19d   : > { %v3224_v61 = vunpack.i.h.bf16 %v3222_v32  ;;  %v3223_v43 = vunpack.i.l.bf16 %v3222_v32  ;;  %v3227_v17 = vpop.permute.xlu1 %3226  ;;  %1988 = vmatprep.mubr.f32.mxu1 %v1619_v34 }
 0x19e   : > { %v3229_v36 = vunpack.i.h.bf16 %v3227_v17  ;;  %v3228_v18 = vunpack.i.l.bf16 %v3227_v17  ;;  %1989 = vmatmul.mubr.f32.gmra.mrb[42].mxu1 %v1523_v33  ;;  %v4536_v11 = vpop.f32.mrb[0].mxu0 }
 0x19f   : > { %v1556_v12 = vsel %vm258_vm0, %v529_v15, %v3223_v43  ;;  %v1458_v62 = vsel %vm258_vm0, %v401_v16, %v3224_v61  ;;  %v4540_v54 = vpop.f32.mrb[1].mxu0 }
 0x1a0   : > { %v3232_v44 = vpop.permute.xlu0 %3231  ;;  %v1588_v14 = vsel %vm1468_vm2, %v1556_v12, %v3228_v18  ;;  %v1491_v25 = vsel %vm1468_vm2, %v1458_v62, %v3229_v36 }
 0x1a1   : > { %v3234_v13 = vunpack.i.h.bf16 %v3232_v44  ;;  %v3233_v21 = vunpack.i.l.bf16 %v3232_v44  ;;  %v3237_v24 = vpop.permute.xlu1 %3236 }
 0x1a2   : > { %v3239_v57 = vunpack.i.h.bf16 %v3237_v24  ;;  %v3238_v63 = vunpack.i.l.bf16 %v3237_v24  ;;  %v4544_v59 = vpop.f32.mrb[2].mxu0  ;;  %v533_v24 = vld [vmem:[#allocation2 + $0x151] sm:$0xff] }
 0x1a3   : > { %v1620_v20 = vsel %vm1501_vm3, %v1588_v14, %v3233_v21  ;;  %v1524_v26 = vsel %vm1501_vm3, %v1491_v25, %v3234_v13  ;;  %v4548_v51 = vpop.f32.mrb[3].mxu0 }
 0x1a4   : > { %v3242_v48 = vpop.permute.xlu0 %3241  ;;  %1994 = vmatprep.mubr.f32.mxu1 %v1620_v20  ;;  %v1557_v37 = vsel %vm258_vm0, %v530_v28, %v3238_v63  ;;  %v1459_v55 = vsel %vm258_vm0, %v402_v39, %v3239_v57  ;;  %v405_v57 = vld [vmem:[#allocation2 + $0x138] sm:$0xff] }
 0x1a5   : > { %v3244_v29 = vunpack.i.h.bf16 %v3242_v48  ;;  %v3243_v49 = vunpack.i.l.bf16 %v3242_v48  ;;  %v3247_v22 = vpop.permute.xlu1 %3246  ;;  %1995 = vmatmul.mubr.f32.gmra.mrb[44].mxu1 %v1524_v26 }
 0x1a6   : > { %v3249_v27 = vunpack.i.h.bf16 %v3247_v22  ;;  %v3248_v1 = vunpack.i.l.bf16 %v3247_v22  ;;  %v4552_v36 = vpop.f32.mrb[4].mxu0 }
 0x1a7   : > { %v1589_v40 = vsel %vm1468_vm2, %v1557_v37, %v3243_v49  ;;  %v1492_v31 = vsel %vm1468_vm2, %v1459_v55, %v3244_v29  ;;  %v4556_v62 = vpop.f32.mrb[5].mxu0 }
 0x1a8   : > { %v3252_v45 = vpop.permute.xlu0 %3251  ;;  %v1621_v30 = vsel %vm1501_vm3, %v1589_v40, %v3248_v1  ;;  %v1525_v38 = vsel %vm1501_vm3, %v1492_v31, %v3249_v27 }
 0x1a9   : > { %v3254_v46 = vunpack.i.h.bf16 %v3252_v45  ;;  %v3253_v52 = vunpack.i.l.bf16 %v3252_v45  ;;  %v3257_v35 = vpop.permute.xlu1 %3256  ;;  %2000 = vmatprep.mubr.f32.mxu1 %v1621_v30 }
 0x1aa   : > { %v3259_v56 = vunpack.i.h.bf16 %v3257_v35  ;;  %v3258_v58 = vunpack.i.l.bf16 %v3257_v35  ;;  %2001 = vmatmul.mubr.f32.gmra.mrb[46].mxu1 %v1525_v38  ;;  %v4560_v28 = vpop.f32.mrb[6].mxu0 }
 0x1ab   : > { %v1558_v50 = vsel %vm258_vm0, %v531_v8, %v3253_v52  ;;  %v1460_v23 = vsel %vm258_vm0, %v403_v47, %v3254_v46  ;;  %v4564_v29 = vpop.f32.mrb[7].mxu0  ;;  %v534_v8 = vld [vmem:[#allocation2 + $0x159] sm:$0xff] }
 0x1ac   : > { %v3262_v60 = vpop.permute.xlu0 %3261  ;;  %v1590_v5 = vsel %vm1468_vm2, %v1558_v50, %v3258_v58  ;;  %v1493_v41 = vsel %vm1468_vm2, %v1460_v23, %v3259_v56  ;;  %v406_v47 = vld [vmem:[#allocation2 + $0x140] sm:$0xff] }
 0x1ad   : > { %v3264_v19 = vunpack.i.h.bf16 %v3262_v60  ;;  %v3263_v2 = vunpack.i.l.bf16 %v3262_v60  ;;  %v3267_v3 = vpop.permute.xlu1 %3266 }
 0x1ae   : > { %v3269_v4 = vunpack.i.h.bf16 %v3267_v3  ;;  %v3268_v53 = vunpack.i.l.bf16 %v3267_v3  ;;  %v4568_v45 = vpop.f32.mrb[8].mxu0 }
 0x1af   : > { %v1622_v10 = vsel %vm1501_vm3, %v1590_v5, %v3263_v2  ;;  %v1526_v6 = vsel %vm1501_vm3, %v1493_v41, %v3264_v19  ;;  %v4572_v46 = vpop.f32.mrb[9].mxu0 }
 0x1b0   : > { %v3272_v32 = vpop.permute.xlu0 %3271  ;;  %2006 = vmatprep.mubr.f32.mxu1 %v1622_v10  ;;  %v1559_v43 = vsel %vm258_vm0, %v532_v0, %v3268_v53  ;;  %v1461_v17 = vsel %vm258_vm0, %v404_v9, %v3269_v4  ;;  %v407_v0 = vld [vmem:[#allocation2 + $0x150] sm:$0xff] }
 0x1b1   : > { %v3274_v34 = vunpack.i.h.bf16 %v3272_v32  ;;  %v3273_v33 = vunpack.i.l.bf16 %v3272_v32  ;;  %v3277_v15 = vpop.permute.xlu1 %3276  ;;  %2007 = vmatmul.mubr.f32.gmra.mrb[48].mxu1 %v1526_v6  ;;  %v535_v6 = vld [vmem:[#allocation2 + $0x169] sm:$0xff] }
 0x1b2   : > { %v3279_v16 = vunpack.i.h.bf16 %v3277_v15  ;;  %v3278_v61 = vunpack.i.l.bf16 %v3277_v15  ;;  %v4576_v2 = vpop.f32.mrb[10].mxu0 }
 0x1b3   : > { %v1591_v18 = vsel %vm1468_vm2, %v1559_v43, %v3273_v33  ;;  %v1494_v12 = vsel %vm1468_vm2, %v1461_v17, %v3274_v34  ;;  %v4580_v53 = vpop.f32.mrb[11].mxu0 }
 0x1b4   : > { %v3282_v44 = vpop.permute.xlu0 %3281  ;;  %v1623_v13 = vsel %vm1501_vm3, %v1591_v18, %v3278_v61  ;;  %v1527_v21 = vsel %vm1501_vm3, %v1494_v12, %v3279_v16 }
 0x1b5   : > { %v3284_v63 = vunpack.i.h.bf16 %v3282_v44  ;;  %v3283_v14 = vunpack.i.l.bf16 %v3282_v44  ;;  %v3287_v25 = vpop.permute.xlu1 %3286  ;;  %2012 = vmatprep.mubr.f32.mxu1 %v1623_v13 }
 0x1b6   : > { %v3289_v20 = vunpack.i.h.bf16 %v3287_v25  ;;  %v3288_v26 = vunpack.i.l.bf16 %v3287_v25  ;;  %2013 = vmatmul.mubr.f32.gmra.mrb[50].mxu1 %v1527_v21  ;;  %v4584_v16 = vpop.f32.mrb[12].mxu0 }
 0x1b7   : > { %v1560_v39 = vsel %vm258_vm0, %v533_v24, %v3283_v14  ;;  %v1462_v48 = vsel %vm258_vm0, %v405_v57, %v3284_v63  ;;  %v4588_v17 = vpop.f32.mrb[13].mxu0 }
 0x1b8   : > { %v3292_v49 = vpop.permute.xlu0 %3291  ;;  %v1592_v40 = vsel %vm1468_vm2, %v1560_v39, %v3288_v26  ;;  %v1495_v31 = vsel %vm1468_vm2, %v1462_v48, %v3289_v20  ;;  %v536_v26 = vld [vmem:[#allocation2 + $0x171] sm:$0xff] }
 0x1b9   : > { %v3294_v22 = vunpack.i.h.bf16 %v3292_v49  ;;  %v3293_v27 = vunpack.i.l.bf16 %v3292_v49  ;;  %v3297_v1 = vpop.permute.xlu1 %3296  ;;  %v408_v39 = vld [vmem:[#allocation2 + $0x158] sm:$0xff] }
 0x1ba   : > { %v3299_v37 = vunpack.i.h.bf16 %v3297_v1  ;;  %v3298_v55 = vunpack.i.l.bf16 %v3297_v1  ;;  %v4592_v14 = vpop.f32.mrb[14].mxu0 }
 0x1bb   : > { %v1624_v30 = vsel %vm1501_vm3, %v1592_v40, %v3293_v27  ;;  %v1528_v38 = vsel %vm1501_vm3, %v1495_v31, %v3294_v22  ;;  %v4596_v48 = vpop.f32.mrb[15].mxu0 }
 0x1bc   : > { %v3302_v52 = vpop.permute.xlu0 %3301  ;;  %2018 = vmatprep.mubr.f32.mxu1 %v1624_v30  ;;  %v1561_v60 = vsel %vm258_vm0, %v534_v8, %v3298_v55  ;;  %v1463_v19 = vsel %vm258_vm0, %v406_v47, %v3299_v37 }
 0x1bd   : > { %v3304_v35 = vunpack.i.h.bf16 %v3302_v52  ;;  %v3303_v56 = vunpack.i.l.bf16 %v3302_v52  ;;  %v3307_v58 = vpop.permute.xlu1 %3306  ;;  %2019 = vmatmul.mubr.f32.gmra.mrb[52].mxu1 %v1528_v38 }
 0x1be   : > { %v3309_v50 = vunpack.i.h.bf16 %v3307_v58  ;;  %v3308_v23 = vunpack.i.l.bf16 %v3307_v58  ;;  %v4600_v30 = vpop.f32.mrb[16].mxu0  ;;  %v409_v58 = vld [vmem:[#allocation2 + $0x168] sm:$0xff] }
 0x1bf   : > { %v1593_v3 = vsel %vm1468_vm2, %v1561_v60, %v3303_v56  ;;  %v1496_v4 = vsel %vm1468_vm2, %v1463_v19, %v3304_v35  ;;  %v4604_v47 = vpop.f32.mrb[17].mxu0 }
 0x1c0   : > { %v3312_v5 = vpop.permute.xlu0 %3311  ;;  %v1625_v41 = vsel %vm1501_vm3, %v1593_v3, %v3308_v23  ;;  %v1529_v10 = vsel %vm1501_vm3, %v1496_v4, %v3309_v50 }
 0x1c1   : > { %v3314_v9 = vunpack.i.h.bf16 %v3312_v5  ;;  %v3313_v32 = vunpack.i.l.bf16 %v3312_v5  ;;  %v3317_v34 = vpop.permute.xlu1 %3316  ;;  %2024 = vmatprep.mubr.f32.mxu1 %v1625_v41 }
 0x1c2   : > { %v3319_v33 = vunpack.i.h.bf16 %v3317_v34  ;;  %v3318_v15 = vunpack.i.l.bf16 %v3317_v34  ;;  %2025 = vmatmul.mubr.f32.gmra.mrb[54].mxu1 %v1529_v10  ;;  %v4608_v4 = vpop.f32.mrb[18].mxu0 }
 0x1c3   : > { %v1562_v61 = vsel %vm258_vm0, %v535_v6, %v3313_v32  ;;  %v1464_v43 = vsel %vm258_vm0, %v407_v0, %v3314_v9  ;;  %v4613_v10 = vpop.f32.mrb[19].mxu0 }
 0x1c4   : > { %v3322_v18 = vpop.permute.xlu0 %3321  ;;  %v1594_v57 = vsel %vm1468_vm2, %v1562_v61, %v3318_v15  ;;  %v1497_v63 = vsel %vm1468_vm2, %v1464_v43, %v3319_v33 }
 0x1c5   : > { %v3324_v12 = vunpack.i.h.bf16 %v3322_v18  ;;  %v3323_v44 = vunpack.i.l.bf16 %v3322_v18  ;;  %v3327_v13 = vpop.permute.xlu1 %3326 }
 0x1c6   : > { %v3329_v21 = vunpack.i.h.bf16 %v3327_v13  ;;  %v3328_v24 = vunpack.i.l.bf16 %v3327_v13  ;;  %v4617_v43 = vpop.f32.mrb[20].mxu0 }
 0x1c7   : > { %v1626_v25 = vsel %vm1501_vm3, %v1594_v57, %v3323_v44  ;;  %v1530_v20 = vsel %vm1501_vm3, %v1497_v63, %v3324_v12  ;;  %v410_v12 = vld [vmem:[#allocation2 + $0x170] sm:$0xff]  ;;  %v4621_v44 = vpop.f32.mrb[21].mxu0 }
 0x1c8   : > { %v3332_v49 = vpop.permute.xlu0 %3331  ;;  %2030 = vmatprep.mubr.f32.mxu1 %v1626_v25  ;;  %v1563_v40 = vsel %vm258_vm0, %v536_v26, %v3328_v24  ;;  %v1465_v31 = vsel %vm258_vm0, %v408_v39, %v3329_v21 }
 0x1c9   : > { %v3334_v22 = vunpack.i.h.bf16 %v3332_v49  ;;  %v3333_v27 = vunpack.i.l.bf16 %v3332_v49  ;;  %v3337_v1 = vpop.permute.xlu1 %3336  ;;  %2031 = vmatmul.mubr.f32.gmra.mrb[56].mxu1 %v1530_v20 }
 0x1ca   : > { %v3339_v37 = vunpack.i.h.bf16 %v3337_v1  ;;  %v3338_v55 = vunpack.i.l.bf16 %v3337_v1  ;;  %v4626_v39 = vpop.f32.mrb[22].mxu0 }
 0x1cb   : > { %v1595_v38 = vsel %vm1468_vm2, %v1563_v40, %v3333_v27  ;;  %v1498_v8 = vsel %vm1468_vm2, %v1465_v31, %v3334_v22  ;;  %v4630_v27 = vpop.f32.mrb[23].mxu0 }
 0x1cc   : > { %v3342_v52 = vpop.permute.xlu0 %3341  ;;  %v1627_v35 = vsel %vm1501_vm3, %v1595_v38, %v3338_v55  ;;  %v1531_v56 = vsel %vm1501_vm3, %v1498_v8, %v3339_v37 }
 0x1cd   : > { %v3344_v50 = vunpack.i.h.bf16 %v3342_v52  ;;  %v3343_v23 = vunpack.i.l.bf16 %v3342_v52  ;;  %v3347_v60 = vpop.permute.xlu1 %3346  ;;  %2036 = vmatprep.mubr.f32.mxu1 %v1627_v35 }
 0x1ce   : > { %v3349_v19 = vunpack.i.h.bf16 %v3347_v60  ;;  %v3348_v3 = vunpack.i.l.bf16 %v3347_v60  ;;  %2037 = vmatmul.mubr.f32.gmra.mrb[58].mxu1 %v1531_v56  ;;  %v4634_v55 = vpop.f32.mrb[24].mxu0  ;;  %v2314_v56 = vlaneseq }
 0x1cf   : > { %v1564_v5 = vsel %vm258_vm0, %v4395_v7, %v3343_v23  ;;  %v1466_v41 = vsel %vm258_vm0, %v409_v58, %v3344_v50 }
 0x1d0   : > { %v3352_v6 = vpop.permute.xlu0 %3351  ;;  %v1596_v15 = vsel %vm1468_vm2, %v1564_v5, %v3348_v3  ;;  %v1499_v61 = vsel %vm1468_vm2, %v1466_v41, %v3349_v19  ;;  %v2315_v23 = vshrl.u32 %v2314_v56, 7  ;;  %v2312_v5 = vld [vmem:[#allocation7] sm:$0x3] }
 0x1d1   : > { %v3354_v0 = vunpack.i.h.bf16 %v3352_v6  ;;  %v3353_v9 = vunpack.i.l.bf16 %v3352_v6  ;;  %v3357_v32 = vpop.permute.xlu1 %3356 }
 0x1d2   : > { %v3359_v34 = vunpack.i.h.bf16 %v3357_v32  ;;  %v3358_v33 = vunpack.i.l.bf16 %v3357_v32  ;;  %v2316_v3 = vsub.s32 0, %v2315_v23  ;;  %v2320_v41 = vsub.s32 1, %v2315_v23 }
 0x1d3   : > { %v1628_v18 = vsel %vm1501_vm3, %v1596_v15, %v3353_v9  ;;  %v1532_v7 = vsel %vm1501_vm3, %v1499_v61, %v3354_v0  ;;  %v2388_v0 = vld [vmem:[#allocation8] sm:$0x3] }
 0x1d4   : > { %v3362_v13 = vpop.permute.xlu0 %3361  ;;  %2042 = vmatprep.mubr.f32.mxu1 %v1628_v18  ;;  %v1565_v20 = vsel %vm258_vm0, %v4419_v42, %v3358_v33  ;;  %v1467_v26 = vsel %vm258_vm0, %v410_v12, %v3359_v34  ;;  %v4636_v42 = vpop.f32.mrb[25].mxu0  ;;  %v4664_v32 = vrot.slane %v2312_v5, %v2316_v3  ;;  %v4666_v33 = vrot.slane %v2312_v5, %v2320_v41 }
 0x1d5   : > { %v3364_v21 = vunpack.i.h.bf16 %v3362_v13  ;;  %v3363_v24 = vunpack.i.l.bf16 %v3362_v13  ;;  %v3367_v57 = vpop.permute.xlu1 %3366  ;;  %2043 = vmatmul.mubr.f32.gmra.mrb[60].mxu1 %v1532_v7  ;;  %v4638_v40 = vpop.f32.mrb[26].mxu0  ;;  %v4669_v61 = vrot.slane %v2388_v0, %v2316_v3  ;;  %v4674_v13 = vrot.slane %v2388_v0, %v2320_v41 }
 0x1d6   : > { %v3369_v63 = vunpack.i.h.bf16 %v3367_v57  ;;  %v3368_v25 = vunpack.i.l.bf16 %v3367_v57  ;;  %v4640_v31 = vpop.f32.mrb[27].mxu0 }
 0x1d7   : > { %v1597_v49 = vsel %vm1468_vm2, %v1565_v20, %v3363_v24  ;;  %v1500_v22 = vsel %vm1468_vm2, %v1467_v26, %v3364_v21  ;;  %v4642_v38 = vpop.f32.mrb[28].mxu0 }
 0x1d8   : > { %v1629_v1 = vsel %vm1501_vm3, %v1597_v49, %v3368_v25  ;;  %v1533_v37 = vsel %vm1501_vm3, %v1500_v22, %v3369_v63  ;;  %v4644_v8 = vpop.f32.mrb[29].mxu0 }
 0x1d9   : > { %2048 = vmatprep.mubr.f32.mxu1 %v1629_v1 }
 0x1da   : > { %2049 = vmatmul.mubr.f32.gmra.mrb[62].mxu1 %v1533_v37  ;;  %v4646_v52 = vpop.f32.mrb[30].mxu0 }
 0x1db   : > { %v4648_v35 = vpop.f32.mrb[31].mxu0 }
 0x1de   : > { %v4650_v58 = vpop.f32.mrb[32].mxu0 }
 0x1df   : > { %v4652_v50 = vpop.f32.mrb[33].mxu0 }
 0x1e2   : > { %v4655_v60 = vpop.f32.mrb[34].mxu0 }
 0x1e3   : > { %v4657_v19 = vpop.f32.mrb[35].mxu0 }
 0x1e6   : > { %v4660_v6 = vpop.f32.mrb[36].mxu0 }
 0x1e7   : > { %v4662_v9 = vpop.f32.mrb[37].mxu0 }
 0x1ea   : > { %v4671_v7 = vpop.f32.mrb[38].mxu0 }
 0x1eb   : > { %v4676_v21 = vpop.f32.mrb[39].mxu0 }
 0x1ee   : > { %v4687_v20 = vpop.f32.mrb[40].mxu0 }
 0x1ef   : > { %v4691_v22 = vpop.f32.mrb[41].mxu0 }
 0x1f2   : > { %v4699_v23 = vpop.f32.mrb[42].mxu0 }
 0x1f3   : > { %v4702_v5 = vpop.f32.mrb[43].mxu0 }
 0x1f5   : > { %v1864_v34 = vpop.f32.mrb[0].mxu1 }
 0x1f6   : > { %v2122_v15 = vadd.f32 %v4536_v11, %v1864_v34  ;;  %v1866_v18 = vpop.f32.mrb[1].mxu1 }
 0x1f7   : > { %v2124_v12 = vadd.f32 %v4540_v54, %v1866_v18 }
 0x1f8   : > { %v2324_v24 = vmul.f32 %v4664_v32, %v2122_v15  ;;  %v4708_v15 = vpop.f32.mrb[44].mxu0 }
 0x1f9   : > { %v2325_v11 = vmul.f32 %v4666_v33, %v2124_v12  ;;  %v1870_v57 = vpop.f32.mrb[2].mxu1  ;;  %v4711_v12 = vpop.f32.mrb[45].mxu0 }
 0x1fa   : > { %v2400_v63 = vadd.f32 %v4669_v61, %v2324_v24  ;;  %v2128_v54 = vadd.f32 %v4544_v59, %v1870_v57  ;;  %v1872_v25 = vpop.f32.mrb[3].mxu1 }
 0x1fb   : > { %v2401_v26 = vadd.f32 %v4674_v13, %v2325_v11  ;;  %v2130_v49 = vadd.f32 %v4548_v51, %v1872_v25 }
 0x1fc   : > { %2464 = vst [vmem:[%s4682_s14] sm:$0xff] %v2400_v63  ;;  %v2326_v1 = vmul.f32 %v4664_v32, %v2128_v54  ;;  %v4718_v54 = vpop.f32.mrb[46].mxu0 }
 0x1fd   : > { %2465 = vst [vmem:[%s4682_s14 + $0x8] sm:$0xff] %v2401_v26  ;;  %v2327_v37 = vmul.f32 %v4666_v33, %v2130_v49  ;;  %v4722_v26 = vpop.f32.mrb[47].mxu0 }
 0x1fe   : > { %v2402_v56 = vadd.f32 %v4669_v61, %v2326_v1 }
 0x1ff   : > { %v2403_v59 = vadd.f32 %v4674_v13, %v2327_v37 }
 0x200   : > { %2466 = vst [vmem:[%s4682_s14 + $0x10] sm:$0xff] %v2402_v56  ;;  %v1876_v3 = vpop.f32.mrb[4].mxu1  ;;  %v4727_v56 = vpop.f32.mrb[48].mxu0 }
 0x201   : > { %2467 = vst [vmem:[%s4682_s14 + $0x18] sm:$0xff] %v2403_v59  ;;  %v2134_v51 = vadd.f32 %v4552_v36, %v1876_v3  ;;  %v1878_v41 = vpop.f32.mrb[5].mxu1  ;;  %v4730_v59 = vpop.f32.mrb[49].mxu0 }
 0x202   : > { %v2136_v0 = vadd.f32 %v4556_v62, %v1878_v41 }
 0x203   : > { %v2328_v34 = vmul.f32 %v4664_v32, %v2134_v51 }
 0x204   : > { %v2329_v18 = vmul.f32 %v4666_v33, %v2136_v0  ;;  %v4736_v0 = vpop.f32.mrb[50].mxu0 }
 0x205   : > { %v2404_v24 = vadd.f32 %v4669_v61, %v2328_v34  ;;  %v1882_v11 = vpop.f32.mrb[6].mxu1 }
 0x206   : > { %v2405_v57 = vadd.f32 %v4674_v13, %v2329_v18  ;;  %v2140_v36 = vadd.f32 %v4560_v28, %v1882_v11  ;;  %v1884_v63 = vpop.f32.mrb[7].mxu1  ;;  %v4739_v18 = vpop.f32.mrb[51].mxu0 }
 0x207   : > { %2468 = vst [vmem:[%s4682_s14 + $0x20] sm:$0xff] %v2404_v24  ;;  %v2142_v62 = vadd.f32 %v4564_v29, %v1884_v63 }
 0x208   : > { %2469 = vst [vmem:[%s4682_s14 + $0x28] sm:$0xff] %v2405_v57  ;;  %v2330_v25 = vmul.f32 %v4664_v32, %v2140_v36  ;;  %v4746_v63 = vpop.f32.mrb[52].mxu0 }
 0x209   : > { %v2331_v49 = vmul.f32 %v4666_v33, %v2142_v62 }
 0x20a   : > { %v2406_v1 = vadd.f32 %v4669_v61, %v2330_v25  ;;  %v4750_v25 = vpop.f32.mrb[53].mxu0 }
 0x20b   : > { %v2407_v37 = vadd.f32 %v4674_v13, %v2331_v49 }
 0x20c   : > { %2470 = vst [vmem:[%s4682_s14 + $0x30] sm:$0xff] %v2406_v1  ;;  %v1888_v28 = vpop.f32.mrb[8].mxu1 }
 0x20d   : > { %2471 = vst [vmem:[%s4682_s14 + $0x38] sm:$0xff] %v2407_v37  ;;  %v2146_v29 = vadd.f32 %v4568_v45, %v1888_v28  ;;  %v1890_v3 = vpop.f32.mrb[9].mxu1  ;;  %v4755_v28 = vpop.f32.mrb[54].mxu0 }
 0x20e   : > { %v2148_v51 = vadd.f32 %v4572_v46, %v1890_v3 }
 0x20f   : > { %v2332_v41 = vmul.f32 %v4664_v32, %v2146_v29  ;;  %v4758_v29 = vpop.f32.mrb[55].mxu0 }
 0x210   : > { %v2333_v34 = vmul.f32 %v4666_v33, %v2148_v51 }
 0x211   : > { %v2408_v24 = vadd.f32 %v4669_v61, %v2332_v41  ;;  %v1894_v11 = vpop.f32.mrb[10].mxu1 }
 0x212   : > { %v2409_v57 = vadd.f32 %v4674_v13, %v2333_v34  ;;  %v2152_v45 = vadd.f32 %v4576_v2, %v1894_v11  ;;  %v1896_v36 = vpop.f32.mrb[11].mxu1 }
 0x213   : > { %2472 = vst [vmem:[%s4682_s14 + $0x40] sm:$0xff] %v2408_v24  ;;  %v2154_v46 = vadd.f32 %v4580_v53, %v1896_v36  ;;  %v4765_v24 = vpop.f32.mrb[56].mxu0 }
 0x214   : > { %2473 = vst [vmem:[%s4682_s14 + $0x48] sm:$0xff] %v2409_v57  ;;  %v2334_v62 = vmul.f32 %v4664_v32, %v2152_v45  ;;  %v4768_v45 = vpop.f32.mrb[57].mxu0 }
 0x215   : > { %v2335_v49 = vmul.f32 %v4666_v33, %v2154_v46 }
 0x216   : > { %v2410_v1 = vadd.f32 %v4669_v61, %v2334_v62 }
 0x217   : > { %v2411_v37 = vadd.f32 %v4674_v13, %v2335_v49 }
 0x218   : > { %2474 = vst [vmem:[%s4682_s14 + $0x50] sm:$0xff] %v2410_v1  ;;  %v1900_v2 = vpop.f32.mrb[12].mxu1  ;;  %v4777_v1 = vpop.f32.mrb[58].mxu0 }
 0x219   : > { %2475 = vst [vmem:[%s4682_s14 + $0x58] sm:$0xff] %v2411_v37  ;;  %v2158_v53 = vadd.f32 %v4584_v16, %v1900_v2  ;;  %v1902_v3 = vpop.f32.mrb[13].mxu1  ;;  %v4780_v2 = vpop.f32.mrb[59].mxu0 }
 0x21a   : > { %v2160_v51 = vadd.f32 %v4588_v17, %v1902_v3 }
 0x21b   : > { %v2336_v41 = vmul.f32 %v4664_v32, %v2158_v53 }
 0x21c   : > { %v2337_v34 = vmul.f32 %v4666_v33, %v2160_v51 }
 0x21d   : > { %v2412_v11 = vadd.f32 %v4669_v61, %v2336_v41  ;;  %v1906_v57 = vpop.f32.mrb[14].mxu1 }
 0x21e   : > { %v2413_v36 = vadd.f32 %v4674_v13, %v2337_v34  ;;  %v2164_v16 = vadd.f32 %v4592_v14, %v1906_v57  ;;  %v1908_v46 = vpop.f32.mrb[15].mxu1 }
 0x21f   : > { %2476 = vst [vmem:[%s4682_s14 + $0x60] sm:$0xff] %v2412_v11  ;;  %v2166_v17 = vadd.f32 %v4596_v48, %v1908_v46  ;;  %v4789_v11 = vpop.f32.mrb[60].mxu0 }
 0x220   : > { %2477 = vst [vmem:[%s4682_s14 + $0x68] sm:$0xff] %v2413_v36  ;;  %v2338_v62 = vmul.f32 %v4664_v32, %v2164_v16  ;;  %v4792_v16 = vpop.f32.mrb[61].mxu0 }
 0x221   : > { %v2339_v49 = vmul.f32 %v4666_v33, %v2166_v17 }
 0x222   : > { %v2414_v37 = vadd.f32 %v4669_v61, %v2338_v62 }
 0x223   : > { %v2415_v53 = vadd.f32 %v4674_v13, %v2339_v49  ;;  %v4800_v49 = vpop.f32.mrb[62].mxu0 }
 0x224   : > { %2478 = vst [vmem:[%s4682_s14 + $0x70] sm:$0xff] %v2414_v37  ;;  %v1912_v14 = vpop.f32.mrb[16].mxu1 }
 0x225   : > { %2479 = vst [vmem:[%s4682_s14 + $0x78] sm:$0xff] %v2415_v53  ;;  %v2170_v48 = vadd.f32 %v4600_v30, %v1912_v14  ;;  %v1914_v3 = vpop.f32.mrb[17].mxu1  ;;  %v4803_v53 = vpop.f32.mrb[63].mxu0 }
 0x226   : > { %v2172_v51 = vadd.f32 %v4604_v47, %v1914_v3 }
 0x227   : > { %v2340_v41 = vmul.f32 %v4664_v32, %v2170_v48 }
 0x228   : > { %v2341_v34 = vmul.f32 %v4666_v33, %v2172_v51 }
 0x229   : > { %v2416_v57 = vadd.f32 %v4669_v61, %v2340_v41  ;;  %v1918_v36 = vpop.f32.mrb[18].mxu1 }
 0x22a   : > { %v2417_v46 = vadd.f32 %v4674_v13, %v2341_v34  ;;  %v2176_v30 = vadd.f32 %v4608_v4, %v1918_v36  ;;  %v1920_v17 = vpop.f32.mrb[19].mxu1 }
 0x22b   : > { %2480 = vst [vmem:[%s4682_s14 + $0x80] sm:$0xff] %v2416_v57  ;;  %v2178_v47 = vadd.f32 %v4613_v10, %v1920_v17 }
 0x22c   : > { %2481 = vst [vmem:[%s4682_s14 + $0x88] sm:$0xff] %v2417_v46  ;;  %v2342_v62 = vmul.f32 %v4664_v32, %v2176_v30 }
 0x22d   : > { %v2343_v37 = vmul.f32 %v4666_v33, %v2178_v47 }
 0x22e   : > { %v2418_v14 = vadd.f32 %v4669_v61, %v2342_v62 }
 0x22f   : > { %v2419_v48 = vadd.f32 %v4674_v13, %v2343_v37 }
 0x230   : > { %2482 = vst [vmem:[%s4682_s14 + $0x90] sm:$0xff] %v2418_v14  ;;  %v1924_v4 = vpop.f32.mrb[20].mxu1 }
 0x231   : > { %2483 = vst [vmem:[%s4682_s14 + $0x98] sm:$0xff] %v2419_v48  ;;  %v2182_v10 = vadd.f32 %v4617_v43, %v1924_v4  ;;  %v1926_v3 = vpop.f32.mrb[21].mxu1 }
 0x232   : > { %v2184_v51 = vadd.f32 %v4621_v44, %v1926_v3 }
 0x233   : > { %v2344_v41 = vmul.f32 %v4664_v32, %v2182_v10 }
 0x234   : > { %v2345_v34 = vmul.f32 %v4666_v33, %v2184_v51 }
 0x235   : > { %v2420_v57 = vadd.f32 %v4669_v61, %v2344_v41  ;;  %v1930_v36 = vpop.f32.mrb[22].mxu1 }
 0x236   : > { %v2421_v46 = vadd.f32 %v4674_v13, %v2345_v34  ;;  %v2188_v30 = vadd.f32 %v4626_v39, %v1930_v36  ;;  %v1932_v17 = vpop.f32.mrb[23].mxu1 }
 0x237   : > { %2484 = vst [vmem:[%s4682_s14 + $0xa0] sm:$0xff] %v2420_v57  ;;  %v2190_v43 = vadd.f32 %v4630_v27, %v1932_v17 }
 0x238   : > { %2485 = vst [vmem:[%s4682_s14 + $0xa8] sm:$0xff] %v2421_v46  ;;  %v2346_v47 = vmul.f32 %v4664_v32, %v2188_v30 }
 0x239   : > { %v2347_v44 = vmul.f32 %v4666_v33, %v2190_v43 }
 0x23a   : > { %v2422_v62 = vadd.f32 %v4669_v61, %v2346_v47 }
 0x23b   : > { %v2423_v37 = vadd.f32 %v4674_v13, %v2347_v44 }
 0x23c   : > { %2486 = vst [vmem:[%s4682_s14 + $0xb0] sm:$0xff] %v2422_v62  ;;  %v1936_v14 = vpop.f32.mrb[24].mxu1 }
 0x23d   : > { %2487 = vst [vmem:[%s4682_s14 + $0xb8] sm:$0xff] %v2423_v37  ;;  %v2194_v39 = vadd.f32 %v4634_v55, %v1936_v14  ;;  %v1938_v48 = vpop.f32.mrb[25].mxu1 }
 0x23e   : > { %v2196_v27 = vadd.f32 %v4636_v42, %v1938_v48 }
 0x23f   : > { %v2348_v4 = vmul.f32 %v4664_v32, %v2194_v39 }
 0x240   : > { %v2349_v10 = vmul.f32 %v4666_v33, %v2196_v27 }
 0x241   : > { %v2424_v3 = vadd.f32 %v4669_v61, %v2348_v4  ;;  %v1942_v51 = vpop.f32.mrb[26].mxu1 }
 0x242   : > { %v2425_v41 = vadd.f32 %v4674_v13, %v2349_v10  ;;  %v2200_v34 = vadd.f32 %v4638_v40, %v1942_v51  ;;  %v1944_v57 = vpop.f32.mrb[27].mxu1 }
 0x243   : > { %2488 = vst [vmem:[%s4682_s14 + $0xc0] sm:$0xff] %v2424_v3  ;;  %v2202_v55 = vadd.f32 %v4640_v31, %v1944_v57 }
 0x244   : > { %2489 = vst [vmem:[%s4682_s14 + $0xc8] sm:$0xff] %v2425_v41  ;;  %v2350_v36 = vmul.f32 %v4664_v32, %v2200_v34 }
 0x245   : > { %v2351_v42 = vmul.f32 %v4666_v33, %v2202_v55 }
 0x246   : > { %v2426_v46 = vadd.f32 %v4669_v61, %v2350_v36 }
 0x247   : > { %v2427_v30 = vadd.f32 %v4674_v13, %v2351_v42 }
 0x248   : > { %2490 = vst [vmem:[%s4682_s14 + $0xd0] sm:$0xff] %v2426_v46  ;;  %v1948_v17 = vpop.f32.mrb[28].mxu1 }
 0x249   : > { %2491 = vst [vmem:[%s4682_s14 + $0xd8] sm:$0xff] %v2427_v30  ;;  %v2206_v40 = vadd.f32 %v4642_v38, %v1948_v17  ;;  %v1950_v43 = vpop.f32.mrb[29].mxu1 }
 0x24a   : > { %v2208_v31 = vadd.f32 %v4644_v8, %v1950_v43 }
 0x24b   : > { %v2352_v47 = vmul.f32 %v4664_v32, %v2206_v40 }
 0x24c   : > { %v2353_v44 = vmul.f32 %v4666_v33, %v2208_v31 }
 0x24d   : > { %v2428_v62 = vadd.f32 %v4669_v61, %v2352_v47  ;;  %v1954_v37 = vpop.f32.mrb[30].mxu1 }
 0x24e   : > { %v2429_v14 = vadd.f32 %v4674_v13, %v2353_v44  ;;  %v2212_v39 = vadd.f32 %v4646_v52, %v1954_v37  ;;  %v1956_v48 = vpop.f32.mrb[31].mxu1 }
 0x24f   : > { %2492 = vst [vmem:[%s4682_s14 + $0xe0] sm:$0xff] %v2428_v62  ;;  %v2214_v38 = vadd.f32 %v4648_v35, %v1956_v48 }
 0x250   : > { %2493 = vst [vmem:[%s4682_s14 + $0xe8] sm:$0xff] %v2429_v14  ;;  %v2354_v27 = vmul.f32 %v4664_v32, %v2212_v39 }
 0x251   : > { %v2355_v8 = vmul.f32 %v4666_v33, %v2214_v38 }
 0x252   : > { %v2430_v4 = vadd.f32 %v4669_v61, %v2354_v27 }
 0x253   : > { %v2431_v10 = vadd.f32 %v4674_v13, %v2355_v8 }
 0x254   : > { %2494 = vst [vmem:[%s4682_s14 + $0xf0] sm:$0xff] %v2430_v4  ;;  %v1960_v3 = vpop.f32.mrb[32].mxu1 }
 0x255   : > { %2495 = vst [vmem:[%s4682_s14 + $0xf8] sm:$0xff] %v2431_v10  ;;  %v2218_v52 = vadd.f32 %v4650_v58, %v1960_v3  ;;  %v1962_v51 = vpop.f32.mrb[33].mxu1 }
 0x256   : > { %v2220_v35 = vadd.f32 %v4652_v50, %v1962_v51 }
 0x257   : > { %v2356_v41 = vmul.f32 %v4664_v32, %v2218_v52 }
 0x258   : > { %v2357_v34 = vmul.f32 %v4666_v33, %v2220_v35 }
 0x259   : > { %v2432_v57 = vadd.f32 %v4669_v61, %v2356_v41  ;;  %v1966_v55 = vpop.f32.mrb[34].mxu1 }
 0x25a   : > { %v2433_v36 = vadd.f32 %v4674_v13, %v2357_v34  ;;  %v2224_v42 = vadd.f32 %v4655_v60, %v1966_v55  ;;  %v1968_v46 = vpop.f32.mrb[35].mxu1 }
 0x25b   : > { %2496 = vst [vmem:[%s4682_s14 + $0x100] sm:$0xff] %v2432_v57  ;;  %v2226_v58 = vadd.f32 %v4657_v19, %v1968_v46 }
 0x25c   : > { %2497 = vst [vmem:[%s4682_s14 + $0x108] sm:$0xff] %v2433_v36  ;;  %v2358_v30 = vmul.f32 %v4664_v32, %v2224_v42 }
 0x25d   : > { %v2359_v50 = vmul.f32 %v4666_v33, %v2226_v58 }
 0x25e   : > { %v2434_v17 = vadd.f32 %v4669_v61, %v2358_v30 }
 0x25f   : > { %v2435_v40 = vadd.f32 %v4674_v13, %v2359_v50 }
 0x260   : > { %2498 = vst [vmem:[%s4682_s14 + $0x110] sm:$0xff] %v2434_v17  ;;  %v1972_v43 = vpop.f32.mrb[36].mxu1 }
 0x261   : > { %2499 = vst [vmem:[%s4682_s14 + $0x118] sm:$0xff] %v2435_v40  ;;  %v2230_v60 = vadd.f32 %v4660_v6, %v1972_v43  ;;  %v1974_v31 = vpop.f32.mrb[37].mxu1 }
 0x262   : > { %v2232_v19 = vadd.f32 %v4662_v9, %v1974_v31 }
 0x263   : > { %v2360_v47 = vmul.f32 %v4664_v32, %v2230_v60 }
 0x264   : > { %v2361_v44 = vmul.f32 %v4666_v33, %v2232_v19 }
 0x265   : > { %v2436_v62 = vadd.f32 %v4669_v61, %v2360_v47  ;;  %v1978_v37 = vpop.f32.mrb[38].mxu1 }
 0x266   : > { %v2437_v14 = vadd.f32 %v4674_v13, %v2361_v44  ;;  %v2236_v39 = vadd.f32 %v4671_v7, %v1978_v37  ;;  %v1980_v48 = vpop.f32.mrb[39].mxu1 }
 0x267   : > { %2500 = vst [vmem:[%s4682_s14 + $0x120] sm:$0xff] %v2436_v62  ;;  %v2238_v6 = vadd.f32 %v4676_v21, %v1980_v48 }
 0x268   : > { %2501 = vst [vmem:[%s4682_s14 + $0x128] sm:$0xff] %v2437_v14  ;;  %v2362_v38 = vmul.f32 %v4664_v32, %v2236_v39 }
 0x269   : > { %v2363_v9 = vmul.f32 %v4666_v33, %v2238_v6 }
 0x26a   : > { %v2438_v27 = vadd.f32 %v4669_v61, %v2362_v38 }
 0x26b   : > { %v2439_v8 = vadd.f32 %v4674_v13, %v2363_v9 }
 0x26c   : > { %2502 = vst [vmem:[%s4682_s14 + $0x130] sm:$0xff] %v2438_v27  ;;  %v1984_v4 = vpop.f32.mrb[40].mxu1 }
 0x26d   : > { %2503 = vst [vmem:[%s4682_s14 + $0x138] sm:$0xff] %v2439_v8  ;;  %v2242_v7 = vadd.f32 %v4687_v20, %v1984_v4  ;;  %v1986_v10 = vpop.f32.mrb[41].mxu1 }
 0x26e   : > { %v2244_v21 = vadd.f32 %v4691_v22, %v1986_v10 }
 0x26f   : > { %v2364_v3 = vmul.f32 %v4664_v32, %v2242_v7 }
 0x270   : > { %v2365_v52 = vmul.f32 %v4666_v33, %v2244_v21 }
 0x271   : > { %v2440_v51 = vadd.f32 %v4669_v61, %v2364_v3  ;;  %v1990_v35 = vpop.f32.mrb[42].mxu1 }
 0x272   : > { %v2441_v41 = vadd.f32 %v4674_v13, %v2365_v52  ;;  %v2248_v34 = vadd.f32 %v4699_v23, %v1990_v35  ;;  %v1992_v57 = vpop.f32.mrb[43].mxu1 }
 0x273   : > { %2504 = vst [vmem:[%s4682_s14 + $0x140] sm:$0xff] %v2440_v51  ;;  %v2250_v20 = vadd.f32 %v4702_v5, %v1992_v57 }
 0x274   : > { %2505 = vst [vmem:[%s4682_s14 + $0x148] sm:$0xff] %v2441_v41  ;;  %v2366_v55 = vmul.f32 %v4664_v32, %v2248_v34 }
 0x275   : > { %v2367_v22 = vmul.f32 %v4666_v33, %v2250_v20 }
 0x276   : > { %v2442_v36 = vadd.f32 %v4669_v61, %v2366_v55 }
 0x277   : > { %v2443_v42 = vadd.f32 %v4674_v13, %v2367_v22 }
 0x278   : > { %2506 = vst [vmem:[%s4682_s14 + $0x150] sm:$0xff] %v2442_v36  ;;  %v1996_v46 = vpop.f32.mrb[44].mxu1 }
 0x279   : > { %2507 = vst [vmem:[%s4682_s14 + $0x158] sm:$0xff] %v2443_v42  ;;  %v2254_v23 = vadd.f32 %v4708_v15, %v1996_v46  ;;  %v1998_v58 = vpop.f32.mrb[45].mxu1 }
 0x27a   : > { %v2256_v5 = vadd.f32 %v4711_v12, %v1998_v58 }
 0x27b   : > { %v2368_v30 = vmul.f32 %v4664_v32, %v2254_v23 }
 0x27c   : > { %v2369_v50 = vmul.f32 %v4666_v33, %v2256_v5 }
 0x27d   : > { %v2444_v17 = vadd.f32 %v4669_v61, %v2368_v30  ;;  %v2002_v40 = vpop.f32.mrb[46].mxu1 }
 0x27e   : > { %v2445_v43 = vadd.f32 %v4674_v13, %v2369_v50  ;;  %v2260_v60 = vadd.f32 %v4718_v54, %v2002_v40  ;;  %v2004_v31 = vpop.f32.mrb[47].mxu1 }
 0x27f   : > { %2508 = vst [vmem:[%s4682_s14 + $0x160] sm:$0xff] %v2444_v17  ;;  %v2262_v15 = vadd.f32 %v4722_v26, %v2004_v31 }
 0x280   : > { %2509 = vst [vmem:[%s4682_s14 + $0x168] sm:$0xff] %v2445_v43  ;;  %v2370_v19 = vmul.f32 %v4664_v32, %v2260_v60 }
 0x281   : > { %v2371_v12 = vmul.f32 %v4666_v33, %v2262_v15 }
 0x282   : > { %v2446_v47 = vadd.f32 %v4669_v61, %v2370_v19 }
 0x283   : > { %v2447_v44 = vadd.f32 %v4674_v13, %v2371_v12 }
 0x284   : > { %2510 = vst [vmem:[%s4682_s14 + $0x170] sm:$0xff] %v2446_v47  ;;  %v2008_v62 = vpop.f32.mrb[48].mxu1 }
 0x285   : > { %2511 = vst [vmem:[%s4682_s14 + $0x178] sm:$0xff] %v2447_v44  ;;  %v2266_v54 = vadd.f32 %v4727_v56, %v2008_v62  ;;  %v2010_v37 = vpop.f32.mrb[49].mxu1 }
 0x286   : > { %v2268_v26 = vadd.f32 %v4730_v59, %v2010_v37 }
 0x287   : > { %v2372_v14 = vmul.f32 %v4664_v32, %v2266_v54 }
 0x288   : > { %v2373_v39 = vmul.f32 %v4666_v33, %v2268_v26 }
 0x289   : > { %v2448_v48 = vadd.f32 %v4669_v61, %v2372_v14  ;;  %v2014_v6 = vpop.f32.mrb[50].mxu1 }
 0x28a   : > { %v2449_v38 = vadd.f32 %v4674_v13, %v2373_v39  ;;  %v2272_v9 = vadd.f32 %v4736_v0, %v2014_v6  ;;  %v2016_v27 = vpop.f32.mrb[51].mxu1 }
 0x28b   : > { %2512 = vst [vmem:[%s4682_s14 + $0x180] sm:$0xff] %v2448_v48  ;;  %v2274_v56 = vadd.f32 %v4739_v18, %v2016_v27 }
 0x28c   : > { %2513 = vst [vmem:[%s4682_s14 + $0x188] sm:$0xff] %v2449_v38  ;;  %v2374_v8 = vmul.f32 %v4664_v32, %v2272_v9 }
 0x28d   : > { %v2375_v59 = vmul.f32 %v4666_v33, %v2274_v56 }
 0x28e   : > { %v2450_v4 = vadd.f32 %v4669_v61, %v2374_v8 }
 0x28f   : > { %v2451_v7 = vadd.f32 %v4674_v13, %v2375_v59 }
 0x290   : > { %2514 = vst [vmem:[%s4682_s14 + $0x190] sm:$0xff] %v2450_v4  ;;  %v2020_v10 = vpop.f32.mrb[52].mxu1 }
 0x291   : > { %2515 = vst [vmem:[%s4682_s14 + $0x198] sm:$0xff] %v2451_v7  ;;  %v2278_v0 = vadd.f32 %v4746_v63, %v2020_v10  ;;  %v2022_v21 = vpop.f32.mrb[53].mxu1 }
 0x292   : > { %v2280_v18 = vadd.f32 %v4750_v25, %v2022_v21 }
 0x293   : > { %v2376_v3 = vmul.f32 %v4664_v32, %v2278_v0 }
 0x294   : > { %v2377_v52 = vmul.f32 %v4666_v33, %v2280_v18 }
 0x295   : > { %v2452_v51 = vadd.f32 %v4669_v61, %v2376_v3  ;;  %v2026_v35 = vpop.f32.mrb[54].mxu1 }
 0x296   : > { %v2453_v41 = vadd.f32 %v4674_v13, %v2377_v52  ;;  %v2284_v34 = vadd.f32 %v4755_v28, %v2026_v35  ;;  %v2028_v57 = vpop.f32.mrb[55].mxu1 }
 0x297   : > { %2516 = vst [vmem:[%s4682_s14 + $0x1a0] sm:$0xff] %v2452_v51  ;;  %v2286_v63 = vadd.f32 %v4758_v29, %v2028_v57 }
 0x298   : > { %2517 = vst [vmem:[%s4682_s14 + $0x1a8] sm:$0xff] %v2453_v41  ;;  %v2378_v20 = vmul.f32 %v4664_v32, %v2284_v34 }
 0x299   : > { %v2379_v25 = vmul.f32 %v4666_v33, %v2286_v63 }
 0x29a   : > { %v2454_v55 = vadd.f32 %v4669_v61, %v2378_v20 }
 0x29b   : > { %v2455_v22 = vadd.f32 %v4674_v13, %v2379_v25 }
 0x29c   : > { %2518 = vst [vmem:[%s4682_s14 + $0x1b0] sm:$0xff] %v2454_v55  ;;  %v2032_v36 = vpop.f32.mrb[56].mxu1 }
 0x29d   : > { %2519 = vst [vmem:[%s4682_s14 + $0x1b8] sm:$0xff] %v2455_v22  ;;  %v2290_v28 = vadd.f32 %v4765_v24, %v2032_v36  ;;  %v2034_v42 = vpop.f32.mrb[57].mxu1 }
 0x29e   : > { %v2292_v29 = vadd.f32 %v4768_v45, %v2034_v42 }
 0x29f   : > { %v2380_v46 = vmul.f32 %v4664_v32, %v2290_v28 }
 0x2a0   : > { %v2381_v23 = vmul.f32 %v4666_v33, %v2292_v29 }
 0x2a1   : > { %v2456_v58 = vadd.f32 %v4669_v61, %v2380_v46  ;;  %v2038_v5 = vpop.f32.mrb[58].mxu1 }
 0x2a2   : > { %v2457_v30 = vadd.f32 %v4674_v13, %v2381_v23  ;;  %v2296_v50 = vadd.f32 %v4777_v1, %v2038_v5  ;;  %v2040_v17 = vpop.f32.mrb[59].mxu1 }
 0x2a3   : > { %2520 = vst [vmem:[%s4682_s14 + $0x1c0] sm:$0xff] %v2456_v58  ;;  %v2298_v24 = vadd.f32 %v4780_v2, %v2040_v17 }
 0x2a4   : > { %2521 = vst [vmem:[%s4682_s14 + $0x1c8] sm:$0xff] %v2457_v30  ;;  %v2382_v40 = vmul.f32 %v4664_v32, %v2296_v50 }
 0x2a5   : > { %v2383_v45 = vmul.f32 %v4666_v33, %v2298_v24 }
 0x2a6   : > { %v2458_v43 = vadd.f32 %v4669_v61, %v2382_v40 }
 0x2a7   : > { %v2459_v60 = vadd.f32 %v4674_v13, %v2383_v45 }
 0x2a8   : > { %2522 = vst [vmem:[%s4682_s14 + $0x1d0] sm:$0xff] %v2458_v43  ;;  %v2044_v31 = vpop.f32.mrb[60].mxu1 }
 0x2a9   : > { %2523 = vst [vmem:[%s4682_s14 + $0x1d8] sm:$0xff] %v2459_v60  ;;  %v2302_v1 = vadd.f32 %v4789_v11, %v2044_v31  ;;  %v2046_v15 = vpop.f32.mrb[61].mxu1 }
 0x2aa   : > { %v2304_v2 = vadd.f32 %v4792_v16, %v2046_v15 }
 0x2ab   : > { %v2384_v19 = vmul.f32 %v4664_v32, %v2302_v1 }
 0x2ac   : > { %v2385_v12 = vmul.f32 %v4666_v33, %v2304_v2 }
 0x2ad   : > { %v2460_v47 = vadd.f32 %v4669_v61, %v2384_v19  ;;  %v2050_v44 = vpop.f32.mrb[62].mxu1 }
 0x2ae   : > { %v2461_v62 = vadd.f32 %v4674_v13, %v2385_v12  ;;  %v2308_v54 = vadd.f32 %v4800_v49, %v2050_v44  ;;  %v2052_v37 = vpop.f32.mrb[63].mxu1 }
 0x2af   : > { %2524 = vst [vmem:[%s4682_s14 + $0x1e0] sm:$0xff] %v2460_v47  ;;  %v2310_v11 = vadd.f32 %v4803_v53, %v2052_v37 }
 0x2b0   : > { %2525 = vst [vmem:[%s4682_s14 + $0x1e8] sm:$0xff] %v2461_v62  ;;  %v2386_v26 = vmul.f32 %v4664_v32, %v2308_v54 }
 0x2b1   : > { %v2387_v16 = vmul.f32 %v4666_v33, %v2310_v11 }
 0x2b2   : > { %v2462_v14 = vadd.f32 %v4669_v61, %v2386_v26 }
 0x2b3   : > { %v2463_v39 = vadd.f32 %v4674_v13, %v2387_v16 }
 0x2b4   : > { %2526 = vst [vmem:[%s4682_s14 + $0x1f0] sm:$0xff] %v2462_v14 }
 0x2b5   : > { %2527 = vst [vmem:[%s4682_s14 + $0x1f8] sm:$0xff] %v2463_v39 }
 0x2b6 PF: > { %p16_p9 = scmp.ge.s32.totalorder %s3686_s8, 4   ;;  %s5017_s15 = smov %s3518_s16 }
 0x2b7   : > { %s5018_s16 = smov %s3522_s17  ;;  %s5019_s17 = smov %s3696_s24 }
 0x2b8   : > { %s5020_s18 = smov %s3686_s8  ;;  %18 = sbr.rel (!%p16_p9) target bundleno = 5 (0x5), region = 90 }
 0x2bf   :  { %2549 = vsyncpa [#allocation4], 1 }
 0x2c0   :  { %2551 = vsyncpa [#allocation4 + $0x1], 1 }
 0x2c1   :  { %2552 = vsyncpa [#allocation6], 1 }
 0x2c2   :  { %2553 = vsyncpa [#allocation9], 1 }

// kernel: pseudo_labeler_forward.3
= control target key start
LH: loop header
LB: loop body
LE: loop exit
PB: predicated region body
PF: predicated region fallthrough
CT: control target
= control target key end

     0   :  { %11 = vsyncpa [#allocation4], 0  ;;  %s10399_s0 = inlined_call_operand.vmem [shape: f32[2,16,16,256], index: 0, kind: input, shape index: {}]   ;;  %s10400_s1 = inlined_call_operand.hbm [shape: f32[2304,256], index: 1, kind: input, shape index: {}]   ;;  %s10401_s2 = inlined_call_operand.hbm [shape: f32[1,256], index: 2, kind: input, shape index: {}]   ;;  %s10402_s3 = inlined_call_operand.hbm [shape: f32[1,256], index: 3, kind: input, shape index: {}]   ;;  %s10403_s4 = inlined_call_operand.hbm [shape: f32[256,128], index: 4, kind: input, shape index: {}]   ;;  %s10404_s5 = inlined_call_operand.hbm [shape: f32[1,128], index: 5, kind: input, shape index: {}]   ;;  %s10405_s6 = inlined_call_operand.vmem [shape: f32[2,16,16,128], index: 6, kind: output, shape index: {}]  }
   0x1   :  { %12 = vsyncpa [#allocation6], 0 }
   0x2   :  { %13 = vsyncpa [#allocation9], 0  ;;  %s8253_s21 = smov 0  }
   0x3 LB: > { %s8207_s22 = smov [#allocation5]   ;;  %s8259_s24 = sadd.s32 4294967295, %s8205_s21   ;;  %s8205_s21 = sphi %s8253_s21, %s19_s21  }
   0x4   : > { %s207_s23 = sshll.u32 %s8207_s22, 4  ;;  %p6692_p0 = scmp.ge.s32.totalorder %s8205_s21, 1  ;;  %s208_s23 = int_to_ptr.vmem [resolvable:$true] %s207_s23 }
   0x5   : > { %p181_p1 = scmp.lt.s32.totalorder %s8205_s21, 3  ;;  %p10406_p2 = scmp.eq.s32.totalorder %s8259_s24, 0 }
   0x6   : > { %s8208_s26 = smov [#allocation8]   ;;  %s8209_s29 = smov [#allocation3]  }
   0x7   : > { %p8264_p3 = pnand %p6692_p0, %p181_p1  ;;  %s228_s27 = sshll.u32 %s8208_s26, 4  ;;  %s8270_s27 = int_to_ptr.vmem [resolvable:$true] %s228_s27 }
   0x8   : > { %s193_s30 = sshll.u32 %s8209_s29, 4  ;;  %s8047_s9 = scalar_lea.hbm %s10401_s2, 32  ;;  %s8278_s30 = int_to_ptr.vmem [resolvable:$true] %s193_s30 }
   0x9   : > { %s10414_s25 = scalar_select %p8264_p3, 1, 0 }
   0xa   : > { %p7870_p4 = pneg %p8264_p3  ;;  %p8048_p6 = scmp.ne.s32.totalorder %s10401_s2, %s8047_s9 }
   0xb   : > { %p8054_p10 = scmp.lt.u32.totalorder %s8047_s9, %s10401_s2 }
   0xc   : > { %p8274_p5 = pnand %p10406_p2, %p7870_p4 }
   0xe   : > { %p8288_p7 = pneg %p8274_p5 }
  0x10   : > { %p8050_p8 = pnand %p8288_p7, %p8048_p6 }
  0x12   : > { %p8051_p9 = pneg %p8050_p8 }
  0x14   : > { %p8056_p11 = pnand %p8054_p10, %p8051_p9 }
  0x16   : > { %8059 = shalt.err (!%p8056_p11)
}
  0x17   : > { %s8060_s15 = scalar_lea.vmem %s208_s23, 32  ;;  %p8068_p1 = scmp.lt.s32.totalorder %s208_s23, %s208_s23 }
  0x18   : > { %p8061_p12 = scmp.ne.s32.totalorder %s208_s23, %s8060_s15  ;;  %p8069_p4 = scmp.lt.s32.totalorder %s8060_s15, %s8060_s15 }
  0x1a   : > { %p8063_p13 = pnand %p8061_p12, %p8288_p7  ;;  %p8070_p2 = por %p8069_p4, %p8068_p1 }
  0x1c   : > { %p8064_p0 = pneg %p8063_p13 }
  0x1e   : > { %p8071_p3 = pnand %p8070_p2, %p8064_p0 }
  0x20   : > { %8074 = shalt.err (!%p8071_p3)
}
  0x21   : > { %7876 = dma.hbm_to_vmem [thread:$0]  (!%p8274_p5), %s10401_s2, 32, %s208_s23, [#allocation6]  }
  0x22   : > { %s8075_s20 = scalar_lea.hbm %s10403_s4, 4096 }
  0x23   : > { %p8076_p6 = scmp.ne.s32.totalorder %s10403_s4, %s8075_s20  ;;  %p8082_p2 = scmp.lt.u32.totalorder %s8075_s20, %s10403_s4 }
  0x25   : > { %p8078_p8 = pnand %p8076_p6, %p8288_p7 }
  0x27   : > { %p8079_p9 = pneg %p8078_p8 }
  0x29   : > { %p8084_p3 = pnand %p8082_p2, %p8079_p9 }
  0x2b   : > { %8087 = shalt.err (!%p8084_p3)
}
  0x2c   : > { %s8088_s23 = scalar_lea.vmem %s8270_s27, 4096  ;;  %p8096_p13 = scmp.lt.s32.totalorder %s8270_s27, %s8270_s27 }
  0x2d   : > { %p8089_p10 = scmp.ne.s32.totalorder %s8270_s27, %s8088_s23  ;;  %p8097_p0 = scmp.lt.s32.totalorder %s8088_s23, %s8088_s23 }
  0x2f   : > { %p8091_p11 = pnand %p8089_p10, %p8288_p7  ;;  %p8098_p1 = por %p8097_p0, %p8096_p13 }
  0x31   : > { %p8092_p12 = pneg %p8091_p11 }
  0x33   : > { %p8099_p4 = pnand %p8098_p1, %p8092_p12 }
  0x35   : > { %8102 = shalt.err (!%p8099_p4)
}
  0x36   : > { %s8210_s8 = smov 128   ;;  %s8211_s9 = smov 8  }
  0x37   : > { %7882 = dma.hbm_to_vmem [thread:$0]  (!%p8274_p5), %s10403_s4, 4096, %s8270_s27, [#allocation9], %s8210_s8, %s8210_s8, %s8211_s9  }
  0x38   : > { %s8103_s15 = scalar_lea.hbm %s10400_s1, 73728 }
  0x39   : > { %p8104_p6 = scmp.ne.s32.totalorder %s10400_s1, %s8103_s15  ;;  %p8110_p2 = scmp.lt.u32.totalorder %s8103_s15, %s10400_s1 }
  0x3b   : > { %p8106_p8 = pnand %p8104_p6, %p8288_p7 }
  0x3d   : > { %p8107_p9 = pneg %p8106_p8 }
  0x3f   : > { %p8112_p3 = pnand %p8110_p2, %p8107_p9 }
  0x41   : > { %8115 = shalt.err (!%p8112_p3)
}
  0x42   : > { %s8116_s27 = scalar_lea.vmem %s8278_s30, 73728  ;;  %p8124_p13 = scmp.lt.s32.totalorder %s8278_s30, %s8278_s30 }
  0x43   : > { %p8117_p10 = scmp.ne.s32.totalorder %s8278_s30, %s8116_s27  ;;  %p8125_p0 = scmp.lt.s32.totalorder %s8116_s27, %s8116_s27 }
  0x45   : > { %p8119_p11 = pnand %p8117_p10, %p8288_p7  ;;  %p8126_p1 = por %p8125_p0, %p8124_p13 }
  0x47   : > { %p8120_p12 = pneg %p8119_p11 }
  0x49   : > { %p8127_p4 = pnand %p8126_p1, %p8120_p12 }
  0x4b   : > { %8130 = shalt.err (!%p8127_p4)
}
  0x4c   : > { %s8212_s20 = smov 256   ;;  %s8213_s22 = smov 16  }
  0x4d   : > { %7873 = dma.hbm_to_vmem [thread:$0]  (!%p8274_p5), %s10400_s1, 73728, %s8278_s30, [#allocation4], %s8212_s20, %s8212_s20, %s8213_s22  }
  0x4e   : > { %s8214_s7 = smov [#allocation7]   ;;  %s8215_s8 = smov [#allocation10]  }
  0x4f   : > { %s218_s23 = sshll.u32 %s8214_s7, 4  ;;  %s242_s9 = sshll.u32 %s8215_s8, 4  ;;  %s219_s23 = int_to_ptr.vmem [resolvable:$true] %s218_s23  ;;  %s8350_s9 = int_to_ptr.vmem [resolvable:$true] %s242_s9 }
  0x50   : > { %s8131_s13 = scalar_lea.hbm %s10402_s3, 32 }
  0x51   : > { %p8132_p6 = scmp.ne.s32.totalorder %s10402_s3, %s8131_s13  ;;  %p8138_p2 = scmp.lt.u32.totalorder %s8131_s13, %s10402_s3 }
  0x53   : > { %p8134_p8 = pnand %p8132_p6, %p8288_p7 }
  0x55   : > { %p8135_p9 = pneg %p8134_p8 }
  0x57   : > { %p8140_p3 = pnand %p8138_p2, %p8135_p9 }
  0x59   : > { %8143 = shalt.err (!%p8140_p3)
}
  0x5a   : > { %s8144_s17 = scalar_lea.vmem %s219_s23, 32  ;;  %p8152_p13 = scmp.lt.s32.totalorder %s219_s23, %s219_s23 }
  0x5b   : > { %p8145_p10 = scmp.ne.s32.totalorder %s219_s23, %s8144_s17  ;;  %p8153_p0 = scmp.lt.s32.totalorder %s8144_s17, %s8144_s17 }
  0x5d   : > { %p8147_p11 = pnand %p8145_p10, %p8288_p7  ;;  %p8154_p1 = por %p8153_p0, %p8152_p13 }
  0x5f   : > { %p8148_p12 = pneg %p8147_p11 }
  0x61   : > { %p8155_p4 = pnand %p8154_p1, %p8148_p12 }
  0x63   : > { %8158 = shalt.err (!%p8155_p4)
}
  0x64   : > { %7879 = dma.hbm_to_vmem [thread:$0]  (!%p8274_p5), %s10402_s3, 32, %s219_s23, [#allocation6]  }
  0x65   : > { %s8159_s22 = scalar_lea.hbm %s10404_s5, 16 }
  0x66   : > { %p8160_p6 = scmp.ne.s32.totalorder %s10404_s5, %s8159_s22  ;;  %p8166_p2 = scmp.lt.u32.totalorder %s8159_s22, %s10404_s5 }
  0x68   : > { %p8162_p8 = pnand %p8160_p6, %p8288_p7 }
  0x6a   : > { %p8163_p9 = pneg %p8162_p8 }
  0x6c   : > { %p8168_p3 = pnand %p8166_p2, %p8163_p9 }
  0x6e   : > { %8171 = shalt.err (!%p8168_p3)
}
  0x6f   : > { %s8172_s23 = scalar_lea.vmem %s8350_s9, 16  ;;  %s8179_s10 = scalar_lea.vmem %s8350_s9, 32 }
  0x70   : > { %p8173_p10 = scmp.ne.s32.totalorder %s8350_s9, %s8172_s23  ;;  %p8180_p13 = scmp.lt.s32.totalorder %s8350_s9, %s8350_s9 }
  0x71   : > { %p8181_p0 = scmp.lt.s32.totalorder %s8179_s10, %s8172_s23 }
  0x72   : > { %p8175_p11 = pnand %p8173_p10, %p8288_p7 }
  0x73   : > { %p8182_p1 = por %p8181_p0, %p8180_p13 }
  0x74   : > { %p8176_p12 = pneg %p8175_p11 }
  0x76   : > { %p8183_p4 = pnand %p8182_p1, %p8176_p12 }
  0x78   : > { %8186 = shalt.err (!%p8183_p4)
}
  0x79   : > { %7885 = dma.hbm_to_vmem [thread:$0]  (!%p8274_p5), %s10404_s5, 16, %s8350_s9, [#allocation9]  }
  0x7a   : > { %p10417_p6 = scmp.ne.s32.totalorder %s10414_s25, 0 }
  0x7c   : > { %263 = sbr.rel (%p10417_p6) target bundleno = 1288 (0x508), region = 44 }
  0x83   : > { %p10418_p7 = scmp.eq.s32.totalorder %s8259_s24, 0 }
  0x85   : > { %8192 = dma.done.wait (%p10418_p7), [#allocation4], 73728   ;;  %p10419_p8 = pmov %p10418_p7 }
  0x86   : > { %p10420_p9 = pmov %p10418_p7 }
  0x87   : > { %8194 = vsyncadd (%p10419_p8), [#allocation4], 4294893568 }
  0x88   : > { %8196 = dma.done.wait (%p10420_p9), [#allocation6], 64   ;;  %p10421_p2 = pmov %p10418_p7 }
  0x8a   : > { %8198 = vsyncadd (%p10421_p2), [#allocation6], 4294967232  ;;  %p10422_p3 = pmov %p10421_p2 }
  0x8b   : > { %p10423_p5 = pmov %p10421_p2 }
  0x8c   : > { %8200 = dma.done.wait (%p10422_p3), [#allocation9], 4112  }
  0x8d   : > { %8202 = vsyncadd (%p10423_p5), [#allocation9], 4294963184  ;;  %v8216_v0 = vmov 0.0   ;;  %v3249_v1 = vld [vmem:[#allocation3 + $0x8] sm:$0xff]  ;;  %v3251_v2 = vld [vmem:[#allocation3 + $0x18] sm:$0xff]  ;;  %p309_p10 = scmp.lt.s32.totalorder %s8259_s24, 1 }
  0x8e   : > { %320 = vst [vmem:[#allocation2 + $0x8] sm:$0xff] %v8216_v0  ;;  %3888 = vmatprep.mubr.f32.mxu1 %v8216_v0  ;;  %319 = vst [vmem:[#allocation2] sm:$0xff] %v8216_v0  ;;  %v3505_v3 = vld [vmem:[#allocation3 + $0x808] sm:$0xff]  ;;  %v6714_v4 = vpack.c.bf16 %v3251_v2, %v3249_v1  ;;  %v3507_v5 = vld [vmem:[#allocation3 + $0x818] sm:$0xff]  ;;  %vm555_vm0 = vcmask 1040384   ;;  %vm1069_vm1 = vcmask 1046528  }
  0x8f   : > { %323 = vst [vmem:[#allocation2 + $0x20] sm:$0x3] %v8216_v0  ;;  %324 = vst [vmem:[#allocation2 + $0x28] sm:$0x3] %v8216_v0  ;;  %v3248_v6 = vld [vmem:[#allocation3] sm:$0xff]  ;;  %v3250_v7 = vld [vmem:[#allocation3 + $0x10] sm:$0xff]  ;;  %v6970_v8 = vpack.c.bf16 %v3507_v5, %v3505_v3 }
  0x90   : > { %325 = vst [vmem:[#allocation2 + $0x30] sm:$0xff] %v8216_v0  ;;  %326 = vst [vmem:[#allocation2 + $0x38] sm:$0xff] %v8216_v0  ;;  %v6716_v9 = vpack.c.bf16 %v3250_v7, %v3248_v6  ;;  %v3504_v10 = vld [vmem:[#allocation3 + $0x800] sm:$0xff]  ;;  %v3506_v11 = vld [vmem:[#allocation3 + $0x810] sm:$0xff]  ;;  %6715 = vmatprep.subr.bf16.mxu1 %v6714_v4  ;;  %s10469_s24 = smov (!%p309_p10, %s8259_s24), 1  ;;  %vm1422_vm2 = vcmask 1045504  }
  0x91   : > { %329 = vst [vmem:[#allocation2 + $0x50] sm:$0x3] %v8216_v0  ;;  %330 = vst [vmem:[#allocation2 + $0x58] sm:$0x3] %v8216_v0  ;;  %v3253_v12 = vld [vmem:[#allocation3 + $0x28] sm:$0xff]  ;;  %v6972_v13 = vpack.c.bf16 %v3506_v11, %v3504_v10  ;;  %v3255_v14 = vld [vmem:[#allocation3 + $0x38] sm:$0xff]  ;;  %6971 = vmatprep.subr.bf16.mxu0 %v6970_v8 }
  0x92   : > { %331 = vst [vmem:[#allocation2 + $0x60] sm:$0xff] %v8216_v0  ;;  %332 = vst [vmem:[#allocation2 + $0x68] sm:$0xff] %v8216_v0  ;;  %v3509_v15 = vld [vmem:[#allocation3 + $0x828] sm:$0xff]  ;;  %v3511_v16 = vld [vmem:[#allocation3 + $0x838] sm:$0xff]  ;;  %6717 = vmatpush1.bf16.msra.mxu1 %v6716_v9  ;;  %v6718_v17 = vpack.c.bf16 %v3255_v14, %v3253_v12  ;;  %s6712_s25 = sshll.u32 %s10469_s24, 9  ;;  %s6713_s14 = sshll.u32 %s10469_s24, 8 }
  0x93   : > { %335 = vst [vmem:[#allocation2 + $0x80] sm:$0x3] %v8216_v0  ;;  %336 = vst [vmem:[#allocation2 + $0x88] sm:$0x3] %v8216_v0  ;;  %v6974_v18 = vpack.c.bf16 %v3511_v16, %v3509_v15  ;;  %v3252_v19 = vld [vmem:[#allocation3 + $0x20] sm:$0xff]  ;;  %v3254_v20 = vld [vmem:[#allocation3 + $0x30] sm:$0xff]  ;;  %6973 = vmatpush1.bf16.msra.mxu0 %v6972_v13  ;;  %s8491_s9 = scalar_lea.vmem %s10399_s0, %s6712_s25  ;;  %s10330_s30 = scalar_lea.vmem %s10405_s6, %s6713_s14 }
  0x94   : > { %337 = vst [vmem:[#allocation2 + $0x90] sm:$0xff] %v8216_v0  ;;  %338 = vst [vmem:[#allocation2 + $0x98] sm:$0xff] %v8216_v0  ;;  %v3508_v21 = vld [vmem:[#allocation3 + $0x820] sm:$0xff]  ;;  %v6720_v22 = vpack.c.bf16 %v3254_v20, %v3252_v19  ;;  %v3510_v23 = vld [vmem:[#allocation3 + $0x830] sm:$0xff]  ;;  %6719 = vmatprep.subr.bf16.mxu1 %v6718_v17 }
  0x95   : > { %341 = vst [vmem:[#allocation2 + $0xb0] sm:$0x3] %v8216_v0  ;;  %342 = vst [vmem:[#allocation2 + $0xb8] sm:$0x3] %v8216_v0  ;;  %v3257_v24 = vld [vmem:[#allocation3 + $0x48] sm:$0xff]  ;;  %v3259_v25 = vld [vmem:[#allocation3 + $0x58] sm:$0xff]  ;;  %6975 = vmatprep.subr.bf16.mxu0 %v6974_v18  ;;  %v6976_v26 = vpack.c.bf16 %v3510_v23, %v3508_v21 }
  0x96   : > { %343 = vst [vmem:[#allocation2 + $0xc0] sm:$0xff] %v8216_v0  ;;  %344 = vst [vmem:[#allocation2 + $0xc8] sm:$0xff] %v8216_v0  ;;  %v6722_v27 = vpack.c.bf16 %v3259_v25, %v3257_v24  ;;  %v3513_v28 = vld [vmem:[#allocation3 + $0x848] sm:$0xff]  ;;  %v3515_v29 = vld [vmem:[#allocation3 + $0x858] sm:$0xff]  ;;  %6721 = vmatpush1.bf16.msra.mxu1 %v6720_v22 }
  0x97   : > { %347 = vst [vmem:[#allocation2 + $0xe0] sm:$0x3] %v8216_v0  ;;  %348 = vst [vmem:[#allocation2 + $0xe8] sm:$0x3] %v8216_v0  ;;  %v3256_v30 = vld [vmem:[#allocation3 + $0x40] sm:$0xff]  ;;  %v6978_v31 = vpack.c.bf16 %v3515_v29, %v3513_v28  ;;  %v3258_v32 = vld [vmem:[#allocation3 + $0x50] sm:$0xff]  ;;  %6977 = vmatpush1.bf16.msra.mxu0 %v6976_v26 }
  0x98   : > { %349 = vst [vmem:[#allocation2 + $0xf0] sm:$0xff] %v8216_v0  ;;  %350 = vst [vmem:[#allocation2 + $0xf8] sm:$0xff] %v8216_v0  ;;  %v3512_v33 = vld [vmem:[#allocation3 + $0x840] sm:$0xff]  ;;  %v3514_v34 = vld [vmem:[#allocation3 + $0x850] sm:$0xff]  ;;  %v6724_v35 = vpack.c.bf16 %v3258_v32, %v3256_v30  ;;  %6723 = vmatprep.subr.bf16.mxu1 %v6722_v27 }
  0x99   : > { %353 = vst [vmem:[#allocation2 + $0x110] sm:$0x3] %v8216_v0  ;;  %354 = vst [vmem:[#allocation2 + $0x118] sm:$0x3] %v8216_v0  ;;  %v3261_v36 = vld [vmem:[#allocation3 + $0x68] sm:$0xff]  ;;  %v3263_v37 = vld [vmem:[#allocation3 + $0x78] sm:$0xff]  ;;  %v6980_v39 = vpack.c.bf16 %v3514_v34, %v3512_v33  ;;  %6979 = vmatprep.subr.bf16.mxu0 %v6978_v31 }
  0x9a   : > { %355 = vst [vmem:[#allocation2 + $0x120] sm:$0xff] %v8216_v0  ;;  %356 = vst [vmem:[#allocation2 + $0x128] sm:$0xff] %v8216_v0  ;;  %v3517_v38 = vld [vmem:[#allocation3 + $0x868] sm:$0xff]  ;;  %v6726_v40 = vpack.c.bf16 %v3263_v37, %v3261_v36  ;;  %v3519_v41 = vld [vmem:[#allocation3 + $0x878] sm:$0xff]  ;;  %6725 = vmatpush1.bf16.msra.mxu1 %v6724_v35 }
  0x9b   : > { %359 = vst [vmem:[#allocation2 + $0x140] sm:$0x3] %v8216_v0  ;;  %360 = vst [vmem:[#allocation2 + $0x148] sm:$0x3] %v8216_v0  ;;  %v3260_v42 = vld [vmem:[#allocation3 + $0x60] sm:$0xff]  ;;  %v3262_v43 = vld [vmem:[#allocation3 + $0x70] sm:$0xff]  ;;  %v6982_v44 = vpack.c.bf16 %v3519_v41, %v3517_v38  ;;  %6981 = vmatpush1.bf16.msra.mxu0 %v6980_v39 }
  0x9c   : > { %361 = vst [vmem:[#allocation2 + $0x150] sm:$0xff] %v8216_v0  ;;  %362 = vst [vmem:[#allocation2 + $0x158] sm:$0xff] %v8216_v0  ;;  %v3516_v45 = vld [vmem:[#allocation3 + $0x860] sm:$0xff]  ;;  %v3518_v46 = vld [vmem:[#allocation3 + $0x870] sm:$0xff]  ;;  %v6728_v51 = vpack.c.bf16 %v3262_v43, %v3260_v42  ;;  %6727 = vmatprep.subr.bf16.mxu1 %v6726_v40 }
  0x9d   : > { %365 = vst [vmem:[#allocation2 + $0x170] sm:$0x3] %v8216_v0  ;;  %366 = vst [vmem:[#allocation2 + $0x178] sm:$0x3] %v8216_v0  ;;  %v3265_v47 = vld [vmem:[#allocation3 + $0x88] sm:$0xff]  ;;  %v3267_v48 = vld [vmem:[#allocation3 + $0x98] sm:$0xff]  ;;  %v6984_v52 = vpack.c.bf16 %v3518_v46, %v3516_v45  ;;  %6983 = vmatprep.subr.bf16.mxu0 %v6982_v44 }
  0x9e   : > { %367 = vst [vmem:[#allocation2 + $0x180] sm:$0xff] %v8216_v0  ;;  %368 = vst [vmem:[#allocation2 + $0x188] sm:$0xff] %v8216_v0  ;;  %v3521_v49 = vld [vmem:[#allocation3 + $0x888] sm:$0xff]  ;;  %v3523_v50 = vld [vmem:[#allocation3 + $0x898] sm:$0xff]  ;;  %v6730_v53 = vpack.c.bf16 %v3267_v48, %v3265_v47  ;;  %6729 = vmatpush1.bf16.msra.mxu1 %v6728_v51 }
  0x9f   : > { %371 = vst [vmem:[#allocation2 + $0x1a0] sm:$0x3] %v8216_v0  ;;  %372 = vst [vmem:[#allocation2 + $0x1a8] sm:$0x3] %v8216_v0  ;;  %v3264_v54 = vld [vmem:[#allocation3 + $0x80] sm:$0xff]  ;;  %v3266_v55 = vld [vmem:[#allocation3 + $0x90] sm:$0xff]  ;;  %v6986_v57 = vpack.c.bf16 %v3523_v50, %v3521_v49  ;;  %6985 = vmatpush1.bf16.msra.mxu0 %v6984_v52 }
  0xa0   : > { %373 = vst [vmem:[#allocation2 + $0x1b0] sm:$0xff] %v8216_v0  ;;  %374 = vst [vmem:[#allocation2 + $0x1b8] sm:$0xff] %v8216_v0  ;;  %v3520_v56 = vld [vmem:[#allocation3 + $0x880] sm:$0xff]  ;;  %v3522_v58 = vld [vmem:[#allocation3 + $0x890] sm:$0xff]  ;;  %v6732_v63 = vpack.c.bf16 %v3266_v55, %v3264_v54  ;;  %6731 = vmatprep.subr.bf16.mxu1 %v6730_v53 }
  0xa1   : > { %377 = vst [vmem:[#allocation2 + $0x1d0] sm:$0x3] %v8216_v0  ;;  %378 = vst [vmem:[#allocation2 + $0x1d8] sm:$0x3] %v8216_v0  ;;  %v3269_v59 = vld [vmem:[#allocation3 + $0xa8] sm:$0xff]  ;;  %v3271_v60 = vld [vmem:[#allocation3 + $0xb8] sm:$0xff]  ;;  %v6988_v1 = vpack.c.bf16 %v3522_v58, %v3520_v56  ;;  %6987 = vmatprep.subr.bf16.mxu0 %v6986_v57 }
  0xa2   : > { %379 = vst [vmem:[#allocation2 + $0x1e0] sm:$0xff] %v8216_v0  ;;  %380 = vst [vmem:[#allocation2 + $0x1e8] sm:$0xff] %v8216_v0  ;;  %v3525_v61 = vld [vmem:[#allocation3 + $0x8a8] sm:$0xff]  ;;  %v3527_v62 = vld [vmem:[#allocation3 + $0x8b8] sm:$0xff]  ;;  %v6734_v2 = vpack.c.bf16 %v3271_v60, %v3269_v59  ;;  %6733 = vmatpush1.bf16.msra.mxu1 %v6732_v63 }
  0xa3   : > { %383 = vst [vmem:[#allocation2 + $0x200] sm:$0x3] %v8216_v0  ;;  %384 = vst [vmem:[#allocation2 + $0x208] sm:$0x3] %v8216_v0  ;;  %v3268_v3 = vld [vmem:[#allocation3 + $0xa0] sm:$0xff]  ;;  %v3270_v4 = vld [vmem:[#allocation3 + $0xb0] sm:$0xff]  ;;  %v6990_v6 = vpack.c.bf16 %v3527_v62, %v3525_v61  ;;  %6989 = vmatpush1.bf16.msra.mxu0 %v6988_v1 }
  0xa4   : > { %385 = vst [vmem:[#allocation2 + $0x210] sm:$0xff] %v8216_v0  ;;  %386 = vst [vmem:[#allocation2 + $0x218] sm:$0xff] %v8216_v0  ;;  %v3524_v5 = vld [vmem:[#allocation3 + $0x8a0] sm:$0xff]  ;;  %v3526_v7 = vld [vmem:[#allocation3 + $0x8b0] sm:$0xff]  ;;  %v6736_v12 = vpack.c.bf16 %v3270_v4, %v3268_v3  ;;  %6735 = vmatprep.subr.bf16.mxu1 %v6734_v2 }
  0xa5   : > { %389 = vst [vmem:[#allocation2 + $0x230] sm:$0x3] %v8216_v0  ;;  %390 = vst [vmem:[#allocation2 + $0x238] sm:$0x3] %v8216_v0  ;;  %v3273_v8 = vld [vmem:[#allocation3 + $0xc8] sm:$0xff]  ;;  %v3275_v9 = vld [vmem:[#allocation3 + $0xd8] sm:$0xff]  ;;  %v6992_v13 = vpack.c.bf16 %v3526_v7, %v3524_v5  ;;  %6991 = vmatprep.subr.bf16.mxu0 %v6990_v6 }
  0xa6   : > { %391 = vst [vmem:[#allocation2 + $0x240] sm:$0xff] %v8216_v0  ;;  %392 = vst [vmem:[#allocation2 + $0x248] sm:$0xff] %v8216_v0  ;;  %v3529_v10 = vld [vmem:[#allocation3 + $0x8c8] sm:$0xff]  ;;  %v3531_v11 = vld [vmem:[#allocation3 + $0x8d8] sm:$0xff]  ;;  %v6738_v14 = vpack.c.bf16 %v3275_v9, %v3273_v8  ;;  %6737 = vmatpush1.bf16.msra.mxu1 %v6736_v12 }
  0xa7   : > { %395 = vst [vmem:[#allocation2 + $0x260] sm:$0x3] %v8216_v0  ;;  %396 = vst [vmem:[#allocation2 + $0x268] sm:$0x3] %v8216_v0  ;;  %v3272_v15 = vld [vmem:[#allocation3 + $0xc0] sm:$0xff]  ;;  %v3274_v16 = vld [vmem:[#allocation3 + $0xd0] sm:$0xff]  ;;  %v6994_v18 = vpack.c.bf16 %v3531_v11, %v3529_v10  ;;  %6993 = vmatpush1.bf16.msra.mxu0 %v6992_v13 }
  0xa8   : > { %397 = vst [vmem:[#allocation2 + $0x270] sm:$0xff] %v8216_v0  ;;  %398 = vst [vmem:[#allocation2 + $0x278] sm:$0xff] %v8216_v0  ;;  %v3528_v17 = vld [vmem:[#allocation3 + $0x8c0] sm:$0xff]  ;;  %v3530_v19 = vld [vmem:[#allocation3 + $0x8d0] sm:$0xff]  ;;  %v6740_v24 = vpack.c.bf16 %v3274_v16, %v3272_v15  ;;  %6739 = vmatprep.subr.bf16.mxu1 %v6738_v14 }
  0xa9   : > { %401 = vst [vmem:[#allocation2 + $0x290] sm:$0x3] %v8216_v0  ;;  %402 = vst [vmem:[#allocation2 + $0x298] sm:$0x3] %v8216_v0  ;;  %v3277_v20 = vld [vmem:[#allocation3 + $0xe8] sm:$0xff]  ;;  %v3279_v21 = vld [vmem:[#allocation3 + $0xf8] sm:$0xff]  ;;  %v6996_v25 = vpack.c.bf16 %v3530_v19, %v3528_v17  ;;  %6995 = vmatprep.subr.bf16.mxu0 %v6994_v18 }
  0xaa   : > { %403 = vst [vmem:[#allocation2 + $0x2a0] sm:$0xff] %v8216_v0  ;;  %404 = vst [vmem:[#allocation2 + $0x2a8] sm:$0xff] %v8216_v0  ;;  %v3533_v22 = vld [vmem:[#allocation3 + $0x8e8] sm:$0xff]  ;;  %v3535_v23 = vld [vmem:[#allocation3 + $0x8f8] sm:$0xff]  ;;  %v6742_v26 = vpack.c.bf16 %v3279_v21, %v3277_v20  ;;  %6741 = vmatpush1.bf16.msra.mxu1 %v6740_v24 }
  0xab   : > { %407 = vst [vmem:[#allocation2 + $0x2c0] sm:$0x3] %v8216_v0  ;;  %408 = vst [vmem:[#allocation2 + $0x2c8] sm:$0x3] %v8216_v0  ;;  %v3276_v27 = vld [vmem:[#allocation3 + $0xe0] sm:$0xff]  ;;  %v3278_v28 = vld [vmem:[#allocation3 + $0xf0] sm:$0xff]  ;;  %v6998_v30 = vpack.c.bf16 %v3535_v23, %v3533_v22  ;;  %6997 = vmatpush1.bf16.msra.mxu0 %v6996_v25 }
  0xac   : > { %409 = vst [vmem:[#allocation2 + $0x2d0] sm:$0xff] %v8216_v0  ;;  %410 = vst [vmem:[#allocation2 + $0x2d8] sm:$0xff] %v8216_v0  ;;  %v3532_v29 = vld [vmem:[#allocation3 + $0x8e0] sm:$0xff]  ;;  %v3534_v31 = vld [vmem:[#allocation3 + $0x8f0] sm:$0xff]  ;;  %v6744_v36 = vpack.c.bf16 %v3278_v28, %v3276_v27  ;;  %6743 = vmatprep.subr.bf16.mxu1 %v6742_v26 }
  0xad   : > { %413 = vst [vmem:[#allocation2 + $0x2f0] sm:$0x3] %v8216_v0  ;;  %414 = vst [vmem:[#allocation2 + $0x2f8] sm:$0x3] %v8216_v0  ;;  %v3281_v32 = vld [vmem:[#allocation3 + $0x108] sm:$0xff]  ;;  %v3283_v33 = vld [vmem:[#allocation3 + $0x118] sm:$0xff]  ;;  %v7000_v37 = vpack.c.bf16 %v3534_v31, %v3532_v29  ;;  %6999 = vmatprep.subr.bf16.mxu0 %v6998_v30 }
  0xae   : > { %415 = vst [vmem:[#allocation2 + $0x300] sm:$0xff] %v8216_v0  ;;  %416 = vst [vmem:[#allocation2 + $0x308] sm:$0xff] %v8216_v0  ;;  %v3537_v34 = vld [vmem:[#allocation3 + $0x908] sm:$0xff]  ;;  %v3539_v35 = vld [vmem:[#allocation3 + $0x918] sm:$0xff]  ;;  %v6746_v38 = vpack.c.bf16 %v3283_v33, %v3281_v32  ;;  %6745 = vmatpush1.bf16.msra.mxu1 %v6744_v36 }
  0xaf   : > { %419 = vst [vmem:[#allocation2 + $0x320] sm:$0x3] %v8216_v0  ;;  %420 = vst [vmem:[#allocation2 + $0x328] sm:$0x3] %v8216_v0  ;;  %v3280_v39 = vld [vmem:[#allocation3 + $0x100] sm:$0xff]  ;;  %v3282_v40 = vld [vmem:[#allocation3 + $0x110] sm:$0xff]  ;;  %v7002_v42 = vpack.c.bf16 %v3539_v35, %v3537_v34  ;;  %7001 = vmatpush1.bf16.msra.mxu0 %v7000_v37 }
  0xb0   : > { %421 = vst [vmem:[#allocation2 + $0x330] sm:$0xff] %v8216_v0  ;;  %422 = vst [vmem:[#allocation2 + $0x338] sm:$0xff] %v8216_v0  ;;  %v3536_v41 = vld [vmem:[#allocation3 + $0x900] sm:$0xff]  ;;  %v3538_v43 = vld [vmem:[#allocation3 + $0x910] sm:$0xff]  ;;  %v6748_v48 = vpack.c.bf16 %v3282_v40, %v3280_v39  ;;  %6747 = vmatprep.subr.bf16.mxu1 %v6746_v38 }
  0xb1   : > { %425 = vst [vmem:[#allocation2 + $0x350] sm:$0x3] %v8216_v0  ;;  %426 = vst [vmem:[#allocation2 + $0x358] sm:$0x3] %v8216_v0  ;;  %v3285_v44 = vld [vmem:[#allocation3 + $0x128] sm:$0xff]  ;;  %v3287_v45 = vld [vmem:[#allocation3 + $0x138] sm:$0xff]  ;;  %v7004_v49 = vpack.c.bf16 %v3538_v43, %v3536_v41  ;;  %7003 = vmatprep.subr.bf16.mxu0 %v7002_v42 }
  0xb2   : > { %v3541_v46 = vld [vmem:[#allocation3 + $0x928] sm:$0xff]  ;;  %v3543_v47 = vld [vmem:[#allocation3 + $0x938] sm:$0xff]  ;;  %v6750_v50 = vpack.c.bf16 %v3287_v45, %v3285_v44  ;;  %v3284_v51 = vld [vmem:[#allocation3 + $0x120] sm:$0xff]  ;;  %6749 = vmatpush1.bf16.msra.mxu1 %v6748_v48 }
  0xb3   : > { %v3286_v52 = vld [vmem:[#allocation3 + $0x130] sm:$0xff]  ;;  %v3540_v53 = vld [vmem:[#allocation3 + $0x920] sm:$0xff]  ;;  %v7006_v54 = vpack.c.bf16 %v3543_v47, %v3541_v46  ;;  %v3289_v56 = vld [vmem:[#allocation3 + $0x148] sm:$0xff]  ;;  %7005 = vmatpush1.bf16.msra.mxu0 %v7004_v49 }
  0xb4   : > { %v3542_v55 = vld [vmem:[#allocation3 + $0x930] sm:$0xff]  ;;  %v3291_v57 = vld [vmem:[#allocation3 + $0x158] sm:$0xff]  ;;  %v3545_v58 = vld [vmem:[#allocation3 + $0x948] sm:$0xff]  ;;  %v6752_v60 = vpack.c.bf16 %v3286_v52, %v3284_v51  ;;  %6751 = vmatprep.subr.bf16.mxu1 %v6750_v50 }
  0xb5   : > { %v3547_v59 = vld [vmem:[#allocation3 + $0x958] sm:$0xff]  ;;  %v7008_v61 = vpack.c.bf16 %v3542_v55, %v3540_v53  ;;  %v6754_v62 = vpack.c.bf16 %v3291_v57, %v3289_v56  ;;  %v3288_v63 = vld [vmem:[#allocation3 + $0x140] sm:$0xff]  ;;  %v3290_v1 = vld [vmem:[#allocation3 + $0x150] sm:$0xff]  ;;  %7007 = vmatprep.subr.bf16.mxu0 %v7006_v54 }
  0xb6   : > { %v3544_v2 = vld [vmem:[#allocation3 + $0x940] sm:$0xff]  ;;  %v7010_v3 = vpack.c.bf16 %v3547_v59, %v3545_v58  ;;  %v3546_v4 = vld [vmem:[#allocation3 + $0x950] sm:$0xff]  ;;  %v3293_v5 = vld [vmem:[#allocation3 + $0x168] sm:$0xff]  ;;  %6753 = vmatpush1.bf16.msra.mxu1 %v6752_v60  ;;  %v6756_v9 = vpack.c.bf16 %v3290_v1, %v3288_v63 }
  0xb7   : > { %v3295_v6 = vld [vmem:[#allocation3 + $0x178] sm:$0xff]  ;;  %v3549_v7 = vld [vmem:[#allocation3 + $0x968] sm:$0xff]  ;;  %v3292_v10 = vld [vmem:[#allocation3 + $0x160] sm:$0xff]  ;;  %7009 = vmatpush1.bf16.msra.mxu0 %v7008_v61  ;;  %6755 = vmatprep.subr.bf16.mxu1 %v6754_v62  ;;  %v7012_v13 = vpack.c.bf16 %v3546_v4, %v3544_v2 }
  0xb8   : > { %v3551_v8 = vld [vmem:[#allocation3 + $0x978] sm:$0xff]  ;;  %v3294_v11 = vld [vmem:[#allocation3 + $0x170] sm:$0xff]  ;;  %v3548_v12 = vld [vmem:[#allocation3 + $0x960] sm:$0xff]  ;;  %v6758_v14 = vpack.c.bf16 %v3295_v6, %v3293_v5  ;;  %7011 = vmatprep.subr.bf16.mxu0 %v7010_v3 }
  0xb9   : > { %v3550_v15 = vld [vmem:[#allocation3 + $0x970] sm:$0xff]  ;;  %v3297_v16 = vld [vmem:[#allocation3 + $0x188] sm:$0xff]  ;;  %v3299_v17 = vld [vmem:[#allocation3 + $0x198] sm:$0xff]  ;;  %v7014_v18 = vpack.c.bf16 %v3551_v8, %v3549_v7  ;;  %v6760_v27 = vpack.c.bf16 %v3294_v11, %v3292_v10 }
  0xba   : > { %v3553_v19 = vld [vmem:[#allocation3 + $0x988] sm:$0xff]  ;;  %v3555_v20 = vld [vmem:[#allocation3 + $0x998] sm:$0xff]  ;;  %v8494_v22 = vld [vmem:[#allocation3 + $0x180] sm:$0xff]  ;;  %6757 = vmatpush1.bf16.msra.mxu1 %v6756_v9  ;;  %v7016_v34 = vpack.c.bf16 %v3550_v15, %v3548_v12  ;;  %v6762_v35 = vpack.c.bf16 %v3299_v17, %v3297_v16 }
  0xbb   : > { %v428_v21 = vld [vmem:[%s8491_s9 + $0x8] sm:$0xff]  ;;  %v430_v23 = vld [vmem:[%s8491_s9 + $0x18] sm:$0xff]  ;;  %v427_v25 = vld [vmem:[%s8491_s9] sm:$0xff]  ;;  %7013 = vmatpush1.bf16.msra.mxu0 %v7012_v13  ;;  %6759 = vmatprep.subr.bf16.mxu1 %v6758_v14  ;;  %v7018_v39 = vpack.c.bf16 %v3555_v20, %v3553_v19 }
  0xbc   : > { %v557_v24 = vrot.slane %v428_v21, 7  ;;  %v429_v26 = vld [vmem:[%s8491_s9 + $0x10] sm:$0xff]  ;;  %v8501_v29 = vld [vmem:[#allocation3 + $0x980] sm:$0xff]  ;;  %v560_v31 = vrot.slane %v430_v23, 7  ;;  %v556_v32 = vrot.slane %v427_v25, 7  ;;  %v8505_v36 = vld [vmem:[#allocation3 + $0x1a8] sm:$0xff]  ;;  %7015 = vmatprep.subr.bf16.mxu0 %v7014_v18 }
  0xbd   : > { %v8499_v28 = vld [vmem:[#allocation3 + $0x190] sm:$0xff]  ;;  %v558_v33 = vrot.slane %v429_v26, 7  ;;  %v432_v37 = vld [vmem:[%s8491_s9 + $0x28] sm:$0xff]  ;;  %v434_v38 = vld [vmem:[%s8491_s9 + $0x38] sm:$0xff] }
  0xbe   : > { %v8503_v30 = vld [vmem:[#allocation3 + $0x990] sm:$0xff]  ;;  %750 = vst [vmem:[#allocation2 + $0x38] sm:$0xfe] %v557_v24  ;;  %v8509_v40 = vld [vmem:[#allocation3 + $0x1b8] sm:$0xff]  ;;  %v8512_v41 = vsel %vm555_vm0, %v557_v24, %v560_v31  ;;  %754 = vst [vmem:[#allocation2 + $0x58] sm:$0x1] %v560_v31  ;;  %6761 = vmatpush1.bf16.msra.mxu1 %v6760_v27  ;;  %v6764_v51 = vpack.c.bf16 %v8499_v28, %v8494_v22 }
  0xbf   : > { %v8515_v42 = vsel %vm555_vm0, %v556_v32, %v558_v33  ;;  %749 = vst [vmem:[#allocation2 + $0x30] sm:$0xfe] %v556_v32  ;;  %753 = vst [vmem:[#allocation2 + $0x50] sm:$0x1] %v558_v33  ;;  %v563_v43 = vrot.slane %v432_v37, 7  ;;  %v431_v44 = vld [vmem:[%s8491_s9 + $0x20] sm:$0xff]  ;;  %v7020_v52 = vpack.c.bf16 %v8503_v30, %v8501_v29  ;;  %7017 = vmatpush1.bf16.msra.mxu0 %v7016_v34  ;;  %6763 = vmatprep.subr.bf16.mxu1 %v6762_v35 }
  0xc0   : > { %v433_v45 = vld [vmem:[%s8491_s9 + $0x30] sm:$0xff]  ;;  %v3557_v46 = vld [vmem:[#allocation3 + $0x9a8] sm:$0xff]  ;;  %v3559_v47 = vld [vmem:[#allocation3 + $0x9b8] sm:$0xff]  ;;  %752 = vst [vmem:[#allocation2 + $0x48] sm:$0xff] %v8512_v41  ;;  %v566_v49 = vrot.slane %v434_v38, 7  ;;  %v562_v50 = vrot.slane %v431_v44, 7  ;;  %v6766_v57 = vpack.c.bf16 %v8509_v40, %v8505_v36  ;;  %7019 = vmatprep.subr.bf16.mxu0 %v7018_v39 }
  0xc1   : > { %v8519_v48 = vld [vmem:[#allocation3 + $0x1a0] sm:$0xff]  ;;  %751 = vst [vmem:[#allocation2 + $0x40] sm:$0xff] %v8515_v42  ;;  %v3302_v53 = vld [vmem:[#allocation3 + $0x1b0] sm:$0xff]  ;;  %756 = vst [vmem:[#allocation2 + $0x68] sm:$0xfe] %v563_v43  ;;  %v564_v54 = vrot.slane %v433_v45, 7  ;;  %v7022_v1 = vpack.c.bf16 %v3559_v47, %v3557_v46 }
  0xc2   : > { %v436_v55 = vld [vmem:[%s8491_s9 + $0x48] sm:$0xff]  ;;  %v438_v56 = vld [vmem:[%s8491_s9 + $0x58] sm:$0xff]  ;;  %v3556_v58 = vld [vmem:[#allocation3 + $0x9a0] sm:$0xff]  ;;  %v8532_v59 = vsel %vm555_vm0, %v563_v43, %v566_v49  ;;  %760 = vst [vmem:[#allocation2 + $0x88] sm:$0x1] %v566_v49  ;;  %v8541_v10 = vrot.slane %v8512_v41, 1  ;;  %6765 = vmatpush1.bf16.msra.mxu1 %v6764_v51  ;;  %v6768_v13 = vpack.c.bf16 %v3302_v53, %v8519_v48 }
  0xc3   : > { %755 = vst [vmem:[#allocation2 + $0x60] sm:$0xfe] %v562_v50  ;;  %v569_v60 = vrot.slane %v436_v55, 7  ;;  %v572_v61 = vrot.slane %v438_v56, 7  ;;  %v435_v62 = vld [vmem:[%s8491_s9 + $0x40] sm:$0xff]  ;;  %v437_v63 = vld [vmem:[%s8491_s9 + $0x50] sm:$0xff]  ;;  %v8538_v5 = vsel %vm555_vm0, %v562_v50, %v564_v54  ;;  %7021 = vmatpush1.bf16.msra.mxu0 %v7020_v52  ;;  %6767 = vmatprep.subr.bf16.mxu1 %v6766_v57 }
  0xc4   : > { %v3558_v2 = vld [vmem:[#allocation3 + $0x9b0] sm:$0xff]  ;;  %v3305_v3 = vld [vmem:[#allocation3 + $0x1c8] sm:$0xff]  ;;  %v3307_v4 = vld [vmem:[#allocation3 + $0x1d8] sm:$0xff]  ;;  %758 = vst [vmem:[#allocation2 + $0x78] sm:$0xff] %v8532_v59  ;;  %v568_v6 = vrot.slane %v435_v62, 7  ;;  %v570_v7 = vrot.slane %v437_v63, 7  ;;  %7023 = vmatprep.subr.bf16.mxu0 %v7022_v1 }
  0xc5   : > { %759 = vst [vmem:[#allocation2 + $0x80] sm:$0x1] %v564_v54  ;;  %v3561_v8 = vld [vmem:[#allocation3 + $0x9c8] sm:$0xff]  ;;  %v3563_v9 = vld [vmem:[#allocation3 + $0x9d8] sm:$0xff]  ;;  %757 = vst [vmem:[#allocation2 + $0x70] sm:$0xff] %v8538_v5  ;;  %v8545_v11 = vsel %vm555_vm0, %v569_v60, %v572_v61  ;;  %v7024_v17 = vpack.c.bf16 %v3558_v2, %v3556_v58  ;;  %v6770_v18 = vpack.c.bf16 %v3307_v4, %v3305_v3  ;;  %v8564_v50 = vrot.slane %v8515_v42, 1 }
  0xc6   : > { %762 = vst [vmem:[#allocation2 + $0x98] sm:$0xfe] %v569_v60  ;;  %766 = vst [vmem:[#allocation2 + $0xb8] sm:$0x1] %v572_v61  ;;  %v440_v12 = vld [vmem:[%s8491_s9 + $0x68] sm:$0xff]  ;;  %v8551_v15 = vsel %vm555_vm0, %v568_v6, %v570_v7  ;;  %v442_v16 = vld [vmem:[%s8491_s9 + $0x78] sm:$0xff]  ;;  %v7026_v23 = vpack.c.bf16 %v3563_v9, %v3561_v8  ;;  %6769 = vmatpush1.bf16.msra.mxu1 %v6768_v13 }
  0xc7   : > { %v1712_v14 = vld [vmem:[#allocation2 + $0x38] sm:$0xfe]  ;;  %764 = vst [vmem:[#allocation2 + $0xa8] sm:$0xff] %v8545_v11  ;;  %761 = vst [vmem:[#allocation2 + $0x90] sm:$0xfe] %v568_v6  ;;  %v3304_v19 = vld [vmem:[#allocation3 + $0x1c0] sm:$0xff]  ;;  %7025 = vmatpush1.bf16.msra.mxu0 %v7024_v17  ;;  %6771 = vmatprep.subr.bf16.mxu1 %v6770_v18 }
  0xc8   : > { %765 = vst [vmem:[#allocation2 + $0xb0] sm:$0x1] %v570_v7  ;;  %v3306_v20 = vld [vmem:[#allocation3 + $0x1d0] sm:$0xff]  ;;  %v3560_v21 = vld [vmem:[#allocation3 + $0x9c0] sm:$0xff]  ;;  %v1874_v22 = vrot.slane %v1712_v14, 1  ;;  %763 = vst [vmem:[#allocation2 + $0xa0] sm:$0xff] %v8551_v15  ;;  %7027 = vmatprep.subr.bf16.mxu0 %v7026_v23 }
  0xc9   : > { %v3562_v24 = vld [vmem:[#allocation3 + $0x9d0] sm:$0xff]  ;;  %v3309_v25 = vld [vmem:[#allocation3 + $0x1e8] sm:$0xff]  ;;  %v3311_v26 = vld [vmem:[#allocation3 + $0x1f8] sm:$0xff]  ;;  %v575_v27 = vrot.slane %v440_v12, 7  ;;  %v578_v31 = vrot.slane %v442_v16, 7  ;;  %v6772_v32 = vpack.c.bf16 %v3306_v20, %v3304_v19 }
  0xca   : > { %v3565_v28 = vld [vmem:[#allocation3 + $0x9e8] sm:$0xff]  ;;  %v3567_v29 = vld [vmem:[#allocation3 + $0x9f8] sm:$0xff]  ;;  %v1876_v30 = vsel %vm1069_vm1, %v1874_v22, %v8541_v10  ;;  %v3308_v33 = vld [vmem:[#allocation3 + $0x1e0] sm:$0xff]  ;;  %v7028_v34 = vpack.c.bf16 %v3562_v24, %v3560_v21  ;;  %v6774_v35 = vpack.c.bf16 %v3311_v26, %v3309_v25 }
  0xcb   : > { %4916 = vmatprep.mubr.f32.mxu0 %v1876_v30  ;;  %768 = vst [vmem:[#allocation2 + $0xc8] sm:$0xfe] %v575_v27  ;;  %v3310_v36 = vld [vmem:[#allocation3 + $0x1f0] sm:$0xff]  ;;  %v3564_v37 = vld [vmem:[#allocation3 + $0x9e0] sm:$0xff]  ;;  %v8558_v39 = vsel %vm555_vm0, %v575_v27, %v578_v31  ;;  %772 = vst [vmem:[#allocation2 + $0xe8] sm:$0x1] %v578_v31  ;;  %v7030_v40 = vpack.c.bf16 %v3567_v29, %v3565_v28  ;;  %6773 = vmatpush1.bf16.msra.mxu1 %v6772_v32 }
  0xcc   : > { %v3566_v38 = vld [vmem:[#allocation3 + $0x9f0] sm:$0xff]  ;;  %770 = vst [vmem:[#allocation2 + $0xd8] sm:$0xff] %v8558_v39  ;;  %v439_v44 = vld [vmem:[%s8491_s9 + $0x60] sm:$0xff]  ;;  %v3569_v46 = vld [vmem:[#allocation3 + $0xa08] sm:$0xff]  ;;  %v6776_v49 = vpack.c.bf16 %v3310_v36, %v3308_v33  ;;  %7029 = vmatpush1.bf16.msra.mxu0 %v7028_v34  ;;  %6775 = vmatprep.subr.bf16.mxu1 %v6774_v35  ;;  %v8607_v28 = vrot.slane %v8532_v59, 1  ;;  %v8618_v33 = vrot.slane %v8538_v5, 1 }
  0xcd   : > { %v1711_v43 = vld [vmem:[#allocation2 + $0x30] sm:$0xfe]  ;;  %v3571_v47 = vld [vmem:[#allocation3 + $0xa18] sm:$0xff]  ;;  %v8566_v51 = vld [vmem:[#allocation3 + $0xa00] sm:$0xff]  ;;  %v7032_v54 = vpack.c.bf16 %v3566_v38, %v3564_v37  ;;  %v574_v56 = vrot.slane %v439_v44, 7  ;;  %7031 = vmatprep.subr.bf16.mxu0 %v7030_v40 }
  0xce   : > { %v441_v45 = vld [vmem:[%s8491_s9 + $0x70] sm:$0xff]  ;;  %v1714_v48 = vld [vmem:[#allocation2 + $0x58] sm:$0x1]  ;;  %v8570_v53 = vld [vmem:[#allocation3 + $0xa28] sm:$0xff]  ;;  %v1871_v55 = vrot.slane %v1711_v43, 1  ;;  %v7034_v62 = vpack.c.bf16 %v3571_v47, %v3569_v46 }
  0xcf   : > { %v8568_v52 = vld [vmem:[#allocation3 + $0xa10] sm:$0xff]  ;;  %v576_v57 = vrot.slane %v441_v45, 7  ;;  %v444_v58 = vld [vmem:[%s8491_s9 + $0x88] sm:$0xff]  ;;  %v446_v60 = vld [vmem:[%s8491_s9 + $0x98] sm:$0xff]  ;;  %v1879_v63 = vrot.slane %v1714_v48, 1  ;;  %6777 = vmatpush1.bf16.msra.mxu1 %v6776_v49 }
  0xd0   : > { %v443_v61 = vld [vmem:[%s8491_s9 + $0x80] sm:$0xff]  ;;  %v1713_v1 = vld [vmem:[#allocation2 + $0x50] sm:$0x1]  ;;  %v8575_v2 = vld [vmem:[#allocation3 + $0xa38] sm:$0xff]  ;;  %767 = vst [vmem:[#allocation2 + $0xc0] sm:$0xfe] %v574_v56  ;;  %v7036_v12 = vpack.c.bf16 %v8568_v52, %v8566_v51  ;;  %7033 = vmatpush1.bf16.msra.mxu0 %v7032_v54  ;;  %v1873_v19 = vsel %vm1069_vm1, %v1871_v55, %v8564_v50 }
  0xd1   : > { %v445_v3 = vld [vmem:[%s8491_s9 + $0x90] sm:$0xff]  ;;  %v1716_v4 = vld [vmem:[#allocation2 + $0x68] sm:$0xfe]  ;;  %v8578_v6 = vld [vmem:[#allocation3 + $0xa20] sm:$0xff]  ;;  %v8581_v7 = vsel %vm555_vm0, %v574_v56, %v576_v57  ;;  %771 = vst [vmem:[#allocation2 + $0xe0] sm:$0x1] %v576_v57  ;;  %v7038_v22 = vpack.c.bf16 %v8575_v2, %v8570_v53  ;;  %7035 = vmatprep.subr.bf16.mxu0 %v7034_v62  ;;  %v1880_v26 = vsel %vm1069_vm1, %v8541_v10, %v1879_v63 }
  0xd2   : > { %v581_v8 = vrot.slane %v444_v58, 7  ;;  %v584_v9 = vrot.slane %v446_v60, 7  ;;  %v8585_v13 = vld [vmem:[#allocation3 + $0xa30] sm:$0xff]  ;;  %v8587_v14 = vld [vmem:[#allocation3 + $0xa48] sm:$0xff]  ;;  %v8589_v16 = vld [vmem:[#allocation3 + $0xa58] sm:$0xff]  ;;  %769 = vst [vmem:[#allocation2 + $0xd0] sm:$0xff] %v8581_v7  ;;  %3889 = vmatmul.mubr.f32.vlgmr.msra.gmra.mrb[0].mxu1 %v8216_v0 }
  0xd3   : > { %v580_v17 = vrot.slane %v443_v61, 7  ;;  %v582_v18 = vrot.slane %v445_v3, 7  ;;  %v1877_v20 = vrot.slane %v1713_v1, 1  ;;  %v8594_v21 = vld [vmem:[#allocation2 + $0x60] sm:$0xfe]  ;;  %v448_v25 = vld [vmem:[%s8491_s9 + $0xa8] sm:$0xff]  ;;  %v7040_v34 = vpack.c.bf16 %v8585_v13, %v8578_v6  ;;  %4917 = vmatmul.mubr.f32.vlgmr.msra.gmra.mrb[0].mxu0 %v1873_v19  ;;  %3894 = vmatprep.mubr.f32.mxu1 %v8216_v0 }
  0xd4   : > { %v8598_v23 = vld [vmem:[#allocation2 + $0x88] sm:$0x1]  ;;  %v8601_v24 = vsel %vm555_vm0, %v581_v8, %v584_v9  ;;  %774 = vst [vmem:[#allocation2 + $0xf8] sm:$0xfe] %v581_v8  ;;  %778 = vst [vmem:[#allocation2 + $0x118] sm:$0x1] %v584_v9  ;;  %v7042_v36 = vpack.c.bf16 %v8589_v16, %v8587_v14  ;;  %7037 = vmatpush1.bf16.msra.mxu0 %v7036_v12  ;;  %4922 = vmatprep.mubr.f32.mxu0 %v1880_v26 }
  0xd5   : > { %v1884_v27 = vrot.slane %v1716_v4, 1  ;;  %776 = vst [vmem:[#allocation2 + $0x108] sm:$0xff] %v8601_v24  ;;  %v8611_v29 = vsel %vm555_vm0, %v580_v17, %v582_v18  ;;  %773 = vst [vmem:[#allocation2 + $0xf0] sm:$0xfe] %v580_v17  ;;  %v450_v30 = vld [vmem:[%s8491_s9 + $0xb8] sm:$0xff]  ;;  %v447_v31 = vld [vmem:[%s8491_s9 + $0xa0] sm:$0xff]  ;;  %v1878_v45 = vsel %vm1069_vm1, %v8564_v50, %v1877_v20  ;;  %7039 = vmatprep.subr.bf16.mxu0 %v7038_v22 }
  0xd6   : > { %777 = vst [vmem:[#allocation2 + $0x110] sm:$0x1] %v582_v18  ;;  %v449_v32 = vld [vmem:[%s8491_s9 + $0xb0] sm:$0xff]  ;;  %775 = vst [vmem:[#allocation2 + $0x100] sm:$0xff] %v8611_v29  ;;  %v587_v35 = vrot.slane %v448_v25, 7  ;;  %v590_v37 = vrot.slane %v450_v30, 7  ;;  %3895 = vmatmul.mubr.f32.gmra.mrb[2].mxu1 %v8216_v0 }
  0xd7   : > { %v586_v38 = vrot.slane %v447_v31, 7  ;;  %v588_v40 = vrot.slane %v449_v32, 7  ;;  %v452_v43 = vld [vmem:[%s8491_s9 + $0xc8] sm:$0xff]  ;;  %v454_v44 = vld [vmem:[%s8491_s9 + $0xd8] sm:$0xff]  ;;  %v1881_v47 = vrot.slane %v8594_v21, 1  ;;  %v1889_v48 = vrot.slane %v8598_v23, 1  ;;  %4923 = vmatmul.mubr.f32.gmra.mrb[2].mxu0 %v1878_v45 }
  0xd8   : > { %v850_v46 = vld [vmem:[#allocation2 + $0x38] sm:$0xff]  ;;  %v3576_v49 = vld [vmem:[#allocation3 + $0xa40] sm:$0xff]  ;;  %780 = vst [vmem:[#allocation2 + $0x128] sm:$0xfe] %v587_v35  ;;  %v593_v51 = vrot.slane %v452_v43, 7  ;;  %v1886_v53 = vsel %vm1069_vm1, %v1884_v27, %v8607_v28  ;;  %v3578_v55 = vld [vmem:[#allocation3 + $0xa50] sm:$0xff]  ;;  %v8636_v57 = vsel %vm555_vm0, %v587_v35, %v590_v37  ;;  %7041 = vmatpush1.bf16.msra.mxu0 %v7040_v34 }
  0xd9   : > { %v451_v52 = vld [vmem:[%s8491_s9 + $0xc0] sm:$0xff]  ;;  %v3581_v56 = vld [vmem:[#allocation3 + $0xa68] sm:$0xff]  ;;  %784 = vst [vmem:[#allocation2 + $0x148] sm:$0x1] %v590_v37  ;;  %v8639_v58 = vsel %vm555_vm0, %v586_v38, %v588_v40  ;;  %779 = vst [vmem:[#allocation2 + $0x120] sm:$0xfe] %v586_v38  ;;  %3900 = vmatprep.mubr.f32.mxu1 %v850_v46  ;;  %4928 = vmatprep.mubr.f32.mxu0 %v1886_v53  ;;  %v1883_v0 = vsel %vm1069_vm1, %v1881_v47, %v8618_v33 }
  0xda   : > { %v1717_v54 = vld [vmem:[#allocation2 + $0x80] sm:$0x1]  ;;  %783 = vst [vmem:[#allocation2 + $0x140] sm:$0x1] %v588_v40  ;;  %v596_v60 = vrot.slane %v454_v44, 7  ;;  %v3583_v62 = vld [vmem:[#allocation3 + $0xa78] sm:$0xff]  ;;  %v7044_v8 = vpack.c.bf16 %v3578_v55, %v3576_v49  ;;  %v1890_v9 = vsel %vm1069_vm1, %v8607_v28, %v1889_v48  ;;  %7043 = vmatprep.subr.bf16.mxu0 %v7042_v36 }
  0xdb   : > { %v1720_v61 = vld [vmem:[#allocation2 + $0x98] sm:$0xfe]  ;;  %782 = vst [vmem:[#allocation2 + $0x138] sm:$0xff] %v8636_v57  ;;  %781 = vst [vmem:[#allocation2 + $0x130] sm:$0xff] %v8639_v58  ;;  %v453_v63 = vld [vmem:[%s8491_s9 + $0xd0] sm:$0xff]  ;;  %v592_v3 = vrot.slane %v451_v52, 7  ;;  %v7046_v14 = vpack.c.bf16 %v3583_v62, %v3581_v56  ;;  %4929 = vmatmul.mubr.f32.gmra.mrb[4].mxu0 %v1883_v0 }
  0xdc   : > { %786 = vst [vmem:[#allocation2 + $0x158] sm:$0xfe] %v593_v51  ;;  %v849_v1 = vld [vmem:[#allocation2 + $0x30] sm:$0xff]  ;;  %v8646_v2 = vsel %vm555_vm0, %v593_v51, %v596_v60  ;;  %790 = vst [vmem:[#allocation2 + $0x178] sm:$0x1] %v596_v60  ;;  %v1887_v4 = vrot.slane %v1717_v54, 1  ;;  %4934 = vmatprep.mubr.f32.mxu0 %v1890_v9  ;;  %7045 = vmatpush1.bf16.msra.mxu0 %v7044_v8 }
  0xdd   : > { %v8651_v6 = vrot.slane %v8545_v11, 1  ;;  %788 = vst [vmem:[#allocation2 + $0x168] sm:$0xff] %v8646_v2  ;;  %v1894_v12 = vrot.slane %v1720_v61, 1  ;;  %v1719_v13 = vld [vmem:[#allocation2 + $0x90] sm:$0xfe]  ;;  %v3580_v16 = vld [vmem:[#allocation3 + $0xa60] sm:$0xff]  ;;  %3901 = vmatmul.mubr.f32.gmra.mrb[4].mxu1 %v849_v1  ;;  %7047 = vmatprep.subr.bf16.mxu0 %v7046_v14 }
  0xde   : > { %v3582_v17 = vld [vmem:[#allocation3 + $0xa70] sm:$0xff]  ;;  %v594_v18 = vrot.slane %v453_v63, 7  ;;  %785 = vst [vmem:[#allocation2 + $0x150] sm:$0xfe] %v592_v3  ;;  %v1722_v19 = vld [vmem:[#allocation2 + $0xb8] sm:$0x1]  ;;  %3906 = vmatprep.mubr.f32.mxu1 %v8512_v41  ;;  %v1888_v26 = vsel %vm1069_vm1, %v8618_v33, %v1887_v4 }
  0xdf   : > { %v3585_v20 = vld [vmem:[#allocation3 + $0xa88] sm:$0xff]  ;;  %v3587_v21 = vld [vmem:[#allocation3 + $0xa98] sm:$0xff]  ;;  %v1721_v23 = vld [vmem:[#allocation2 + $0xb0] sm:$0x1]  ;;  %v1891_v27 = vrot.slane %v1719_v13, 1  ;;  %v8663_v30 = vrot.slane %v8551_v15, 1  ;;  %v7048_v41 = vpack.c.bf16 %v3582_v17, %v3580_v16  ;;  %v1896_v35 = vsel %vm1069_vm1, %v1894_v12, %v8651_v6  ;;  %4935 = vmatmul.mubr.f32.gmra.mrb[6].mxu0 %v1888_v26 }
  0xe0   : > { %v854_v22 = vld [vmem:[#allocation2 + $0x68] sm:$0xff]  ;;  %v8658_v25 = vsel %vm555_vm0, %v592_v3, %v594_v18  ;;  %789 = vst [vmem:[#allocation2 + $0x170] sm:$0x1] %v594_v18  ;;  %v8667_v32 = vld [vmem:[#allocation3 + $0xa80] sm:$0xff]  ;;  %v1899_v36 = vrot.slane %v1722_v19, 1  ;;  %v7050_v37 = vpack.c.bf16 %v3587_v21, %v3585_v20  ;;  %v3586_v38 = vld [vmem:[#allocation3 + $0xa90] sm:$0xff]  ;;  %4940 = vmatprep.mubr.f32.mxu0 %v1896_v35 }
  0xe1   : > { %v8665_v31 = vld [vmem:[#allocation2 + $0xc8] sm:$0xfe]  ;;  %787 = vst [vmem:[#allocation2 + $0x160] sm:$0xff] %v8658_v25  ;;  %v458_v40 = vld [vmem:[%s8491_s9 + $0xf8] sm:$0xff]  ;;  %v455_v43 = vld [vmem:[%s8491_s9 + $0xe0] sm:$0xff]  ;;  %3907 = vmatmul.mubr.f32.gmra.mrb[6].mxu1 %v8515_v42  ;;  %v1897_v44 = vrot.slane %v1721_v23, 1  ;;  %v1893_v42 = vsel %vm1069_vm1, %v1891_v27, %v8663_v30  ;;  %7049 = vmatpush1.bf16.msra.mxu0 %v7048_v41  ;;  %v7052_v55 = vpack.c.bf16 %v3586_v38, %v8667_v32 }
  0xe2   : > { %v456_v34 = vld [vmem:[%s8491_s9 + $0xe8] sm:$0xff]  ;;  %v3591_v46 = vld [vmem:[#allocation3 + $0xab8] sm:$0xff]  ;;  %v457_v47 = vld [vmem:[%s8491_s9 + $0xf0] sm:$0xff]  ;;  %3912 = vmatprep.mubr.f32.mxu1 %v854_v22  ;;  %v8678_v49 = vrot.slane %v8558_v39, 1  ;;  %v602_v61 = vrot.slane %v458_v40, 7  ;;  %v598_v62 = vrot.slane %v455_v43, 7  ;;  %v1900_v63 = vsel %vm1069_vm1, %v8651_v6, %v1899_v36  ;;  %7051 = vmatprep.subr.bf16.mxu0 %v7050_v37 }
  0xe3   : > { %v3589_v45 = vld [vmem:[#allocation3 + $0xaa8] sm:$0xff]  ;;  %v853_v48 = vld [vmem:[#allocation2 + $0x60] sm:$0xff]  ;;  %v599_v53 = vrot.slane %v456_v34, 7  ;;  %v8689_v56 = vld [vmem:[#allocation3 + $0xab0] sm:$0xff]  ;;  %v1904_v1 = vrot.slane %v8665_v31, 1  ;;  %v600_v0 = vrot.slane %v457_v47, 7  ;;  %v1898_v12 = vsel %vm1069_vm1, %v8663_v30, %v1897_v44  ;;  %4941 = vmatmul.mubr.f32.gmra.mrb[8].mxu0 %v1893_v42 }
  0xe4   : > { %v8680_v51 = vld [vmem:[#allocation2 + $0xe8] sm:$0x1]  ;;  %v8682_v52 = vld [vmem:[#allocation3 + $0xaa0] sm:$0xff]  ;;  %v7054_v3 = vpack.c.bf16 %v3591_v46, %v3589_v45  ;;  %v462_v8 = vld [vmem:[%s8491_s9 + $0x118] sm:$0xff]  ;;  %796 = vst [vmem:[#allocation2 + $0x1a8] sm:$0x1] %v602_v61  ;;  %4946 = vmatprep.mubr.f32.mxu0 %v1900_v63 }
  0xe5   : > { %v8686_v54 = vld [vmem:[#allocation2 + $0xc0] sm:$0xfe]  ;;  %v8691_v60 = vld [vmem:[#allocation3 + $0xac8] sm:$0xff]  ;;  %792 = vst [vmem:[#allocation2 + $0x188] sm:$0xfe] %v599_v53  ;;  %3913 = vmatmul.mubr.f32.gmra.mrb[8].mxu1 %v853_v48  ;;  %v858_v13 = vld [vmem:[#allocation2 + $0x98] sm:$0xff]  ;;  %v8705_v17 = vsel %vm555_vm0, %v599_v53, %v602_v61  ;;  %v7056_v22 = vpack.c.bf16 %v8689_v56, %v8682_v52  ;;  %v8721_v27 = vsel %vm555_vm0, %v598_v62, %v600_v0 }
  0xe6   : > { %v460_v4 = vld [vmem:[%s8491_s9 + $0x108] sm:$0xff]  ;;  %v8700_v14 = vld [vmem:[#allocation2 + $0xe0] sm:$0x1]  ;;  %v8702_v16 = vld [vmem:[#allocation3 + $0xad8] sm:$0xff]  ;;  %791 = vst [vmem:[#allocation2 + $0x180] sm:$0xfe] %v598_v62  ;;  %3918 = vmatprep.mubr.f32.mxu1 %v8532_v59  ;;  %7053 = vmatpush1.bf16.msra.mxu0 %v7052_v55  ;;  %v1906_v40 = vsel %vm1069_vm1, %v1904_v1, %v8678_v49 }
  0xe7   : > { %v3313_v9 = vld [vmem:[#allocation3 + $0x208] sm:$0xff]  ;;  %v3315_v18 = vld [vmem:[#allocation3 + $0x218] sm:$0xff]  ;;  %v459_v19 = vld [vmem:[%s8491_s9 + $0x100] sm:$0xff]  ;;  %v8710_v20 = vrot.slane %v8581_v7, 1  ;;  %v1909_v21 = vrot.slane %v8680_v51, 1  ;;  %794 = vst [vmem:[#allocation2 + $0x198] sm:$0xff] %v8705_v17  ;;  %7055 = vmatprep.subr.bf16.mxu0 %v7054_v3  ;;  %v7058_v44 = vpack.c.bf16 %v8702_v16, %v8691_v60  ;;  %4947 = vmatmul.mubr.f32.gmra.mrb[10].mxu0 %v1898_v12 }
  0xe8   : > { %v8715_v23 = vld [vmem:[#allocation3 + $0xac0] sm:$0xff]  ;;  %v8717_v26 = vld [vmem:[#allocation3 + $0xad0] sm:$0xff]  ;;  %795 = vst [vmem:[#allocation2 + $0x1a0] sm:$0x1] %v600_v0  ;;  %v1901_v59 = vrot.slane %v8686_v54, 1  ;;  %793 = vst [vmem:[#allocation2 + $0x190] sm:$0xff] %v8721_v27  ;;  %v6778_v36 = vpack.c.bf16 %v3315_v18, %v3313_v9  ;;  %4952 = vmatprep.mubr.f32.mxu0 %v1906_v40 }
  0xe9   : > { %v461_v31 = vld [vmem:[%s8491_s9 + $0x110] sm:$0xff]  ;;  %v8725_v41 = vld [vmem:[#allocation2 + $0xf8] sm:$0xfe]  ;;  %v8728_v32 = vld [vmem:[#allocation3 + $0xae8] sm:$0xff]  ;;  %v605_v34 = vrot.slane %v460_v4, 7  ;;  %v608_v35 = vrot.slane %v462_v8, 7  ;;  %3919 = vmatmul.mubr.f32.gmra.mrb[10].mxu1 %v8538_v5  ;;  %v7060_v8 = vpack.c.bf16 %v8717_v26, %v8715_v23 }
  0xea   : > { %v3312_v37 = vld [vmem:[#allocation3 + $0x200] sm:$0xff]  ;;  %v3314_v38 = vld [vmem:[#allocation3 + $0x210] sm:$0xff]  ;;  %v8734_v45 = vld [vmem:[#allocation3 + $0xaf8] sm:$0xff]  ;;  %v604_v46 = vrot.slane %v459_v19, 7  ;;  %v606_v47 = vrot.slane %v461_v31, 7  ;;  %6779 = vmatprep.subr.bf16.mxu1 %v6778_v36  ;;  %3924 = vmatprep.mubr.f32.mxu1 %v858_v13  ;;  %v1907_v56 = vrot.slane %v8700_v14, 1  ;;  %v1903_v3 = vsel %vm1069_vm1, %v1901_v59, %v8710_v20 }
  0xeb   : > { %v857_v43 = vld [vmem:[#allocation2 + $0x90] sm:$0xff]  ;;  %v3317_v48 = vld [vmem:[#allocation3 + $0x228] sm:$0xff]  ;;  %v3319_v51 = vld [vmem:[#allocation3 + $0x238] sm:$0xff]  ;;  %v8738_v52 = vsel %vm555_vm0, %v605_v34, %v608_v35  ;;  %798 = vst [vmem:[#allocation2 + $0x1b8] sm:$0xfe] %v605_v34  ;;  %v6780_v53 = vpack.c.bf16 %v3314_v38, %v3312_v37  ;;  %v8745_v60 = vrot.slane %v8601_v24, 1  ;;  %7057 = vmatpush1.bf16.msra.mxu0 %v7056_v22  ;;  %v1910_v13 = vsel %vm1069_vm1, %v8678_v49, %v1909_v21 }
  0xec   : > { %802 = vst [vmem:[#allocation2 + $0x1d8] sm:$0x1] %v608_v35  ;;  %v8740_v42 = vld [vmem:[#allocation3 + $0x220] sm:$0xff]  ;;  %v3318_v54 = vld [vmem:[#allocation3 + $0x230] sm:$0xff]  ;;  %v464_v55 = vld [vmem:[%s8491_s9 + $0x128] sm:$0xff]  ;;  %v8749_v5 = vsel %vm555_vm0, %v604_v46, %v606_v47  ;;  %v6782_v61 = vpack.c.bf16 %v3319_v51, %v3317_v48  ;;  %v1914_v14 = vrot.slane %v8725_v41, 1  ;;  %7059 = vmatprep.subr.bf16.mxu0 %v7058_v44  ;;  %v7062_v16 = vpack.c.bf16 %v8734_v45, %v8728_v32 }
  0xed   : > { %800 = vst [vmem:[#allocation2 + $0x1c8] sm:$0xff] %v8738_v52  ;;  %797 = vst [vmem:[#allocation2 + $0x1b0] sm:$0xfe] %v604_v46  ;;  %v466_v62 = vld [vmem:[%s8491_s9 + $0x138] sm:$0xff]  ;;  %v3321_v63 = vld [vmem:[#allocation3 + $0x248] sm:$0xff]  ;;  %v611_v9 = vrot.slane %v464_v55, 7  ;;  %6781 = vmatpush1.bf16.msra.mxu1 %v6780_v53  ;;  %v6784_v23 = vpack.c.bf16 %v3318_v54, %v8740_v42  ;;  %4953 = vmatmul.mubr.f32.gmra.mrb[12].mxu0 %v1903_v3  ;;  %v1908_v36 = vsel %vm1069_vm1, %v8710_v20, %v1907_v56 }
  0xee   : > { %801 = vst [vmem:[#allocation2 + $0x1d0] sm:$0x1] %v606_v47  ;;  %v3323_v1 = vld [vmem:[#allocation3 + $0x258] sm:$0xff]  ;;  %v8754_v0 = vld [vmem:[#allocation2 + $0xf0] sm:$0xfe]  ;;  %799 = vst [vmem:[#allocation2 + $0x1c0] sm:$0xff] %v8749_v5  ;;  %3925 = vmatmul.mubr.f32.gmra.mrb[12].mxu1 %v857_v43  ;;  %6783 = vmatprep.subr.bf16.mxu1 %v6782_v61 }
  0xef   : > { %v8756_v4 = vld [vmem:[#allocation2 + $0x118] sm:$0x1]  ;;  %v614_v12 = vrot.slane %v466_v62, 7  ;;  %v3596_v18 = vld [vmem:[#allocation3 + $0xae0] sm:$0xff]  ;;  %v3598_v19 = vld [vmem:[#allocation3 + $0xaf0] sm:$0xff]  ;;  %v6786_v21 = vpack.c.bf16 %v3323_v1, %v3321_v63  ;;  %3930 = vmatprep.mubr.f32.mxu1 %v8545_v11  ;;  %v8774_v32 = vrot.slane %v8611_v29, 1  ;;  %4958 = vmatprep.mubr.f32.mxu0 %v1910_v13  ;;  %v1916_v11 = vsel %vm1069_vm1, %v1914_v14, %v8745_v60 }
  0xf0   : > { %v3601_v22 = vld [vmem:[#allocation3 + $0xb08] sm:$0xff]  ;;  %v3603_v26 = vld [vmem:[#allocation3 + $0xb18] sm:$0xff]  ;;  %804 = vst [vmem:[#allocation2 + $0x1e8] sm:$0xfe] %v611_v9  ;;  %v463_v59 = vld [vmem:[%s8491_s9 + $0x120] sm:$0xff]  ;;  %v1911_v38 = vrot.slane %v8754_v0, 1  ;;  %7061 = vmatpush1.bf16.msra.mxu0 %v7060_v8  ;;  %v7064_v43 = vpack.c.bf16 %v3598_v19, %v3596_v18 }
  0xf1   : > { %v8768_v31 = vsel %vm555_vm0, %v611_v9, %v614_v12  ;;  %808 = vst [vmem:[#allocation2 + $0x208] sm:$0x1] %v614_v12  ;;  %v465_v41 = vld [vmem:[%s8491_s9 + $0x130] sm:$0xff]  ;;  %v610_v34 = vrot.slane %v463_v59, 7  ;;  %v3320_v35 = vld [vmem:[#allocation3 + $0x240] sm:$0xff]  ;;  %v862_v37 = vld [vmem:[#allocation2 + $0xc8] sm:$0xff]  ;;  %7063 = vmatprep.subr.bf16.mxu0 %v7062_v16  ;;  %v7066_v47 = vpack.c.bf16 %v3603_v26, %v3601_v22  ;;  %6785 = vmatpush1.bf16.msra.mxu1 %v6784_v23 }
  0xf2   : > { %806 = vst [vmem:[#allocation2 + $0x1f8] sm:$0xff] %v8768_v31  ;;  %v1729_v40 = vld [vmem:[#allocation2 + $0x110] sm:$0x1]  ;;  %v612_v44 = vrot.slane %v465_v41, 7  ;;  %v1919_v46 = vrot.slane %v8756_v4, 1  ;;  %v3600_v48 = vld [vmem:[#allocation3 + $0xb00] sm:$0xff]  ;;  %3931 = vmatmul.mubr.f32.gmra.mrb[14].mxu1 %v8551_v15  ;;  %6787 = vmatprep.subr.bf16.mxu1 %v6786_v21  ;;  %v1913_v15 = vsel %vm1069_vm1, %v1911_v38, %v8774_v32 }
  0xf3   : > { %v3322_v45 = vld [vmem:[#allocation3 + $0x250] sm:$0xff]  ;;  %803 = vst [vmem:[#allocation2 + $0x1e0] sm:$0xfe] %v610_v34  ;;  %v1732_v42 = vld [vmem:[#allocation2 + $0x128] sm:$0xfe]  ;;  %v3607_v56 = vld [vmem:[#allocation3 + $0xb38] sm:$0xff]  ;;  %4959 = vmatmul.mubr.f32.gmra.mrb[14].mxu0 %v1908_v36  ;;  %3936 = vmatprep.mubr.f32.mxu1 %v862_v37 }
  0xf4   : > { %v3602_v51 = vld [vmem:[#allocation3 + $0xb10] sm:$0xff]  ;;  %v6788_v53 = vpack.c.bf16 %v3322_v45, %v3320_v35  ;;  %v8785_v54 = vsel %vm555_vm0, %v610_v34, %v612_v44  ;;  %807 = vst [vmem:[#allocation2 + $0x200] sm:$0x1] %v612_v44  ;;  %v3605_v55 = vld [vmem:[#allocation3 + $0xb28] sm:$0xff]  ;;  %v861_v61 = vld [vmem:[#allocation2 + $0xc0] sm:$0xff]  ;;  %v1917_v62 = vrot.slane %v1729_v40, 1  ;;  %4964 = vmatprep.mubr.f32.mxu0 %v1916_v11  ;;  %7065 = vmatpush1.bf16.msra.mxu0 %v7064_v43 }
  0xf5   : > { %v8787_v63 = vld [vmem:[#allocation2 + $0x120] sm:$0xfe]  ;;  %805 = vst [vmem:[#allocation2 + $0x1f0] sm:$0xff] %v8785_v54  ;;  %v3325_v1 = vld [vmem:[#allocation3 + $0x268] sm:$0xff]  ;;  %v8793_v3 = vrot.slane %v8636_v57, 1  ;;  %v7068_v4 = vpack.c.bf16 %v3602_v51, %v3600_v48  ;;  %v3327_v9 = vld [vmem:[#allocation3 + $0x278] sm:$0xff]  ;;  %v1920_v12 = vsel %vm1069_vm1, %v8745_v60, %v1919_v46  ;;  %7067 = vmatprep.subr.bf16.mxu0 %v7066_v47  ;;  %v7070_v14 = vpack.c.bf16 %v3607_v56, %v3605_v55 }
  0xf6   : > { %v8795_v0 = vld [vmem:[#allocation2 + $0x148] sm:$0x1]  ;;  %v8797_v8 = vld [vmem:[#allocation3 + $0xb20] sm:$0xff]  ;;  %v1924_v13 = vrot.slane %v1732_v42, 1  ;;  %6789 = vmatpush1.bf16.msra.mxu1 %v6788_v53  ;;  %v3606_v16 = vld [vmem:[#allocation3 + $0xb30] sm:$0xff]  ;;  %v6790_v18 = vpack.c.bf16 %v3327_v9, %v3325_v1  ;;  %v1918_v41 = vsel %vm1069_vm1, %v8774_v32, %v1917_v62  ;;  %v8813_v34 = vrot.slane %v8639_v58, 1 }
  0xf7   : > { %v8801_v19 = vld [vmem:[#allocation3 + $0x260] sm:$0xff]  ;;  %v8803_v22 = vld [vmem:[#allocation3 + $0x270] sm:$0xff]  ;;  %3937 = vmatmul.mubr.f32.gmra.mrb[16].mxu1 %v861_v61  ;;  %v866_v23 = vld [vmem:[#allocation2 + $0xf8] sm:$0xff]  ;;  %4965 = vmatmul.mubr.f32.gmra.mrb[16].mxu0 %v1913_v15  ;;  %v1921_v43 = vrot.slane %v8787_v63, 1  ;;  %v1929_v44 = vrot.slane %v8795_v0, 1 }
  0xf8   : > { %v468_v26 = vld [vmem:[%s8491_s9 + $0x148] sm:$0xff]  ;;  %v470_v21 = vld [vmem:[%s8491_s9 + $0x158] sm:$0xff]  ;;  %3942 = vmatprep.mubr.f32.mxu1 %v8558_v39  ;;  %v467_v38 = vld [vmem:[%s8491_s9 + $0x140] sm:$0xff]  ;;  %4970 = vmatprep.mubr.f32.mxu0 %v1920_v12  ;;  %v7072_v39 = vpack.c.bf16 %v3606_v16, %v8797_v8  ;;  %v1926_v47 = vsel %vm1069_vm1, %v1924_v13, %v8793_v3  ;;  %v6792_v51 = vpack.c.bf16 %v8803_v22, %v8801_v19 }
  0xf9   : > { %v8807_v59 = vld [vmem:[#allocation3 + $0x288] sm:$0xff]  ;;  %v617_v35 = vrot.slane %v468_v26, 7  ;;  %v620_v36 = vrot.slane %v470_v21, 7  ;;  %v3331_v37 = vld [vmem:[#allocation3 + $0x298] sm:$0xff]  ;;  %v469_v40 = vld [vmem:[%s8491_s9 + $0x150] sm:$0xff]  ;;  %7069 = vmatpush1.bf16.msra.mxu0 %v7068_v4  ;;  %v616_v11 = vrot.slane %v467_v38, 7  ;;  %6791 = vmatprep.subr.bf16.mxu1 %v6790_v18  ;;  %v1923_v12 = vsel %vm1069_vm1, %v1921_v43, %v8813_v34 }
  0xfa   : > { %v8819_v45 = vld [vmem:[#allocation2 + $0x140] sm:$0x1]  ;;  %v3609_v46 = vld [vmem:[#allocation3 + $0xb48] sm:$0xff]  ;;  %v8824_v48 = vld [vmem:[#allocation2 + $0x158] sm:$0xfe]  ;;  %7071 = vmatprep.subr.bf16.mxu0 %v7070_v14  ;;  %v618_v42 = vrot.slane %v469_v40, 7  ;;  %v6794_v61 = vpack.c.bf16 %v3331_v37, %v8807_v59  ;;  %v1930_v26 = vsel %vm1069_vm1, %v8793_v3, %v1929_v44  ;;  %6793 = vmatpush1.bf16.msra.mxu1 %v6792_v51 }
  0xfb   : > { %v8829_v53 = vsel %vm555_vm0, %v617_v35, %v620_v36  ;;  %810 = vst [vmem:[#allocation2 + $0x218] sm:$0xfe] %v617_v35  ;;  %814 = vst [vmem:[#allocation2 + $0x238] sm:$0x1] %v620_v36  ;;  %v3611_v55 = vld [vmem:[#allocation3 + $0xb58] sm:$0xff]  ;;  %v8831_v56 = vld [vmem:[#allocation3 + $0x280] sm:$0xff]  ;;  %3943 = vmatmul.mubr.f32.gmra.mrb[18].mxu1 %v8581_v7  ;;  %4971 = vmatmul.mubr.f32.gmra.mrb[18].mxu0 %v1918_v41 }
  0xfc   : > { %812 = vst [vmem:[#allocation2 + $0x228] sm:$0xff] %v8829_v53  ;;  %809 = vst [vmem:[#allocation2 + $0x210] sm:$0xfe] %v616_v11  ;;  %v7074_v62 = vpack.c.bf16 %v3611_v55, %v3609_v46  ;;  %v3330_v63 = vld [vmem:[#allocation3 + $0x290] sm:$0xff]  ;;  %v3608_v1 = vld [vmem:[#allocation3 + $0xb40] sm:$0xff]  ;;  %3948 = vmatprep.mubr.f32.mxu1 %v866_v23  ;;  %v8837_v4 = vrot.slane %v8646_v2, 1  ;;  %v8840_v8 = vsel %vm555_vm0, %v616_v11, %v618_v42  ;;  %4976 = vmatprep.mubr.f32.mxu0 %v1926_v47 }
  0xfd   : > { %v3610_v15 = vld [vmem:[#allocation3 + $0xb50] sm:$0xff]  ;;  %813 = vst [vmem:[#allocation2 + $0x230] sm:$0x1] %v618_v42  ;;  %v3333_v7 = vld [vmem:[#allocation3 + $0x2a8] sm:$0xff]  ;;  %v3335_v9 = vld [vmem:[#allocation3 + $0x2b8] sm:$0xff]  ;;  %v1927_v13 = vrot.slane %v8819_v45, 1  ;;  %7073 = vmatpush1.bf16.msra.mxu0 %v7072_v39  ;;  %v6796_v21 = vpack.c.bf16 %v3330_v63, %v8831_v56  ;;  %6795 = vmatprep.subr.bf16.mxu1 %v6794_v61 }
  0xfe   : > { %v865_v0 = vld [vmem:[#allocation2 + $0xf0] sm:$0xff]  ;;  %v1934_v14 = vrot.slane %v8824_v48, 1  ;;  %v8848_v18 = vld [vmem:[#allocation2 + $0x178] sm:$0x1]  ;;  %811 = vst [vmem:[#allocation2 + $0x220] sm:$0xff] %v8840_v8  ;;  %v7076_v19 = vpack.c.bf16 %v3610_v15, %v3608_v1  ;;  %v472_v22 = vld [vmem:[%s8491_s9 + $0x168] sm:$0xff]  ;;  %7075 = vmatprep.subr.bf16.mxu0 %v7074_v62  ;;  %v6798_v38 = vpack.c.bf16 %v3335_v9, %v3333_v7 }
  0xff   : > { %v8846_v16 = vld [vmem:[#allocation2 + $0x150] sm:$0xfe]  ;;  %v474_v23 = vld [vmem:[%s8491_s9 + $0x178] sm:$0xff]  ;;  %v8856_v59 = vld [vmem:[#allocation3 + $0x2a0] sm:$0xff]  ;;  %v623_v35 = vrot.slane %v472_v22, 7  ;;  %3949 = vmatmul.mubr.f32.gmra.mrb[20].mxu1 %v865_v0  ;;  %4977 = vmatmul.mubr.f32.gmra.mrb[20].mxu0 %v1923_v12  ;;  %v1928_v42 = vsel %vm1069_vm1, %v8813_v34, %v1927_v13  ;;  %v8868_v61 = vrot.slane %v8658_v25, 1 }
 0x100   : > { %v3334_v41 = vld [vmem:[#allocation3 + $0x2b0] sm:$0xff]  ;;  %v626_v36 = vrot.slane %v474_v23, 7  ;;  %v471_v37 = vld [vmem:[%s8491_s9 + $0x160] sm:$0xff]  ;;  %v3613_v45 = vld [vmem:[#allocation3 + $0xb68] sm:$0xff]  ;;  %3954 = vmatprep.mubr.f32.mxu1 %v8601_v24  ;;  %4982 = vmatprep.mubr.f32.mxu0 %v1930_v26  ;;  %v1931_v56 = vrot.slane %v8846_v16, 1  ;;  %v1936_v24 = vsel %vm1069_vm1, %v1934_v14, %v8837_v4  ;;  %v1939_v63 = vrot.slane %v8848_v18, 1 }
 0x101   : > { %v473_v40 = vld [vmem:[%s8491_s9 + $0x170] sm:$0xff]  ;;  %v622_v43 = vrot.slane %v471_v37, 7  ;;  %v3615_v39 = vld [vmem:[#allocation3 + $0xb78] sm:$0xff]  ;;  %816 = vst [vmem:[#allocation2 + $0x248] sm:$0xfe] %v623_v35  ;;  %v3337_v11 = vld [vmem:[#allocation3 + $0x2c8] sm:$0xff]  ;;  %7077 = vmatpush1.bf16.msra.mxu0 %v7076_v19  ;;  %6797 = vmatpush1.bf16.msra.mxu1 %v6796_v21  ;;  %v6800_v15 = vpack.c.bf16 %v3334_v41, %v8856_v59 }
 0x102   : > { %v8862_v44 = vsel %vm555_vm0, %v623_v35, %v626_v36  ;;  %820 = vst [vmem:[#allocation2 + $0x268] sm:$0x1] %v626_v36  ;;  %v3339_v46 = vld [vmem:[#allocation3 + $0x2d8] sm:$0xff]  ;;  %v624_v47 = vrot.slane %v473_v40, 7  ;;  %v7078_v48 = vpack.c.bf16 %v3615_v39, %v3613_v45  ;;  %v3612_v51 = vld [vmem:[#allocation3 + $0xb60] sm:$0xff]  ;;  %v870_v55 = vld [vmem:[#allocation2 + $0x128] sm:$0xff]  ;;  %6799 = vmatprep.subr.bf16.mxu1 %v6798_v38  ;;  %v1940_v41 = vsel %vm1069_vm1, %v8837_v4, %v1939_v63 }
 0x103   : > { %818 = vst [vmem:[#allocation2 + $0x258] sm:$0xff] %v8862_v44  ;;  %815 = vst [vmem:[#allocation2 + $0x240] sm:$0xfe] %v622_v43  ;;  %v869_v62 = vld [vmem:[#allocation2 + $0x120] sm:$0xff]  ;;  %v1737_v1 = vld [vmem:[#allocation2 + $0x170] sm:$0x1]  ;;  %3955 = vmatmul.mubr.f32.gmra.mrb[22].mxu1 %v8611_v29  ;;  %v6802_v12 = vpack.c.bf16 %v3339_v46, %v3337_v11  ;;  %4983 = vmatmul.mubr.f32.gmra.mrb[22].mxu0 %v1928_v42  ;;  %v1933_v29 = vsel %vm1069_vm1, %v1931_v56, %v8868_v61 }
 0x104   : > { %v8876_v0 = vsel %vm555_vm0, %v622_v43, %v624_v47  ;;  %819 = vst [vmem:[#allocation2 + $0x260] sm:$0x1] %v624_v47  ;;  %7079 = vmatprep.subr.bf16.mxu0 %v7078_v48  ;;  %v3614_v7 = vld [vmem:[#allocation3 + $0xb70] sm:$0xff]  ;;  %v1740_v9 = vld [vmem:[#allocation2 + $0x188] sm:$0xfe]  ;;  %v3336_v13 = vld [vmem:[#allocation3 + $0x2c0] sm:$0xff]  ;;  %3960 = vmatprep.mubr.f32.mxu1 %v870_v55 }
 0x105   : > { %817 = vst [vmem:[#allocation2 + $0x250] sm:$0xff] %v8876_v0  ;;  %v3338_v14 = vld [vmem:[#allocation3 + $0x2d0] sm:$0xff]  ;;  %v7080_v16 = vpack.c.bf16 %v3614_v7, %v3612_v51  ;;  %v3341_v18 = vld [vmem:[#allocation3 + $0x2e8] sm:$0xff]  ;;  %v3343_v19 = vld [vmem:[#allocation3 + $0x2f8] sm:$0xff]  ;;  %4988 = vmatprep.mubr.f32.mxu0 %v1936_v24  ;;  %v1937_v23 = vrot.slane %v1737_v1, 1  ;;  %v8884_v26 = vrot.slane %v8705_v17, 1  ;;  %6801 = vmatpush1.bf16.msra.mxu1 %v6800_v15 }
 0x106   : > { %v476_v22 = vld [vmem:[%s8491_s9 + $0x188] sm:$0xff]  ;;  %v478_v21 = vld [vmem:[%s8491_s9 + $0x198] sm:$0xff]  ;;  %v1944_v35 = vrot.slane %v1740_v9, 1  ;;  %v1739_v36 = vld [vmem:[#allocation2 + $0x180] sm:$0xfe]  ;;  %v6804_v37 = vpack.c.bf16 %v3338_v14, %v3336_v13  ;;  %6803 = vmatprep.subr.bf16.mxu1 %v6802_v12  ;;  %v6806_v39 = vpack.c.bf16 %v3343_v19, %v3341_v18  ;;  %v8898_v1 = vrot.slane %v8721_v27, 1 }
 0x107   : > { %7081 = vmatpush1.bf16.msra.mxu0 %v7080_v16  ;;  %v629_v59 = vrot.slane %v476_v22, 7  ;;  %v632_v38 = vrot.slane %v478_v21, 7  ;;  %v475_v40 = vld [vmem:[%s8491_s9 + $0x180] sm:$0xff]  ;;  %v477_v43 = vld [vmem:[%s8491_s9 + $0x190] sm:$0xff]  ;;  %3961 = vmatmul.mubr.f32.gmra.mrb[24].mxu1 %v869_v62  ;;  %v1742_v45 = vld [vmem:[#allocation2 + $0x1a8] sm:$0x1]  ;;  %v1938_v24 = vsel %vm1069_vm1, %v8868_v61, %v1937_v23 }
 0x108   : > { %v3340_v11 = vld [vmem:[#allocation3 + $0x2e0] sm:$0xff]  ;;  %v3342_v46 = vld [vmem:[#allocation3 + $0x2f0] sm:$0xff]  ;;  %v628_v47 = vrot.slane %v475_v40, 7  ;;  %4989 = vmatmul.mubr.f32.gmra.mrb[24].mxu0 %v1933_v29  ;;  %3966 = vmatprep.mubr.f32.mxu1 %v8636_v57  ;;  %v3345_v51 = vld [vmem:[#allocation3 + $0x308] sm:$0xff]  ;;  %v630_v55 = vrot.slane %v477_v43, 7  ;;  %v1941_v63 = vrot.slane %v1739_v36, 1  ;;  %v1946_v7 = vsel %vm1069_vm1, %v1944_v35, %v8884_v26 }
 0x109   : > { %822 = vst [vmem:[#allocation2 + $0x278] sm:$0xfe] %v629_v59  ;;  %v8893_v48 = vsel %vm555_vm0, %v629_v59, %v632_v38  ;;  %826 = vst [vmem:[#allocation2 + $0x298] sm:$0x1] %v632_v38  ;;  %v3347_v42 = vld [vmem:[#allocation3 + $0x318] sm:$0xff]  ;;  %v3617_v56 = vld [vmem:[#allocation3 + $0xb88] sm:$0xff]  ;;  %4994 = vmatprep.mubr.f32.mxu0 %v1940_v41  ;;  %6805 = vmatpush1.bf16.msra.mxu1 %v6804_v37  ;;  %v6808_v14 = vpack.c.bf16 %v3342_v46, %v3340_v11 }
 0x10a   : > { %v874_v62 = vld [vmem:[#allocation2 + $0x158] sm:$0xff]  ;;  %v8900_v15 = vld [vmem:[#allocation2 + $0x1a0] sm:$0x1]  ;;  %824 = vst [vmem:[#allocation2 + $0x288] sm:$0xff] %v8893_v48  ;;  %821 = vst [vmem:[#allocation2 + $0x270] sm:$0xfe] %v628_v47  ;;  %v8908_v16 = vsel %vm555_vm0, %v628_v47, %v630_v55  ;;  %6807 = vmatprep.subr.bf16.mxu1 %v6806_v39  ;;  %v6810_v22 = vpack.c.bf16 %v3347_v42, %v3345_v51 }
 0x10b   : > { %v3619_v57 = vld [vmem:[#allocation3 + $0xb98] sm:$0xff]  ;;  %v873_v9 = vld [vmem:[#allocation2 + $0x150] sm:$0xff]  ;;  %v1949_v12 = vrot.slane %v1742_v45, 1  ;;  %825 = vst [vmem:[#allocation2 + $0x290] sm:$0x1] %v630_v55  ;;  %v3616_v18 = vld [vmem:[#allocation3 + $0xb80] sm:$0xff]  ;;  %3967 = vmatmul.mubr.f32.gmra.mrb[26].mxu1 %v8639_v58  ;;  %v1943_v58 = vsel %vm1069_vm1, %v1941_v63, %v8898_v1 }
 0x10c   : > { %v8905_v13 = vld [vmem:[#allocation2 + $0x1b8] sm:$0xfe]  ;;  %v3618_v19 = vld [vmem:[#allocation3 + $0xb90] sm:$0xff]  ;;  %823 = vst [vmem:[#allocation2 + $0x280] sm:$0xff] %v8908_v16  ;;  %v7082_v29 = vpack.c.bf16 %v3619_v57, %v3617_v56  ;;  %v3344_v23 = vld [vmem:[#allocation3 + $0x300] sm:$0xff]  ;;  %4995 = vmatmul.mubr.f32.gmra.mrb[26].mxu0 %v1938_v24  ;;  %3972 = vmatprep.mubr.f32.mxu1 %v874_v62  ;;  %v8913_v41 = vrot.slane %v8738_v52, 1 }
 0x10d   : > { %v3346_v21 = vld [vmem:[#allocation3 + $0x310] sm:$0xff]  ;;  %v3349_v59 = vld [vmem:[#allocation3 + $0x328] sm:$0xff]  ;;  %v7084_v35 = vpack.c.bf16 %v3618_v19, %v3616_v18  ;;  %v3351_v36 = vld [vmem:[#allocation3 + $0x338] sm:$0xff]  ;;  %5000 = vmatprep.mubr.f32.mxu0 %v1946_v7  ;;  %v1947_v40 = vrot.slane %v8900_v15, 1  ;;  %v1950_v46 = vsel %vm1069_vm1, %v8884_v26, %v1949_v12  ;;  %v1954_v47 = vrot.slane %v8905_v13, 1  ;;  %6809 = vmatpush1.bf16.msra.mxu1 %v6808_v14 }
 0x10e   : > { %v480_v37 = vld [vmem:[%s8491_s9 + $0x1a8] sm:$0xff]  ;;  %v482_v38 = vld [vmem:[%s8491_s9 + $0x1b8] sm:$0xff]  ;;  %7083 = vmatprep.subr.bf16.mxu0 %v7082_v29  ;;  %v479_v11 = vld [vmem:[%s8491_s9 + $0x1a0] sm:$0xff]  ;;  %v6812_v42 = vpack.c.bf16 %v3346_v21, %v3344_v23  ;;  %6811 = vmatprep.subr.bf16.mxu1 %v6810_v22  ;;  %v6814_v62 = vpack.c.bf16 %v3351_v36, %v3349_v59  ;;  %v8937_v29 = vrot.slane %v8749_v5, 1 }
 0x10f   : > { %v8920_v43 = vld [vmem:[#allocation2 + $0x1d8] sm:$0x1]  ;;  %v635_v45 = vrot.slane %v480_v37, 7  ;;  %v638_v39 = vrot.slane %v482_v38, 7  ;;  %v1743_v51 = vld [vmem:[#allocation2 + $0x1b0] sm:$0xfe]  ;;  %7085 = vmatpush1.bf16.msra.mxu0 %v7084_v35  ;;  %3973 = vmatmul.mubr.f32.gmra.mrb[28].mxu1 %v873_v9  ;;  %v1948_v18 = vsel %vm1069_vm1, %v8898_v1, %v1947_v40  ;;  %v1956_v21 = vsel %vm1069_vm1, %v1954_v47, %v8913_v41 }
 0x110   : > { %v8926_v55 = vld [vmem:[#allocation3 + $0x320] sm:$0xff]  ;;  %v481_v56 = vld [vmem:[%s8491_s9 + $0x1b0] sm:$0xff]  ;;  %v634_v24 = vrot.slane %v479_v11, 7  ;;  %v3621_v7 = vld [vmem:[#allocation3 + $0xba8] sm:$0xff]  ;;  %5001 = vmatmul.mubr.f32.gmra.mrb[28].mxu0 %v1943_v58  ;;  %3978 = vmatprep.mubr.f32.mxu1 %v8646_v2  ;;  %v1951_v22 = vrot.slane %v1743_v51, 1  ;;  %v1959_v35 = vrot.slane %v8920_v43, 1 }
 0x111   : > { %v3350_v63 = vld [vmem:[#allocation3 + $0x330] sm:$0xff]  ;;  %v8930_v15 = vsel %vm555_vm0, %v635_v45, %v638_v39  ;;  %828 = vst [vmem:[#allocation2 + $0x2a8] sm:$0xfe] %v635_v45  ;;  %832 = vst [vmem:[#allocation2 + $0x2c8] sm:$0x1] %v638_v39  ;;  %v636_v57 = vrot.slane %v481_v56, 7  ;;  %5006 = vmatprep.mubr.f32.mxu0 %v1950_v46  ;;  %6813 = vmatpush1.bf16.msra.mxu1 %v6812_v42 }
 0x112   : > { %v3623_v12 = vld [vmem:[#allocation3 + $0xbb8] sm:$0xff]  ;;  %830 = vst [vmem:[#allocation2 + $0x2b8] sm:$0xff] %v8930_v15  ;;  %v3353_v13 = vld [vmem:[#allocation3 + $0x348] sm:$0xff]  ;;  %827 = vst [vmem:[#allocation2 + $0x2a0] sm:$0xfe] %v634_v24  ;;  %v6816_v38 = vpack.c.bf16 %v3350_v63, %v8926_v55  ;;  %6815 = vmatprep.subr.bf16.mxu1 %v6814_v62  ;;  %v8952_v46 = vrot.slane %v8768_v31, 1 }
 0x113   : > { %v3355_v14 = vld [vmem:[#allocation3 + $0x358] sm:$0xff]  ;;  %v7086_v9 = vpack.c.bf16 %v3623_v12, %v3621_v7  ;;  %v878_v19 = vld [vmem:[#allocation2 + $0x188] sm:$0xff]  ;;  %v8940_v23 = vsel %vm555_vm0, %v634_v24, %v636_v57  ;;  %831 = vst [vmem:[#allocation2 + $0x2c0] sm:$0x1] %v636_v57  ;;  %v3620_v2 = vld [vmem:[#allocation3 + $0xba0] sm:$0xff]  ;;  %3979 = vmatmul.mubr.f32.gmra.mrb[30].mxu1 %v8658_v25  ;;  %v1953_v25 = vsel %vm1069_vm1, %v1951_v22, %v8937_v29 }
 0x114   : > { %v877_v59 = vld [vmem:[#allocation2 + $0x180] sm:$0xff]  ;;  %v1745_v36 = vld [vmem:[#allocation2 + $0x1d0] sm:$0x1]  ;;  %v8945_v37 = vld [vmem:[#allocation2 + $0x1e8] sm:$0xfe]  ;;  %829 = vst [vmem:[#allocation2 + $0x2b0] sm:$0xff] %v8940_v23  ;;  %v6818_v40 = vpack.c.bf16 %v3355_v14, %v3353_v13  ;;  %5007 = vmatmul.mubr.f32.gmra.mrb[30].mxu0 %v1948_v18  ;;  %3984 = vmatprep.mubr.f32.mxu1 %v878_v19  ;;  %v1960_v7 = vsel %vm1069_vm1, %v8913_v41, %v1959_v35 }
 0x115   : > { %7087 = vmatprep.subr.bf16.mxu0 %v7086_v9  ;;  %v3622_v58 = vld [vmem:[#allocation3 + $0xbb0] sm:$0xff]  ;;  %v3352_v45 = vld [vmem:[#allocation3 + $0x340] sm:$0xff]  ;;  %v484_v43 = vld [vmem:[%s8491_s9 + $0x1c8] sm:$0xff]  ;;  %5012 = vmatprep.mubr.f32.mxu0 %v1956_v21  ;;  %v1957_v56 = vrot.slane %v1745_v36, 1  ;;  %v1964_v12 = vrot.slane %v8945_v37, 1 }
 0x116   : > { %v3354_v39 = vld [vmem:[#allocation3 + $0x350] sm:$0xff]  ;;  %v7088_v11 = vpack.c.bf16 %v3622_v58, %v3620_v2  ;;  %v3357_v47 = vld [vmem:[#allocation3 + $0x368] sm:$0xff]  ;;  %v3359_v51 = vld [vmem:[#allocation3 + $0x378] sm:$0xff]  ;;  %v641_v55 = vrot.slane %v484_v43, 7  ;;  %6817 = vmatpush1.bf16.msra.mxu1 %v6816_v38 }
 0x117   : > { %v486_v42 = vld [vmem:[%s8491_s9 + $0x1d8] sm:$0xff]  ;;  %v1750_v24 = vld [vmem:[#allocation2 + $0x208] sm:$0x1]  ;;  %v483_v63 = vld [vmem:[%s8491_s9 + $0x1c0] sm:$0xff]  ;;  %v6820_v14 = vpack.c.bf16 %v3354_v39, %v3352_v45  ;;  %3985 = vmatmul.mubr.f32.gmra.mrb[32].mxu1 %v877_v59  ;;  %6819 = vmatprep.subr.bf16.mxu1 %v6818_v40  ;;  %v6822_v18 = vpack.c.bf16 %v3359_v51, %v3357_v47  ;;  %v1958_v58 = vsel %vm1069_vm1, %v8937_v29, %v1957_v56  ;;  %v8970_v39 = vrot.slane %v8785_v54, 1 }
 0x118   : > { %7089 = vmatpush1.bf16.msra.mxu0 %v7088_v11  ;;  %v644_v62 = vrot.slane %v486_v42, 7  ;;  %v485_v57 = vld [vmem:[%s8491_s9 + $0x1d0] sm:$0xff]  ;;  %v1747_v13 = vld [vmem:[#allocation2 + $0x1e0] sm:$0xfe]  ;;  %834 = vst [vmem:[#allocation2 + $0x2d8] sm:$0xfe] %v641_v55  ;;  %3990 = vmatprep.mubr.f32.mxu1 %v8705_v17  ;;  %v1966_v47 = vsel %vm1069_vm1, %v1964_v12, %v8952_v46 }
 0x119   : > { %v640_v9 = vrot.slane %v483_v63, 7  ;;  %v3356_v19 = vld [vmem:[#allocation3 + $0x360] sm:$0xff]  ;;  %v3358_v22 = vld [vmem:[#allocation3 + $0x370] sm:$0xff]  ;;  %v642_v21 = vrot.slane %v485_v57, 7  ;;  %v3625_v36 = vld [vmem:[#allocation3 + $0xbc8] sm:$0xff]  ;;  %5013 = vmatmul.mubr.f32.gmra.mrb[32].mxu0 %v1953_v25  ;;  %v1969_v35 = vrot.slane %v1750_v24, 1 }
 0x11a   : > { %v8963_v2 = vsel %vm555_vm0, %v641_v55, %v644_v62  ;;  %838 = vst [vmem:[#allocation2 + $0x2f8] sm:$0x1] %v644_v62  ;;  %v3361_v37 = vld [vmem:[#allocation3 + $0x388] sm:$0xff]  ;;  %v3363_v38 = vld [vmem:[#allocation3 + $0x398] sm:$0xff]  ;;  %5018 = vmatprep.mubr.f32.mxu0 %v1960_v7  ;;  %v1961_v45 = vrot.slane %v1747_v13, 1  ;;  %v3624_v17 = vld [vmem:[#allocation3 + $0xbc0] sm:$0xff]  ;;  %6821 = vmatpush1.bf16.msra.mxu1 %v6820_v14  ;;  %v6824_v25 = vpack.c.bf16 %v3358_v22, %v3356_v19 }
 0x11b   : > { %836 = vst [vmem:[#allocation2 + $0x2e8] sm:$0xff] %v8963_v2  ;;  %833 = vst [vmem:[#allocation2 + $0x2d0] sm:$0xfe] %v640_v9  ;;  %v3627_v59 = vld [vmem:[#allocation3 + $0xbd8] sm:$0xff]  ;;  %v8973_v11 = vsel %vm555_vm0, %v640_v9, %v642_v21  ;;  %v3626_v43 = vld [vmem:[#allocation3 + $0xbd0] sm:$0xff]  ;;  %3991 = vmatmul.mubr.f32.gmra.mrb[34].mxu1 %v8721_v27  ;;  %6823 = vmatprep.subr.bf16.mxu1 %v6822_v18  ;;  %v6826_v62 = vpack.c.bf16 %v3363_v38, %v3361_v37 }
 0x11c   : > { %v882_v40 = vld [vmem:[#allocation2 + $0x1b8] sm:$0xff]  ;;  %837 = vst [vmem:[#allocation2 + $0x2f0] sm:$0x1] %v642_v21  ;;  %v881_v51 = vld [vmem:[#allocation2 + $0x1b0] sm:$0xff]  ;;  %v1749_v42 = vld [vmem:[#allocation2 + $0x200] sm:$0x1]  ;;  %v7090_v56 = vpack.c.bf16 %v3627_v59, %v3625_v36  ;;  %v7092_v57 = vpack.c.bf16 %v3626_v43, %v3624_v17  ;;  %v1970_v13 = vsel %vm1069_vm1, %v8952_v46, %v1969_v35  ;;  %v1963_v27 = vsel %vm1069_vm1, %v1961_v45, %v8970_v39 }
 0x11d   : > { %v8977_v55 = vld [vmem:[#allocation2 + $0x218] sm:$0xfe]  ;;  %835 = vst [vmem:[#allocation2 + $0x2e0] sm:$0xff] %v8973_v11  ;;  %v8980_v24 = vld [vmem:[#allocation3 + $0x380] sm:$0xff]  ;;  %v3362_v63 = vld [vmem:[#allocation3 + $0x390] sm:$0xff]  ;;  %5019 = vmatmul.mubr.f32.gmra.mrb[34].mxu0 %v1958_v58  ;;  %3996 = vmatprep.mubr.f32.mxu1 %v882_v40  ;;  %v1967_v18 = vrot.slane %v1749_v42, 1 }
 0x11e   : > { %v488_v7 = vld [vmem:[%s8491_s9 + $0x1e8] sm:$0xff]  ;;  %v490_v12 = vld [vmem:[%s8491_s9 + $0x1f8] sm:$0xff]  ;;  %v487_v21 = vld [vmem:[%s8491_s9 + $0x1e0] sm:$0xff]  ;;  %5024 = vmatprep.mubr.f32.mxu0 %v1966_v47  ;;  %v8991_v36 = vrot.slane %v8829_v53, 1  ;;  %7091 = vmatprep.subr.bf16.mxu0 %v7090_v56  ;;  %v1974_v59 = vrot.slane %v8977_v55, 1  ;;  %v6828_v35 = vpack.c.bf16 %v3362_v63, %v8980_v24 }
 0x11f   : > { %v3365_v14 = vld [vmem:[#allocation3 + $0x3a8] sm:$0xff]  ;;  %v3367_v9 = vld [vmem:[#allocation3 + $0x3b8] sm:$0xff]  ;;  %v647_v19 = vrot.slane %v488_v7, 7  ;;  %v650_v22 = vrot.slane %v490_v12, 7  ;;  %v489_v37 = vld [vmem:[%s8491_s9 + $0x1f0] sm:$0xff]  ;;  %v646_v38 = vrot.slane %v487_v21, 7  ;;  %6825 = vmatpush1.bf16.msra.mxu1 %v6824_v25  ;;  %7093 = vmatpush1.bf16.msra.mxu0 %v7092_v57 }
 0x120   : > { %v1751_v58 = vld [vmem:[#allocation2 + $0x210] sm:$0xfe]  ;;  %v648_v45 = vrot.slane %v489_v37, 7  ;;  %v3629_v17 = vld [vmem:[#allocation3 + $0xbe8] sm:$0xff]  ;;  %v3631_v43 = vld [vmem:[#allocation3 + $0xbf8] sm:$0xff]  ;;  %3997 = vmatmul.mubr.f32.gmra.mrb[36].mxu1 %v881_v51  ;;  %6827 = vmatprep.subr.bf16.mxu1 %v6826_v62  ;;  %v6830_v42 = vpack.c.bf16 %v3367_v9, %v3365_v14  ;;  %v1968_v51 = vsel %vm1069_vm1, %v8970_v39, %v1967_v18  ;;  %v9007_v14 = vrot.slane %v8840_v8, 1 }
 0x121   : > { %v8997_v40 = vsel %vm555_vm0, %v647_v19, %v650_v22  ;;  %840 = vst [vmem:[#allocation2 + $0x308] sm:$0xfe] %v647_v19  ;;  %844 = vst [vmem:[#allocation2 + $0x328] sm:$0x1] %v650_v22  ;;  %v1754_v47 = vld [vmem:[#allocation2 + $0x238] sm:$0x1]  ;;  %v7094_v55 = vpack.c.bf16 %v3631_v43, %v3629_v17  ;;  %5025 = vmatmul.mubr.f32.gmra.mrb[36].mxu0 %v1963_v27  ;;  %4002 = vmatprep.mubr.f32.mxu1 %v8738_v52 }
 0x122   : > { %v3364_v56 = vld [vmem:[#allocation3 + $0x3a0] sm:$0xff]  ;;  %v3366_v7 = vld [vmem:[#allocation3 + $0x3b0] sm:$0xff]  ;;  %842 = vst [vmem:[#allocation2 + $0x318] sm:$0xff] %v8997_v40  ;;  %839 = vst [vmem:[#allocation2 + $0x300] sm:$0xfe] %v646_v38  ;;  %v9002_v63 = vsel %vm555_vm0, %v646_v38, %v648_v45  ;;  %5030 = vmatprep.mubr.f32.mxu0 %v1970_v13  ;;  %v1971_v12 = vrot.slane %v1751_v58, 1  ;;  %v1976_v9 = vsel %vm1069_vm1, %v1974_v59, %v8991_v36 }
 0x123   : > { %v3369_v25 = vld [vmem:[#allocation3 + $0x3c8] sm:$0xff]  ;;  %v3371_v24 = vld [vmem:[#allocation3 + $0x3d8] sm:$0xff]  ;;  %843 = vst [vmem:[#allocation2 + $0x320] sm:$0x1] %v648_v45  ;;  %v3628_v57 = vld [vmem:[#allocation3 + $0xbe0] sm:$0xff]  ;;  %7095 = vmatprep.subr.bf16.mxu0 %v7094_v55  ;;  %v1979_v22 = vrot.slane %v1754_v47, 1  ;;  %6829 = vmatpush1.bf16.msra.mxu1 %v6828_v35  ;;  %v6832_v13 = vpack.c.bf16 %v3366_v7, %v3364_v56 }
 0x124   : > { %v886_v62 = vld [vmem:[#allocation2 + $0x1e8] sm:$0xff]  ;;  %841 = vst [vmem:[#allocation2 + $0x310] sm:$0xff] %v9002_v63  ;;  %v3630_v52 = vld [vmem:[#allocation3 + $0xbf0] sm:$0xff]  ;;  %v885_v19 = vld [vmem:[#allocation2 + $0x1e0] sm:$0xff]  ;;  %4003 = vmatmul.mubr.f32.gmra.mrb[38].mxu1 %v8749_v5  ;;  %6831 = vmatprep.subr.bf16.mxu1 %v6830_v42  ;;  %v6834_v18 = vpack.c.bf16 %v3371_v24, %v3369_v25  ;;  %v1973_v59 = vsel %vm1069_vm1, %v1971_v12, %v9007_v14  ;;  %v9018_v56 = vrot.slane %v8862_v44, 1 }
 0x125   : > { %v1753_v21 = vld [vmem:[#allocation2 + $0x230] sm:$0x1]  ;;  %v1756_v27 = vld [vmem:[#allocation2 + $0x248] sm:$0xfe]  ;;  %v7096_v37 = vpack.c.bf16 %v3630_v52, %v3628_v57  ;;  %v3368_v38 = vld [vmem:[#allocation3 + $0x3c0] sm:$0xff]  ;;  %5031 = vmatmul.mubr.f32.gmra.mrb[38].mxu0 %v1968_v51  ;;  %4008 = vmatprep.mubr.f32.mxu1 %v886_v62  ;;  %v1980_v5 = vsel %vm1069_vm1, %v8991_v36, %v1979_v22  ;;  %v9024_v22 = vrot.slane %v8876_v0, 1 }
 0x126   : > { %v3370_v58 = vld [vmem:[#allocation3 + $0x3d0] sm:$0xff]  ;;  %v3633_v45 = vld [vmem:[#allocation3 + $0xc08] sm:$0xff]  ;;  %v3375_v43 = vld [vmem:[#allocation3 + $0x3f8] sm:$0xff]  ;;  %5036 = vmatprep.mubr.f32.mxu0 %v1976_v9  ;;  %v1977_v47 = vrot.slane %v1753_v21, 1  ;;  %v1984_v42 = vrot.slane %v1756_v27, 1 }
 0x127   : > { %v3373_v17 = vld [vmem:[#allocation3 + $0x3e8] sm:$0xff]  ;;  %v3635_v55 = vld [vmem:[#allocation3 + $0xc18] sm:$0xff]  ;;  %7097 = vmatpush1.bf16.msra.mxu0 %v7096_v37  ;;  %v1755_v7 = vld [vmem:[#allocation2 + $0x240] sm:$0xfe]  ;;  %6833 = vmatpush1.bf16.msra.mxu1 %v6832_v13  ;;  %v6836_v25 = vpack.c.bf16 %v3370_v58, %v3368_v38 }
 0x128   : > { %v7098_v35 = vpack.c.bf16 %v3635_v55, %v3633_v45  ;;  %4009 = vmatmul.mubr.f32.gmra.mrb[40].mxu1 %v885_v19  ;;  %v1758_v24 = vld [vmem:[#allocation2 + $0x268] sm:$0x1]  ;;  %6835 = vmatprep.subr.bf16.mxu1 %v6834_v18  ;;  %v6838_v57 = vpack.c.bf16 %v3375_v43, %v3373_v17  ;;  %v3372_v51 = vld [vmem:[#allocation3 + $0x3e0] sm:$0xff]  ;;  %v3374_v62 = vld [vmem:[#allocation3 + $0x3f0] sm:$0xff]  ;;  %v1978_v12 = vsel %vm1069_vm1, %v9007_v14, %v1977_v47  ;;  %v1981_v9 = vrot.slane %v1755_v7, 1 }
 0x129   : > { %5037 = vmatmul.mubr.f32.gmra.mrb[40].mxu0 %v1973_v59  ;;  %4014 = vmatprep.mubr.f32.mxu1 %v8768_v31  ;;  %v890_v52 = vld [vmem:[#allocation2 + $0x218] sm:$0xff]  ;;  %v1986_v19 = vsel %vm1069_vm1, %v1984_v42, %v9018_v56  ;;  %v1989_v21 = vrot.slane %v1758_v24, 1  ;;  %v1757_v27 = vld [vmem:[#allocation2 + $0x260] sm:$0x1]  ;;  %v6840_v13 = vpack.c.bf16 %v3374_v62, %v3372_v51  ;;  %v889_v37 = vld [vmem:[#allocation2 + $0x210] sm:$0xff]  ;;  %v9034_v17 = vrot.slane %v8893_v48, 1 }
 0x12a   : > { %5042 = vmatprep.mubr.f32.mxu0 %v1980_v5  ;;  %7099 = vmatprep.subr.bf16.mxu0 %v7098_v35  ;;  %v1760_v31 = vld [vmem:[#allocation2 + $0x278] sm:$0xfe]  ;;  %v1983_v18 = vsel %vm1069_vm1, %v1981_v9, %v9024_v22  ;;  %v1987_v38 = vrot.slane %v1757_v27, 1  ;;  %v1759_v43 = vld [vmem:[#allocation2 + $0x270] sm:$0xfe]  ;;  %v894_v59 = vld [vmem:[#allocation2 + $0x248] sm:$0xff] }
 0x12b   : > { %6837 = vmatpush1.bf16.msra.mxu1 %v6836_v25  ;;  %v1990_v58 = vsel %vm1069_vm1, %v9018_v56, %v1989_v21  ;;  %v1994_v45 = vrot.slane %v1760_v31, 1  ;;  %v1991_v47 = vrot.slane %v1759_v43, 1  ;;  %v9040_v35 = vrot.slane %v8908_v16, 1  ;;  %v1761_v7 = vld [vmem:[#allocation2 + $0x290] sm:$0x1] }
 0x12c   : > { %4015 = vmatmul.mubr.f32.gmra.mrb[42].mxu1 %v8785_v54  ;;  %6839 = vmatprep.subr.bf16.mxu1 %v6838_v57  ;;  %v1762_v54 = vld [vmem:[#allocation2 + $0x298] sm:$0x1]  ;;  %v1988_v55 = vsel %vm1069_vm1, %v9024_v22, %v1987_v38  ;;  %v1764_v25 = vld [vmem:[#allocation2 + $0x2a8] sm:$0xfe]  ;;  %v1997_v57 = vrot.slane %v1761_v7, 1  ;;  %v9056_v27 = vrot.slane %v8940_v23, 1 }
 0x12d   : > { %5043 = vmatmul.mubr.f32.gmra.mrb[42].mxu0 %v1978_v12  ;;  %4020 = vmatprep.mubr.f32.mxu1 %v890_v52  ;;  %v1996_v5 = vsel %vm1069_vm1, %v1994_v45, %v9034_v17  ;;  %v1999_v42 = vrot.slane %v1762_v54, 1  ;;  %v1993_v24 = vsel %vm1069_vm1, %v1991_v47, %v9040_v35  ;;  %v2004_v62 = vrot.slane %v1764_v25, 1  ;;  %v1763_v52 = vld [vmem:[#allocation2 + $0x2a0] sm:$0xfe]  ;;  %v1766_v9 = vld [vmem:[#allocation2 + $0x2c8] sm:$0x1] }
 0x12e   : > { %5048 = vmatprep.mubr.f32.mxu0 %v1986_v19  ;;  %v9050_v12 = vrot.slane %v8930_v15, 1  ;;  %v898_v19 = vld [vmem:[#allocation2 + $0x278] sm:$0xff]  ;;  %v2001_v21 = vrot.slane %v1763_v52, 1  ;;  %10424 = vst [vmem:[#allocation14_spill] sm:$0xff] %v9056_v27  ;;  %v2009_v31 = vrot.slane %v1766_v9, 1  ;;  %v9066_v54 = vrot.slane %v8963_v2, 1 }
 0x12f   : > { %6841 = vmatpush1.bf16.msra.mxu1 %v6840_v13  ;;  %v2000_v51 = vsel %vm1069_vm1, %v9034_v17, %v1999_v42  ;;  %v902_v47 = vld [vmem:[#allocation2 + $0x2a8] sm:$0xff]  ;;  %v9072_v42 = vrot.slane %v8973_v11, 1  ;;  %v2025_v9 = vrot.slane %v8997_v40, 1 }
 0x130   : > { %4021 = vmatmul.mubr.f32.gmra.mrb[44].mxu1 %v889_v37  ;;  %v2006_v13 = vsel %vm1069_vm1, %v2004_v62, %v9050_v12  ;;  %v1765_v37 = vld [vmem:[#allocation2 + $0x2c0] sm:$0x1]  ;;  %v2003_v38 = vsel %vm1069_vm1, %v2001_v21, %v9056_v27  ;;  %v2010_v45 = vsel %vm1069_vm1, %v9050_v12, %v2009_v31  ;;  %10425 = vst [vmem:[#allocation15_spill] sm:$0xff] %v9066_v54  ;;  %v906_v21 = vld [vmem:[#allocation2 + $0x2d8] sm:$0xff]  ;;  %v2022_v31 = vrot.slane %v9002_v63, 1  ;;  %v3377_v40 = vld [vmem:[#allocation3 + $0x408] sm:$0xff] }
 0x131   : > { %5049 = vmatmul.mubr.f32.gmra.mrb[44].mxu0 %v1983_v18  ;;  %4026 = vmatprep.mubr.f32.mxu1 %v8829_v53  ;;  %v893_v53 = vld [vmem:[#allocation2 + $0x240] sm:$0xff]  ;;  %v1768_v18 = vld [vmem:[#allocation2 + $0x2d8] sm:$0xfe]  ;;  %10426 = vst [vmem:[#allocation16_spill] sm:$0xff] %v9072_v42 }
 0x132   : > { %5054 = vmatprep.mubr.f32.mxu0 %v1990_v58  ;;  %v2007_v58 = vrot.slane %v1765_v37, 1  ;;  %v2014_v43 = vrot.slane %v1768_v18, 1 }
 0x134   : > { %4027 = vmatmul.mubr.f32.gmra.mrb[46].mxu1 %v8840_v8  ;;  %v1998_v8 = vsel %vm1069_vm1, %v9040_v35, %v1997_v57  ;;  %v2016_v7 = vsel %vm1069_vm1, %v2014_v43, %v9066_v54  ;;  %v7915_v43 = vld [vmem:[#allocation2 + $0x8] sm:$0xff] }
 0x135   : > { %5055 = vmatmul.mubr.f32.gmra.mrb[46].mxu0 %v1988_v55  ;;  %4032 = vmatprep.mubr.f32.mxu1 %v894_v59  ;;  %v1767_v55 = vld [vmem:[#allocation2 + $0x2d0] sm:$0xfe]  ;;  %v1770_v59 = vld [vmem:[#allocation2 + $0x2f8] sm:$0x1] }
 0x136   : > { %5060 = vmatprep.mubr.f32.mxu0 %v1996_v5  ;;  %v2011_v5 = vrot.slane %v1767_v55, 1  ;;  %v2019_v25 = vrot.slane %v1770_v59, 1  ;;  %v905_v55 = vld [vmem:[#allocation2 + $0x2d0] sm:$0xff] }
 0x138   : > { %4033 = vmatmul.mubr.f32.gmra.mrb[48].mxu1 %v893_v53  ;;  %v1769_v53 = vld [vmem:[#allocation2 + $0x2f0] sm:$0x1]  ;;  %v2013_v57 = vsel %vm1069_vm1, %v2011_v5, %v9072_v42  ;;  %v2020_v62 = vsel %vm1069_vm1, %v9066_v54, %v2019_v25  ;;  %v2095_v5 = vld [vmem:[#allocation2 + $0x30] sm:$0xfc]  ;;  %v3380_v54 = vld [vmem:[#allocation3 + $0x420] sm:$0xff] }
 0x139   : > { %5061 = vmatmul.mubr.f32.gmra.mrb[48].mxu0 %v1993_v24  ;;  %4038 = vmatprep.mubr.f32.mxu1 %v8862_v44  ;;  %v897_v44 = vld [vmem:[#allocation2 + $0x270] sm:$0xff]  ;;  %v1772_v24 = vld [vmem:[#allocation2 + $0x308] sm:$0xfe] }
 0x13a   : > { %5066 = vmatprep.mubr.f32.mxu0 %v2000_v51  ;;  %v2017_v51 = vrot.slane %v1769_v53, 1  ;;  %v2024_v52 = vrot.slane %v1772_v24, 1 }
 0x13c   : > { %4039 = vmatmul.mubr.f32.gmra.mrb[50].mxu1 %v8876_v0  ;;  %v2008_v0 = vsel %vm1069_vm1, %v9056_v27, %v2007_v58  ;;  %v2026_v37 = vsel %vm1069_vm1, %v2024_v52, %v2025_v9  ;;  %v2096_v58 = vld [vmem:[#allocation2 + $0x38] sm:$0xfc]  ;;  %v9093_v52 = vld [vmem:[#allocation2 + $0x40] sm:$0xff]  ;;  %v3382_v27 = vld [vmem:[#allocation3 + $0x430] sm:$0xff] }
 0x13d   : > { %5067 = vmatmul.mubr.f32.gmra.mrb[50].mxu0 %v1998_v8  ;;  %4044 = vmatprep.mubr.f32.mxu1 %v898_v19  ;;  %v1771_v8 = vld [vmem:[#allocation2 + $0x300] sm:$0xfe]  ;;  %v1774_v19 = vld [vmem:[#allocation2 + $0x328] sm:$0x1]  ;;  %v2226_v53 = vrot.slane %v2096_v58, 2 }
 0x13e   : > { %5072 = vmatprep.mubr.f32.mxu0 %v2006_v13  ;;  %v2021_v13 = vrot.slane %v1771_v8, 1  ;;  %v2029_v18 = vrot.slane %v1774_v19, 1  ;;  %v2224_v8 = vrot.slane %v9093_v52, 2  ;;  %v3632_v19 = vld [vmem:[#allocation3 + $0xc00] sm:$0xff]  ;;  %v3637_v58 = vld [vmem:[#allocation3 + $0xc28] sm:$0xff] }
 0x13f   : > { %v3636_v52 = vld [vmem:[#allocation3 + $0xc20] sm:$0xff] }
 0x140   : > { %4045 = vmatmul.mubr.f32.gmra.mrb[52].mxu1 %v897_v44  ;;  %v1773_v44 = vld [vmem:[#allocation2 + $0x320] sm:$0x1]  ;;  %v2023_v59 = vsel %vm1069_vm1, %v2021_v13, %v2022_v31  ;;  %v2030_v25 = vsel %vm1069_vm1, %v2025_v9, %v2029_v18  ;;  %v2097_v18 = vld [vmem:[#allocation2 + $0x50] sm:$0x3] }
 0x141   : > { %5073 = vmatmul.mubr.f32.gmra.mrb[52].mxu0 %v2003_v38  ;;  %4050 = vmatprep.mubr.f32.mxu1 %v8893_v48  ;;  %v901_v48 = vld [vmem:[#allocation2 + $0x2a0] sm:$0xff]  ;;  %v910_v38 = vld [vmem:[#allocation2 + $0x8] sm:$0xfe]  ;;  %v2027_v63 = vrot.slane %v1773_v44, 1 }
 0x142   : > { %5078 = vmatprep.mubr.f32.mxu0 %v2010_v45  ;;  %v3379_v45 = vld [vmem:[#allocation3 + $0x418] sm:$0xff] }
 0x143   : > { %v2028_v9 = vsel %vm1069_vm1, %v2022_v31, %v2027_v63  ;;  %v3639_v31 = vld [vmem:[#allocation3 + $0xc38] sm:$0xff] }
 0x144   : > { %4051 = vmatmul.mubr.f32.gmra.mrb[54].mxu1 %v8908_v16  ;;  %v2018_v16 = vsel %vm1069_vm1, %v9072_v42, %v2017_v51 }
 0x145   : > { %5079 = vmatmul.mubr.f32.gmra.mrb[54].mxu0 %v2008_v0  ;;  %4056 = vmatprep.mubr.f32.mxu1 %v902_v47  ;;  %v1073_v0 = vrot.slane %v910_v38, 1  ;;  %v909_v47 = vld [vmem:[#allocation2] sm:$0xfe]  ;;  %v914_v38 = vld [vmem:[#allocation2 + $0x38] sm:$0xfe] }
 0x146   : > { %5084 = vmatprep.mubr.f32.mxu0 %v2016_v7  ;;  %v6842_v7 = vpack.c.bf16 %v3379_v45, %v3377_v40  ;;  %v1070_v51 = vrot.slane %v909_v47, 1  ;;  %v2100_v40 = vld [vmem:[#allocation2 + $0x68] sm:$0xfc]  ;;  %v9101_v45 = vld [vmem:[#allocation2 + $0x78] sm:$0xff]  ;;  %v2229_v47 = vrot.slane %v2097_v18, 2  ;;  %v3638_v18 = vld [vmem:[#allocation3 + $0xc30] sm:$0xff] }
 0x148   : > { %4057 = vmatmul.mubr.f32.gmra.mrb[56].mxu1 %v901_v48  ;;  %v912_v48 = vld [vmem:[#allocation2 + $0x28] sm:$0x1]  ;;  %6843 = vmatprep.subr.bf16.mxu1 %v6842_v7 }
 0x149   : > { %5085 = vmatmul.mubr.f32.gmra.mrb[56].mxu0 %v2013_v57  ;;  %4062 = vmatprep.mubr.f32.mxu1 %v8930_v15  ;;  %v9088_v15 = vrot.slane %v7915_v43, 1  ;;  %v2098_v57 = vld [vmem:[#allocation2 + $0x58] sm:$0x3]  ;;  %v1078_v13 = vrot.slane %v912_v48, 1  ;;  %v3381_v7 = vld [vmem:[#allocation3 + $0x428] sm:$0xff]  ;;  %v1083_v48 = vrot.slane %v914_v38, 1 }
 0x14a   : > { %5090 = vmatprep.mubr.f32.mxu0 %v2020_v62  ;;  %v2223_v62 = vrot.slane %v2095_v5, 2  ;;  %v9106_v5 = vld [vmem:[#allocation2 + $0x30] sm:$0xfe]  ;;  %v9116_v43 = vld [vmem:[#allocation2 + $0x88] sm:$0x3] }
 0x14b   : > { %v1072_v63 = vsel %vm1069_vm1, %v1070_v51, %v9088_v15 }
 0x14c   : > { %4063 = vmatmul.mubr.f32.gmra.mrb[58].mxu1 %v8940_v23  ;;  %v7916_v23 = vld [vmem:[#allocation2 + $0x48] sm:$0xff] }
 0x14d   : > { %5091 = vmatmul.mubr.f32.gmra.mrb[58].mxu0 %v2018_v16  ;;  %4068 = vmatprep.mubr.f32.mxu1 %v906_v21  ;;  %v2227_v24 = vrot.slane %v7916_v23, 2  ;;  %v1075_v16 = vsel %vm1069_vm1, %v1073_v0, %v9088_v15  ;;  %v3634_v21 = vld [vmem:[#allocation3 + $0xc10] sm:$0xff]  ;;  %v1079_v23 = vsel %vm1069_vm1, %v9088_v15, %v1078_v13  ;;  %v3643_v13 = vld [vmem:[#allocation3 + $0xc58] sm:$0xff] }
 0x14e   : > { %5096 = vmatprep.mubr.f32.mxu0 %v2026_v37  ;;  %v911_v37 = vld [vmem:[#allocation2 + $0x20] sm:$0x1] }
 0x14f   : > { %v2228_v44 = vsel %vm1422_vm2, %v2226_v53, %v2227_v24  ;;  %v1076_v0 = vrot.slane %v911_v37, 1  ;;  %v7100_v53 = vpack.c.bf16 %v3634_v21, %v3632_v19  ;;  %v7102_v37 = vpack.c.bf16 %v3639_v31, %v3637_v58  ;;  %v9119_v19 = vld [vmem:[#allocation2 + $0x70] sm:$0xff]  ;;  %v3385_v31 = vld [vmem:[#allocation3 + $0x448] sm:$0xff] }
 0x150   : > { %4069 = vmatmul.mubr.f32.gmra.mrb[60].mxu1 %v905_v55  ;;  %v3376_v55 = vld [vmem:[#allocation3 + $0x400] sm:$0xff]  ;;  %v2234_v21 = vrot.slane %v9119_v19, 2  ;;  %v9126_v58 = vld [vmem:[#allocation2 + $0x50] sm:$0x1] }
 0x151   : > { %5097 = vmatmul.mubr.f32.gmra.mrb[60].mxu0 %v2023_v59  ;;  %4074 = vmatprep.mubr.f32.mxu1 %v8963_v2  ;;  %v2231_v2 = vrot.slane %v2098_v57, 2  ;;  %v3378_v59 = vld [vmem:[#allocation3 + $0x410] sm:$0xff]  ;;  %v9111_v57 = vld [vmem:[#allocation2 + $0x60] sm:$0xfc] }
 0x152   : > { %5102 = vmatprep.mubr.f32.mxu0 %v2030_v25  ;;  %v3383_v25 = vld [vmem:[#allocation3 + $0x438] sm:$0xff]  ;;  %v6844_v42 = vpack.c.bf16 %v3378_v59, %v3376_v55  ;;  %v2230_v59 = vsel %vm1422_vm2, %v2224_v8, %v2229_v47  ;;  %v9141_v47 = vld [vmem:[#allocation3 + $0xc68] sm:$0xff] }
 0x153   : > { %v2232_v51 = vsel %vm1422_vm2, %v2227_v24, %v2231_v2  ;;  %v6846_v38 = vpack.c.bf16 %v3383_v25, %v3381_v7  ;;  %v1077_v24 = vsel %vm1069_vm1, %v9088_v15, %v1076_v0  ;;  %v2233_v2 = vrot.slane %v9111_v57, 2  ;;  %v3387_v55 = vld [vmem:[#allocation3 + $0x458] sm:$0xff]  ;;  %v9131_v7 = vld [vmem:[#allocation2 + $0x80] sm:$0x3]  ;;  %v9133_v25 = vld [vmem:[#allocation2 + $0x68] sm:$0xfe] }
 0x154   : > { %4075 = vmatmul.mubr.f32.gmra.mrb[62].mxu1 %v8973_v11  ;;  %v2225_v11 = vsel %vm1422_vm2, %v2223_v62, %v2224_v8  ;;  %v1080_v62 = vrot.slane %v9106_v5, 1  ;;  %v7104_v5 = vpack.c.bf16 %v3638_v18, %v3636_v52  ;;  %v9135_v15 = vld [vmem:[#allocation2 + $0x98] sm:$0xfc]  ;;  %v10427_v0 = vrot.slane %v9101_v45, 2  ;;  %v3640_v57 = vld [vmem:[#allocation3 + $0xc40] sm:$0xff]  ;;  %v3642_v8 = vld [vmem:[#allocation3 + $0xc50] sm:$0xff] }
 0x155   : > { %5103 = vmatmul.mubr.f32.gmra.mrb[62].mxu0 %v2028_v9  ;;  %4145 = vmatprep.mubr.f32.mxu1 %v1075_v16  ;;  %v9113_v9 = vld [vmem:[#allocation2 + $0x58] sm:$0x1]  ;;  %v2236_v16 = vrot.slane %v2100_v40, 2  ;;  %v1086_v52 = vrot.slane %v9126_v58, 1  ;;  %v9158_v58 = vld [vmem:[#allocation2 + $0x90] sm:$0xfc] }
 0x156   : > { %5173 = vmatprep.mubr.f32.mxu0 %v2228_v44  ;;  %v3641_v44 = vld [vmem:[#allocation3 + $0xc48] sm:$0xff]  ;;  %v1088_v40 = vrot.slane %v9113_v9, 1  ;;  %v3647_v18 = vld [vmem:[#allocation3 + $0xc78] sm:$0xff] }
 0x157   : > { %v9144_v9 = vld [vmem:[#allocation2 + $0xa8] sm:$0xff] }
 0x158   : > { %4146 = vmatmul.mubr.f32.vlgmr.msra.gmra.mrb[0].mxu1 %v1072_v63  ;;  %v1085_v63 = vsel %vm1069_vm1, %v1083_v48, %v8541_v10  ;;  %v6848_v48 = vpack.c.bf16 %v3382_v27, %v3380_v54  ;;  %v1093_v27 = vrot.slane %v9133_v25, 1  ;;  %v9151_v54 = vld [vmem:[#allocation2 + $0x60] sm:$0xfe]  ;;  %v3646_v25 = vld [vmem:[#allocation3 + $0xc70] sm:$0xff] }
 0x159   : > { %5174 = vmatmul.mubr.f32.vlgmr.msra.gmra.mrb[0].mxu0 %v2225_v11  ;;  %4151 = vmatprep.mubr.f32.mxu1 %v1079_v23  ;;  %v2238_v11 = vsel %vm1422_vm2, %v2236_v16, %v10427_v0  ;;  %v7106_v23 = vpack.c.bf16 %v3643_v13, %v3641_v44  ;;  %v6850_v16 = vpack.c.bf16 %v3387_v55, %v3385_v31  ;;  %v3386_v0 = vld [vmem:[#allocation3 + $0x450] sm:$0xff]  ;;  %v3389_v44 = vld [vmem:[#allocation3 + $0x468] sm:$0xff]  ;;  %v3391_v13 = vld [vmem:[#allocation3 + $0x478] sm:$0xff] }
 0x15a   : > { %7101 = vmatpush1.bf16.msra.mxu0 %v7100_v53  ;;  %5179 = vmatprep.mubr.f32.mxu0 %v2232_v51  ;;  %v2241_v53 = vrot.slane %v9116_v43, 2  ;;  %v2247_v51 = vrot.slane %v9144_v9, 2  ;;  %v1082_v43 = vsel %vm1069_vm1, %v1080_v62, %v8564_v50  ;;  %v7108_v62 = vpack.c.bf16 %v3642_v8, %v3640_v57  ;;  %v9160_v31 = vld [vmem:[#allocation2 + $0x88] sm:$0x1]  ;;  %v9162_v55 = vld [vmem:[#allocation2 + $0xb8] sm:$0x3] }
 0x15b   : > { %7103 = vmatprep.subr.bf16.mxu0 %v7102_v37  ;;  %6845 = vmatpush1.bf16.msra.mxu1 %v6844_v42  ;;  %v3384_v37 = vld [vmem:[#allocation3 + $0x440] sm:$0xff]  ;;  %v2239_v42 = vrot.slane %v9131_v7, 2  ;;  %v2246_v7 = vrot.slane %v9135_v15, 2  ;;  %v3651_v8 = vld [vmem:[#allocation3 + $0xc98] sm:$0xff] }
 0x15c   : > { %4152 = vmatmul.mubr.f32.gmra.mrb[2].mxu1 %v1077_v24  ;;  %6847 = vmatprep.subr.bf16.mxu1 %v6846_v38  ;;  %v2235_v38 = vsel %vm1422_vm2, %v2233_v2, %v2234_v21  ;;  %v1089_v24 = vsel %vm1069_vm1, %v8541_v10, %v1088_v40  ;;  %v7110_v2 = vpack.c.bf16 %v3647_v18, %v9141_v47  ;;  %v1090_v40 = vrot.slane %v9151_v54, 1  ;;  %v9172_v57 = vld [vmem:[#allocation2 + $0xa0] sm:$0xff] }
 0x15d   : > { %5180 = vmatmul.mubr.f32.gmra.mrb[2].mxu0 %v2230_v59  ;;  %4157 = vmatprep.mubr.f32.mxu1 %v1085_v63  ;;  %v10428_v59 = vrot.slane %v9101_v45, 2  ;;  %v6852_v10 = vpack.c.bf16 %v3386_v0, %v3384_v37  ;;  %v2244_v45 = vrot.slane %v9172_v57, 2  ;;  %v3388_v15 = vld [vmem:[#allocation3 + $0x460] sm:$0xff]  ;;  %v1087_v47 = vsel %vm1069_vm1, %v8564_v50, %v1086_v52  ;;  %v3393_v0 = vld [vmem:[#allocation3 + $0x488] sm:$0xff]  ;;  %v9188_v50 = vld [vmem:[#allocation2 + $0x98] sm:$0xfe] }
 0x15e   : > { %5185 = vmatprep.mubr.f32.mxu0 %v2238_v11  ;;  %7105 = vmatpush1.bf16.msra.mxu0 %v7104_v5  ;;  %v3644_v5 = vld [vmem:[#allocation3 + $0xc60] sm:$0xff]  ;;  %v9169_v11 = vld [vmem:[#allocation3 + $0xc88] sm:$0xff]  ;;  %v1098_v18 = vrot.slane %v9160_v31, 1  ;;  %v1095_v54 = vsel %vm1069_vm1, %v1093_v27, %v8607_v28  ;;  %v9200_v31 = vld [vmem:[#allocation2 + $0xd8] sm:$0xff] }
 0x15f   : > { %v2242_v63 = vsel %vm1422_vm2, %v10428_v59, %v2241_v53  ;;  %7107 = vmatprep.subr.bf16.mxu0 %v7106_v23  ;;  %6849 = vmatpush1.bf16.msra.mxu1 %v6848_v48  ;;  %v6854_v53 = vpack.c.bf16 %v3391_v13, %v3389_v44  ;;  %v3390_v23 = vld [vmem:[#allocation3 + $0x470] sm:$0xff]  ;;  %v2243_v48 = vrot.slane %v9158_v58, 2  ;;  %v9179_v37 = vld [vmem:[#allocation2 + $0x80] sm:$0x1]  ;;  %v9190_v52 = vld [vmem:[#allocation2 + $0xc8] sm:$0xfc]  ;;  %v7112_v13 = vpack.c.bf16 %v3646_v25, %v3644_v5 }
 0x160   : > { %4158 = vmatmul.mubr.f32.gmra.mrb[4].mxu1 %v1082_v43  ;;  %6851 = vmatprep.subr.bf16.mxu1 %v6850_v16  ;;  %v3395_v43 = vld [vmem:[#allocation3 + $0x498] sm:$0xff]  ;;  %v2240_v16 = vsel %vm1422_vm2, %v2234_v21, %v2239_v42  ;;  %v9186_v44 = vld [vmem:[#allocation2 + $0xb0] sm:$0x3]  ;;  %v7114_v19 = vpack.c.bf16 %v3651_v8, %v9169_v11  ;;  %v3648_v21 = vld [vmem:[#allocation3 + $0xc80] sm:$0xff]  ;;  %v6856_v58 = vpack.c.bf16 %v3390_v23, %v3388_v15  ;;  %v2257_v59 = vrot.slane %v9200_v31, 2 }
 0x161   : > { %5186 = vmatmul.mubr.f32.gmra.mrb[4].mxu0 %v2235_v38  ;;  %4163 = vmatprep.mubr.f32.mxu1 %v1089_v24  ;;  %v2248_v38 = vsel %vm1422_vm2, %v2246_v7, %v2247_v51  ;;  %v2251_v24 = vrot.slane %v9162_v55, 2  ;;  %v3650_v42 = vld [vmem:[#allocation3 + $0xc90] sm:$0xff]  ;;  %v9197_v27 = vld [vmem:[#allocation3 + $0xca8] sm:$0xff]  ;;  %v6858_v7 = vpack.c.bf16 %v3395_v43, %v3393_v0  ;;  %v3392_v55 = vld [vmem:[#allocation3 + $0x480] sm:$0xff]  ;;  %v1092_v5 = vsel %vm1069_vm1, %v1090_v40, %v8618_v33 }
 0x162   : > { %5191 = vmatprep.mubr.f32.mxu0 %v2242_v63  ;;  %7109 = vmatpush1.bf16.msra.mxu0 %v7108_v62  ;;  %v1096_v62 = vrot.slane %v9179_v37, 1  ;;  %v3655_v63 = vld [vmem:[#allocation3 + $0xcb8] sm:$0xff]  ;;  %v2249_v25 = vrot.slane %v9186_v44, 2  ;;  %v1103_v11 = vrot.slane %v9188_v50, 1  ;;  %v3397_v8 = vld [vmem:[#allocation3 + $0x4a8] sm:$0xff]  ;;  %v1099_v23 = vsel %vm1069_vm1, %v8607_v28, %v1098_v18  ;;  %v3654_v44 = vld [vmem:[#allocation3 + $0xcb0] sm:$0xff] }
 0x163   : > { %7111 = vmatprep.subr.bf16.mxu0 %v7110_v2  ;;  %6853 = vmatpush1.bf16.msra.mxu1 %v6852_v10  ;;  %v3394_v2 = vld [vmem:[#allocation3 + $0x490] sm:$0xff]  ;;  %v3399_v15 = vld [vmem:[#allocation3 + $0x4b8] sm:$0xff]  ;;  %v9218_v37 = vld [vmem:[#allocation2 + $0xe8] sm:$0x3]  ;;  %v7116_v0 = vpack.c.bf16 %v3650_v42, %v3648_v21  ;;  %v2252_v43 = vsel %vm1422_vm2, %v2247_v51, %v2251_v24 }
 0x164   : > { %4164 = vmatmul.mubr.f32.gmra.mrb[6].mxu1 %v1087_v47  ;;  %6855 = vmatprep.subr.bf16.mxu1 %v6854_v53  ;;  %v9207_v10 = vld [vmem:[#allocation2 + $0x90] sm:$0xfe]  ;;  %v2245_v53 = vsel %vm1422_vm2, %v2243_v48, %v2244_v45  ;;  %v9214_v47 = vld [vmem:[#allocation2 + $0xc0] sm:$0xfc]  ;;  %v9216_v40 = vld [vmem:[#allocation2 + $0xb8] sm:$0x1]  ;;  %v7118_v48 = vpack.c.bf16 %v3655_v63, %v9197_v27  ;;  %v6860_v18 = vpack.c.bf16 %v3394_v2, %v3392_v55 }
 0x165   : > { %5192 = vmatmul.mubr.f32.gmra.mrb[6].mxu0 %v2240_v16  ;;  %4169 = vmatprep.mubr.f32.mxu1 %v1095_v54  ;;  %v2256_v16 = vrot.slane %v9190_v52, 2  ;;  %v3652_v54 = vld [vmem:[#allocation3 + $0xca0] sm:$0xff]  ;;  %v9225_v28 = vld [vmem:[#allocation3 + $0xcc8] sm:$0xff]  ;;  %v1100_v50 = vrot.slane %v9207_v10, 1  ;;  %v6862_v51 = vpack.c.bf16 %v3399_v15, %v3397_v8  ;;  %v3398_v24 = vld [vmem:[#allocation3 + $0x4b0] sm:$0xff]  ;;  %v2253_v21 = vrot.slane %v9214_v47, 2 }
 0x166   : > { %5197 = vmatprep.mubr.f32.mxu0 %v2248_v38  ;;  %7113 = vmatpush1.bf16.msra.mxu0 %v7112_v13  ;;  %v9228_v13 = vld [vmem:[#allocation2 + $0xd0] sm:$0xff]  ;;  %v3659_v38 = vld [vmem:[#allocation3 + $0xcd8] sm:$0xff]  ;;  %v3396_v52 = vld [vmem:[#allocation3 + $0x4a0] sm:$0xff]  ;;  %v1108_v42 = vrot.slane %v9216_v40, 1  ;;  %v1105_v55 = vsel %vm1069_vm1, %v1103_v11, %v8651_v6  ;;  %v2261_v8 = vrot.slane %v9218_v37, 2 }
 0x167   : > { %7115 = vmatprep.subr.bf16.mxu0 %v7114_v19  ;;  %6857 = vmatpush1.bf16.msra.mxu1 %v6856_v58  ;;  %v2254_v9 = vrot.slane %v9228_v13, 2  ;;  %v1097_v19 = vsel %vm1069_vm1, %v8618_v33, %v1096_v62  ;;  %v9235_v27 = vld [vmem:[#allocation2 + $0xb0] sm:$0x1]  ;;  %v3401_v58 = vld [vmem:[#allocation3 + $0x4c8] sm:$0xff]  ;;  %v3403_v63 = vld [vmem:[#allocation3 + $0x4d8] sm:$0xff]  ;;  %v7120_v62 = vpack.c.bf16 %v3654_v44, %v3652_v54  ;;  %v2258_v10 = vsel %vm1422_vm2, %v2256_v16, %v2257_v59 }
 0x168   : > { %4170 = vmatmul.mubr.f32.gmra.mrb[8].mxu1 %v1092_v5  ;;  %6859 = vmatprep.subr.bf16.mxu1 %v6858_v7  ;;  %v2250_v7 = vsel %vm1422_vm2, %v2244_v45, %v2249_v25  ;;  %v9242_v2 = vld [vmem:[#allocation2 + $0xe0] sm:$0x3]  ;;  %v9244_v5 = vld [vmem:[#allocation2 + $0xc8] sm:$0xfe]  ;;  %v9246_v33 = vld [vmem:[#allocation2 + $0xf8] sm:$0xfc]  ;;  %v7122_v57 = vpack.c.bf16 %v3659_v38, %v9225_v28  ;;  %v6864_v15 = vpack.c.bf16 %v3398_v24, %v3396_v52 }
 0x169   : > { %5198 = vmatmul.mubr.f32.gmra.mrb[8].mxu0 %v2245_v53  ;;  %4175 = vmatprep.mubr.f32.mxu1 %v1099_v23  ;;  %v3656_v45 = vld [vmem:[#allocation3 + $0xcc0] sm:$0xff]  ;;  %v3658_v25 = vld [vmem:[#allocation3 + $0xcd0] sm:$0xff]  ;;  %v9253_v11 = vld [vmem:[#allocation3 + $0xce8] sm:$0xff]  ;;  %v1106_v53 = vrot.slane %v9235_v27, 1  ;;  %v1102_v16 = vsel %vm1069_vm1, %v1100_v50, %v8663_v30  ;;  %v1113_v54 = vrot.slane %v9244_v5, 1  ;;  %v2255_v38 = vsel %vm1422_vm2, %v2253_v21, %v2254_v9 }
 0x16a   : > { %5203 = vmatprep.mubr.f32.mxu0 %v2252_v43  ;;  %7117 = vmatpush1.bf16.msra.mxu0 %v7116_v0  ;;  %v9256_v23 = vld [vmem:[#allocation2 + $0x108] sm:$0xff]  ;;  %v3663_v40 = vld [vmem:[#allocation3 + $0xcf8] sm:$0xff]  ;;  %v6866_v0 = vpack.c.bf16 %v3403_v63, %v3401_v58  ;;  %v3400_v37 = vld [vmem:[#allocation3 + $0x4c0] sm:$0xff]  ;;  %v2262_v27 = vsel %vm1422_vm2, %v2257_v59, %v2261_v8  ;;  %v2266_v58 = vrot.slane %v9246_v33, 2 }
 0x16b   : > { %7119 = vmatprep.subr.bf16.mxu0 %v7118_v48  ;;  %6861 = vmatpush1.bf16.msra.mxu1 %v6860_v18  ;;  %v2267_v47 = vrot.slane %v9256_v23, 2  ;;  %v3402_v43 = vld [vmem:[#allocation3 + $0x4d0] sm:$0xff]  ;;  %v2259_v48 = vrot.slane %v9242_v2, 2  ;;  %v9263_v44 = vld [vmem:[#allocation2 + $0xc0] sm:$0xfe]  ;;  %v3405_v28 = vld [vmem:[#allocation3 + $0x4e8] sm:$0xff]  ;;  %v7126_v21 = vpack.c.bf16 %v3663_v40, %v9253_v11  ;;  %v1115_v40 = vsel %vm1069_vm1, %v1113_v54, %v8678_v49 }
 0x16c   : > { %4176 = vmatmul.mubr.f32.gmra.mrb[10].mxu1 %v1097_v19  ;;  %6863 = vmatprep.subr.bf16.mxu1 %v6862_v51  ;;  %v3407_v18 = vld [vmem:[#allocation3 + $0x4f8] sm:$0xff]  ;;  %v1109_v51 = vsel %vm1069_vm1, %v8651_v6, %v1108_v42  ;;  %v9270_v52 = vld [vmem:[#allocation2 + $0xf0] sm:$0xfc]  ;;  %v9272_v24 = vld [vmem:[#allocation2 + $0xe8] sm:$0x1]  ;;  %v7124_v19 = vpack.c.bf16 %v3658_v25, %v3656_v45  ;;  %v6868_v42 = vpack.c.bf16 %v3402_v43, %v3400_v37 }
 0x16d   : > { %5204 = vmatmul.mubr.f32.gmra.mrb[10].mxu0 %v2250_v7  ;;  %4181 = vmatprep.mubr.f32.mxu1 %v1105_v55  ;;  %v9274_v50 = vld [vmem:[#allocation2 + $0x118] sm:$0x3]  ;;  %v3660_v63 = vld [vmem:[#allocation3 + $0xce0] sm:$0xff]  ;;  %v3662_v7 = vld [vmem:[#allocation3 + $0xcf0] sm:$0xff]  ;;  %v1110_v55 = vrot.slane %v9263_v44, 1  ;;  %v6870_v59 = vpack.c.bf16 %v3407_v18, %v3405_v28  ;;  %v2263_v8 = vrot.slane %v9270_v52, 2  ;;  %v2268_v43 = vsel %vm1422_vm2, %v2266_v58, %v2267_v47 }
 0x16e   : > { %5209 = vmatprep.mubr.f32.mxu0 %v2258_v10  ;;  %7121 = vmatpush1.bf16.msra.mxu0 %v7120_v62  ;;  %v9281_v6 = vld [vmem:[#allocation3 + $0xd08] sm:$0xff]  ;;  %v9284_v2 = vld [vmem:[#allocation2 + $0x100] sm:$0xff]  ;;  %v3667_v5 = vld [vmem:[#allocation3 + $0xd18] sm:$0xff]  ;;  %v1107_v10 = vsel %vm1069_vm1, %v8663_v30, %v1106_v53  ;;  %v7128_v53 = vpack.c.bf16 %v3662_v7, %v3660_v63 }
 0x16f   : > { %7123 = vmatprep.subr.bf16.mxu0 %v7122_v57  ;;  %6865 = vmatpush1.bf16.msra.mxu1 %v6864_v15  ;;  %v2264_v31 = vrot.slane %v9284_v2, 2  ;;  %v3404_v33 = vld [vmem:[#allocation3 + $0x4e0] sm:$0xff]  ;;  %v3406_v62 = vld [vmem:[#allocation3 + $0x4f0] sm:$0xff]  ;;  %v1118_v57 = vrot.slane %v9272_v24, 1  ;;  %v3409_v25 = vld [vmem:[#allocation3 + $0x508] sm:$0xff]  ;;  %v2260_v15 = vsel %vm1422_vm2, %v2254_v9, %v2259_v48  ;;  %v7130_v13 = vpack.c.bf16 %v3667_v5, %v9281_v6 }
 0x170   : > { %4182 = vmatmul.mubr.f32.gmra.mrb[12].mxu1 %v1102_v16  ;;  %6867 = vmatprep.subr.bf16.mxu1 %v6866_v0  ;;  %v9291_v45 = vld [vmem:[#allocation2 + $0xe0] sm:$0x1]  ;;  %v3411_v11 = vld [vmem:[#allocation3 + $0x518] sm:$0xff]  ;;  %v9298_v0 = vld [vmem:[#allocation2 + $0x110] sm:$0x3]  ;;  %v2271_v16 = vrot.slane %v9274_v50, 2  ;;  %v6872_v44 = vpack.c.bf16 %v3406_v62, %v3404_v33 }
 0x171   : > { %5210 = vmatmul.mubr.f32.gmra.mrb[12].mxu0 %v2255_v38  ;;  %4187 = vmatprep.mubr.f32.mxu1 %v1109_v51  ;;  %v9300_v37 = vld [vmem:[#allocation2 + $0xf8] sm:$0xfe]  ;;  %v9302_v30 = vld [vmem:[#allocation2 + $0x128] sm:$0xfc]  ;;  %v3664_v9 = vld [vmem:[#allocation3 + $0xd00] sm:$0xff]  ;;  %v1116_v28 = vrot.slane %v9291_v45, 1  ;;  %v6874_v52 = vpack.c.bf16 %v3411_v11, %v3409_v25  ;;  %v2265_v6 = vsel %vm1422_vm2, %v2263_v8, %v2264_v31 }
 0x172   : > { %5215 = vmatprep.mubr.f32.mxu0 %v2262_v27  ;;  %7125 = vmatpush1.bf16.msra.mxu0 %v7124_v19  ;;  %v3666_v48 = vld [vmem:[#allocation3 + $0xd10] sm:$0xff]  ;;  %v9309_v54 = vld [vmem:[#allocation3 + $0xd28] sm:$0xff]  ;;  %v9312_v18 = vld [vmem:[#allocation2 + $0x138] sm:$0xff]  ;;  %v1112_v19 = vsel %vm1069_vm1, %v1110_v55, %v8710_v20  ;;  %v2269_v27 = vrot.slane %v9298_v0, 2  ;;  %v1123_v58 = vrot.slane %v9300_v37, 1  ;;  %v2272_v62 = vsel %vm1422_vm2, %v2267_v47, %v2271_v16 }
 0x173   : > { %7127 = vmatprep.subr.bf16.mxu0 %v7126_v21  ;;  %6869 = vmatpush1.bf16.msra.mxu1 %v6868_v42  ;;  %v2277_v38 = vrot.slane %v9312_v18, 2  ;;  %v3671_v51 = vld [vmem:[#allocation3 + $0xd38] sm:$0xff]  ;;  %v3408_v24 = vld [vmem:[#allocation3 + $0x500] sm:$0xff]  ;;  %v3410_v50 = vld [vmem:[#allocation3 + $0x510] sm:$0xff]  ;;  %v1119_v42 = vsel %vm1069_vm1, %v8678_v49, %v1118_v57  ;;  %v7132_v33 = vpack.c.bf16 %v3666_v48, %v3664_v9 }
 0x174   : > { %4188 = vmatmul.mubr.f32.gmra.mrb[14].mxu1 %v1107_v10  ;;  %6871 = vmatprep.subr.bf16.mxu1 %v6870_v59  ;;  %v9319_v21 = vld [vmem:[#allocation2 + $0xf0] sm:$0xfe]  ;;  %v3413_v63 = vld [vmem:[#allocation3 + $0x528] sm:$0xff]  ;;  %v3415_v7 = vld [vmem:[#allocation3 + $0x538] sm:$0xff]  ;;  %v2276_v10 = vrot.slane %v9302_v30, 2  ;;  %v7134_v45 = vpack.c.bf16 %v3671_v51, %v9309_v54  ;;  %v6876_v49 = vpack.c.bf16 %v3410_v50, %v3408_v24  ;;  %v1117_v30 = vsel %vm1069_vm1, %v8710_v20, %v1116_v28 }
 0x175   : > { %5216 = vmatmul.mubr.f32.gmra.mrb[14].mxu0 %v2260_v15  ;;  %4193 = vmatprep.mubr.f32.mxu1 %v1115_v40  ;;  %v2115_v5 = vld [vmem:[#allocation2 + $0x120] sm:$0xfc]  ;;  %v9326_v59 = vld [vmem:[#allocation2 + $0x118] sm:$0x1]  ;;  %v9328_v55 = vld [vmem:[#allocation2 + $0x148] sm:$0x3]  ;;  %v6878_v47 = vpack.c.bf16 %v3415_v7, %v3413_v63  ;;  %v2270_v48 = vsel %vm1422_vm2, %v2264_v31, %v2269_v27  ;;  %v1125_v54 = vsel %vm1069_vm1, %v1123_v58, %v8745_v60 }
 0x176   : > { %5221 = vmatprep.mubr.f32.mxu0 %v2268_v43  ;;  %7129 = vmatpush1.bf16.msra.mxu0 %v7128_v53  ;;  %v3668_v8 = vld [vmem:[#allocation3 + $0xd20] sm:$0xff]  ;;  %v3670_v25 = vld [vmem:[#allocation3 + $0xd30] sm:$0xff]  ;;  %v9335_v11 = vld [vmem:[#allocation3 + $0xd48] sm:$0xff]  ;;  %v1120_v57 = vrot.slane %v9319_v21, 1  ;;  %v2273_v53 = vrot.slane %v2115_v5, 2  ;;  %v1128_v43 = vrot.slane %v9326_v59, 1 }
 0x177   : > { %7131 = vmatprep.subr.bf16.mxu0 %v7130_v13  ;;  %6873 = vmatpush1.bf16.msra.mxu1 %v6872_v44  ;;  %v9338_v15 = vld [vmem:[#allocation2 + $0x130] sm:$0xff]  ;;  %v3675_v40 = vld [vmem:[#allocation3 + $0xd58] sm:$0xff]  ;;  %v3412_v0 = vld [vmem:[#allocation3 + $0x520] sm:$0xff]  ;;  %v7136_v28 = vpack.c.bf16 %v3670_v25, %v3668_v8  ;;  %v2281_v24 = vrot.slane %v9328_v55, 2 }
 0x178   : > { %4194 = vmatmul.mubr.f32.gmra.mrb[16].mxu1 %v1112_v19  ;;  %v2274_v23 = vrot.slane %v9338_v15, 2  ;;  %6875 = vmatprep.subr.bf16.mxu1 %v6874_v52  ;;  %v3414_v37 = vld [vmem:[#allocation3 + $0x530] sm:$0xff]  ;;  %v3417_v13 = vld [vmem:[#allocation3 + $0x548] sm:$0xff]  ;;  %v3419_v9 = vld [vmem:[#allocation3 + $0x558] sm:$0xff]  ;;  %v2278_v52 = vsel %vm1422_vm2, %v2276_v10, %v2277_v38  ;;  %v7138_v31 = vpack.c.bf16 %v3675_v40, %v9335_v11  ;;  %v1129_v8 = vsel %vm1069_vm1, %v8745_v60, %v1128_v43 }
 0x179   : > { %5222 = vmatmul.mubr.f32.gmra.mrb[16].mxu0 %v2265_v6  ;;  %4199 = vmatprep.mubr.f32.mxu1 %v1119_v42  ;;  %v9344_v16 = vld [vmem:[#allocation2 + $0x110] sm:$0x1]  ;;  %v9351_v44 = vld [vmem:[#allocation2 + $0x140] sm:$0x3]  ;;  %v9353_v51 = vld [vmem:[#allocation2 + $0x128] sm:$0xfe]  ;;  %v6880_v58 = vpack.c.bf16 %v3414_v37, %v3412_v0  ;;  %v6882_v63 = vpack.c.bf16 %v3419_v9, %v3417_v13  ;;  %v1122_v42 = vsel %vm1069_vm1, %v1120_v57, %v8774_v32 }
 0x17a   : > { %5227 = vmatprep.mubr.f32.mxu0 %v2272_v62  ;;  %v9355_v20 = vld [vmem:[#allocation2 + $0x158] sm:$0xfc]  ;;  %7133 = vmatpush1.bf16.msra.mxu0 %v7132_v33  ;;  %v9361_v2 = vld [vmem:[#allocation2 + $0x120] sm:$0xfe]  ;;  %v3674_v19 = vld [vmem:[#allocation3 + $0xd50] sm:$0xff]  ;;  %v2275_v5 = vsel %vm1422_vm2, %v2273_v53, %v2274_v23  ;;  %v1126_v59 = vrot.slane %v9344_v16, 1 }
 0x17b   : > { %7135 = vmatprep.subr.bf16.mxu0 %v7134_v45  ;;  %v3672_v50 = vld [vmem:[#allocation3 + $0xd40] sm:$0xff]  ;;  %v9364_v27 = vld [vmem:[#allocation3 + $0xd68] sm:$0xff]  ;;  %6877 = vmatpush1.bf16.msra.mxu1 %v6876_v49  ;;  %v3679_v21 = vld [vmem:[#allocation3 + $0xd78] sm:$0xff]  ;;  %v2279_v25 = vrot.slane %v9351_v44, 2  ;;  %v1133_v11 = vrot.slane %v9353_v51, 1  ;;  %v2286_v0 = vrot.slane %v9355_v20, 2 }
 0x17c   : > { %4200 = vmatmul.mubr.f32.gmra.mrb[18].mxu1 %v1117_v30  ;;  %6879 = vmatprep.subr.bf16.mxu1 %v6878_v47  ;;  %v3416_v7 = vld [vmem:[#allocation3 + $0x540] sm:$0xff]  ;;  %v3418_v6 = vld [vmem:[#allocation3 + $0x550] sm:$0xff]  ;;  %v9372_v55 = vld [vmem:[#allocation2 + $0x168] sm:$0xff]  ;;  %v7140_v40 = vpack.c.bf16 %v3674_v19, %v3672_v50  ;;  %v2282_v47 = vsel %vm1422_vm2, %v2277_v38, %v2281_v24  ;;  %v7142_v37 = vpack.c.bf16 %v3679_v21, %v9364_v27  ;;  %v1130_v16 = vrot.slane %v9361_v2, 1 }
 0x17d   : > { %5228 = vmatmul.mubr.f32.gmra.mrb[18].mxu0 %v2270_v48  ;;  %4205 = vmatprep.mubr.f32.mxu1 %v1125_v54  ;;  %v2287_v33 = vrot.slane %v9372_v55, 2  ;;  %v9375_v62 = vld [vmem:[#allocation2 + $0x150] sm:$0xfc]  ;;  %v3421_v10 = vld [vmem:[#allocation3 + $0x568] sm:$0xff]  ;;  %v3423_v45 = vld [vmem:[#allocation3 + $0x578] sm:$0xff]  ;;  %v6884_v43 = vpack.c.bf16 %v3418_v6, %v3416_v7  ;;  %v1127_v51 = vsel %vm1069_vm1, %v8774_v32, %v1126_v59  ;;  %v1135_v50 = vsel %vm1069_vm1, %v1133_v11, %v8793_v3 }
 0x17e   : > { %5233 = vmatprep.mubr.f32.mxu0 %v2278_v52  ;;  %v9381_v49 = vld [vmem:[#allocation2 + $0x148] sm:$0x1]  ;;  %v9383_v57 = vld [vmem:[#allocation2 + $0x178] sm:$0x3]  ;;  %7137 = vmatpush1.bf16.msra.mxu0 %v7136_v28  ;;  %v3676_v60 = vld [vmem:[#allocation3 + $0xd60] sm:$0xff]  ;;  %v2283_v13 = vrot.slane %v9375_v62, 2  ;;  %v6886_v48 = vpack.c.bf16 %v3423_v45, %v3421_v10  ;;  %v1132_v45 = vsel %vm1069_vm1, %v1130_v16, %v8813_v34 }
 0x17f   : > { %7139 = vmatprep.subr.bf16.mxu0 %v7138_v31  ;;  %v3678_v30 = vld [vmem:[#allocation3 + $0xd70] sm:$0xff]  ;;  %v9390_v53 = vld [vmem:[#allocation3 + $0xd88] sm:$0xff]  ;;  %6881 = vmatpush1.bf16.msra.mxu1 %v6880_v58  ;;  %v9394_v9 = vld [vmem:[#allocation2 + $0x160] sm:$0xff]  ;;  %v1138_v20 = vrot.slane %v9381_v49, 1  ;;  %v2291_v28 = vrot.slane %v9383_v57, 2  ;;  %v2280_v31 = vsel %vm1422_vm2, %v2274_v23, %v2279_v25  ;;  %v2288_v21 = vsel %vm1422_vm2, %v2286_v0, %v2287_v33 }
 0x180   : > { %4206 = vmatmul.mubr.f32.gmra.mrb[20].mxu1 %v1122_v42  ;;  %v2284_v18 = vrot.slane %v9394_v9, 2  ;;  %v3683_v38 = vld [vmem:[#allocation3 + $0xd98] sm:$0xff]  ;;  %6883 = vmatprep.subr.bf16.mxu1 %v6882_v63  ;;  %v3420_v54 = vld [vmem:[#allocation3 + $0x560] sm:$0xff]  ;;  %v3422_v44 = vld [vmem:[#allocation3 + $0x570] sm:$0xff]  ;;  %v7144_v58 = vpack.c.bf16 %v3678_v30, %v3676_v60 }
 0x181   : > { %5234 = vmatmul.mubr.f32.gmra.mrb[20].mxu0 %v2275_v5  ;;  %4211 = vmatprep.mubr.f32.mxu1 %v1129_v8  ;;  %v9401_v52 = vld [vmem:[#allocation2 + $0x140] sm:$0x1]  ;;  %v3425_v24 = vld [vmem:[#allocation3 + $0x588] sm:$0xff]  ;;  %v3427_v2 = vld [vmem:[#allocation3 + $0x598] sm:$0xff]  ;;  %v7146_v63 = vpack.c.bf16 %v3683_v38, %v9390_v53  ;;  %v6888_v6 = vpack.c.bf16 %v3422_v44, %v3420_v54  ;;  %v2292_v0 = vsel %vm1422_vm2, %v2287_v33, %v2291_v28 }
 0x182   : > { %5239 = vmatprep.mubr.f32.mxu0 %v2282_v47  ;;  %v2121_v19 = vld [vmem:[#allocation2 + $0x170] sm:$0x3]  ;;  %v9408_v27 = vld [vmem:[#allocation2 + $0x158] sm:$0xfe]  ;;  %v9410_v32 = vld [vmem:[#allocation2 + $0x188] sm:$0xfc]  ;;  %7141 = vmatpush1.bf16.msra.mxu0 %v7140_v40  ;;  %v6890_v59 = vpack.c.bf16 %v3427_v2, %v3425_v24  ;;  %v2285_v8 = vsel %vm1422_vm2, %v2283_v13, %v2284_v18  ;;  %v1139_v47 = vsel %vm1069_vm1, %v8793_v3, %v1138_v20 }
 0x183   : > { %7143 = vmatprep.subr.bf16.mxu0 %v7142_v37  ;;  %v3680_v15 = vld [vmem:[#allocation3 + $0xd80] sm:$0xff]  ;;  %v3682_v7 = vld [vmem:[#allocation3 + $0xd90] sm:$0xff]  ;;  %v9416_v23 = vld [vmem:[#allocation3 + $0xda8] sm:$0xff]  ;;  %6885 = vmatpush1.bf16.msra.mxu1 %v6884_v43  ;;  %v1136_v42 = vrot.slane %v9401_v52, 1  ;;  %v2289_v25 = vrot.slane %v2121_v19, 2  ;;  %v1143_v11 = vrot.slane %v9408_v27, 1 }
 0x184   : > { %4212 = vmatmul.mubr.f32.gmra.mrb[22].mxu1 %v1127_v51  ;;  %v3687_v5 = vld [vmem:[#allocation3 + $0xdb8] sm:$0xff]  ;;  %6887 = vmatprep.subr.bf16.mxu1 %v6886_v48  ;;  %v3424_v62 = vld [vmem:[#allocation3 + $0x580] sm:$0xff]  ;;  %v3426_v10 = vld [vmem:[#allocation3 + $0x590] sm:$0xff]  ;;  %v7148_v53 = vpack.c.bf16 %v3682_v7, %v3680_v15  ;;  %v2296_v43 = vrot.slane %v9410_v32, 2 }
 0x185   : > { %5240 = vmatmul.mubr.f32.gmra.mrb[22].mxu0 %v2280_v31  ;;  %4217 = vmatprep.mubr.f32.mxu1 %v1135_v50  ;;  %v9425_v49 = vld [vmem:[#allocation2 + $0x150] sm:$0xfe]  ;;  %v3429_v57 = vld [vmem:[#allocation3 + $0x5a8] sm:$0xff]  ;;  %v3431_v40 = vld [vmem:[#allocation3 + $0x5b8] sm:$0xff]  ;;  %v7150_v3 = vpack.c.bf16 %v3687_v5, %v9416_v23  ;;  %v6892_v54 = vpack.c.bf16 %v3426_v10, %v3424_v62  ;;  %v1137_v52 = vsel %vm1069_vm1, %v8813_v34, %v1136_v42 }
 0x186   : > { %5245 = vmatprep.mubr.f32.mxu0 %v2288_v21  ;;  %v9432_v37 = vld [vmem:[#allocation2 + $0x180] sm:$0xfc]  ;;  %v9434_v60 = vld [vmem:[#allocation2 + $0x178] sm:$0x1]  ;;  %v9436_v30 = vld [vmem:[#allocation2 + $0x1a8] sm:$0x3]  ;;  %7145 = vmatpush1.bf16.msra.mxu0 %v7144_v58  ;;  %v6894_v51 = vpack.c.bf16 %v3431_v40, %v3429_v57  ;;  %v2290_v24 = vsel %vm1422_vm2, %v2284_v18, %v2289_v25  ;;  %v1145_v32 = vsel %vm1069_vm1, %v1143_v11, %v8837_v4 }
 0x187   : > { %v9439_v16 = vld [vmem:[#allocation2 + $0x198] sm:$0xff]  ;;  %v9442_v38 = vld [vmem:[#allocation2 + $0x170] sm:$0x1]  ;;  %7147 = vmatprep.subr.bf16.mxu0 %v7146_v63  ;;  %v3684_v55 = vld [vmem:[#allocation3 + $0xda0] sm:$0xff]  ;;  %6889 = vmatpush1.bf16.msra.mxu1 %v6888_v6  ;;  %v1140_v2 = vrot.slane %v9425_v49, 1  ;;  %v2293_v31 = vrot.slane %v9432_v37, 2 }
 0x188   : > { %v2297_v13 = vrot.slane %v9439_v16, 2  ;;  %v3686_v33 = vld [vmem:[#allocation3 + $0xdb0] sm:$0xff]  ;;  %v3689_v48 = vld [vmem:[#allocation3 + $0xdc8] sm:$0xff]  ;;  %4218 = vmatmul.mubr.f32.gmra.mrb[24].mxu1 %v1132_v45  ;;  %6891 = vmatprep.subr.bf16.mxu1 %v6890_v59  ;;  %v3691_v44 = vld [vmem:[#allocation3 + $0xdd8] sm:$0xff]  ;;  %v1148_v34 = vrot.slane %v9434_v60, 1  ;;  %v2301_v7 = vrot.slane %v9436_v30, 2 }
 0x189   : > { %v3428_v20 = vld [vmem:[#allocation3 + $0x5a0] sm:$0xff]  ;;  %v3430_v28 = vld [vmem:[#allocation3 + $0x5b0] sm:$0xff]  ;;  %5246 = vmatmul.mubr.f32.gmra.mrb[24].mxu0 %v2285_v8  ;;  %4223 = vmatprep.mubr.f32.mxu1 %v1139_v47  ;;  %v3433_v19 = vld [vmem:[#allocation3 + $0x5c8] sm:$0xff]  ;;  %v7152_v18 = vpack.c.bf16 %v3686_v33, %v3684_v55  ;;  %v7154_v23 = vpack.c.bf16 %v3691_v44, %v3689_v48  ;;  %v1146_v62 = vrot.slane %v9442_v38, 1  ;;  %v1142_v49 = vsel %vm1069_vm1, %v1140_v2, %v8868_v61 }
 0x18a   : > { %v9452_v50 = vld [vmem:[#allocation2 + $0x1a0] sm:$0x3]  ;;  %v3435_v27 = vld [vmem:[#allocation3 + $0x5d8] sm:$0xff]  ;;  %5251 = vmatprep.mubr.f32.mxu0 %v2292_v0  ;;  %v7931_v58 = vld [vmem:[#allocation2 + $0x190] sm:$0xff]  ;;  %7149 = vmatpush1.bf16.msra.mxu0 %v7148_v53  ;;  %v2298_v15 = vsel %vm1422_vm2, %v2296_v43, %v2297_v13  ;;  %v6896_v5 = vpack.c.bf16 %v3430_v28, %v3428_v20  ;;  %v1149_v53 = vsel %vm1069_vm1, %v8837_v4, %v1148_v34 }
 0x18b   : > { %v2294_v21 = vrot.slane %v7931_v58, 2  ;;  %v942_v63 = vld [vmem:[#allocation2 + $0x188] sm:$0xfe]  ;;  %v9457_v9 = vld [vmem:[#allocation2 + $0x1b8] sm:$0xfc]  ;;  %7151 = vmatprep.subr.bf16.mxu0 %v7150_v3  ;;  %6893 = vmatpush1.bf16.msra.mxu1 %v6892_v54  ;;  %v3688_v6 = vld [vmem:[#allocation3 + $0xdc0] sm:$0xff]  ;;  %v6898_v45 = vpack.c.bf16 %v3435_v27, %v3433_v19  ;;  %v2302_v33 = vsel %vm1422_vm2, %v2297_v13, %v2301_v7  ;;  %v1147_v16 = vsel %vm1069_vm1, %v8868_v61, %v1146_v62 }
 0x18c   : > { %v3690_v42 = vld [vmem:[#allocation3 + $0xdd0] sm:$0xff]  ;;  %v3693_v59 = vld [vmem:[#allocation3 + $0xde8] sm:$0xff]  ;;  %4224 = vmatmul.mubr.f32.gmra.mrb[26].mxu1 %v1137_v52  ;;  %v2299_v10 = vrot.slane %v9452_v50, 2  ;;  %6895 = vmatprep.subr.bf16.mxu1 %v6894_v51  ;;  %v3695_v8 = vld [vmem:[#allocation3 + $0xdf8] sm:$0xff]  ;;  %v1153_v57 = vrot.slane %v942_v63, 1  ;;  %v2306_v48 = vrot.slane %v9457_v9, 2 }
 0x18d   : > { %v3432_v25 = vld [vmem:[#allocation3 + $0x5c0] sm:$0xff]  ;;  %v3434_v11 = vld [vmem:[#allocation3 + $0x5d0] sm:$0xff]  ;;  %5252 = vmatmul.mubr.f32.gmra.mrb[26].mxu0 %v2290_v24  ;;  %4229 = vmatprep.mubr.f32.mxu1 %v1145_v32  ;;  %v9467_v40 = vld [vmem:[#allocation2 + $0x1c8] sm:$0xff]  ;;  %v2295_v30 = vsel %vm1422_vm2, %v2293_v31, %v2294_v21  ;;  %v7156_v55 = vpack.c.bf16 %v3690_v42, %v3688_v6  ;;  %v7158_v54 = vpack.c.bf16 %v3695_v8, %v3693_v59 }
 0x18e   : > { %v2307_v47 = vrot.slane %v9467_v40, 2  ;;  %v941_v0 = vld [vmem:[#allocation2 + $0x180] sm:$0xfe]  ;;  %v3437_v37 = vld [vmem:[#allocation3 + $0x5e8] sm:$0xff]  ;;  %v3439_v60 = vld [vmem:[#allocation3 + $0x5f8] sm:$0xff]  ;;  %5257 = vmatprep.mubr.f32.mxu0 %v2298_v15  ;;  %7153 = vmatpush1.bf16.msra.mxu0 %v7152_v18  ;;  %v6900_v44 = vpack.c.bf16 %v3434_v11, %v3432_v25  ;;  %v2300_v13 = vsel %vm1422_vm2, %v2294_v21, %v2299_v10  ;;  %v1155_v31 = vsel %vm1069_vm1, %v1153_v57, %v8884_v26 }
 0x18f   : > { %v2127_v43 = vld [vmem:[#allocation2 + $0x1b0] sm:$0xfc]  ;;  %v944_v38 = vld [vmem:[#allocation2 + $0x1a8] sm:$0x1]  ;;  %v2130_v3 = vld [vmem:[#allocation2 + $0x1d8] sm:$0x3]  ;;  %7155 = vmatprep.subr.bf16.mxu0 %v7154_v23  ;;  %6897 = vmatpush1.bf16.msra.mxu1 %v6896_v5  ;;  %v6902_v4 = vpack.c.bf16 %v3439_v60, %v3437_v37 }
 0x190   : > { %v3692_v51 = vld [vmem:[#allocation3 + $0xde0] sm:$0xff]  ;;  %v3694_v20 = vld [vmem:[#allocation3 + $0xdf0] sm:$0xff]  ;;  %4230 = vmatmul.mubr.f32.gmra.mrb[28].mxu1 %v1142_v49  ;;  %6899 = vmatprep.subr.bf16.mxu1 %v6898_v45  ;;  %v3697_v24 = vld [vmem:[#allocation3 + $0xe08] sm:$0xff]  ;;  %v1150_v50 = vrot.slane %v941_v0, 1  ;;  %v2303_v19 = vrot.slane %v2127_v43, 2  ;;  %v1158_v58 = vrot.slane %v944_v38, 1  ;;  %v2308_v9 = vsel %vm1422_vm2, %v2306_v48, %v2307_v47 }
 0x191   : > { %v3436_v28 = vld [vmem:[#allocation3 + $0x5e0] sm:$0xff]  ;;  %v3438_v52 = vld [vmem:[#allocation3 + $0x5f0] sm:$0xff]  ;;  %v3699_v2 = vld [vmem:[#allocation3 + $0xe18] sm:$0xff]  ;;  %5258 = vmatmul.mubr.f32.gmra.mrb[28].mxu0 %v2295_v30  ;;  %4235 = vmatprep.mubr.f32.mxu1 %v1149_v53  ;;  %v7160_v63 = vpack.c.bf16 %v3694_v20, %v3692_v51  ;;  %v2311_v18 = vrot.slane %v2130_v3, 2 }
 0x192   : > { %5263 = vmatprep.mubr.f32.mxu0 %v2302_v33  ;;  %v7933_v27 = vld [vmem:[#allocation2 + $0x1c0] sm:$0xff]  ;;  %7157 = vmatpush1.bf16.msra.mxu0 %v7156_v55  ;;  %v2129_v61 = vld [vmem:[#allocation2 + $0x1d0] sm:$0x3]  ;;  %v946_v15 = vld [vmem:[#allocation2 + $0x1b8] sm:$0xfe]  ;;  %v6904_v21 = vpack.c.bf16 %v3438_v52, %v3436_v28  ;;  %v7162_v7 = vpack.c.bf16 %v3699_v2, %v3697_v24  ;;  %v1152_v6 = vsel %vm1069_vm1, %v1150_v50, %v8898_v1 }
 0x193   : > { %v2304_v32 = vrot.slane %v7933_v27, 2  ;;  %v943_v34 = vld [vmem:[#allocation2 + $0x1a0] sm:$0x1]  ;;  %7159 = vmatprep.subr.bf16.mxu0 %v7158_v54  ;;  %6901 = vmatpush1.bf16.msra.mxu1 %v6900_v44  ;;  %v2132_v23 = vld [vmem:[#allocation2 + $0x1e8] sm:$0xfc]  ;;  %v1159_v59 = vsel %vm1069_vm1, %v8884_v26, %v1158_v58  ;;  %v2309_v62 = vrot.slane %v2129_v61, 2  ;;  %v2312_v25 = vsel %vm1422_vm2, %v2307_v47, %v2311_v18 }
 0x194   : > { %4236 = vmatmul.mubr.f32.gmra.mrb[30].mxu1 %v1147_v16  ;;  %6903 = vmatprep.subr.bf16.mxu1 %v6902_v4  ;;  %v1156_v42 = vrot.slane %v943_v34, 1  ;;  %v1163_v10 = vrot.slane %v946_v15, 1  ;;  %v945_v45 = vld [vmem:[#allocation2 + $0x1b0] sm:$0xfe]  ;;  %v2131_v8 = vld [vmem:[#allocation2 + $0x1e0] sm:$0xfc] }
 0x195   : > { %5264 = vmatmul.mubr.f32.gmra.mrb[30].mxu0 %v2300_v13  ;;  %4241 = vmatprep.mubr.f32.mxu1 %v1155_v31  ;;  %v2305_v5 = vsel %vm1422_vm2, %v2303_v19, %v2304_v32  ;;  %v2316_v11 = vrot.slane %v2132_v23, 2  ;;  %v7934_v49 = vld [vmem:[#allocation2 + $0x1f8] sm:$0xff]  ;;  %v2134_v37 = vld [vmem:[#allocation2 + $0x208] sm:$0x3]  ;;  %v1160_v60 = vrot.slane %v945_v45, 1  ;;  %v2313_v30 = vrot.slane %v2131_v8, 2 }
 0x196   : > { %5269 = vmatprep.mubr.f32.mxu0 %v2308_v9  ;;  %7161 = vmatpush1.bf16.msra.mxu0 %v7160_v63  ;;  %v2317_v57 = vrot.slane %v7934_v49, 2  ;;  %v948_v0 = vld [vmem:[#allocation2 + $0x1d8] sm:$0x1]  ;;  %v1157_v26 = vsel %vm1069_vm1, %v8898_v1, %v1156_v42  ;;  %v947_v53 = vld [vmem:[#allocation2 + $0x1d0] sm:$0x1]  ;;  %v2310_v40 = vsel %vm1422_vm2, %v2304_v32, %v2309_v62  ;;  %v1165_v47 = vsel %vm1069_vm1, %v1163_v10, %v8913_v41  ;;  %v7936_v50 = vld [vmem:[#allocation2 + $0x228] sm:$0xff] }
 0x197   : > { %6905 = vmatpush1.bf16.msra.mxu1 %v6904_v21  ;;  %7163 = vmatprep.subr.bf16.mxu0 %v7162_v7  ;;  %v7935_v43 = vld [vmem:[#allocation2 + $0x1f0] sm:$0xff]  ;;  %v1168_v3 = vrot.slane %v948_v0, 1  ;;  %v2133_v55 = vld [vmem:[#allocation2 + $0x200] sm:$0x3]  ;;  %v950_v33 = vld [vmem:[#allocation2 + $0x1e8] sm:$0xfe]  ;;  %v1162_v51 = vsel %vm1069_vm1, %v1160_v60, %v8937_v29 }
 0x198   : > { %4242 = vmatmul.mubr.f32.gmra.mrb[32].mxu1 %v1152_v6  ;;  %v2314_v38 = vrot.slane %v7935_v43, 2  ;;  %v2318_v48 = vsel %vm1422_vm2, %v2316_v11, %v2317_v57  ;;  %v2321_v54 = vrot.slane %v2134_v37, 2  ;;  %v1166_v44 = vrot.slane %v947_v53, 1  ;;  %v2136_v1 = vld [vmem:[#allocation2 + $0x218] sm:$0xfc]  ;;  %v7937_v63 = vld [vmem:[#allocation2 + $0x220] sm:$0xff] }
 0x199   : > { %5270 = vmatmul.mubr.f32.gmra.mrb[32].mxu0 %v2305_v5  ;;  %4247 = vmatprep.mubr.f32.mxu1 %v1159_v59  ;;  %v2319_v20 = vrot.slane %v2133_v55, 2  ;;  %v1173_v28 = vrot.slane %v950_v33, 1  ;;  %v1169_v52 = vsel %vm1069_vm1, %v8913_v41, %v1168_v3  ;;  %v949_v24 = vld [vmem:[#allocation2 + $0x1e0] sm:$0xfe]  ;;  %v2135_v2 = vld [vmem:[#allocation2 + $0x210] sm:$0xfc] }
 0x19a   : > { %5275 = vmatprep.mubr.f32.mxu0 %v2312_v25  ;;  %v2315_v4 = vsel %vm1422_vm2, %v2313_v30, %v2314_v38  ;;  %v952_v16 = vld [vmem:[#allocation2 + $0x208] sm:$0x1]  ;;  %v2322_v13 = vsel %vm1422_vm2, %v2317_v57, %v2321_v54  ;;  %v2326_v31 = vrot.slane %v2136_v1, 2  ;;  %v2327_v19 = vrot.slane %v7936_v50, 2  ;;  %v2138_v32 = vld [vmem:[#allocation2 + $0x238] sm:$0x3] }
 0x19b   : > { %v1167_v27 = vsel %vm1069_vm1, %v8937_v29, %v1166_v44  ;;  %v1170_v58 = vrot.slane %v949_v24, 1  ;;  %v2323_v34 = vrot.slane %v2135_v2, 2  ;;  %v2324_v9 = vrot.slane %v7937_v63, 2  ;;  %v951_v15 = vld [vmem:[#allocation2 + $0x200] sm:$0x1]  ;;  %v7938_v49 = vld [vmem:[#allocation2 + $0x258] sm:$0xff] }
 0x19c   : > { %4248 = vmatmul.mubr.f32.gmra.mrb[34].mxu1 %v1157_v26  ;;  %v1178_v41 = vrot.slane %v952_v16, 1  ;;  %v2320_v18 = vsel %vm1422_vm2, %v2314_v38, %v2319_v20  ;;  %v1175_v61 = vsel %vm1069_vm1, %v1173_v28, %v8952_v46  ;;  %v2137_v21 = vld [vmem:[#allocation2 + $0x230] sm:$0x3]  ;;  %v954_v7 = vld [vmem:[#allocation2 + $0x218] sm:$0xfe]  ;;  %v2328_v23 = vsel %vm1422_vm2, %v2326_v31, %v2327_v19  ;;  %v3441_v60 = vld [vmem:[#allocation3 + $0x608] sm:$0xff] }
 0x19d   : > { %5276 = vmatmul.mubr.f32.gmra.mrb[34].mxu0 %v2310_v40  ;;  %4253 = vmatprep.mubr.f32.mxu1 %v1165_v47  ;;  %v2331_v29 = vrot.slane %v2138_v32, 2  ;;  %v2140_v6 = vld [vmem:[#allocation2 + $0x248] sm:$0xfc]  ;;  %v1172_v42 = vsel %vm1069_vm1, %v1170_v58, %v8970_v39  ;;  %v1176_v5 = vrot.slane %v951_v15, 1  ;;  %v2329_v59 = vrot.slane %v2137_v21, 2  ;;  %v3443_v47 = vld [vmem:[#allocation3 + $0x618] sm:$0xff] }
 0x19e   : > { %5281 = vmatprep.mubr.f32.mxu0 %v2318_v48  ;;  %v1183_v62 = vrot.slane %v954_v7, 1  ;;  %v2325_v10 = vsel %vm1422_vm2, %v2323_v34, %v2324_v9  ;;  %v1179_v45 = vsel %vm1069_vm1, %v8952_v46, %v1178_v41  ;;  %v953_v8 = vld [vmem:[#allocation2 + $0x210] sm:$0xfe]  ;;  %v2336_v11 = vrot.slane %v2140_v6, 2  ;;  %v2139_v0 = vld [vmem:[#allocation2 + $0x240] sm:$0xfc] }
 0x19f   : > { %v2332_v25 = vsel %vm1422_vm2, %v2327_v19, %v2331_v29  ;;  %v2337_v57 = vrot.slane %v7938_v49, 2  ;;  %v956_v37 = vld [vmem:[#allocation2 + $0x238] sm:$0x1]  ;;  %v2142_v26 = vld [vmem:[#allocation2 + $0x268] sm:$0x3]  ;;  %v1177_v30 = vsel %vm1069_vm1, %v8970_v39, %v1176_v5  ;;  %v2330_v53 = vsel %vm1422_vm2, %v2324_v9, %v2329_v59  ;;  %v7939_v38 = vld [vmem:[#allocation2 + $0x250] sm:$0xff] }
 0x1a0   : > { %4254 = vmatmul.mubr.f32.gmra.mrb[36].mxu1 %v1162_v51  ;;  %v1185_v46 = vsel %vm1069_vm1, %v1183_v62, %v8991_v36  ;;  %v1180_v40 = vrot.slane %v953_v8, 1  ;;  %v2333_v43 = vrot.slane %v2139_v0, 2  ;;  %v2334_v3 = vrot.slane %v7939_v38, 2  ;;  %v955_v33 = vld [vmem:[#allocation2 + $0x230] sm:$0x1]  ;;  %v7940_v50 = vld [vmem:[#allocation2 + $0x288] sm:$0xff] }
 0x1a1   : > { %5282 = vmatmul.mubr.f32.gmra.mrb[36].mxu0 %v2315_v4  ;;  %4259 = vmatprep.mubr.f32.mxu1 %v1169_v52  ;;  %v1188_v55 = vrot.slane %v956_v37, 1  ;;  %v6906_v48 = vpack.c.bf16 %v3443_v47, %v3441_v60  ;;  %v2338_v54 = vsel %vm1422_vm2, %v2336_v11, %v2337_v57  ;;  %v2341_v44 = vrot.slane %v2142_v26, 2  ;;  %v2141_v1 = vld [vmem:[#allocation2 + $0x260] sm:$0x3]  ;;  %v958_v51 = vld [vmem:[#allocation2 + $0x248] sm:$0xfe] }
 0x1a2   : > { %5287 = vmatprep.mubr.f32.mxu0 %v2322_v13  ;;  %v2144_v39 = vld [vmem:[#allocation2 + $0x278] sm:$0xfc]  ;;  %v1182_v20 = vsel %vm1069_vm1, %v1180_v40, %v9007_v14  ;;  %v1186_v28 = vrot.slane %v955_v33, 1  ;;  %v2335_v4 = vsel %vm1422_vm2, %v2333_v43, %v2334_v3  ;;  %v2339_v24 = vrot.slane %v2141_v1, 2  ;;  %v957_v16 = vld [vmem:[#allocation2 + $0x240] sm:$0xfe] }
 0x1a3   : > { %6907 = vmatprep.subr.bf16.mxu1 %v6906_v48  ;;  %v1189_v52 = vsel %vm1069_vm1, %v8991_v36, %v1188_v55  ;;  %v1193_v2 = vrot.slane %v958_v51, 1  ;;  %v2342_v13 = vsel %vm1422_vm2, %v2337_v57, %v2341_v44  ;;  %v2346_v31 = vrot.slane %v2144_v39, 2  ;;  %v960_v32 = vld [vmem:[#allocation2 + $0x268] sm:$0x1]  ;;  %v2146_v58 = vld [vmem:[#allocation2 + $0x298] sm:$0x3] }
 0x1a4   : > { %4260 = vmatmul.mubr.f32.gmra.mrb[38].mxu1 %v1167_v27  ;;  %v2347_v19 = vrot.slane %v7940_v50, 2  ;;  %v2143_v27 = vld [vmem:[#allocation2 + $0x270] sm:$0xfc]  ;;  %v1187_v34 = vsel %vm1069_vm1, %v9007_v14, %v1186_v28  ;;  %v1190_v63 = vrot.slane %v957_v16, 1  ;;  %v7941_v9 = vld [vmem:[#allocation2 + $0x280] sm:$0xff]  ;;  %v2340_v41 = vsel %vm1422_vm2, %v2334_v3, %v2339_v24  ;;  %v7942_v49 = vld [vmem:[#allocation2 + $0x2b8] sm:$0xff] }
 0x1a5   : > { %5288 = vmatmul.mubr.f32.gmra.mrb[38].mxu0 %v2320_v18  ;;  %4265 = vmatprep.mubr.f32.mxu1 %v1175_v61  ;;  %v2344_v36 = vrot.slane %v7941_v9, 2  ;;  %v1195_v18 = vsel %vm1069_vm1, %v1193_v2, %v9018_v56  ;;  %v2343_v61 = vrot.slane %v2143_v27, 2  ;;  %v1198_v15 = vrot.slane %v960_v32, 1  ;;  %v959_v21 = vld [vmem:[#allocation2 + $0x260] sm:$0x1]  ;;  %v7944_v24 = vld [vmem:[#allocation2 + $0x2e8] sm:$0xff] }
 0x1a6   : > { %5293 = vmatprep.mubr.f32.mxu0 %v2328_v23  ;;  %v2348_v7 = vsel %vm1422_vm2, %v2346_v31, %v2347_v19  ;;  %v2351_v23 = vrot.slane %v2146_v58, 2  ;;  %v2145_v29 = vld [vmem:[#allocation2 + $0x290] sm:$0x3]  ;;  %v962_v6 = vld [vmem:[#allocation2 + $0x278] sm:$0xfe]  ;;  %v1192_v14 = vsel %vm1069_vm1, %v1190_v63, %v9024_v22  ;;  %v1196_v5 = vrot.slane %v959_v21, 1 }
 0x1a7   : > { %v2345_v59 = vsel %vm1422_vm2, %v2343_v61, %v2344_v36  ;;  %v1199_v62 = vsel %vm1069_vm1, %v9018_v56, %v1198_v15  ;;  %v961_v8 = vld [vmem:[#allocation2 + $0x270] sm:$0xfe]  ;;  %v2357_v57 = vrot.slane %v7942_v49, 2  ;;  %v2147_v0 = vld [vmem:[#allocation2 + $0x2a0] sm:$0xfc]  ;;  %v2367_v2 = vrot.slane %v7944_v24, 2 }
 0x1a8   : > { %4266 = vmatmul.mubr.f32.gmra.mrb[40].mxu1 %v1172_v42  ;;  %v2148_v42 = vld [vmem:[#allocation2 + $0x2a8] sm:$0xfc]  ;;  %v964_v37 = vld [vmem:[#allocation2 + $0x298] sm:$0x1]  ;;  %v2150_v26 = vld [vmem:[#allocation2 + $0x2c8] sm:$0x3]  ;;  %v1197_v60 = vsel %vm1069_vm1, %v9024_v22, %v1196_v5 }
 0x1a9   : > { %5294 = vmatmul.mubr.f32.gmra.mrb[40].mxu0 %v2325_v10  ;;  %4271 = vmatprep.mubr.f32.mxu1 %v1179_v45  ;;  %v2349_v10 = vrot.slane %v2145_v29, 2  ;;  %v1203_v45 = vrot.slane %v962_v6, 1  ;;  %v2356_v11 = vrot.slane %v2148_v42, 2  ;;  %v2353_v47 = vrot.slane %v2147_v0, 2  ;;  %v963_v38 = vld [vmem:[#allocation2 + $0x290] sm:$0x1] }
 0x1aa   : > { %5299 = vmatprep.mubr.f32.mxu0 %v2332_v25  ;;  %v2352_v25 = vsel %vm1422_vm2, %v2347_v19, %v2351_v23  ;;  %v1208_v43 = vrot.slane %v964_v37, 1  ;;  %v2361_v55 = vrot.slane %v2150_v26, 2  ;;  %v2149_v33 = vld [vmem:[#allocation2 + $0x2c0] sm:$0x3]  ;;  %v966_v48 = vld [vmem:[#allocation2 + $0x2a8] sm:$0xfe] }
 0x1ab   : > { %v1205_v40 = vsel %vm1069_vm1, %v1203_v45, %v9034_v17  ;;  %v2358_v3 = vsel %vm1422_vm2, %v2356_v11, %v2357_v57  ;;  %v1206_v44 = vrot.slane %v963_v38, 1  ;;  %v2359_v39 = vrot.slane %v2149_v33, 2  ;;  %v965_v28 = vld [vmem:[#allocation2 + $0x2a0] sm:$0xfe]  ;;  %v2151_v16 = vld [vmem:[#allocation2 + $0x2d0] sm:$0xfc] }
 0x1ac   : > { %4272 = vmatmul.mubr.f32.gmra.mrb[42].mxu1 %v1177_v30  ;;  %v1200_v30 = vrot.slane %v961_v8, 1  ;;  %v1209_v51 = vsel %vm1069_vm1, %v9034_v17, %v1208_v43  ;;  %v2154_v31 = vld [vmem:[#allocation2 + $0x2f8] sm:$0x3]  ;;  %v1210_v19 = vrot.slane %v965_v28, 1  ;;  %v7945_v27 = vld [vmem:[#allocation2 + $0x2e0] sm:$0xff]  ;;  %v10430_v37 = vld [vmem:[#allocation15_spill] sm:$0xff] }
 0x1ad   : > { %5300 = vmatmul.mubr.f32.gmra.mrb[42].mxu0 %v2330_v53  ;;  %4277 = vmatprep.mubr.f32.mxu1 %v1185_v46  ;;  %v7943_v53 = vld [vmem:[#allocation2 + $0x2b0] sm:$0xff]  ;;  %v2350_v46 = vsel %vm1422_vm2, %v2344_v36, %v2349_v10  ;;  %v1207_v50 = vsel %vm1069_vm1, %v9040_v35, %v1206_v44  ;;  %v2364_v17 = vrot.slane %v7945_v27, 2  ;;  %v967_v9 = vld [vmem:[#allocation2 + $0x2c0] sm:$0x1]  ;;  %v970_v61 = vld [vmem:[#allocation2 + $0x2d8] sm:$0xfe] }
 0x1ae   : > { %5305 = vmatprep.mubr.f32.mxu0 %v2338_v54  ;;  %v2354_v56 = vrot.slane %v7943_v53, 2  ;;  %v2152_v54 = vld [vmem:[#allocation2 + $0x2d8] sm:$0xfc]  ;;  %v1202_v22 = vsel %vm1069_vm1, %v1200_v30, %v9040_v35  ;;  %v2156_v15 = vld [vmem:[#allocation2 + $0x308] sm:$0xfc]  ;;  %v1223_v42 = vrot.slane %v970_v61, 1 }
 0x1af   : > { %v10429_v35 = vld [vmem:[#allocation14_spill] sm:$0xff]  ;;  %v972_v8 = vld [vmem:[#allocation2 + $0x2f8] sm:$0x1]  ;;  %v971_v53 = vld [vmem:[#allocation2 + $0x2f0] sm:$0x1] }
 0x1b0   : > { %4278 = vmatmul.mubr.f32.gmra.mrb[44].mxu1 %v1182_v20  ;;  %v2355_v1 = vsel %vm1422_vm2, %v2353_v47, %v2354_v56  ;;  %v1213_v20 = vrot.slane %v966_v48, 1  ;;  %v2360_v32 = vsel %vm1422_vm2, %v2354_v56, %v2359_v39  ;;  %v1212_v21 = vsel %vm1069_vm1, %v1210_v19, %v10429_v35  ;;  %v2155_v45 = vld [vmem:[#allocation2 + $0x300] sm:$0xfc]  ;;  %v1295_v47 = vld [vmem:[#allocation2 + $0x8] sm:$0xfc]  ;;  %v3703_v27 = vld [vmem:[#allocation3 + $0xe38] sm:$0xff] }
 0x1b1   : > { %5306 = vmatmul.mubr.f32.gmra.mrb[44].mxu0 %v2335_v4  ;;  %4283 = vmatprep.mubr.f32.mxu1 %v1189_v52  ;;  %v2362_v4 = vsel %vm1422_vm2, %v2357_v57, %v2361_v55  ;;  %v2366_v52 = vrot.slane %v2152_v54, 2  ;;  %v7947_v57 = vld [vmem:[#allocation2 + $0x310] sm:$0xff]  ;;  %v1225_v26 = vsel %vm1069_vm1, %v1223_v42, %v10430_v37  ;;  %v1228_v30 = vrot.slane %v972_v8, 1  ;;  %v7948_v43 = vld [vmem:[#allocation2 + $0x8] sm:$0xff]  ;;  %v1301_v42 = vld [vmem:[#allocation2 + $0x58] sm:$0x3] }
 0x1b2   : > { %5311 = vmatprep.mubr.f32.mxu0 %v2342_v13  ;;  %v968_v13 = vld [vmem:[#allocation2 + $0x2c8] sm:$0x1]  ;;  %v1215_v58 = vsel %vm1069_vm1, %v1213_v20, %v9050_v12  ;;  %v9571_v38 = vrot.slane %v7948_v43, 2  ;;  %v1226_v33 = vrot.slane %v971_v53, 1  ;;  %v1426_v44 = vrot.slane %v1295_v47, 2  ;;  %v9588_v8 = vld [vmem:[#allocation2 + $0x40] sm:$0xff] }
 0x1b3   : > { %v1218_v63 = vrot.slane %v968_v13, 1  ;;  %v2368_v36 = vsel %vm1422_vm2, %v2366_v52, %v2367_v2  ;;  %v1229_v54 = vsel %vm1069_vm1, %v10430_v37, %v1228_v30  ;;  %v1297_v39 = vld [vmem:[#allocation2 + $0x28] sm:$0x3]  ;;  %v1296_v13 = vld [vmem:[#allocation2 + $0x20] sm:$0x3]  ;;  %v1441_v30 = vrot.slane %v1301_v42, 2 }
 0x1b4   : > { %4284 = vmatmul.mubr.f32.gmra.mrb[46].mxu1 %v1187_v34  ;;  %v2363_v34 = vrot.slane %v2151_v16, 2  ;;  %v1428_v52 = vsel %vm1422_vm2, %v1426_v44, %v9571_v38  ;;  %v2449_v24 = vld [vmem:[#allocation2 + $0x68] sm:$0xff]  ;;  %v1431_v16 = vrot.slane %v1297_v39, 2  ;;  %v1300_v53 = vld [vmem:[#allocation2 + $0x50] sm:$0x3] }
 0x1b5   : > { %5312 = vmatmul.mubr.f32.gmra.mrb[46].mxu0 %v2340_v41  ;;  %4289 = vmatprep.mubr.f32.mxu1 %v1195_v18  ;;  %v2371_v41 = vrot.slane %v2154_v31, 2  ;;  %v2153_v18 = vld [vmem:[#allocation2 + $0x2f0] sm:$0x3]  ;;  %v1219_v29 = vsel %vm1069_vm1, %v9050_v12, %v1218_v63  ;;  %v2374_v12 = vrot.slane %v7947_v57, 2  ;;  %v3701_v19 = vld [vmem:[#allocation3 + $0xe28] sm:$0xff]  ;;  %v1429_v63 = vrot.slane %v1296_v13, 2 }
 0x1b6   : > { %5317 = vmatprep.mubr.f32.mxu0 %v2348_v7  ;;  %v1216_v7 = vrot.slane %v967_v9, 1  ;;  %v2365_v23 = vsel %vm1422_vm2, %v2363_v34, %v2364_v17  ;;  %v2369_v6 = vrot.slane %v2153_v18, 2  ;;  %v3698_v31 = vld [vmem:[#allocation3 + $0xe10] sm:$0xff]  ;;  %v2448_v34 = vld [vmem:[#allocation2 + $0x60] sm:$0xff]  ;;  %v3445_v9 = vld [vmem:[#allocation3 + $0x628] sm:$0xff] }
 0x1b7   : > { %v2372_v5 = vsel %vm1422_vm2, %v2367_v2, %v2371_v41  ;;  %v3696_v2 = vld [vmem:[#allocation3 + $0xe00] sm:$0xff]  ;;  %v7949_v41 = vld [vmem:[#allocation2 + $0x48] sm:$0xff]  ;;  %v3706_v47 = vld [vmem:[#allocation3 + $0xe50] sm:$0xff] }
 0x1b8   : > { %4290 = vmatmul.mubr.f32.gmra.mrb[48].mxu1 %v1192_v14  ;;  %v969_v14 = vld [vmem:[#allocation2 + $0x2d0] sm:$0xfe]  ;;  %v1217_v11 = vsel %vm1069_vm1, %v10429_v35, %v1216_v7  ;;  %v2370_v0 = vsel %vm1422_vm2, %v2364_v17, %v2369_v6  ;;  %v3440_v17 = vld [vmem:[#allocation3 + $0x600] sm:$0xff]  ;;  %v1437_v18 = vrot.slane %v7949_v41, 2  ;;  %v7164_v61 = vpack.c.bf16 %v3698_v31, %v3696_v2  ;;  %v2451_v35 = vld [vmem:[#allocation2 + $0x78] sm:$0xff] }
 0x1b9   : > { %5318 = vmatmul.mubr.f32.gmra.mrb[48].mxu0 %v2345_v59  ;;  %4295 = vmatprep.mubr.f32.mxu1 %v1199_v62  ;;  %v2376_v59 = vrot.slane %v2156_v15, 2  ;;  %v7946_v62 = vld [vmem:[#allocation2 + $0x318] sm:$0xff]  ;;  %v1220_v49 = vrot.slane %v969_v14, 1  ;;  %v1432_v15 = vsel %vm1422_vm2, %v9571_v38, %v1431_v16  ;;  %v1298_v7 = vld [vmem:[#allocation2 + $0x30] sm:$0xfc]  ;;  %v3705_v14 = vld [vmem:[#allocation3 + $0xe48] sm:$0xff] }
 0x1ba   : > { %5323 = vmatprep.mubr.f32.mxu0 %v2352_v25  ;;  %v2377_v10 = vrot.slane %v7946_v62, 2  ;;  %v2158_v25 = vld [vmem:[#allocation2 + $0x328] sm:$0x3]  ;;  %v3702_v6 = vld [vmem:[#allocation3 + $0xe30] sm:$0xff]  ;;  %v1433_v57 = vrot.slane %v1298_v7, 2  ;;  %v3708_v31 = vld [vmem:[#allocation3 + $0xe60] sm:$0xff] }
 0x1bb   : > { %v3709_v43 = vld [vmem:[#allocation3 + $0xe68] sm:$0xff]  ;;  %v2454_v41 = vld [vmem:[#allocation2 + $0xa0] sm:$0xff] }
 0x1bc   : > { %4296 = vmatmul.mubr.f32.gmra.mrb[50].mxu1 %v1197_v60  ;;  %v2373_v60 = vrot.slane %v2155_v45, 2  ;;  %v2378_v56 = vsel %vm1422_vm2, %v2376_v59, %v2377_v10  ;;  %v3707_v59 = vld [vmem:[#allocation3 + $0xe58] sm:$0xff]  ;;  %v3446_v45 = vld [vmem:[#allocation3 + $0x630] sm:$0xff]  ;;  %v3453_v39 = vld [vmem:[#allocation3 + $0x668] sm:$0xff] }
 0x1bd   : > { %5324 = vmatmul.mubr.f32.gmra.mrb[50].mxu0 %v2350_v46  ;;  %4301 = vmatprep.mubr.f32.mxu1 %v1205_v40  ;;  %v2381_v46 = vrot.slane %v2158_v25, 2  ;;  %v2157_v40 = vld [vmem:[#allocation2 + $0x320] sm:$0x3]  ;;  %v1434_v25 = vrot.slane %v9588_v8, 2  ;;  %v1305_v16 = vld [vmem:[#allocation2 + $0x88] sm:$0x3] }
 0x1be   : > { %5329 = vmatprep.mubr.f32.mxu0 %v2358_v3  ;;  %v10431_v3 = vld [vmem:[#allocation16_spill] sm:$0xff]  ;;  %v2375_v48 = vsel %vm1422_vm2, %v2373_v60, %v2374_v12  ;;  %v1451_v7 = vrot.slane %v1305_v16, 2  ;;  %v3456_v8 = vld [vmem:[#allocation3 + $0x680] sm:$0xff]  ;;  %v1308_v16 = vld [vmem:[#allocation2 + $0xb0] sm:$0x3] }
 0x1bf   : > { %v1222_v55 = vsel %vm1069_vm1, %v1220_v49, %v10431_v3  ;;  %v1227_v20 = vsel %vm1069_vm1, %v10431_v3, %v1226_v33  ;;  %v2450_v49 = vld [vmem:[#allocation2 + $0x70] sm:$0xff]  ;;  %v3711_v3 = vld [vmem:[#allocation3 + $0xe78] sm:$0xff]  ;;  %v3448_v33 = vld [vmem:[#allocation3 + $0x640] sm:$0xff]  ;;  %v1435_v44 = vsel %vm1422_vm2, %v1433_v57, %v1434_v25 }
 0x1c0   : > { %4302 = vmatmul.mubr.f32.gmra.mrb[52].mxu1 %v1202_v22  ;;  %v2379_v22 = vrot.slane %v2157_v40, 2  ;;  %v3704_v40 = vld [vmem:[#allocation3 + $0xe40] sm:$0xff]  ;;  %v7174_v13 = vpack.c.bf16 %v3711_v3, %v3709_v43  ;;  %v3721_v3 = vld [vmem:[#allocation3 + $0xec8] sm:$0xff] }
 0x1c1   : > { %5330 = vmatmul.mubr.f32.gmra.mrb[52].mxu0 %v2355_v1  ;;  %4307 = vmatprep.mubr.f32.mxu1 %v1209_v51  ;;  %v1294_v1 = vld [vmem:[#allocation2] sm:$0xfc]  ;;  %v2382_v51 = vsel %vm1422_vm2, %v2377_v10, %v2381_v46  ;;  %v7170_v46 = vpack.c.bf16 %v3707_v59, %v3705_v14  ;;  %v7172_v2 = vpack.c.bf16 %v3706_v47, %v3704_v40  ;;  %v3717_v59 = vld [vmem:[#allocation3 + $0xea8] sm:$0xff] }
 0x1c2   : > { %5335 = vmatprep.mubr.f32.mxu0 %v2362_v4  ;;  %v1423_v28 = vrot.slane %v1294_v1, 2  ;;  %v2380_v4 = vsel %vm1422_vm2, %v2374_v12, %v2379_v22  ;;  %v3444_v10 = vld [vmem:[#allocation3 + $0x620] sm:$0xff]  ;;  %v3449_v12 = vld [vmem:[#allocation3 + $0x648] sm:$0xff]  ;;  %v2452_v1 = vld [vmem:[#allocation2 + $0x90] sm:$0xff] }
 0x1c3   : > { %v3712_v14 = vld [vmem:[#allocation3 + $0xe80] sm:$0xff] }
 0x1c4   : > { %4308 = vmatmul.mubr.f32.gmra.mrb[54].mxu1 %v1207_v50  ;;  %v1299_v50 = vld [vmem:[#allocation2 + $0x38] sm:$0xfc]  ;;  %v3716_v43 = vld [vmem:[#allocation3 + $0xea0] sm:$0xff] }
 0x1c5   : > { %5336 = vmatmul.mubr.f32.gmra.mrb[54].mxu0 %v2360_v32  ;;  %4313 = vmatprep.mubr.f32.mxu1 %v1215_v58  ;;  %v3442_v32 = vld [vmem:[#allocation3 + $0x610] sm:$0xff]  ;;  %v1425_v58 = vsel %vm1422_vm2, %v1423_v28, %v9571_v38  ;;  %v1442_v28 = vsel %vm1422_vm2, %v1437_v18, %v1441_v30  ;;  %v2459_v30 = vld [vmem:[#allocation2 + $0xd8] sm:$0xff] }
 0x1c6   : > { %5341 = vmatprep.mubr.f32.mxu0 %v2368_v36  ;;  %v3447_v36 = vld [vmem:[#allocation3 + $0x638] sm:$0xff] }
 0x1c7   : > { %v6910_v62 = vpack.c.bf16 %v3447_v36, %v3445_v9 }
 0x1c8   : > { %4314 = vmatmul.mubr.f32.gmra.mrb[56].mxu1 %v1212_v21  ;;  %v1436_v21 = vrot.slane %v1299_v50, 2  ;;  %v3710_v50 = vld [vmem:[#allocation3 + $0xe70] sm:$0xff] }
 0x1c9   : > { %5342 = vmatmul.mubr.f32.gmra.mrb[56].mxu0 %v2365_v23  ;;  %4319 = vmatprep.mubr.f32.mxu1 %v1219_v29  ;;  %v3700_v23 = vld [vmem:[#allocation3 + $0xe20] sm:$0xff]  ;;  %v7166_v29 = vpack.c.bf16 %v3703_v27, %v3701_v19  ;;  %v3713_v19 = vld [vmem:[#allocation3 + $0xe88] sm:$0xff] }
 0x1ca   : > { %5347 = vmatprep.mubr.f32.mxu0 %v2372_v5  ;;  %v6908_v5 = vpack.c.bf16 %v3442_v32, %v3440_v17  ;;  %v1438_v37 = vsel %vm1422_vm2, %v1436_v21, %v1437_v18  ;;  %v7168_v60 = vpack.c.bf16 %v3702_v6, %v3700_v23  ;;  %v3715_v17 = vld [vmem:[#allocation3 + $0xe98] sm:$0xff]  ;;  %v2457_v21 = vld [vmem:[#allocation2 + $0xc8] sm:$0xff]  ;;  %v1304_v23 = vld [vmem:[#allocation2 + $0x80] sm:$0x3]  ;;  %v7176_v6 = vpack.c.bf16 %v3710_v50, %v3708_v31 }
 0x1cb   : > { %v7178_v42 = vpack.c.bf16 %v3715_v17, %v3713_v19  ;;  %v3720_v19 = vld [vmem:[#allocation3 + $0xec0] sm:$0xff]  ;;  %v3725_v17 = vld [vmem:[#allocation3 + $0xee8] sm:$0xff] }
 0x1cc   : > { %4320 = vmatmul.mubr.f32.gmra.mrb[58].mxu1 %v1217_v11  ;;  %v1430_v11 = vsel %vm1422_vm2, %v9571_v38, %v1429_v63  ;;  %v6912_v38 = vpack.c.bf16 %v3446_v45, %v3444_v10  ;;  %v9601_v63 = vld [vmem:[#allocation2 + $0x70] sm:$0xff]  ;;  %v3719_v10 = vld [vmem:[#allocation3 + $0xeb8] sm:$0xff] }
 0x1cd   : > { %5348 = vmatmul.mubr.f32.gmra.mrb[58].mxu0 %v2370_v0  ;;  %4325 = vmatprep.mubr.f32.mxu1 %v1225_v26  ;;  %v3451_v0 = vld [vmem:[#allocation3 + $0x658] sm:$0xff]  ;;  %v1444_v9 = vrot.slane %v9601_v63, 2  ;;  %v7182_v47 = vpack.c.bf16 %v3719_v10, %v3717_v59  ;;  %v3464_v63 = vld [vmem:[#allocation3 + $0x6c0] sm:$0xff]  ;;  %v3729_v10 = vld [vmem:[#allocation3 + $0xf08] sm:$0xff] }
 0x1ce   : > { %5353 = vmatprep.mubr.f32.mxu0 %v2378_v56  ;;  %v2453_v26 = vld [vmem:[#allocation2 + $0x98] sm:$0xff]  ;;  %v1303_v56 = vld [vmem:[#allocation2 + $0x68] sm:$0xfc]  ;;  %v3724_v59 = vld [vmem:[#allocation3 + $0xee0] sm:$0xff] }
 0x1d0   : > { %4326 = vmatmul.mubr.f32.gmra.mrb[60].mxu1 %v1222_v55  ;;  %v6914_v55 = vpack.c.bf16 %v3451_v0, %v3449_v12  ;;  %v2456_v12 = vld [vmem:[#allocation2 + $0xc0] sm:$0xff]  ;;  %v1449_v0 = vrot.slane %v1304_v23, 2  ;;  %v2463_v23 = vld [vmem:[#allocation2 + $0x108] sm:$0xff] }
 0x1d1   : > { %5354 = vmatmul.mubr.f32.gmra.mrb[60].mxu0 %v2375_v48  ;;  %4331 = vmatprep.mubr.f32.mxu1 %v1229_v54  ;;  %v3450_v48 = vld [vmem:[#allocation3 + $0x650] sm:$0xff]  ;;  %v9594_v54 = vld [vmem:[#allocation2 + $0x78] sm:$0xff] }
 0x1d2   : > { %5359 = vmatprep.mubr.f32.mxu0 %v2382_v51  ;;  %v1447_v22 = vrot.slane %v9594_v54, 2  ;;  %v1439_v51 = vrot.slane %v1300_v53, 2  ;;  %v6916_v27 = vpack.c.bf16 %v3450_v48, %v3448_v33  ;;  %v3723_v33 = vld [vmem:[#allocation3 + $0xed8] sm:$0xff]  ;;  %v3460_v54 = vld [vmem:[#allocation3 + $0x6a0] sm:$0xff] }
 0x1d3   : > { %v7186_v50 = vpack.c.bf16 %v3723_v33, %v3721_v3  ;;  %v3728_v3 = vld [vmem:[#allocation3 + $0xf00] sm:$0xff]  ;;  %v3733_v33 = vld [vmem:[#allocation3 + $0xf28] sm:$0xff] }
 0x1d4   : > { %4332 = vmatmul.mubr.f32.gmra.mrb[62].mxu1 %v1227_v20  ;;  %v3455_v20 = vld [vmem:[#allocation3 + $0x678] sm:$0xff]  ;;  %v1440_v36 = vsel %vm1422_vm2, %v1434_v25, %v1439_v51  ;;  %v3458_v25 = vld [vmem:[#allocation3 + $0x690] sm:$0xff]  ;;  %v1450_v51 = vsel %vm1422_vm2, %v1444_v9, %v1449_v0 }
 0x1d5   : > { %5360 = vmatmul.mubr.f32.gmra.mrb[62].mxu0 %v2380_v4  ;;  %4402 = vmatprep.mubr.f32.mxu1 %v1428_v52  ;;  %v2455_v4 = vld [vmem:[#allocation2 + $0xa8] sm:$0xff]  ;;  %v1446_v52 = vrot.slane %v1303_v56, 2  ;;  %v6918_v32 = vpack.c.bf16 %v3455_v20, %v3453_v39  ;;  %v1306_v56 = vld [vmem:[#allocation2 + $0x90] sm:$0xfc] }
 0x1d6   : > { %5430 = vmatprep.mubr.f32.mxu0 %v2449_v24  ;;  %v1302_v24 = vld [vmem:[#allocation2 + $0x60] sm:$0xfc]  ;;  %v2458_v39 = vld [vmem:[#allocation2 + $0xd0] sm:$0xff]  ;;  %v1453_v20 = vrot.slane %v1306_v56, 2  ;;  %v2465_v56 = vld [vmem:[#allocation2 + $0x128] sm:$0xff] }
 0x1d7   : > { %v1443_v18 = vrot.slane %v1302_v24, 2  ;;  %v2461_v24 = vld [vmem:[#allocation2 + $0xf8] sm:$0xff] }
 0x1d8   : > { %4403 = vmatmul.mubr.f32.vlgmr.msra.gmra.mrb[0].mxu1 %v1425_v58  ;;  %v3452_v58 = vld [vmem:[#allocation3 + $0x660] sm:$0xff] }
 0x1d9   : > { %5431 = vmatmul.mubr.f32.vlgmr.msra.gmra.mrb[0].mxu0 %v2448_v34  ;;  %4408 = vmatprep.mubr.f32.mxu1 %v1432_v15  ;;  %v3454_v34 = vld [vmem:[#allocation3 + $0x670] sm:$0xff]  ;;  %v3459_v15 = vld [vmem:[#allocation3 + $0x698] sm:$0xff]  ;;  %v1445_v57 = vsel %vm1422_vm2, %v1443_v18, %v1444_v9 }
 0x1da   : > { %7165 = vmatpush1.bf16.msra.mxu0 %v7164_v61  ;;  %5436 = vmatprep.mubr.f32.mxu0 %v2451_v35  ;;  %v3457_v61 = vld [vmem:[#allocation3 + $0x688] sm:$0xff]  ;;  %v1448_v35 = vsel %vm1422_vm2, %v1446_v52, %v1447_v22  ;;  %v3466_v9 = vld [vmem:[#allocation3 + $0x6d0] sm:$0xff] }
 0x1db   : > { %7167 = vmatprep.subr.bf16.mxu0 %v7166_v29  ;;  %6909 = vmatpush1.bf16.msra.mxu1 %v6908_v5  ;;  %v1307_v29 = vld [vmem:[#allocation2 + $0x98] sm:$0xfc]  ;;  %v3714_v5 = vld [vmem:[#allocation3 + $0xe90] sm:$0xff]  ;;  %v6922_v45 = vpack.c.bf16 %v3459_v15, %v3457_v61  ;;  %v1459_v15 = vrot.slane %v1308_v16, 2 }
 0x1dc   : > { %4409 = vmatmul.mubr.f32.gmra.mrb[2].mxu1 %v1430_v11  ;;  %6911 = vmatprep.subr.bf16.mxu1 %v6910_v62  ;;  %v6920_v62 = vpack.c.bf16 %v3454_v34, %v3452_v58  ;;  %v9610_v11 = vld [vmem:[#allocation2 + $0xa8] sm:$0xff]  ;;  %v1456_v53 = vrot.slane %v1307_v29, 2  ;;  %v7180_v40 = vpack.c.bf16 %v3714_v5, %v3712_v14  ;;  %v3727_v58 = vld [vmem:[#allocation3 + $0xef8] sm:$0xff]  ;;  %v2460_v61 = vld [vmem:[#allocation2 + $0xf0] sm:$0xff] }
 0x1dd   : > { %5437 = vmatmul.mubr.f32.gmra.mrb[2].mxu0 %v2450_v49  ;;  %4414 = vmatprep.mubr.f32.mxu1 %v1438_v37  ;;  %v1457_v49 = vrot.slane %v9610_v11, 2  ;;  %v3461_v37 = vld [vmem:[#allocation3 + $0x6a8] sm:$0xff]  ;;  %v7190_v5 = vpack.c.bf16 %v3727_v58, %v3725_v17  ;;  %v3468_v11 = vld [vmem:[#allocation3 + $0x6e0] sm:$0xff]  ;;  %v2467_v16 = vld [vmem:[#allocation2 + $0x138] sm:$0xff] }
 0x1de   : > { %5442 = vmatprep.mubr.f32.mxu0 %v2453_v26  ;;  %7169 = vmatpush1.bf16.msra.mxu0 %v7168_v60  ;;  %v3463_v26 = vld [vmem:[#allocation3 + $0x6b8] sm:$0xff]  ;;  %v1452_v60 = vsel %vm1422_vm2, %v1447_v22, %v1451_v7  ;;  %v9619_v22 = vld [vmem:[#allocation2 + $0xa0] sm:$0xff]  ;;  %v3737_v58 = vld [vmem:[#allocation3 + $0xf48] sm:$0xff] }
 0x1df   : > { %7171 = vmatprep.subr.bf16.mxu0 %v7170_v46  ;;  %6913 = vmatpush1.bf16.msra.mxu1 %v6912_v38  ;;  %v1309_v46 = vld [vmem:[#allocation2 + $0xb8] sm:$0x3]  ;;  %v3718_v38 = vld [vmem:[#allocation3 + $0xeb0] sm:$0xff]  ;;  %v6926_v48 = vpack.c.bf16 %v3463_v26, %v3461_v37  ;;  %v1458_v52 = vsel %vm1422_vm2, %v1456_v53, %v1457_v49  ;;  %v2462_v37 = vld [vmem:[#allocation2 + $0x100] sm:$0xff] }
 0x1e0   : > { %4415 = vmatmul.mubr.f32.gmra.mrb[4].mxu1 %v1435_v44  ;;  %6915 = vmatprep.subr.bf16.mxu1 %v6914_v55  ;;  %v6924_v55 = vpack.c.bf16 %v3458_v25, %v3456_v8  ;;  %v3462_v44 = vld [vmem:[#allocation3 + $0x6b0] sm:$0xff]  ;;  %v7184_v31 = vpack.c.bf16 %v3718_v38, %v3716_v43  ;;  %v3731_v8 = vld [vmem:[#allocation3 + $0xf18] sm:$0xff]  ;;  %v3732_v17 = vld [vmem:[#allocation3 + $0xf20] sm:$0xff] }
 0x1e1   : > { %5443 = vmatmul.mubr.f32.gmra.mrb[4].mxu0 %v2452_v1  ;;  %4420 = vmatprep.mubr.f32.mxu1 %v1442_v28  ;;  %v1454_v1 = vrot.slane %v9619_v22, 2  ;;  %v3465_v28 = vld [vmem:[#allocation3 + $0x6c8] sm:$0xff]  ;;  %v7194_v38 = vpack.c.bf16 %v3731_v8, %v3729_v10  ;;  %v3472_v22 = vld [vmem:[#allocation3 + $0x700] sm:$0xff] }
 0x1e2   : > { %5448 = vmatprep.mubr.f32.mxu0 %v2455_v4  ;;  %7173 = vmatpush1.bf16.msra.mxu0 %v7172_v2  ;;  %v3467_v4 = vld [vmem:[#allocation3 + $0x6d8] sm:$0xff]  ;;  %v1461_v2 = vrot.slane %v1309_v46, 2  ;;  %v3736_v10 = vld [vmem:[#allocation3 + $0xf40] sm:$0xff]  ;;  %v3741_v8 = vld [vmem:[#allocation3 + $0xf68] sm:$0xff] }
 0x1e3   : > { %7175 = vmatprep.subr.bf16.mxu0 %v7174_v13  ;;  %6917 = vmatpush1.bf16.msra.mxu1 %v6916_v27  ;;  %v1311_v13 = vld [vmem:[#allocation2 + $0xc8] sm:$0xfc]  ;;  %v3722_v27 = vld [vmem:[#allocation3 + $0xed0] sm:$0xff]  ;;  %v6930_v34 = vpack.c.bf16 %v3467_v4, %v3465_v28  ;;  %v1455_v18 = vsel %vm1422_vm2, %v1453_v20, %v1454_v1  ;;  %v1460_v0 = vsel %vm1422_vm2, %v1454_v1, %v1459_v15  ;;  %v2464_v28 = vld [vmem:[#allocation2 + $0x120] sm:$0xff] }
 0x1e4   : > { %4421 = vmatmul.mubr.f32.gmra.mrb[6].mxu1 %v1440_v36  ;;  %6919 = vmatprep.subr.bf16.mxu1 %v6918_v32  ;;  %v6928_v32 = vpack.c.bf16 %v3462_v44, %v3460_v54  ;;  %v9628_v36 = vld [vmem:[#allocation2 + $0xd8] sm:$0xff]  ;;  %v1462_v7 = vsel %vm1422_vm2, %v1457_v49, %v1461_v2  ;;  %v1466_v29 = vrot.slane %v1311_v13, 2  ;;  %v7188_v14 = vpack.c.bf16 %v3722_v27, %v3720_v19  ;;  %v9637_v49 = vld [vmem:[#allocation2 + $0xd0] sm:$0xff] }
 0x1e5   : > { %5449 = vmatmul.mubr.f32.gmra.mrb[6].mxu0 %v2454_v41  ;;  %4426 = vmatprep.mubr.f32.mxu1 %v1448_v35  ;;  %v1467_v41 = vrot.slane %v9628_v36, 2  ;;  %v3469_v35 = vld [vmem:[#allocation3 + $0x6e8] sm:$0xff]  ;;  %v3735_v54 = vld [vmem:[#allocation3 + $0xf38] sm:$0xff]  ;;  %v3474_v1 = vld [vmem:[#allocation3 + $0x710] sm:$0xff] }
 0x1e6   : > { %5454 = vmatprep.mubr.f32.mxu0 %v2457_v21  ;;  %7177 = vmatpush1.bf16.msra.mxu0 %v7176_v6  ;;  %v3471_v21 = vld [vmem:[#allocation3 + $0x6f8] sm:$0xff]  ;;  %v1310_v6 = vld [vmem:[#allocation2 + $0xc0] sm:$0xfc]  ;;  %v7198_v27 = vpack.c.bf16 %v3735_v54, %v3733_v33  ;;  %v3745_v54 = vld [vmem:[#allocation3 + $0xf88] sm:$0xff] }
 0x1e7   : > { %7179 = vmatprep.subr.bf16.mxu0 %v7178_v42  ;;  %6921 = vmatpush1.bf16.msra.mxu1 %v6920_v62  ;;  %v1313_v42 = vld [vmem:[#allocation2 + $0xe8] sm:$0x3]  ;;  %v3726_v62 = vld [vmem:[#allocation3 + $0xef0] sm:$0xff]  ;;  %v6934_v25 = vpack.c.bf16 %v3471_v21, %v3469_v35  ;;  %v1463_v26 = vrot.slane %v1310_v6, 2  ;;  %v1468_v53 = vsel %vm1422_vm2, %v1466_v29, %v1467_v41  ;;  %v3476_v36 = vld [vmem:[#allocation3 + $0x720] sm:$0xff] }
 0x1e8   : > { %4427 = vmatmul.mubr.f32.gmra.mrb[8].mxu1 %v1445_v57  ;;  %6923 = vmatprep.subr.bf16.mxu1 %v6922_v45  ;;  %v6932_v45 = vpack.c.bf16 %v3466_v9, %v3464_v63  ;;  %v3470_v57 = vld [vmem:[#allocation3 + $0x6f0] sm:$0xff]  ;;  %v1471_v46 = vrot.slane %v1313_v42, 2  ;;  %v7192_v43 = vpack.c.bf16 %v3726_v62, %v3724_v59  ;;  %v3739_v63 = vld [vmem:[#allocation3 + $0xf58] sm:$0xff]  ;;  %v3740_v33 = vld [vmem:[#allocation3 + $0xf60] sm:$0xff] }
 0x1e9   : > { %5455 = vmatmul.mubr.f32.gmra.mrb[8].mxu0 %v2456_v12  ;;  %4432 = vmatprep.mubr.f32.mxu1 %v1452_v60  ;;  %v1464_v12 = vrot.slane %v9637_v49, 2  ;;  %v3473_v60 = vld [vmem:[#allocation3 + $0x708] sm:$0xff]  ;;  %v2466_v35 = vld [vmem:[#allocation2 + $0x130] sm:$0xff]  ;;  %v2469_v6 = vld [vmem:[#allocation2 + $0x158] sm:$0xff]  ;;  %v7202_v62 = vpack.c.bf16 %v3739_v63, %v3737_v58 }
 0x1ea   : > { %5460 = vmatprep.mubr.f32.mxu0 %v2459_v30  ;;  %7181 = vmatpush1.bf16.msra.mxu0 %v7180_v40  ;;  %v3475_v30 = vld [vmem:[#allocation3 + $0x718] sm:$0xff]  ;;  %v1312_v40 = vld [vmem:[#allocation2 + $0xe0] sm:$0x3]  ;;  %v1472_v2 = vsel %vm1422_vm2, %v1467_v41, %v1471_v46  ;;  %v3749_v63 = vld [vmem:[#allocation3 + $0xfa8] sm:$0xff] }
 0x1eb   : > { %7183 = vmatprep.subr.bf16.mxu0 %v7182_v47  ;;  %6925 = vmatpush1.bf16.msra.mxu1 %v6924_v55  ;;  %v1315_v47 = vld [vmem:[#allocation2 + $0xf8] sm:$0xfc]  ;;  %v3730_v55 = vld [vmem:[#allocation3 + $0xf10] sm:$0xff]  ;;  %v6938_v44 = vpack.c.bf16 %v3475_v30, %v3473_v60  ;;  %v1465_v20 = vsel %vm1422_vm2, %v1463_v26, %v1464_v12  ;;  %v1469_v4 = vrot.slane %v1312_v40, 2  ;;  %v9655_v41 = vld [vmem:[#allocation2 + $0x100] sm:$0xff] }
 0x1ec   : > { %4433 = vmatmul.mubr.f32.gmra.mrb[10].mxu1 %v1450_v51  ;;  %6927 = vmatprep.subr.bf16.mxu1 %v6926_v48  ;;  %v6936_v48 = vpack.c.bf16 %v3470_v57, %v3468_v11  ;;  %v9646_v51 = vld [vmem:[#allocation2 + $0x108] sm:$0xff]  ;;  %v1476_v13 = vrot.slane %v1315_v47, 2  ;;  %v7196_v19 = vpack.c.bf16 %v3730_v55, %v3728_v3  ;;  %v3743_v11 = vld [vmem:[#allocation3 + $0xf78] sm:$0xff]  ;;  %v3480_v49 = vld [vmem:[#allocation3 + $0x740] sm:$0xff] }
 0x1ed   : > { %5461 = vmatmul.mubr.f32.gmra.mrb[10].mxu0 %v2458_v39  ;;  %4438 = vmatprep.mubr.f32.mxu1 %v1458_v52  ;;  %v1477_v39 = vrot.slane %v9646_v51, 2  ;;  %v3477_v52 = vld [vmem:[#allocation3 + $0x728] sm:$0xff]  ;;  %v1470_v15 = vsel %vm1422_vm2, %v1464_v12, %v1469_v4  ;;  %v3482_v12 = vld [vmem:[#allocation3 + $0x750] sm:$0xff]  ;;  %v7206_v55 = vpack.c.bf16 %v3743_v11, %v3741_v8  ;;  %v3484_v51 = vld [vmem:[#allocation3 + $0x760] sm:$0xff] }
 0x1ee   : > { %5466 = vmatprep.mubr.f32.mxu0 %v2461_v24  ;;  %7185 = vmatpush1.bf16.msra.mxu0 %v7184_v31  ;;  %v3479_v24 = vld [vmem:[#allocation3 + $0x738] sm:$0xff]  ;;  %v1314_v31 = vld [vmem:[#allocation2 + $0xf0] sm:$0xfc]  ;;  %v2471_v40 = vld [vmem:[#allocation2 + $0x168] sm:$0xff] }
 0x1ef   : > { %7187 = vmatprep.subr.bf16.mxu0 %v7186_v50  ;;  %6929 = vmatpush1.bf16.msra.mxu1 %v6928_v32  ;;  %v1317_v50 = vld [vmem:[#allocation2 + $0x118] sm:$0x3]  ;;  %v3734_v32 = vld [vmem:[#allocation3 + $0xf30] sm:$0xff]  ;;  %v6942_v9 = vpack.c.bf16 %v3479_v24, %v3477_v52  ;;  %v1473_v21 = vrot.slane %v1314_v31, 2  ;;  %v1478_v29 = vsel %vm1422_vm2, %v1476_v13, %v1477_v39  ;;  %v2470_v52 = vld [vmem:[#allocation2 + $0x160] sm:$0xff] }
 0x1f0   : > { %4439 = vmatmul.mubr.f32.gmra.mrb[12].mxu1 %v1455_v18  ;;  %6931 = vmatprep.subr.bf16.mxu1 %v6930_v34  ;;  %v6940_v34 = vpack.c.bf16 %v3474_v1, %v3472_v22  ;;  %v3478_v18 = vld [vmem:[#allocation3 + $0x730] sm:$0xff]  ;;  %v1481_v42 = vrot.slane %v1317_v50, 2  ;;  %v7200_v59 = vpack.c.bf16 %v3734_v32, %v3732_v17  ;;  %v3747_v22 = vld [vmem:[#allocation3 + $0xf98] sm:$0xff]  ;;  %v2473_v31 = vld [vmem:[#allocation2 + $0x188] sm:$0xff] }
 0x1f1   : > { %5467 = vmatmul.mubr.f32.gmra.mrb[12].mxu0 %v2460_v61  ;;  %4444 = vmatprep.mubr.f32.mxu1 %v1462_v7  ;;  %v1474_v61 = vrot.slane %v9655_v41, 2  ;;  %v3481_v7 = vld [vmem:[#allocation3 + $0x748] sm:$0xff]  ;;  %v2468_v60 = vld [vmem:[#allocation2 + $0x150] sm:$0xff]  ;;  %v7210_v32 = vpack.c.bf16 %v3747_v22, %v3745_v54  ;;  %v3744_v58 = vld [vmem:[#allocation3 + $0xf80] sm:$0xff] }
 0x1f2   : > { %5472 = vmatprep.mubr.f32.mxu0 %v2463_v23  ;;  %7189 = vmatpush1.bf16.msra.mxu0 %v7188_v14  ;;  %v3483_v23 = vld [vmem:[#allocation3 + $0x758] sm:$0xff]  ;;  %v1316_v14 = vld [vmem:[#allocation2 + $0x110] sm:$0x3]  ;;  %v1482_v46 = vsel %vm1422_vm2, %v1477_v39, %v1481_v42  ;;  %v3488_v41 = vld [vmem:[#allocation3 + $0x780] sm:$0xff] }
 0x1f3   : > { %7191 = vmatprep.subr.bf16.mxu0 %v7190_v5  ;;  %6933 = vmatpush1.bf16.msra.mxu1 %v6932_v45  ;;  %v1319_v5 = vld [vmem:[#allocation2 + $0x128] sm:$0xfc]  ;;  %v3738_v45 = vld [vmem:[#allocation3 + $0xf50] sm:$0xff]  ;;  %v6946_v57 = vpack.c.bf16 %v3483_v23, %v3481_v7  ;;  %v1475_v26 = vsel %vm1422_vm2, %v1473_v21, %v1474_v61  ;;  %v1479_v30 = vrot.slane %v1316_v14, 2  ;;  %v2472_v7 = vld [vmem:[#allocation2 + $0x180] sm:$0xff] }
 0x1f4   : > { %4445 = vmatmul.mubr.f32.gmra.mrb[14].mxu1 %v1460_v0  ;;  %6935 = vmatprep.subr.bf16.mxu1 %v6934_v25  ;;  %v6944_v25 = vpack.c.bf16 %v3478_v18, %v3476_v36  ;;  %v9664_v0 = vld [vmem:[#allocation2 + $0x138] sm:$0xff]  ;;  %v1486_v47 = vrot.slane %v1319_v5, 2  ;;  %v7204_v3 = vpack.c.bf16 %v3738_v45, %v3736_v10  ;;  %v9673_v39 = vld [vmem:[#allocation2 + $0x130] sm:$0xff]  ;;  %v3748_v8 = vld [vmem:[#allocation3 + $0xfa0] sm:$0xff] }
 0x1f5   : > { %5473 = vmatmul.mubr.f32.gmra.mrb[14].mxu0 %v2462_v37  ;;  %4450 = vmatprep.mubr.f32.mxu1 %v1468_v53  ;;  %v1487_v37 = vrot.slane %v9664_v0, 2  ;;  %v3485_v53 = vld [vmem:[#allocation3 + $0x768] sm:$0xff]  ;;  %v1480_v4 = vsel %vm1422_vm2, %v1474_v61, %v1479_v30  ;;  %v3751_v36 = vld [vmem:[#allocation3 + $0xfb8] sm:$0xff]  ;;  %v3490_v61 = vld [vmem:[#allocation3 + $0x790] sm:$0xff] }
 0x1f6   : > { %5478 = vmatprep.mubr.f32.mxu0 %v2465_v56  ;;  %7193 = vmatpush1.bf16.msra.mxu0 %v7192_v43  ;;  %v3487_v56 = vld [vmem:[#allocation3 + $0x778] sm:$0xff]  ;;  %v1318_v43 = vld [vmem:[#allocation2 + $0x120] sm:$0xfc]  ;;  %v7214_v45 = vpack.c.bf16 %v3751_v36, %v3749_v63  ;;  %v3753_v11 = vld [vmem:[#allocation3 + $0xfc8] sm:$0xff] }
 0x1f7   : > { %7195 = vmatprep.subr.bf16.mxu0 %v7194_v38  ;;  %6937 = vmatpush1.bf16.msra.mxu1 %v6936_v48  ;;  %v1321_v38 = vld [vmem:[#allocation2 + $0x148] sm:$0x3]  ;;  %v3742_v48 = vld [vmem:[#allocation3 + $0xf70] sm:$0xff]  ;;  %v6950_v1 = vpack.c.bf16 %v3487_v56, %v3485_v53  ;;  %v1483_v24 = vrot.slane %v1318_v43, 2  ;;  %v1488_v13 = vsel %vm1422_vm2, %v1486_v47, %v1487_v37  ;;  %v2475_v14 = vld [vmem:[#allocation2 + $0x198] sm:$0xff] }
 0x1f8   : > { %4451 = vmatmul.mubr.f32.gmra.mrb[16].mxu1 %v1465_v20  ;;  %6939 = vmatprep.subr.bf16.mxu1 %v6938_v44  ;;  %v6948_v44 = vpack.c.bf16 %v3482_v12, %v3480_v49  ;;  %v3486_v20 = vld [vmem:[#allocation3 + $0x770] sm:$0xff]  ;;  %v1491_v50 = vrot.slane %v1321_v38, 2  ;;  %v7208_v17 = vpack.c.bf16 %v3742_v48, %v3740_v33  ;;  %v3755_v49 = vld [vmem:[#allocation3 + $0xfd8] sm:$0xff]  ;;  %v3492_v0 = vld [vmem:[#allocation3 + $0x7a0] sm:$0xff] }
 0x1f9   : > { %5479 = vmatmul.mubr.f32.gmra.mrb[16].mxu0 %v2464_v28  ;;  %4456 = vmatprep.mubr.f32.mxu1 %v1472_v2  ;;  %v1484_v28 = vrot.slane %v9673_v39, 2  ;;  %v3489_v2 = vld [vmem:[#allocation3 + $0x788] sm:$0xff]  ;;  %v9697_v53 = vld [vmem:[#allocation2 + $0x190] sm:$0xff]  ;;  %v2477_v43 = vld [vmem:[#allocation2 + $0x1b8] sm:$0xff]  ;;  %v7218_v48 = vpack.c.bf16 %v3755_v49, %v3753_v11 }
 0x1fa   : > { %5484 = vmatprep.mubr.f32.mxu0 %v2467_v16  ;;  %7197 = vmatpush1.bf16.msra.mxu0 %v7196_v19  ;;  %v3491_v16 = vld [vmem:[#allocation3 + $0x798] sm:$0xff]  ;;  %v1320_v19 = vld [vmem:[#allocation2 + $0x140] sm:$0x3]  ;;  %v1492_v42 = vsel %vm1422_vm2, %v1487_v37, %v1491_v50  ;;  %v3758_v36 = vld [vmem:[#allocation3 + $0xff0] sm:$0xff] }
 0x1fb   : > { %7199 = vmatprep.subr.bf16.mxu0 %v7198_v27  ;;  %6941 = vmatpush1.bf16.msra.mxu1 %v6940_v34  ;;  %v1323_v27 = vld [vmem:[#allocation2 + $0x158] sm:$0xfc]  ;;  %v3746_v34 = vld [vmem:[#allocation3 + $0xf90] sm:$0xff]  ;;  %v6954_v18 = vpack.c.bf16 %v3491_v16, %v3489_v2  ;;  %v1485_v21 = vsel %vm1422_vm2, %v1483_v24, %v1484_v28  ;;  %v1489_v23 = vrot.slane %v1320_v19, 2  ;;  %v9691_v37 = vld [vmem:[#allocation2 + $0x160] sm:$0xff] }
 0x1fc   : > { %4457 = vmatmul.mubr.f32.gmra.mrb[18].mxu1 %v1470_v15  ;;  %6943 = vmatprep.subr.bf16.mxu1 %v6942_v9  ;;  %v6952_v9 = vpack.c.bf16 %v3486_v20, %v3484_v51  ;;  %v9682_v15 = vld [vmem:[#allocation2 + $0x168] sm:$0xff]  ;;  %v1496_v5 = vrot.slane %v1323_v27, 2  ;;  %v7212_v10 = vpack.c.bf16 %v3746_v34, %v3744_v58  ;;  %v3752_v54 = vld [vmem:[#allocation3 + $0xfc0] sm:$0xff]  ;;  %v3759_v20 = vld [vmem:[#allocation3 + $0xff8] sm:$0xff] }
 0x1fd   : > { %5485 = vmatmul.mubr.f32.gmra.mrb[18].mxu0 %v2466_v35  ;;  %4462 = vmatprep.mubr.f32.mxu1 %v1478_v29  ;;  %v1497_v35 = vrot.slane %v9682_v15, 2  ;;  %v3493_v29 = vld [vmem:[#allocation3 + $0x7a8] sm:$0xff]  ;;  %v1490_v30 = vsel %vm1422_vm2, %v1484_v28, %v1489_v23  ;;  %v3496_v39 = vld [vmem:[#allocation3 + $0x7c0] sm:$0xff]  ;;  %v3498_v28 = vld [vmem:[#allocation3 + $0x7d0] sm:$0xff] }
 0x1fe   : > { %5490 = vmatprep.mubr.f32.mxu0 %v2469_v6  ;;  %7201 = vmatpush1.bf16.msra.mxu0 %v7200_v59  ;;  %v3495_v6 = vld [vmem:[#allocation3 + $0x7b8] sm:$0xff]  ;;  %v1322_v59 = vld [vmem:[#allocation2 + $0x150] sm:$0xfc]  ;;  %v9709_v19 = vld [vmem:[#allocation2 + $0x1c8] sm:$0xff]  ;;  %v6964_v63 = vpack.c.bf16 %v3498_v28, %v3496_v39 }
 0x1ff   : > { %7203 = vmatprep.subr.bf16.mxu0 %v7202_v62  ;;  %6945 = vmatpush1.bf16.msra.mxu1 %v6944_v25  ;;  %v1325_v62 = vld [vmem:[#allocation2 + $0x178] sm:$0x3]  ;;  %v3750_v25 = vld [vmem:[#allocation3 + $0xfb0] sm:$0xff]  ;;  %v6958_v12 = vpack.c.bf16 %v3495_v6, %v3493_v29  ;;  %v1493_v56 = vrot.slane %v1322_v59, 2  ;;  %v1498_v47 = vsel %vm1422_vm2, %v1496_v5, %v1497_v35  ;;  %v3761_v15 = vld [vmem:[#allocation3 + $0x1008] sm:$0xff] }
 0x200   : > { %4463 = vmatmul.mubr.f32.gmra.mrb[20].mxu1 %v1475_v26  ;;  %6947 = vmatprep.subr.bf16.mxu1 %v6946_v57  ;;  %v6956_v57 = vpack.c.bf16 %v3490_v61, %v3488_v41  ;;  %v3494_v26 = vld [vmem:[#allocation3 + $0x7b0] sm:$0xff]  ;;  %v1501_v38 = vrot.slane %v1325_v62, 2  ;;  %v7216_v33 = vpack.c.bf16 %v3750_v25, %v3748_v8  ;;  %v9715_v6 = vld [vmem:[#allocation2 + $0x1c0] sm:$0xff]  ;;  %v2481_v62 = vld [vmem:[#allocation2 + $0x1e8] sm:$0xff] }
 0x201   : > { %5491 = vmatmul.mubr.f32.gmra.mrb[20].mxu0 %v2468_v60  ;;  %4468 = vmatprep.mubr.f32.mxu1 %v1482_v46  ;;  %v1494_v60 = vrot.slane %v9691_v37, 2  ;;  %v3497_v46 = vld [vmem:[#allocation3 + $0x7c8] sm:$0xff]  ;;  %v6960_v22 = vpack.c.bf16 %v3494_v26, %v3492_v0  ;;  %v2476_v2 = vld [vmem:[#allocation2 + $0x1b0] sm:$0xff]  ;;  %v1328_v5 = vld [vmem:[#allocation2 + $0x1a0] sm:$0x3] }
 0x202   : > { %5496 = vmatprep.mubr.f32.mxu0 %v2471_v40  ;;  %7205 = vmatpush1.bf16.msra.mxu0 %v7204_v3  ;;  %v3499_v40 = vld [vmem:[#allocation3 + $0x7d8] sm:$0xff]  ;;  %v1324_v3 = vld [vmem:[#allocation2 + $0x170] sm:$0x3]  ;;  %v1502_v50 = vsel %vm1422_vm2, %v1497_v35, %v1501_v38  ;;  %v1509_v11 = vrot.slane %v1328_v5, 2  ;;  %v1330_v37 = vld [vmem:[#allocation2 + $0x1b0] sm:$0xfc] }
 0x203   : > { %7207 = vmatprep.subr.bf16.mxu0 %v7206_v55  ;;  %6949 = vmatpush1.bf16.msra.mxu1 %v6948_v44  ;;  %v1327_v55 = vld [vmem:[#allocation2 + $0x188] sm:$0xfc]  ;;  %v3754_v44 = vld [vmem:[#allocation3 + $0xfd0] sm:$0xff]  ;;  %v6962_v51 = vpack.c.bf16 %v3499_v40, %v3497_v46  ;;  %v1495_v24 = vsel %vm1422_vm2, %v1493_v56, %v1494_v60  ;;  %v1499_v16 = vrot.slane %v1324_v3, 2  ;;  %v3763_v35 = vld [vmem:[#allocation3 + $0x1018] sm:$0xff] }
 0x204   : > { %4469 = vmatmul.mubr.f32.gmra.mrb[22].mxu1 %v1480_v4  ;;  %6951 = vmatprep.subr.bf16.mxu1 %v6950_v1  ;;  %v3757_v1 = vld [vmem:[#allocation3 + $0xfe8] sm:$0xff]  ;;  %v7963_v4 = vld [vmem:[#allocation2 + $0x198] sm:$0xff]  ;;  %v1506_v27 = vrot.slane %v1327_v55, 2  ;;  %v7220_v58 = vpack.c.bf16 %v3754_v44, %v3752_v54  ;;  %v3502_v61 = vld [vmem:[#allocation3 + $0x7f0] sm:$0xff]  ;;  %v7226_v8 = vpack.c.bf16 %v3763_v35, %v3761_v15 }
 0x205   : > { %5497 = vmatmul.mubr.f32.gmra.mrb[22].mxu0 %v2470_v52  ;;  %4474 = vmatprep.mubr.f32.mxu1 %v1488_v13  ;;  %v1507_v52 = vrot.slane %v7963_v4, 2  ;;  %v3501_v13 = vld [vmem:[#allocation3 + $0x7e8] sm:$0xff]  ;;  %v7222_v34 = vpack.c.bf16 %v3759_v20, %v3757_v1  ;;  %v1500_v23 = vsel %vm1422_vm2, %v1494_v60, %v1499_v16  ;;  %v9721_v60 = vld [vmem:[#allocation2 + $0x1f8] sm:$0xff]  ;;  %v7966_v56 = vld [vmem:[#allocation2 + $0x1c0] sm:$0xff] }
 0x206   : > { %5502 = vmatprep.mubr.f32.mxu0 %v2473_v31  ;;  %7209 = vmatpush1.bf16.msra.mxu0 %v7208_v17  ;;  %v3503_v31 = vld [vmem:[#allocation3 + $0x7f8] sm:$0xff]  ;;  %v1326_v17 = vld [vmem:[#allocation2 + $0x180] sm:$0xfc]  ;;  %v1514_v46 = vrot.slane %v7966_v56, 2  ;;  %v1332_v55 = vld [vmem:[#allocation2 + $0x1d0] sm:$0x3] }
 0x207   : > { %7211 = vmatprep.subr.bf16.mxu0 %v7210_v32  ;;  %6953 = vmatpush1.bf16.msra.mxu1 %v6952_v9  ;;  %v1329_v32 = vld [vmem:[#allocation2 + $0x1a8] sm:$0x3]  ;;  %v3756_v9 = vld [vmem:[#allocation3 + $0xfe0] sm:$0xff]  ;;  %v6966_v41 = vpack.c.bf16 %v3503_v31, %v3501_v13  ;;  %v1503_v29 = vrot.slane %v1326_v17, 2  ;;  %v1519_v44 = vrot.slane %v1332_v55, 2  ;;  %v9741_v35 = vld [vmem:[#allocation2 + $0x258] sm:$0xff] }
 0x208   : > { %4475 = vmatmul.mubr.f32.gmra.mrb[24].mxu1 %v1485_v21  ;;  %6955 = vmatprep.subr.bf16.mxu1 %v6954_v18  ;;  %v3500_v18 = vld [vmem:[#allocation3 + $0x7e0] sm:$0xff]  ;;  %v7964_v21 = vld [vmem:[#allocation2 + $0x190] sm:$0xff]  ;;  %v7224_v59 = vpack.c.bf16 %v3758_v36, %v3756_v9  ;;  %v9731_v4 = vld [vmem:[#allocation2 + $0x228] sm:$0xff] }
 0x209   : > { %5503 = vmatmul.mubr.f32.gmra.mrb[24].mxu0 %v2472_v7  ;;  %4480 = vmatprep.mubr.f32.mxu1 %v1492_v42  ;;  %v1504_v7 = vrot.slane %v7964_v21, 2  ;;  %v1508_v42 = vsel %vm1422_vm2, %v1506_v27, %v1507_v52  ;;  %v1334_v28 = vld [vmem:[#allocation2 + $0x1e0] sm:$0xfc]  ;;  %v1520_v16 = vsel %vm1422_vm2, %v1514_v46, %v1519_v44  ;;  %v1336_v17 = vld [vmem:[#allocation2 + $0x200] sm:$0x3]  ;;  %v7969_v9 = vld [vmem:[#allocation2 + $0x228] sm:$0xff] }
 0x20a   : > { %5508 = vmatprep.mubr.f32.mxu0 %v2475_v14  ;;  %7213 = vmatpush1.bf16.msra.mxu0 %v7212_v10  ;;  %v1511_v14 = vrot.slane %v1329_v32, 2  ;;  %v1331_v10 = vld [vmem:[#allocation2 + $0x1b8] sm:$0xfc]  ;;  %v1523_v13 = vrot.slane %v1334_v28, 2  ;;  %v9735_v31 = vld [vmem:[#allocation2 + $0x220] sm:$0xff]  ;;  %v2489_v32 = vld [vmem:[#allocation2 + $0x248] sm:$0xff] }
 0x20b   : > { %7215 = vmatprep.subr.bf16.mxu0 %v7214_v45  ;;  %6957 = vmatpush1.bf16.msra.mxu1 %v6956_v57  ;;  %v6968_v45 = vpack.c.bf16 %v3502_v61, %v3500_v18  ;;  %v1505_v25 = vsel %vm1422_vm2, %v1503_v29, %v1504_v7  ;;  %v7965_v57 = vld [vmem:[#allocation2 + $0x1c8] sm:$0xff]  ;;  %v1516_v26 = vrot.slane %v1331_v10, 2  ;;  %v1510_v40 = vsel %vm1422_vm2, %v1504_v7, %v1509_v11  ;;  %v2488_v18 = vld [vmem:[#allocation2 + $0x240] sm:$0xff]  ;;  %v1338_v15 = vld [vmem:[#allocation2 + $0x210] sm:$0xfc] }
 0x20c   : > { %4481 = vmatmul.mubr.f32.gmra.mrb[26].mxu1 %v1490_v30  ;;  %6959 = vmatprep.subr.bf16.mxu1 %v6958_v12  ;;  %v1517_v49 = vrot.slane %v7965_v57, 2  ;;  %v2480_v12 = vld [vmem:[#allocation2 + $0x1e0] sm:$0xff]  ;;  %v1512_v0 = vsel %vm1422_vm2, %v1507_v52, %v1511_v14  ;;  %v1333_v30 = vld [vmem:[#allocation2 + $0x1d8] sm:$0x3]  ;;  %v1337_v52 = vld [vmem:[#allocation2 + $0x208] sm:$0x3] }
 0x20d   : > { %5509 = vmatmul.mubr.f32.gmra.mrb[26].mxu0 %v9697_v53  ;;  %4486 = vmatprep.mubr.f32.mxu1 %v1498_v47  ;;  %v1513_v47 = vrot.slane %v1330_v37, 2  ;;  %v1521_v3 = vrot.slane %v1333_v30, 2  ;;  %v1531_v27 = vrot.slane %v1337_v52, 2  ;;  %v1537_v36 = vrot.slane %v7969_v9, 2  ;;  %v1341_v21 = vld [vmem:[#allocation2 + $0x238] sm:$0x3] }
 0x20e   : > { %5514 = vmatprep.mubr.f32.mxu0 %v2477_v43  ;;  %7217 = vmatpush1.bf16.msra.mxu0 %v7216_v33  ;;  %v9725_v43 = vld [vmem:[#allocation2 + $0x1f0] sm:$0xff]  ;;  %v1518_v38 = vsel %vm1422_vm2, %v1516_v26, %v1517_v49  ;;  %v2485_v33 = vld [vmem:[#allocation2 + $0x218] sm:$0xff]  ;;  %v7970_v7 = vld [vmem:[#allocation2 + $0x220] sm:$0xff] }
 0x20f   : > { %7219 = vmatprep.subr.bf16.mxu0 %v7218_v48  ;;  %6961 = vmatpush1.bf16.msra.mxu1 %v6960_v22  ;;  %v1335_v48 = vld [vmem:[#allocation2 + $0x1e8] sm:$0xfc]  ;;  %v1515_v54 = vsel %vm1422_vm2, %v1513_v47, %v1514_v46  ;;  %v7967_v22 = vld [vmem:[#allocation2 + $0x1f8] sm:$0xff]  ;;  %v1522_v20 = vsel %vm1422_vm2, %v1517_v49, %v1521_v3  ;;  %v9745_v14 = vld [vmem:[#allocation2 + $0x250] sm:$0xff] }
 0x210   : > { %4487 = vmatmul.mubr.f32.gmra.mrb[28].mxu1 %v1495_v24  ;;  %6963 = vmatprep.subr.bf16.mxu1 %v6962_v51  ;;  %v1527_v1 = vrot.slane %v7967_v22, 2  ;;  %v2484_v51 = vld [vmem:[#allocation2 + $0x210] sm:$0xff]  ;;  %v1526_v39 = vrot.slane %v1335_v48, 2  ;;  %v2493_v10 = vld [vmem:[#allocation2 + $0x278] sm:$0xff]  ;;  %v1342_v26 = vld [vmem:[#allocation2 + $0x240] sm:$0xfc] }
 0x211   : > { %5515 = vmatmul.mubr.f32.gmra.mrb[28].mxu0 %v2476_v2  ;;  %4492 = vmatprep.mubr.f32.mxu1 %v1502_v50  ;;  %v7968_v24 = vld [vmem:[#allocation2 + $0x1f0] sm:$0xff]  ;;  %v7971_v11 = vld [vmem:[#allocation2 + $0x258] sm:$0xff]  ;;  %v9751_v37 = vld [vmem:[#allocation2 + $0x288] sm:$0xff]  ;;  %v1543_v47 = vrot.slane %v1342_v26, 2 }
 0x212   : > { %5520 = vmatprep.mubr.f32.mxu0 %v9709_v19  ;;  %7221 = vmatpush1.bf16.msra.mxu0 %v7220_v58  ;;  %v1524_v2 = vrot.slane %v7968_v24, 2  ;;  %v1528_v50 = vsel %vm1422_vm2, %v1526_v39, %v1527_v1  ;;  %v1339_v58 = vld [vmem:[#allocation2 + $0x218] sm:$0xfc]  ;;  %v1547_v57 = vrot.slane %v7971_v11, 2  ;;  %v2492_v49 = vld [vmem:[#allocation2 + $0x270] sm:$0xff]  ;;  %v2497_v48 = vld [vmem:[#allocation2 + $0x2a8] sm:$0xff] }
 0x213   : > { %7223 = vmatprep.subr.bf16.mxu0 %v7222_v34  ;;  %6965 = vmatpush1.bf16.msra.mxu1 %v6964_v63  ;;  %v1529_v63 = vrot.slane %v1336_v17, 2  ;;  %v1536_v61 = vrot.slane %v1339_v58, 2  ;;  %v1345_v30 = vld [vmem:[#allocation2 + $0x268] sm:$0x3]  ;;  %v7972_v56 = vld [vmem:[#allocation2 + $0x250] sm:$0xff]  ;;  %v9761_v24 = vld [vmem:[#allocation2 + $0x2b8] sm:$0xff] }
 0x214   : > { %4493 = vmatmul.mubr.f32.gmra.mrb[30].mxu1 %v1500_v23  ;;  %6967 = vmatprep.subr.bf16.mxu1 %v6966_v41  ;;  %v1525_v34 = vsel %vm1422_vm2, %v1523_v13, %v1524_v2  ;;  %v1532_v41 = vsel %vm1422_vm2, %v1527_v1, %v1531_v27  ;;  %v1534_v23 = vrot.slane %v7970_v7, 2  ;;  %v1544_v46 = vrot.slane %v7972_v56, 2  ;;  %v7973_v1 = vld [vmem:[#allocation2 + $0x288] sm:$0xff]  ;;  %v1346_v52 = vld [vmem:[#allocation2 + $0x270] sm:$0xfc]  ;;  %v2504_v56 = vld [vmem:[#allocation2 + $0x300] sm:$0xff] }
 0x215   : > { %5521 = vmatmul.mubr.f32.gmra.mrb[30].mxu0 %v9715_v6  ;;  %4498 = vmatprep.mubr.f32.mxu1 %v1508_v42  ;;  %v1530_v29 = vsel %vm1422_vm2, %v1524_v2, %v1529_v63  ;;  %v1533_v42 = vrot.slane %v1338_v15, 2  ;;  %v1538_v5 = vsel %vm1422_vm2, %v1536_v61, %v1537_v36  ;;  %v1551_v55 = vrot.slane %v1345_v30, 2  ;;  %v1349_v2 = vld [vmem:[#allocation2 + $0x298] sm:$0x3]  ;;  %v9765_v17 = vld [vmem:[#allocation2 + $0x2b0] sm:$0xff]  ;;  %v7977_v26 = vld [vmem:[#allocation2 + $0x2e8] sm:$0xff] }
 0x216   : > { %5526 = vmatprep.mubr.f32.mxu0 %v2481_v62  ;;  %7225 = vmatpush1.bf16.msra.mxu0 %v7224_v59  ;;  %v1541_v59 = vrot.slane %v1341_v21, 2  ;;  %v1340_v62 = vld [vmem:[#allocation2 + $0x230] sm:$0x3]  ;;  %v1545_v44 = vsel %vm1422_vm2, %v1543_v47, %v1544_v46  ;;  %v1553_v27 = vrot.slane %v1346_v52, 2  ;;  %v1561_v58 = vrot.slane %v1349_v2, 2  ;;  %v2501_v63 = vld [vmem:[#allocation2 + $0x2d8] sm:$0xff] }
 0x217   : > { %6969 = vmatpush1.bf16.msra.mxu1 %v6968_v45  ;;  %7227 = vmatprep.subr.bf16.mxu0 %v7226_v8  ;;  %v1343_v45 = vld [vmem:[#allocation2 + $0x248] sm:$0xfc]  ;;  %v1535_v8 = vsel %vm1422_vm2, %v1533_v42, %v1534_v23  ;;  %v1552_v39 = vsel %vm1422_vm2, %v1547_v57, %v1551_v55  ;;  %v2500_v15 = vld [vmem:[#allocation2 + $0x2d0] sm:$0xff]  ;;  %v1353_v42 = vld [vmem:[#allocation2 + $0x2c8] sm:$0x3]  ;;  %v1577_v30 = vrot.slane %v7977_v26, 2 }
 0x218   : > { %4499 = vmatmul.mubr.f32.gmra.mrb[32].mxu1 %v1505_v25  ;;  %v1539_v25 = vrot.slane %v1340_v62, 2  ;;  %v1351_v9 = vld [vmem:[#allocation2 + $0x2a8] sm:$0xfc]  ;;  %v1352_v11 = vld [vmem:[#allocation2 + $0x2c0] sm:$0x3] }
 0x219   : > { %5527 = vmatmul.mubr.f32.gmra.mrb[32].mxu0 %v2480_v12  ;;  %4504 = vmatprep.mubr.f32.mxu1 %v1512_v0  ;;  %v1542_v12 = vsel %vm1422_vm2, %v1537_v36, %v1541_v59  ;;  %v1546_v0 = vrot.slane %v1343_v45, 2  ;;  %v1566_v7 = vrot.slane %v1351_v9, 2  ;;  %v9775_v45 = vld [vmem:[#allocation2 + $0x2e0] sm:$0xff]  ;;  %v1354_v47 = vld [vmem:[#allocation2 + $0x2d0] sm:$0xfc]  ;;  %v9790_v2 = vld [vmem:[#allocation2 + $0x8] sm:$0xff] }
 0x21a   : > { %5532 = vmatprep.mubr.f32.mxu0 %v9721_v60  ;;  %v1357_v55 = vld [vmem:[#allocation2 + $0x2f8] sm:$0x3]  ;;  %v3764_v26 = vld [vmem:[#allocation3 + $0x1020] sm:$0xff] }
 0x21b   : > { %v1548_v3 = vsel %vm1422_vm2, %v1546_v0, %v1547_v57  ;;  %v2505_v57 = vld [vmem:[#allocation2 + $0x308] sm:$0xff]  ;;  %v1569_v0 = vrot.slane %v1352_v11, 2 }
 0x21c   : > { %4505 = vmatmul.mubr.f32.gmra.mrb[34].mxu1 %v1510_v40  ;;  %v1540_v40 = vsel %vm1422_vm2, %v1534_v23, %v1539_v25  ;;  %v1350_v23 = vld [vmem:[#allocation2 + $0x2a0] sm:$0xfc]  ;;  %v1571_v25 = vrot.slane %v1353_v42, 2  ;;  %v3765_v42 = vld [vmem:[#allocation3 + $0x1028] sm:$0xff] }
 0x21d   : > { %5533 = vmatmul.mubr.f32.gmra.mrb[34].mxu0 %v9725_v43  ;;  %4510 = vmatprep.mubr.f32.mxu1 %v1518_v38  ;;  %v9755_v38 = vld [vmem:[#allocation2 + $0x280] sm:$0xff] }
 0x21e   : > { %5538 = vmatprep.mubr.f32.mxu0 %v2485_v33  ;;  %v1344_v33 = vld [vmem:[#allocation2 + $0x260] sm:$0x3] }
 0x21f   : > { %v1549_v22 = vrot.slane %v1344_v33, 2  ;;  %v7978_v33 = vld [vmem:[#allocation2 + $0x2e0] sm:$0xff] }
 0x220   : > { %4511 = vmatmul.mubr.f32.gmra.mrb[36].mxu1 %v1515_v54  ;;  %v1347_v54 = vld [vmem:[#allocation2 + $0x278] sm:$0xfc] }
 0x221   : > { %5539 = vmatmul.mubr.f32.gmra.mrb[36].mxu0 %v2484_v51  ;;  %4516 = vmatprep.mubr.f32.mxu1 %v1522_v20  ;;  %v1557_v51 = vrot.slane %v7973_v1, 2  ;;  %v2496_v20 = vld [vmem:[#allocation2 + $0x2a0] sm:$0xff]  ;;  %v1556_v28 = vrot.slane %v1347_v54, 2 }
 0x222   : > { %5544 = vmatprep.mubr.f32.mxu0 %v9731_v4 }
 0x223   : > { %v1562_v21 = vsel %vm1422_vm2, %v1557_v51, %v1561_v58  ;;  %v2515_v58 = vld [vmem:[#allocation2 + $0x88] sm:$0x1] }
 0x224   : > { %4517 = vmatmul.mubr.f32.gmra.mrb[38].mxu1 %v1520_v16  ;;  %v7974_v16 = vld [vmem:[#allocation2 + $0x280] sm:$0xff] }
 0x225   : > { %5545 = vmatmul.mubr.f32.gmra.mrb[38].mxu0 %v9735_v31  ;;  %4522 = vmatprep.mubr.f32.mxu1 %v1528_v50  ;;  %v1554_v13 = vrot.slane %v7974_v16, 2  ;;  %v1550_v50 = vsel %vm1422_vm2, %v1544_v46, %v1549_v22  ;;  %v9785_v22 = vld [vmem:[#allocation2 + $0x310] sm:$0xff] }
 0x226   : > { %5550 = vmatprep.mubr.f32.mxu0 %v2489_v32  ;;  %v1558_v32 = vsel %vm1422_vm2, %v1556_v28, %v1557_v51  ;;  %v1581_v51 = vrot.slane %v1357_v55, 2  ;;  %v7984_v55 = vld [vmem:[#allocation2 + $0xa0] sm:$0xff] }
 0x227   : > { %v1555_v36 = vsel %vm1422_vm2, %v1553_v27, %v1554_v13 }
 0x228   : > { %4523 = vmatmul.mubr.f32.gmra.mrb[40].mxu1 %v1525_v34  ;;  %v1348_v34 = vld [vmem:[#allocation2 + $0x290] sm:$0x3]  ;;  %v1582_v16 = vsel %vm1422_vm2, %v1577_v30, %v1581_v51 }
 0x229   : > { %5551 = vmatmul.mubr.f32.gmra.mrb[40].mxu0 %v2488_v18  ;;  %4528 = vmatprep.mubr.f32.mxu1 %v1532_v41  ;;  %v1559_v18 = vrot.slane %v1348_v34, 2  ;;  %v7975_v41 = vld [vmem:[#allocation2 + $0x2b8] sm:$0xff] }
 0x22a   : > { %5556 = vmatprep.mubr.f32.mxu0 %v9741_v35  ;;  %v1567_v61 = vrot.slane %v7975_v41, 2 }
 0x22b   : > { %v1560_v62 = vsel %vm1422_vm2, %v1554_v13, %v1559_v18  ;;  %v7980_v13 = vld [vmem:[#allocation2 + $0x78] sm:$0xff] }
 0x22c   : > { %4529 = vmatmul.mubr.f32.gmra.mrb[42].mxu1 %v1530_v29  ;;  %v9771_v29 = vld [vmem:[#allocation2 + $0x2e8] sm:$0xff]  ;;  %v1572_v46 = vsel %vm1422_vm2, %v1567_v61, %v1571_v25 }
 0x22d   : > { %5557 = vmatmul.mubr.f32.gmra.mrb[42].mxu0 %v9745_v14  ;;  %4534 = vmatprep.mubr.f32.mxu1 %v1538_v5  ;;  %v7976_v5 = vld [vmem:[#allocation2 + $0x2b0] sm:$0xff]  ;;  %v7982_v25 = vld [vmem:[#allocation2 + $0xa8] sm:$0xff] }
 0x22e   : > { %5562 = vmatprep.mubr.f32.mxu0 %v2493_v10  ;;  %v1564_v59 = vrot.slane %v7976_v5, 2  ;;  %v1563_v10 = vrot.slane %v1350_v23, 2  ;;  %v2517_v23 = vld [vmem:[#allocation2 + $0x98] sm:$0xfe]  ;;  %v2686_v11 = vrot.slane %v7982_v25, 1 }
 0x22f   : > { %v3767_v5 = vld [vmem:[#allocation3 + $0x1038] sm:$0xff] }
 0x230   : > { %4535 = vmatmul.mubr.f32.gmra.mrb[44].mxu1 %v1535_v8  ;;  %v1568_v8 = vsel %vm1422_vm2, %v1566_v7, %v1567_v61  ;;  %v1570_v54 = vsel %vm1422_vm2, %v1564_v59, %v1569_v0  ;;  %v3760_v61 = vld [vmem:[#allocation3 + $0x1000] sm:$0xff]  ;;  %v7230_v0 = vpack.c.bf16 %v3767_v5, %v3765_v42  ;;  %v2523_v42 = vld [vmem:[#allocation2 + $0xe8] sm:$0x1] }
 0x231   : > { %5563 = vmatmul.mubr.f32.gmra.mrb[44].mxu0 %v2492_v49  ;;  %4540 = vmatprep.mubr.f32.mxu1 %v1542_v12  ;;  %v1355_v49 = vld [vmem:[#allocation2 + $0x2d8] sm:$0xfc]  ;;  %v1565_v12 = vsel %vm1422_vm2, %v1563_v10, %v1564_v59  ;;  %v2514_v7 = vld [vmem:[#allocation2 + $0x80] sm:$0x1]  ;;  %v1647_v59 = vld [vmem:[#allocation2 + $0x30] sm:$0xff] }
 0x232   : > { %5568 = vmatprep.mubr.f32.mxu0 %v9751_v37  ;;  %v3777_v5 = vld [vmem:[#allocation3 + $0x1088] sm:$0xff] }
 0x234   : > { %4541 = vmatmul.mubr.f32.gmra.mrb[46].mxu1 %v1540_v40  ;;  %v1576_v40 = vrot.slane %v1355_v49, 2  ;;  %v2685_v49 = vrot.slane %v2517_v23, 1  ;;  %v3774_v23 = vld [vmem:[#allocation3 + $0x1070] sm:$0xff] }
 0x235   : > { %5569 = vmatmul.mubr.f32.gmra.mrb[46].mxu0 %v9755_v38  ;;  %4546 = vmatprep.mubr.f32.mxu1 %v1548_v3  ;;  %v9781_v3 = vld [vmem:[#allocation2 + $0x318] sm:$0xff] }
 0x236   : > { %5574 = vmatprep.mubr.f32.mxu0 %v2497_v48  ;;  %v1574_v48 = vrot.slane %v7978_v33, 2  ;;  %v1578_v1 = vsel %vm1422_vm2, %v1576_v40, %v1577_v30  ;;  %v3766_v30 = vld [vmem:[#allocation3 + $0x1030] sm:$0xff]  ;;  %v3771_v40 = vld [vmem:[#allocation3 + $0x1058] sm:$0xff]  ;;  %v2683_v33 = vrot.slane %v7984_v55, 1  ;;  %v2687_v51 = vsel %vm1069_vm1, %v2685_v49, %v2686_v11  ;;  %v3781_v55 = vld [vmem:[#allocation3 + $0x10a8] sm:$0xff] }
 0x238   : > { %4547 = vmatmul.mubr.f32.gmra.mrb[48].mxu1 %v1545_v44  ;;  %v1573_v44 = vrot.slane %v1354_v47, 2  ;;  %v7983_v47 = vld [vmem:[#allocation2 + $0x48] sm:$0xff] }
 0x239   : > { %5575 = vmatmul.mubr.f32.gmra.mrb[48].mxu0 %v2496_v20  ;;  %4552 = vmatprep.mubr.f32.mxu1 %v1552_v39  ;;  %v1356_v20 = vld [vmem:[#allocation2 + $0x2f0] sm:$0x3]  ;;  %v2513_v39 = vld [vmem:[#allocation2 + $0x68] sm:$0xfe] }
 0x23a   : > { %5580 = vmatprep.mubr.f32.mxu0 %v9761_v24  ;;  %v1575_v28 = vsel %vm1422_vm2, %v1573_v44, %v1574_v48  ;;  %v1579_v52 = vrot.slane %v1356_v20, 2  ;;  %v2675_v27 = vrot.slane %v2513_v39, 1  ;;  %v2518_v39 = vld [vmem:[#allocation2 + $0xb0] sm:$0x1] }
 0x23c   : > { %4553 = vmatmul.mubr.f32.gmra.mrb[50].mxu1 %v1550_v50  ;;  %v2676_v50 = vrot.slane %v7980_v13, 1  ;;  %v1580_v34 = vsel %vm1422_vm2, %v1574_v48, %v1579_v52  ;;  %v3768_v52 = vld [vmem:[#allocation3 + $0x1040] sm:$0xff] }
 0x23d   : > { %5581 = vmatmul.mubr.f32.gmra.mrb[50].mxu0 %v9765_v17  ;;  %4558 = vmatprep.mubr.f32.mxu1 %v1558_v32  ;;  %v2512_v32 = vld [vmem:[#allocation2 + $0x60] sm:$0xfe] }
 0x23e   : > { %5586 = vmatprep.mubr.f32.mxu0 %v2501_v63  ;;  %v7981_v63 = vld [vmem:[#allocation2 + $0x70] sm:$0xff]  ;;  %v2672_v18 = vrot.slane %v2512_v32, 1  ;;  %v2677_v41 = vsel %vm1069_vm1, %v2675_v27, %v2676_v50  ;;  %v7985_v13 = vld [vmem:[#allocation2 + $0x40] sm:$0xff]  ;;  %v3773_v27 = vld [vmem:[#allocation3 + $0x1068] sm:$0xff] }
 0x23f   : > { %v2673_v9 = vrot.slane %v7981_v63, 1  ;;  %v3775_v32 = vld [vmem:[#allocation3 + $0x1078] sm:$0xff]  ;;  %v2688_v63 = vrot.slane %v2518_v39, 1 }
 0x240   : > { %4559 = vmatmul.mubr.f32.gmra.mrb[52].mxu1 %v1555_v36  ;;  %v1648_v36 = vld [vmem:[#allocation2 + $0x38] sm:$0xff] }
 0x241   : > { %5587 = vmatmul.mubr.f32.gmra.mrb[52].mxu0 %v2500_v15  ;;  %4564 = vmatprep.mubr.f32.mxu1 %v1562_v21  ;;  %v3762_v15 = vld [vmem:[#allocation3 + $0x1010] sm:$0xff]  ;;  %v2680_v21 = vrot.slane %v2515_v58, 1  ;;  %v1651_v58 = vld [vmem:[#allocation2 + $0x60] sm:$0xff]  ;;  %v2689_v25 = vsel %vm1069_vm1, %v2683_v33, %v2688_v63 }
 0x242   : > { %5592 = vmatprep.mubr.f32.mxu0 %v9771_v29  ;;  %v7228_v10 = vpack.c.bf16 %v3762_v15, %v3760_v61  ;;  %v2520_v15 = vld [vmem:[#allocation2 + $0xc0] sm:$0xfe] }
 0x243   : > { %v9818_v63 = vld [vmem:[#allocation2 + $0x100] sm:$0xff] }
 0x244   : > { %4565 = vmatmul.mubr.f32.gmra.mrb[54].mxu1 %v1560_v62  ;;  %v2674_v62 = vsel %vm1069_vm1, %v2672_v18, %v2673_v9 }
 0x245   : > { %5593 = vmatmul.mubr.f32.gmra.mrb[54].mxu0 %v9775_v45  ;;  %4570 = vmatprep.mubr.f32.mxu1 %v1568_v8  ;;  %v2678_v8 = vrot.slane %v2514_v7, 1  ;;  %v3772_v7 = vld [vmem:[#allocation3 + $0x1060] sm:$0xff] }
 0x246   : > { %5598 = vmatprep.mubr.f32.mxu0 %v2505_v57  ;;  %v2681_v57 = vsel %vm1069_vm1, %v2676_v50, %v2680_v21  ;;  %v2521_v50 = vld [vmem:[#allocation2 + $0xc8] sm:$0xfe]  ;;  %v7238_v21 = vpack.c.bf16 %v3775_v32, %v3773_v27  ;;  %v7240_v49 = vpack.c.bf16 %v3774_v23, %v3772_v7  ;;  %v2527_v27 = vld [vmem:[#allocation2 + $0x118] sm:$0x1]  ;;  %v2526_v23 = vld [vmem:[#allocation2 + $0x110] sm:$0x1] }
 0x247   : > { %v2679_v48 = vsel %vm1069_vm1, %v2673_v9, %v2678_v8  ;;  %v2695_v61 = vrot.slane %v2521_v50, 1  ;;  %v3782_v50 = vld [vmem:[#allocation3 + $0x10b0] sm:$0xff]  ;;  %v3785_v32 = vld [vmem:[#allocation3 + $0x10c8] sm:$0xff]  ;;  %v2710_v7 = vrot.slane %v2527_v27, 1 }
 0x248   : > { %4571 = vmatmul.mubr.f32.gmra.mrb[56].mxu1 %v1565_v12  ;;  %v2516_v12 = vld [vmem:[#allocation2 + $0x90] sm:$0xfe] }
 0x249   : > { %5599 = vmatmul.mubr.f32.gmra.mrb[56].mxu0 %v2504_v56  ;;  %4576 = vmatprep.mubr.f32.mxu1 %v1572_v46  ;;  %v2519_v56 = vld [vmem:[#allocation2 + $0xb8] sm:$0x1]  ;;  %v3769_v46 = vld [vmem:[#allocation3 + $0x1048] sm:$0xff]  ;;  %v2682_v44 = vrot.slane %v2516_v12, 1 }
 0x24a   : > { %5604 = vmatprep.mubr.f32.mxu0 %v9781_v3  ;;  %v2690_v20 = vrot.slane %v2519_v56, 1  ;;  %v3776_v56 = vld [vmem:[#allocation3 + $0x1080] sm:$0xff] }
 0x24c   : > { %4577 = vmatmul.mubr.f32.gmra.mrb[58].mxu1 %v1570_v54  ;;  %v1652_v54 = vld [vmem:[#allocation2 + $0x68] sm:$0xff] }
 0x24d   : > { %5605 = vmatmul.mubr.f32.gmra.mrb[58].mxu0 %v9785_v22  ;;  %4582 = vmatprep.mubr.f32.mxu1 %v1578_v1  ;;  %v7232_v1 = vpack.c.bf16 %v3766_v30, %v3764_v26  ;;  %v2522_v26 = vld [vmem:[#allocation2 + $0xe0] sm:$0x1] }
 0x24e   : > { %5610 = vmatprep.mubr.f32.mxu0 %v9790_v2 }
 0x250   : > { %4583 = vmatmul.mubr.f32.gmra.mrb[60].mxu1 %v1575_v28  ;;  %v7234_v28 = vpack.c.bf16 %v3771_v40, %v3769_v46  ;;  %v3778_v46 = vld [vmem:[#allocation3 + $0x1090] sm:$0xff] }
 0x251   : > { %5611 = vmatmul.mubr.f32.gmra.mrb[60].mxu0 %v9790_v2  ;;  %4588 = vmatprep.mubr.f32.mxu1 %v1582_v16  ;;  %v3770_v16 = vld [vmem:[#allocation3 + $0x1050] sm:$0xff] }
 0x252   : > { %5616 = vmatprep.mubr.f32.mxu0 %v9790_v2  ;;  %v7236_v9 = vpack.c.bf16 %v3770_v16, %v3768_v52  ;;  %v7989_v40 = vld [vmem:[#allocation2 + $0x70] sm:$0xff] }
 0x253   : > { %v2524_v52 = vld [vmem:[#allocation2 + $0xf0] sm:$0xfe] }
 0x254   : > { %4589 = vmatmul.mubr.f32.gmra.mrb[62].mxu1 %v1580_v34  ;;  %v2684_v34 = vsel %vm1069_vm1, %v2682_v44, %v2683_v33  ;;  %v1655_v33 = vld [vmem:[#allocation2 + $0x90] sm:$0xff]  ;;  %v2698_v44 = vrot.slane %v2522_v26, 1  ;;  %v9824_v26 = vld [vmem:[#allocation2 + $0x138] sm:$0xff] }
 0x255   : > { %5617 = vmatmul.mubr.f32.gmra.mrb[62].mxu0 %v9790_v2  ;;  %4659 = vmatprep.mubr.f32.mxu1 %v1648_v36  ;;  %v9804_v36 = vld [vmem:[#allocation2 + $0xd8] sm:$0xff] }
 0x256   : > { %5687 = vmatprep.mubr.f32.mxu0 %v2677_v41  ;;  %v2696_v18 = vrot.slane %v9804_v36, 1  ;;  %v2691_v41 = vsel %vm1069_vm1, %v2686_v11, %v2690_v20  ;;  %v1656_v11 = vld [vmem:[#allocation2 + $0x98] sm:$0xff] }
 0x258   : > { %4660 = vmatmul.mubr.f32.vlgmr.msra.gmra.mrb[0].mxu1 %v1647_v59  ;;  %v3779_v59 = vld [vmem:[#allocation3 + $0x1098] sm:$0xff]  ;;  %v2697_v12 = vsel %vm1069_vm1, %v2695_v61, %v2696_v18  ;;  %v2702_v61 = vrot.slane %v2524_v52, 1 }
 0x259   : > { %5688 = vmatmul.mubr.f32.vlgmr.msra.gmra.mrb[0].mxu0 %v2674_v62  ;;  %4665 = vmatprep.mubr.f32.mxu1 %v7983_v47  ;;  %v7987_v62 = vld [vmem:[#allocation2 + $0x78] sm:$0xff]  ;;  %v7242_v30 = vpack.c.bf16 %v3779_v59, %v3777_v5  ;;  %v3784_v5 = vld [vmem:[#allocation3 + $0x10c0] sm:$0xff]  ;;  %v3786_v59 = vld [vmem:[#allocation3 + $0x10d0] sm:$0xff] }
 0x25a   : > { %7229 = vmatpush1.bf16.msra.mxu0 %v7228_v10  ;;  %5693 = vmatprep.mubr.f32.mxu0 %v2681_v57  ;;  %v9808_v10 = vld [vmem:[#allocation2 + $0xd0] sm:$0xff]  ;;  %v2692_v57 = vrot.slane %v2520_v15, 1  ;;  %v2525_v47 = vld [vmem:[#allocation2 + $0xf8] sm:$0xfe] }
 0x25b   : > { %7231 = vmatprep.subr.bf16.mxu0 %v7230_v0  ;;  %v2693_v8 = vrot.slane %v9808_v10, 1  ;;  %v2700_v0 = vrot.slane %v2523_v42, 1  ;;  %v1664_v52 = vld [vmem:[#allocation2 + $0xf8] sm:$0xff] }
 0x25c   : > { %4666 = vmatmul.mubr.f32.gmra.mrb[2].mxu1 %v7985_v13  ;;  %v3780_v13 = vld [vmem:[#allocation3 + $0x10a0] sm:$0xff] }
 0x25d   : > { %5694 = vmatmul.mubr.f32.gmra.mrb[2].mxu0 %v2679_v48  ;;  %4671 = vmatprep.mubr.f32.mxu1 %v1652_v54  ;;  %v3783_v48 = vld [vmem:[#allocation3 + $0x10b8] sm:$0xff]  ;;  %v2694_v54 = vsel %vm1069_vm1, %v2692_v57, %v2693_v8  ;;  %v2701_v39 = vsel %vm1069_vm1, %v2696_v18, %v2700_v0  ;;  %v2699_v18 = vsel %vm1069_vm1, %v2693_v8, %v2698_v44  ;;  %v1659_v8 = vld [vmem:[#allocation2 + $0xc0] sm:$0xff] }
 0x25e   : > { %5699 = vmatprep.mubr.f32.mxu0 %v2687_v51  ;;  %7233 = vmatpush1.bf16.msra.mxu0 %v7232_v1  ;;  %v7244_v1 = vpack.c.bf16 %v3778_v46, %v3776_v56  ;;  %v9814_v51 = vld [vmem:[#allocation2 + $0x108] sm:$0xff]  ;;  %v7246_v16 = vpack.c.bf16 %v3783_v48, %v3781_v55  ;;  %v7248_v15 = vpack.c.bf16 %v3782_v50, %v3780_v13  ;;  %v3791_v57 = vld [vmem:[#allocation3 + $0x10f8] sm:$0xff]  ;;  %v3788_v55 = vld [vmem:[#allocation3 + $0x10e0] sm:$0xff] }
 0x25f   : > { %7235 = vmatprep.subr.bf16.mxu0 %v7234_v28  ;;  %v2706_v20 = vrot.slane %v9814_v51, 1  ;;  %v2705_v28 = vrot.slane %v2525_v47, 1  ;;  %v7252_v0 = vpack.c.bf16 %v3786_v59, %v3784_v5  ;;  %v3790_v48 = vld [vmem:[#allocation3 + $0x10f0] sm:$0xff]  ;;  %v3795_v44 = vld [vmem:[#allocation3 + $0x1118] sm:$0xff]  ;;  %v9834_v5 = vld [vmem:[#allocation2 + $0x168] sm:$0xff] }
 0x260   : > { %4672 = vmatmul.mubr.f32.gmra.mrb[4].mxu1 %v1651_v58  ;;  %v3787_v58 = vld [vmem:[#allocation3 + $0x10d8] sm:$0xff]  ;;  %v7256_v13 = vpack.c.bf16 %v3790_v48, %v3788_v55  ;;  %v2726_v59 = vrot.slane %v9834_v5, 1  ;;  %v1668_v55 = vld [vmem:[#allocation2 + $0x128] sm:$0xff] }
 0x261   : > { %5700 = vmatmul.mubr.f32.gmra.mrb[4].mxu0 %v2684_v34  ;;  %4677 = vmatprep.mubr.f32.mxu1 %v7987_v62  ;;  %v7991_v34 = vld [vmem:[#allocation2 + $0xa8] sm:$0xff]  ;;  %v7250_v42 = vpack.c.bf16 %v3787_v58, %v3785_v32  ;;  %v7993_v62 = vld [vmem:[#allocation2 + $0xa0] sm:$0xff]  ;;  %v2711_v56 = vsel %vm1069_vm1, %v2706_v20, %v2710_v7 }
 0x262   : > { %5705 = vmatprep.mubr.f32.mxu0 %v2691_v41  ;;  %7237 = vmatpush1.bf16.msra.mxu0 %v7236_v9  ;;  %v2703_v9 = vrot.slane %v9818_v63, 1  ;;  %v1660_v41 = vld [vmem:[#allocation2 + $0xc8] sm:$0xff]  ;;  %v2530_v32 = vld [vmem:[#allocation2 + $0x140] sm:$0x1] }
 0x263   : > { %7239 = vmatprep.subr.bf16.mxu0 %v7238_v21  ;;  %v2707_v21 = vsel %vm1069_vm1, %v2705_v28, %v2706_v20 }
 0x264   : > { %4678 = vmatmul.mubr.f32.gmra.mrb[6].mxu1 %v7989_v40  ;;  %v2528_v40 = vld [vmem:[#allocation2 + $0x120] sm:$0xfe] }
 0x265   : > { %5706 = vmatmul.mubr.f32.gmra.mrb[6].mxu0 %v2689_v25  ;;  %4683 = vmatprep.mubr.f32.mxu1 %v1656_v11  ;;  %v2529_v25 = vld [vmem:[#allocation2 + $0x128] sm:$0xfe] }
 0x266   : > { %5711 = vmatprep.mubr.f32.mxu0 %v2697_v12  ;;  %7241 = vmatpush1.bf16.msra.mxu0 %v7240_v49  ;;  %v3789_v11 = vld [vmem:[#allocation3 + $0x10e8] sm:$0xff]  ;;  %v2704_v49 = vsel %vm1069_vm1, %v2702_v61, %v2703_v9  ;;  %v2708_v12 = vrot.slane %v2526_v23, 1  ;;  %v2715_v46 = vrot.slane %v2529_v25, 1  ;;  %v2533_v61 = vld [vmem:[#allocation2 + $0x158] sm:$0xfe]  ;;  %v2718_v23 = vrot.slane %v2530_v32, 1 }
 0x267   : > { %7243 = vmatprep.subr.bf16.mxu0 %v7242_v30  ;;  %v2716_v30 = vrot.slane %v9824_v26, 1  ;;  %v7254_v47 = vpack.c.bf16 %v3791_v57, %v3789_v11  ;;  %v2725_v25 = vrot.slane %v2533_v61, 1  ;;  %v2532_v11 = vld [vmem:[#allocation2 + $0x150] sm:$0xfe]  ;;  %v3807_v32 = vld [vmem:[#allocation3 + $0x1178] sm:$0xff] }
 0x268   : > { %4684 = vmatmul.mubr.f32.gmra.mrb[8].mxu1 %v1655_v33  ;;  %v2531_v33 = vld [vmem:[#allocation2 + $0x148] sm:$0x1]  ;;  %v2709_v20 = vsel %vm1069_vm1, %v2703_v9, %v2708_v12  ;;  %v1663_v9 = vld [vmem:[#allocation2 + $0xf0] sm:$0xff]  ;;  %v2535_v12 = vld [vmem:[#allocation2 + $0x178] sm:$0x1]  ;;  %v2722_v48 = vrot.slane %v2532_v11, 1 }
 0x269   : > { %5712 = vmatmul.mubr.f32.gmra.mrb[8].mxu0 %v2694_v54  ;;  %4689 = vmatprep.mubr.f32.mxu1 %v7991_v34  ;;  %v3793_v54 = vld [vmem:[#allocation3 + $0x1108] sm:$0xff]  ;;  %v2717_v50 = vsel %vm1069_vm1, %v2715_v46, %v2716_v30  ;;  %v2720_v27 = vrot.slane %v2531_v33, 1  ;;  %v3792_v34 = vld [vmem:[#allocation3 + $0x1100] sm:$0xff]  ;;  %v3811_v11 = vld [vmem:[#allocation3 + $0x1198] sm:$0xff] }
 0x26a   : > { %5717 = vmatprep.mubr.f32.mxu0 %v2701_v39  ;;  %7245 = vmatpush1.bf16.msra.mxu0 %v7244_v1  ;;  %v7995_v1 = vld [vmem:[#allocation2 + $0xd8] sm:$0xff]  ;;  %v9828_v39 = vld [vmem:[#allocation2 + $0x130] sm:$0xff]  ;;  %v7258_v58 = vpack.c.bf16 %v3795_v44, %v3793_v54  ;;  %v7999_v46 = vld [vmem:[#allocation2 + $0x108] sm:$0xff]  ;;  %v2727_v54 = vsel %vm1069_vm1, %v2725_v25, %v2726_v59  ;;  %v2730_v44 = vrot.slane %v2535_v12, 1 }
 0x26b   : > { %7247 = vmatprep.subr.bf16.mxu0 %v7246_v16  ;;  %v2713_v28 = vrot.slane %v9828_v39, 1  ;;  %v2712_v16 = vrot.slane %v2528_v40, 1  ;;  %v9838_v40 = vld [vmem:[#allocation2 + $0x160] sm:$0xff]  ;;  %v3809_v25 = vld [vmem:[#allocation3 + $0x1188] sm:$0xff]  ;;  %v1672_v12 = vld [vmem:[#allocation2 + $0x158] sm:$0xff] }
 0x26c   : > { %4690 = vmatmul.mubr.f32.gmra.mrb[10].mxu1 %v7993_v62  ;;  %v2721_v62 = vsel %vm1069_vm1, %v2716_v30, %v2720_v27  ;;  %v3805_v27 = vld [vmem:[#allocation3 + $0x1168] sm:$0xff] }
 0x26d   : > { %5718 = vmatmul.mubr.f32.gmra.mrb[10].mxu0 %v2699_v18  ;;  %4695 = vmatprep.mubr.f32.mxu1 %v1660_v41  ;;  %v3794_v18 = vld [vmem:[#allocation3 + $0x1110] sm:$0xff]  ;;  %v2714_v7 = vsel %vm1069_vm1, %v2712_v16, %v2713_v28  ;;  %v2719_v30 = vsel %vm1069_vm1, %v2713_v28, %v2718_v23  ;;  %v1667_v28 = vld [vmem:[#allocation2 + $0x120] sm:$0xff] }
 0x26e   : > { %5723 = vmatprep.mubr.f32.mxu0 %v2707_v21  ;;  %7249 = vmatpush1.bf16.msra.mxu0 %v7248_v15  ;;  %v7997_v41 = vld [vmem:[#allocation2 + $0xd0] sm:$0xff]  ;;  %v3797_v15 = vld [vmem:[#allocation3 + $0x1128] sm:$0xff]  ;;  %v3799_v21 = vld [vmem:[#allocation3 + $0x1138] sm:$0xff] }
 0x26f   : > { %7251 = vmatprep.subr.bf16.mxu0 %v7250_v42  ;;  %v7260_v42 = vpack.c.bf16 %v3794_v18, %v3792_v34  ;;  %v7262_v57 = vpack.c.bf16 %v3799_v21, %v3797_v15  ;;  %v3802_v16 = vld [vmem:[#allocation3 + $0x1150] sm:$0xff]  ;;  %v2731_v15 = vsel %vm1069_vm1, %v2726_v59, %v2730_v44  ;;  %v3804_v23 = vld [vmem:[#allocation3 + $0x1160] sm:$0xff]  ;;  %v2541_v44 = vld [vmem:[#allocation2 + $0x1b8] sm:$0xfe] }
 0x270   : > { %4696 = vmatmul.mubr.f32.gmra.mrb[12].mxu1 %v1659_v8  ;;  %v3796_v8 = vld [vmem:[#allocation3 + $0x1120] sm:$0xff] }
 0x271   : > { %5724 = vmatmul.mubr.f32.gmra.mrb[12].mxu0 %v2704_v49  ;;  %4701 = vmatprep.mubr.f32.mxu1 %v7995_v1  ;;  %v3798_v49 = vld [vmem:[#allocation3 + $0x1130] sm:$0xff] }
 0x272   : > { %5729 = vmatprep.mubr.f32.mxu0 %v2711_v56  ;;  %7253 = vmatpush1.bf16.msra.mxu0 %v7252_v0  ;;  %v3801_v0 = vld [vmem:[#allocation3 + $0x1148] sm:$0xff]  ;;  %v3803_v56 = vld [vmem:[#allocation3 + $0x1158] sm:$0xff]  ;;  %v7264_v33 = vpack.c.bf16 %v3798_v49, %v3796_v8  ;;  %v2534_v1 = vld [vmem:[#allocation2 + $0x170] sm:$0x1]  ;;  %v2733_v8 = vrot.slane %v9697_v53, 1 }
 0x273   : > { %7255 = vmatprep.subr.bf16.mxu0 %v7254_v47  ;;  %v2723_v47 = vrot.slane %v9838_v40, 1  ;;  %v2728_v34 = vrot.slane %v2534_v1, 1  ;;  %v3813_v1 = vld [vmem:[#allocation3 + $0x11a8] sm:$0xff]  ;;  %v3815_v53 = vld [vmem:[#allocation3 + $0x11b8] sm:$0xff] }
 0x274   : > { %4702 = vmatmul.mubr.f32.gmra.mrb[14].mxu1 %v7997_v41  ;;  %v9844_v41 = vld [vmem:[#allocation2 + $0x198] sm:$0xff] }
 0x275   : > { %5730 = vmatmul.mubr.f32.gmra.mrb[14].mxu0 %v2709_v20  ;;  %4707 = vmatprep.mubr.f32.mxu1 %v1664_v52  ;;  %v7266_v20 = vpack.c.bf16 %v3803_v56, %v3801_v0  ;;  %v3800_v52 = vld [vmem:[#allocation3 + $0x1140] sm:$0xff]  ;;  %v2736_v61 = vrot.slane %v9844_v41, 1  ;;  %v2729_v49 = vsel %vm1069_vm1, %v2723_v47, %v2728_v34  ;;  %v3814_v34 = vld [vmem:[#allocation3 + $0x11b0] sm:$0xff] }
 0x276   : > { %5735 = vmatprep.mubr.f32.mxu0 %v2717_v50  ;;  %7257 = vmatpush1.bf16.msra.mxu0 %v7256_v13  ;;  %v8001_v13 = vld [vmem:[#allocation2 + $0x100] sm:$0xff]  ;;  %v2537_v50 = vld [vmem:[#allocation2 + $0x188] sm:$0xfe]  ;;  %v7268_v18 = vpack.c.bf16 %v3802_v16, %v3800_v52 }
 0x277   : > { %7259 = vmatprep.subr.bf16.mxu0 %v7258_v58  ;;  %v2724_v58 = vsel %vm1069_vm1, %v2722_v48, %v2723_v47  ;;  %v2735_v21 = vrot.slane %v2537_v50, 1  ;;  %v3808_v48 = vld [vmem:[#allocation3 + $0x1180] sm:$0xff]  ;;  %v1671_v47 = vld [vmem:[#allocation2 + $0x150] sm:$0xff] }
 0x278   : > { %4708 = vmatmul.mubr.f32.gmra.mrb[16].mxu1 %v1663_v9  ;;  %v2536_v9 = vld [vmem:[#allocation2 + $0x180] sm:$0xfe] }
 0x279   : > { %5736 = vmatmul.mubr.f32.gmra.mrb[16].mxu0 %v2714_v7  ;;  %4713 = vmatprep.mubr.f32.mxu1 %v7999_v46  ;;  %v7270_v7 = vpack.c.bf16 %v3807_v32, %v3805_v27  ;;  %v2732_v59 = vrot.slane %v2536_v9, 1  ;;  %v2737_v56 = vsel %vm1069_vm1, %v2735_v21, %v2736_v61  ;;  %v2745_v27 = vrot.slane %v2541_v44, 1  ;;  %v2540_v32 = vld [vmem:[#allocation2 + $0x1b0] sm:$0xfe]  ;;  %v3819_v21 = vld [vmem:[#allocation3 + $0x11d8] sm:$0xff]  ;;  %v8005_v9 = vld [vmem:[#allocation2 + $0x168] sm:$0xff] }
 0x27a   : > { %5741 = vmatprep.mubr.f32.mxu0 %v2721_v62  ;;  %7261 = vmatpush1.bf16.msra.mxu0 %v7260_v42  ;;  %v3806_v42 = vld [vmem:[#allocation3 + $0x1170] sm:$0xff]  ;;  %v2539_v62 = vld [vmem:[#allocation2 + $0x1a8] sm:$0x1]  ;;  %v2544_v44 = vld [vmem:[#allocation2 + $0x1e0] sm:$0xfe] }
 0x27b   : > { %7263 = vmatprep.subr.bf16.mxu0 %v7262_v57  ;;  %v8003_v57 = vld [vmem:[#allocation2 + $0x138] sm:$0xff]  ;;  %v7272_v0 = vpack.c.bf16 %v3806_v42, %v3804_v23  ;;  %v2740_v46 = vrot.slane %v2539_v62, 1  ;;  %v1676_v23 = vld [vmem:[#allocation2 + $0x188] sm:$0xff] }
 0x27c   : > { %4714 = vmatmul.mubr.f32.gmra.mrb[18].mxu1 %v8001_v13  ;;  %v2746_v13 = vrot.slane %v9709_v19, 1 }
 0x27d   : > { %5742 = vmatmul.mubr.f32.gmra.mrb[18].mxu0 %v2719_v30  ;;  %4719 = vmatprep.mubr.f32.mxu1 %v1668_v55  ;;  %v2538_v30 = vld [vmem:[#allocation2 + $0x1a0] sm:$0x1]  ;;  %v7274_v55 = vpack.c.bf16 %v3811_v11, %v3809_v25  ;;  %v2741_v50 = vsel %vm1069_vm1, %v2736_v61, %v2740_v46  ;;  %v2742_v61 = vrot.slane %v2540_v32, 1  ;;  %v2542_v11 = vld [vmem:[#allocation2 + $0x1d0] sm:$0x1] }
 0x27e   : > { %5747 = vmatprep.mubr.f32.mxu0 %v2727_v54  ;;  %7265 = vmatpush1.bf16.msra.mxu0 %v7264_v33  ;;  %v3810_v33 = vld [vmem:[#allocation3 + $0x1190] sm:$0xff]  ;;  %v2738_v52 = vrot.slane %v2538_v30, 1  ;;  %v2747_v62 = vsel %vm1069_vm1, %v2745_v27, %v2746_v13  ;;  %v2748_v30 = vrot.slane %v2542_v11, 1  ;;  %v1680_v27 = vld [vmem:[#allocation2 + $0x1b8] sm:$0xff]  ;;  %v1684_v11 = vld [vmem:[#allocation2 + $0x1e8] sm:$0xff] }
 0x27f   : > { %7267 = vmatprep.subr.bf16.mxu0 %v7266_v20  ;;  %v8004_v54 = vld [vmem:[#allocation2 + $0x130] sm:$0xff]  ;;  %v2734_v20 = vsel %vm1069_vm1, %v2732_v59, %v2733_v8  ;;  %v7276_v16 = vpack.c.bf16 %v3810_v33, %v3808_v48  ;;  %v8006_v59 = vld [vmem:[#allocation2 + $0x160] sm:$0xff]  ;;  %v2756_v48 = vrot.slane %v9721_v60, 1  ;;  %v2752_v60 = vrot.slane %v2544_v44, 1 }
 0x280   : > { %4720 = vmatmul.mubr.f32.gmra.mrb[20].mxu1 %v1667_v28  ;;  %v7278_v28 = vpack.c.bf16 %v3815_v53, %v3813_v1  ;;  %v2739_v19 = vsel %vm1069_vm1, %v2733_v8, %v2738_v52  ;;  %v1675_v8 = vld [vmem:[#allocation2 + $0x180] sm:$0xff]  ;;  %v8007_v52 = vld [vmem:[#allocation2 + $0x198] sm:$0xff] }
 0x281   : > { %5748 = vmatmul.mubr.f32.gmra.mrb[20].mxu0 %v2724_v58  ;;  %4725 = vmatprep.mubr.f32.mxu1 %v8003_v57  ;;  %v3812_v58 = vld [vmem:[#allocation3 + $0x11a0] sm:$0xff] }
 0x282   : > { %5753 = vmatprep.mubr.f32.mxu0 %v2731_v15  ;;  %7269 = vmatpush1.bf16.msra.mxu0 %v7268_v18  ;;  %v2543_v18 = vld [vmem:[#allocation2 + $0x1d8] sm:$0x1]  ;;  %v3817_v15 = vld [vmem:[#allocation3 + $0x11c8] sm:$0xff]  ;;  %v7280_v42 = vpack.c.bf16 %v3814_v34, %v3812_v58  ;;  %v3820_v53 = vld [vmem:[#allocation3 + $0x11e0] sm:$0xff] }
 0x283   : > { %7271 = vmatprep.subr.bf16.mxu0 %v7270_v7  ;;  %v2743_v7 = vrot.slane %v9715_v6, 1  ;;  %v2750_v25 = vrot.slane %v2543_v18, 1  ;;  %v7282_v57 = vpack.c.bf16 %v3819_v21, %v3817_v15  ;;  %v3823_v6 = vld [vmem:[#allocation3 + $0x11f8] sm:$0xff]  ;;  %v2546_v58 = vld [vmem:[#allocation2 + $0x200] sm:$0x1]  ;;  %v8008_v34 = vld [vmem:[#allocation2 + $0x190] sm:$0xff] }
 0x284   : > { %4726 = vmatmul.mubr.f32.gmra.mrb[22].mxu1 %v8004_v54  ;;  %v2549_v18 = vld [vmem:[#allocation2 + $0x218] sm:$0xfe]  ;;  %v1679_v15 = vld [vmem:[#allocation2 + $0x1b0] sm:$0xff]  ;;  %v2758_v21 = vrot.slane %v2546_v58, 1  ;;  %v2559_v58 = vld [vmem:[#allocation2 + $0x298] sm:$0x1] }
 0x285   : > { %5754 = vmatmul.mubr.f32.gmra.mrb[22].mxu0 %v2729_v49  ;;  %4731 = vmatprep.mubr.f32.mxu1 %v1672_v12  ;;  %v3816_v49 = vld [vmem:[#allocation3 + $0x11c0] sm:$0xff]  ;;  %v3818_v12 = vld [vmem:[#allocation3 + $0x11d0] sm:$0xff]  ;;  %v2744_v46 = vsel %vm1069_vm1, %v2742_v61, %v2743_v7  ;;  %v2751_v33 = vsel %vm1069_vm1, %v2746_v13, %v2750_v25  ;;  %v2551_v61 = vld [vmem:[#allocation2 + $0x238] sm:$0x1] }
 0x286   : > { %5759 = vmatprep.mubr.f32.mxu0 %v2737_v56  ;;  %7273 = vmatpush1.bf16.msra.mxu0 %v7272_v0  ;;  %v2545_v0 = vld [vmem:[#allocation2 + $0x1e8] sm:$0xfe] }
 0x287   : > { %7275 = vmatprep.subr.bf16.mxu0 %v7274_v55  ;;  %v3821_v56 = vld [vmem:[#allocation3 + $0x11e8] sm:$0xff]  ;;  %v7284_v55 = vpack.c.bf16 %v3818_v12, %v3816_v49  ;;  %v2755_v54 = vrot.slane %v2545_v0, 1  ;;  %v2770_v12 = vrot.slane %v2551_v61, 1  ;;  %v1691_v61 = vld [vmem:[#allocation2 + $0x240] sm:$0xff] }
 0x288   : > { %4732 = vmatmul.mubr.f32.gmra.mrb[24].mxu1 %v1671_v47  ;;  %v7286_v1 = vpack.c.bf16 %v3823_v6, %v3821_v56  ;;  %v3822_v47 = vld [vmem:[#allocation3 + $0x11f0] sm:$0xff]  ;;  %v2553_v0 = vld [vmem:[#allocation2 + $0x248] sm:$0xfe]  ;;  %v1683_v56 = vld [vmem:[#allocation2 + $0x1e0] sm:$0xff] }
 0x289   : > { %5760 = vmatmul.mubr.f32.gmra.mrb[24].mxu0 %v2734_v20  ;;  %4737 = vmatprep.mubr.f32.mxu1 %v8005_v9  ;;  %v2547_v20 = vld [vmem:[#allocation2 + $0x208] sm:$0x1]  ;;  %v7288_v13 = vpack.c.bf16 %v3822_v47, %v3820_v53  ;;  %v2757_v32 = vsel %vm1069_vm1, %v2755_v54, %v2756_v48  ;;  %v2766_v9 = vrot.slane %v9731_v4, 1  ;;  %v2550_v4 = vld [vmem:[#allocation2 + $0x230] sm:$0x1]  ;;  %v2773_v54 = vrot.slane %v9745_v14, 1 }
 0x28a   : > { %5765 = vmatprep.mubr.f32.mxu0 %v2741_v50  ;;  %7277 = vmatpush1.bf16.msra.mxu0 %v7276_v16  ;;  %v2753_v16 = vrot.slane %v9725_v43, 1  ;;  %v2749_v50 = vsel %vm1069_vm1, %v2743_v7, %v2748_v30  ;;  %v2775_v30 = vrot.slane %v2553_v0, 1  ;;  %v2786_v14 = vrot.slane %v9751_v37, 1  ;;  %v2558_v37 = vld [vmem:[#allocation2 + $0x290] sm:$0x1]  ;;  %v1696_v0 = vld [vmem:[#allocation2 + $0x278] sm:$0xff] }
 0x28b   : > { %7279 = vmatprep.subr.bf16.mxu0 %v7278_v28  ;;  %v2760_v28 = vrot.slane %v2547_v20, 1 }
 0x28c   : > { %4738 = vmatmul.mubr.f32.gmra.mrb[26].mxu1 %v8006_v59  ;;  %v2754_v43 = vsel %vm1069_vm1, %v2752_v60, %v2753_v16  ;;  %v2759_v25 = vsel %vm1069_vm1, %v2753_v16, %v2758_v21  ;;  %v8010_v59 = vld [vmem:[#allocation2 + $0x1c0] sm:$0xff]  ;;  %v2557_v16 = vld [vmem:[#allocation2 + $0x278] sm:$0xfe] }
 0x28d   : > { %5766 = vmatmul.mubr.f32.gmra.mrb[26].mxu0 %v2739_v19  ;;  %4743 = vmatprep.mubr.f32.mxu1 %v1676_v23  ;;  %v2761_v7 = vsel %vm1069_vm1, %v2756_v48, %v2760_v28  ;;  %v2765_v19 = vrot.slane %v2549_v18, 1  ;;  %v2548_v23 = vld [vmem:[#allocation2 + $0x210] sm:$0xfe]  ;;  %v2555_v48 = vld [vmem:[#allocation2 + $0x268] sm:$0x1]  ;;  %v2783_v18 = vrot.slane %v9755_v38, 1 }
 0x28e   : > { %5771 = vmatprep.mubr.f32.mxu0 %v2747_v62  ;;  %7281 = vmatpush1.bf16.msra.mxu0 %v7280_v42  ;;  %v8009_v42 = vld [vmem:[#allocation2 + $0x1c8] sm:$0xff]  ;;  %v2763_v62 = vrot.slane %v9735_v31, 1  ;;  %v2776_v31 = vrot.slane %v9741_v35, 1  ;;  %v2780_v20 = vrot.slane %v2555_v48, 1  ;;  %v2554_v35 = vld [vmem:[#allocation2 + $0x260] sm:$0x1] }
 0x28f   : > { %7283 = vmatprep.subr.bf16.mxu0 %v7282_v57  ;;  %v2762_v57 = vrot.slane %v2548_v23, 1  ;;  %v2767_v49 = vsel %vm1069_vm1, %v2765_v19, %v2766_v9  ;;  %v2778_v60 = vrot.slane %v2554_v35, 1  ;;  %v2556_v28 = vld [vmem:[#allocation2 + $0x270] sm:$0xfe]  ;;  %v8014_v19 = vld [vmem:[#allocation2 + $0x220] sm:$0xff]  ;;  %v2796_v38 = vrot.slane %v9761_v24, 1 }
 0x290   : > { %4744 = vmatmul.mubr.f32.gmra.mrb[28].mxu1 %v1675_v8  ;;  %v2768_v8 = vrot.slane %v2550_v4, 1  ;;  %v2777_v47 = vsel %vm1069_vm1, %v2775_v30, %v2776_v31  ;;  %v2782_v21 = vrot.slane %v2556_v28, 1  ;;  %v2561_v23 = vld [vmem:[#allocation2 + $0x2a8] sm:$0xfe]  ;;  %v2793_v4 = vrot.slane %v9765_v17, 1  ;;  %v1695_v30 = vld [vmem:[#allocation2 + $0x270] sm:$0xff] }
 0x291   : > { %5772 = vmatmul.mubr.f32.gmra.mrb[28].mxu0 %v2744_v46  ;;  %4749 = vmatprep.mubr.f32.mxu1 %v8007_v52  ;;  %v2764_v6 = vsel %vm1069_vm1, %v2762_v57, %v2763_v62  ;;  %v2771_v46 = vsel %vm1069_vm1, %v2766_v9, %v2770_v12  ;;  %v8012_v52 = vld [vmem:[#allocation2 + $0x1f0] sm:$0xff]  ;;  %v2560_v57 = vld [vmem:[#allocation2 + $0x2a0] sm:$0xfe]  ;;  %v8015_v12 = vld [vmem:[#allocation2 + $0x258] sm:$0xff] }
 0x292   : > { %5777 = vmatprep.mubr.f32.mxu0 %v2751_v33  ;;  %7285 = vmatpush1.bf16.msra.mxu0 %v7284_v55  ;;  %v2552_v55 = vld [vmem:[#allocation2 + $0x240] sm:$0xfe]  ;;  %v8011_v33 = vld [vmem:[#allocation2 + $0x1f8] sm:$0xff]  ;;  %v2769_v44 = vsel %vm1069_vm1, %v2763_v62, %v2768_v8  ;;  %v2788_v62 = vrot.slane %v2558_v37, 1  ;;  %v2562_v24 = vld [vmem:[#allocation2 + $0x2c0] sm:$0x1] }
 0x293   : > { %7287 = vmatprep.subr.bf16.mxu0 %v7286_v1  ;;  %v1688_v1 = vld [vmem:[#allocation2 + $0x218] sm:$0xff]  ;;  %v2772_v53 = vrot.slane %v2552_v55, 1  ;;  %v6289_v55 = vld [vmem:[#allocation8] sm:$0xff]  ;;  %v6290_v48 = vld [vmem:[#allocation8 + $0x8] sm:$0xff] }
 0x294   : > { %4750 = vmatmul.mubr.f32.gmra.mrb[30].mxu1 %v8008_v34  ;;  %v8013_v34 = vld [vmem:[#allocation2 + $0x228] sm:$0xff]  ;;  %v2567_v35 = vld [vmem:[#allocation2 + $0x2f8] sm:$0x1]  ;;  %v2568_v37 = vld [vmem:[#allocation2 + $0x300] sm:$0xfe] }
 0x295   : > { %5778 = vmatmul.mubr.f32.gmra.mrb[30].mxu0 %v2749_v50  ;;  %4755 = vmatprep.mubr.f32.mxu1 %v1680_v27  ;;  %v1687_v50 = vld [vmem:[#allocation2 + $0x210] sm:$0xff]  ;;  %v2774_v27 = vsel %vm1069_vm1, %v2772_v53, %v2773_v54  ;;  %v2569_v28 = vld [vmem:[#allocation2 + $0x308] sm:$0xfe] }
 0x296   : > { %5783 = vmatprep.mubr.f32.mxu0 %v2757_v32  ;;  %7289 = vmatpush1.bf16.msra.mxu0 %v7288_v13  ;;  %v2781_v13 = vsel %vm1069_vm1, %v2776_v31, %v2780_v20  ;;  %v2785_v32 = vrot.slane %v2557_v16, 1  ;;  %v8016_v31 = vld [vmem:[#allocation2 + $0x250] sm:$0xff]  ;;  %v2803_v16 = vrot.slane %v9775_v45, 1  ;;  %v6292_v45 = vld [vmem:[#allocation8 + $0x18] sm:$0xff] }
 0x297   : > { %v2564_v20 = vld [vmem:[#allocation2 + $0x2d0] sm:$0xfe] }
 0x298   : > { %4756 = vmatmul.mubr.f32.gmra.mrb[32].mxu1 %v1679_v15  ;;  %v2779_v15 = vsel %vm1069_vm1, %v2773_v54, %v2778_v60  ;;  %v2787_v9 = vsel %vm1069_vm1, %v2785_v32, %v2786_v14  ;;  %v8217_v54 = vmov 0.0|0.0   ;;  %v2802_v60 = vrot.slane %v2564_v20, 1  ;;  %v8018_v32 = vld [vmem:[#allocation2 + $0x280] sm:$0xff]  ;;  %v6295_v20 = vld [vmem:[#allocation8 + $0x30] sm:$0xff] }
 0x299   : > { %5784 = vmatmul.mubr.f32.gmra.mrb[32].mxu0 %v2754_v43  ;;  %4761 = vmatprep.mubr.f32.mxu1 %v8009_v42  ;;  %v1692_v43 = vld [vmem:[#allocation2 + $0x248] sm:$0xff]  ;;  %v2784_v42 = vsel %vm1069_vm1, %v2782_v21, %v2783_v18  ;;  %v2816_v21 = vrot.slane %v9781_v3, 1 }
 0x29a   : > { %5789 = vmatprep.mubr.f32.mxu0 %v2761_v7  ;;  %v2790_v7 = vrot.slane %v2559_v58, 1  ;;  %7290 = vmatprep.subr.bf16.mxu1 %v8217_v54  ;;  %v1699_v58 = vld [vmem:[#allocation2 + $0x2a0] sm:$0xff] }
 0x29c   : > { %4762 = vmatmul.mubr.f32.gmra.mrb[34].mxu1 %v8010_v59  ;;  %v2789_v59 = vsel %vm1069_vm1, %v2783_v18, %v2788_v62  ;;  %v2804_v18 = vsel %vm1069_vm1, %v2802_v60, %v2803_v16  ;;  %v1704_v62 = vld [vmem:[#allocation2 + $0x2d8] sm:$0xff] }
 0x29d   : > { %5790 = vmatmul.mubr.f32.gmra.mrb[34].mxu0 %v2759_v25  ;;  %4767 = vmatprep.mubr.f32.mxu1 %v1684_v11  ;;  %v2791_v25 = vsel %vm1069_vm1, %v2786_v14, %v2790_v7  ;;  %v2795_v11 = vrot.slane %v2561_v23, 1  ;;  %v2815_v7 = vrot.slane %v2569_v28, 1  ;;  %v8019_v23 = vld [vmem:[#allocation2 + $0x2b8] sm:$0xff] }
 0x29e   : > { %5795 = vmatprep.mubr.f32.mxu0 %v2767_v49  ;;  %v2563_v49 = vld [vmem:[#allocation2 + $0x2c8] sm:$0x1]  ;;  %v8024_v28 = vld [vmem:[#allocation2 + $0x318] sm:$0xff] }
 0x29f   : > { %v2800_v8 = vrot.slane %v2563_v49, 1  ;;  %v2573_v49 = vld [vmem:[#allocation2 + $0x338] sm:$0xfe] }
 0x2a0   : > { %4768 = vmatmul.mubr.f32.gmra.mrb[36].mxu1 %v1683_v56  ;;  %v2792_v56 = vrot.slane %v2560_v57, 1  ;;  %v8020_v57 = vld [vmem:[#allocation2 + $0x2b0] sm:$0xff] }
 0x2a1   : > { %5796 = vmatmul.mubr.f32.gmra.mrb[36].mxu0 %v2764_v6  ;;  %4773 = vmatprep.mubr.f32.mxu1 %v8011_v33  ;;  %v2797_v6 = vsel %vm1069_vm1, %v2795_v11, %v2796_v38  ;;  %v2798_v33 = vrot.slane %v2562_v24, 1  ;;  %v2801_v53 = vsel %vm1069_vm1, %v2796_v38, %v2800_v8  ;;  %v2812_v38 = vrot.slane %v2568_v37, 1  ;;  %v2570_v11 = vld [vmem:[#allocation2 + $0x320] sm:$0x1]  ;;  %v6297_v37 = vld [vmem:[#allocation8 + $0x40] sm:$0xff] }
 0x2a2   : > { %5801 = vmatprep.mubr.f32.mxu0 %v2771_v46  ;;  %v2565_v46 = vld [vmem:[#allocation2 + $0x2d8] sm:$0xfe]  ;;  %v2794_v17 = vsel %vm1069_vm1, %v2792_v56, %v2793_v4  ;;  %v2825_v24 = vrot.slane %v2573_v49, 1  ;;  %v8028_v49 = vld [vmem:[#allocation2 + $0xa0] sm:$0xff] }
 0x2a4   : > { %4774 = vmatmul.mubr.f32.gmra.mrb[38].mxu1 %v8012_v52  ;;  %v8017_v52 = vld [vmem:[#allocation2 + $0x288] sm:$0xff] }
 0x2a5   : > { %5802 = vmatmul.mubr.f32.gmra.mrb[38].mxu0 %v2769_v44  ;;  %4779 = vmatprep.mubr.f32.mxu1 %v1688_v1  ;;  %v7291_v44 = vpack.c.bf16 %v6290_v48, %v6289_v55  ;;  %v2806_v1 = vrot.slane %v9771_v29, 1  ;;  %v2810_v29 = vrot.slane %v2567_v35, 1  ;;  %v1708_v48 = vld [vmem:[#allocation2 + $0x308] sm:$0xff]  ;;  %v6296_v35 = vld [vmem:[#allocation8 + $0x38] sm:$0xff] }
 0x2a6   : > { %5807 = vmatprep.mubr.f32.mxu0 %v2777_v47  ;;  %v2805_v47 = vrot.slane %v2565_v46, 1  ;;  %v2575_v46 = vld [vmem:[#allocation2 + $0x358] sm:$0x1] }
 0x2a7   : > { %7292 = vmatpush1.bf16.msra.mxu1 %v7291_v44  ;;  %v2830_v44 = vrot.slane %v2575_v46, 1 }
 0x2a8   : > { %4780 = vmatmul.mubr.f32.gmra.mrb[40].mxu1 %v1687_v50  ;;  %v2799_v50 = vsel %vm1069_vm1, %v2793_v4, %v2798_v33  ;;  %v2807_v14 = vsel %vm1069_vm1, %v2805_v47, %v2806_v1  ;;  %7293 = vmatprep.subr.bf16.mxu1 %v8217_v54  ;;  %v6293_v4 = vld [vmem:[#allocation8 + $0x20] sm:$0xff] }
 0x2a9   : > { %5808 = vmatmul.mubr.f32.gmra.mrb[40].mxu0 %v2774_v27  ;;  %4785 = vmatprep.mubr.f32.mxu1 %v8013_v34  ;;  %v1700_v27 = vld [vmem:[#allocation2 + $0x2a8] sm:$0xff]  ;;  %v6291_v34 = vld [vmem:[#allocation8 + $0x10] sm:$0xff]  ;;  %v1707_v47 = vld [vmem:[#allocation2 + $0x300] sm:$0xff] }
 0x2aa   : > { %5813 = vmatprep.mubr.f32.mxu0 %v2781_v13  ;;  %v2566_v13 = vld [vmem:[#allocation2 + $0x2f0] sm:$0x1] }
 0x2ac   : > { %4786 = vmatmul.mubr.f32.gmra.mrb[42].mxu1 %v8014_v19  ;;  %v2571_v19 = vld [vmem:[#allocation2 + $0x328] sm:$0x1] }
 0x2ad   : > { %5814 = vmatmul.mubr.f32.gmra.mrb[42].mxu0 %v2779_v15  ;;  %4791 = vmatprep.mubr.f32.mxu1 %v1692_v43  ;;  %v2808_v15 = vrot.slane %v2566_v13, 1  ;;  %v7294_v43 = vpack.c.bf16 %v6292_v45, %v6291_v34  ;;  %v2820_v3 = vrot.slane %v2571_v19, 1  ;;  %v2896_v13 = vld [vmem:[#allocation2 + $0x60] sm:$0xfc]  ;;  %v6298_v19 = vld [vmem:[#allocation8 + $0x48] sm:$0xff] }
 0x2ae   : > { %5819 = vmatprep.mubr.f32.mxu0 %v2787_v9  ;;  %v2811_v9 = vsel %vm1069_vm1, %v2806_v1, %v2810_v29  ;;  %v2574_v1 = vld [vmem:[#allocation2 + $0x350] sm:$0x1] }
 0x2af   : > { %7295 = vmatpush1.bf16.msra.mxu1 %v7294_v43  ;;  %v2821_v8 = vsel %vm1069_vm1, %v2816_v21, %v2820_v3 }
 0x2b0   : > { %4792 = vmatmul.mubr.f32.gmra.mrb[44].mxu1 %v1691_v61  ;;  %v2813_v61 = vrot.slane %v9785_v22, 1  ;;  %7296 = vmatprep.subr.bf16.mxu1 %v8217_v54  ;;  %v6294_v22 = vld [vmem:[#allocation8 + $0x28] sm:$0xff] }
 0x2b1   : > { %5820 = vmatmul.mubr.f32.gmra.mrb[44].mxu0 %v2784_v42  ;;  %4797 = vmatprep.mubr.f32.mxu1 %v8015_v12  ;;  %v2809_v42 = vsel %vm1069_vm1, %v2803_v16, %v2808_v15  ;;  %v1703_v12 = vld [vmem:[#allocation2 + $0x2d0] sm:$0xff]  ;;  %v7297_v56 = vpack.c.bf16 %v6294_v22, %v6293_v4  ;;  %v2828_v16 = vrot.slane %v2574_v1, 1  ;;  %v3045_v1 = vrot.slane %v9808_v10, 2 }
 0x2b2   : > { %5825 = vmatprep.mubr.f32.mxu0 %v2791_v25  ;;  %v2817_v25 = vsel %vm1069_vm1, %v2815_v7, %v2816_v21  ;;  %v2898_v21 = vld [vmem:[#allocation2 + $0x80] sm:$0x3]  ;;  %v2901_v7 = vld [vmem:[#allocation2 + $0x98] sm:$0xfc] }
 0x2b3   : > { %7298 = vmatpush1.bf16.msra.mxu1 %v7297_v56  ;;  %v3037_v3 = vrot.slane %v2901_v7, 2  ;;  %v2902_v56 = vld [vmem:[#allocation2 + $0xb0] sm:$0x3] }
 0x2b4   : > { %4798 = vmatmul.mubr.f32.gmra.mrb[46].mxu1 %v8016_v31  ;;  %v2572_v31 = vld [vmem:[#allocation2 + $0x330] sm:$0xfe]  ;;  %7299 = vmatprep.subr.bf16.mxu1 %v8217_v54 }
 0x2b5   : > { %5826 = vmatmul.mubr.f32.gmra.mrb[46].mxu0 %v2789_v59  ;;  %4803 = vmatprep.mubr.f32.mxu1 %v1696_v0  ;;  %v2814_v59 = vsel %vm1069_vm1, %v2812_v38, %v2813_v61  ;;  %v2818_v0 = vrot.slane %v2570_v11, 1  ;;  %v2900_v11 = vld [vmem:[#allocation2 + $0x90] sm:$0xfc] }
 0x2b6   : > { %5831 = vmatprep.mubr.f32.mxu0 %v2797_v6  ;;  %v2826_v6 = vrot.slane %v9790_v2, 1  ;;  %v8022_v2 = vld [vmem:[#allocation2 + $0x2e0] sm:$0xff]  ;;  %v3034_v22 = vrot.slane %v2900_v11, 2 }
 0x2b7   : > { %v2819_v55 = vsel %vm1069_vm1, %v2813_v61, %v2818_v0  ;;  %v3030_v61 = vrot.slane %v2898_v21, 2  ;;  %v6304_v21 = vld [vmem:[#allocation8 + $0x78] sm:$0xff] }
 0x2b8   : > { %4804 = vmatmul.mubr.f32.gmra.mrb[48].mxu1 %v1695_v30  ;;  %v8021_v30 = vld [vmem:[#allocation2 + $0x2e8] sm:$0xff]  ;;  %v2827_v33 = vsel %vm1069_vm1, %v2825_v24, %v2826_v6  ;;  %v2829_v45 = vsel %vm1069_vm1, %v2826_v6, %v2828_v16  ;;  %v6300_v24 = vld [vmem:[#allocation8 + $0x58] sm:$0xff] }
 0x2b9   : > { %5832 = vmatmul.mubr.f32.gmra.mrb[48].mxu0 %v2794_v17  ;;  %4809 = vmatprep.mubr.f32.mxu1 %v8017_v52  ;;  %v2822_v17 = vrot.slane %v2572_v31, 1  ;;  %v6302_v16 = vld [vmem:[#allocation8 + $0x68] sm:$0xff] }
 0x2ba   : > { %5837 = vmatprep.mubr.f32.mxu0 %v2801_v53  ;;  %v2897_v53 = vld [vmem:[#allocation2 + $0x68] sm:$0xfc] }
 0x2bb   : > { %v2824_v52 = vsel %vm1069_vm1, %v2822_v17, %v2826_v6  ;;  %v3027_v29 = vrot.slane %v2897_v53, 2 }
 0x2bc   : > { %4810 = vmatmul.mubr.f32.gmra.mrb[50].mxu1 %v8018_v32  ;;  %v2899_v32 = vld [vmem:[#allocation2 + $0x88] sm:$0x3] }
 0x2bd   : > { %5838 = vmatmul.mubr.f32.gmra.mrb[50].mxu0 %v2799_v50  ;;  %4815 = vmatprep.mubr.f32.mxu1 %v1700_v27  ;;  %v7300_v50 = vpack.c.bf16 %v6296_v35, %v6295_v20  ;;  %v8023_v27 = vld [vmem:[#allocation2 + $0x78] sm:$0xff]  ;;  %v3032_v43 = vrot.slane %v2899_v32, 2  ;;  %v2906_v35 = vld [vmem:[#allocation2 + $0xe0] sm:$0x3] }
 0x2be   : > { %5843 = vmatprep.mubr.f32.mxu0 %v2807_v14  ;;  %v3028_v60 = vrot.slane %v8023_v27, 2  ;;  %v2831_v14 = vsel %vm1069_vm1, %v2826_v6, %v2830_v44  ;;  %v2905_v6 = vld [vmem:[#allocation2 + $0xc8] sm:$0xfc]  ;;  %v2907_v44 = vld [vmem:[#allocation2 + $0xe8] sm:$0x3] }
 0x2bf   : > { %7301 = vmatpush1.bf16.msra.mxu1 %v7300_v50  ;;  %v3047_v17 = vrot.slane %v2905_v6, 2  ;;  %v3052_v20 = vrot.slane %v2907_v44, 2  ;;  %v2911_v32 = vld [vmem:[#allocation2 + $0x118] sm:$0x3]  ;;  %v2916_v6 = vld [vmem:[#allocation2 + $0x150] sm:$0xfc] }
 0x2c0   : > { %4816 = vmatmul.mubr.f32.gmra.mrb[52].mxu1 %v1699_v58  ;;  %v8025_v58 = vld [vmem:[#allocation2 + $0x70] sm:$0xff]  ;;  %v3029_v15 = vsel %vm1422_vm2, %v3027_v29, %v3028_v60  ;;  %7302 = vmatprep.subr.bf16.mxu1 %v8217_v54 }
 0x2c1   : > { %5844 = vmatmul.mubr.f32.gmra.mrb[52].mxu0 %v2804_v18  ;;  %4821 = vmatprep.mubr.f32.mxu1 %v8019_v23  ;;  %v3025_v34 = vrot.slane %v8025_v58, 2  ;;  %v3024_v18 = vrot.slane %v2896_v13, 2  ;;  %v2908_v13 = vld [vmem:[#allocation2 + $0xf0] sm:$0xfc] }
 0x2c2   : > { %5849 = vmatprep.mubr.f32.mxu0 %v2811_v9  ;;  %v8026_v9 = vld [vmem:[#allocation2 + $0x310] sm:$0xff] }
 0x2c3   : > { %v3026_v23 = vsel %vm1422_vm2, %v3024_v18, %v3025_v34  ;;  %v3031_v4 = vsel %vm1422_vm2, %v3025_v34, %v3030_v61  ;;  %v3054_v34 = vrot.slane %v2908_v13, 2  ;;  %v3062_v18 = vrot.slane %v2911_v32, 2  ;;  %v2912_v61 = vld [vmem:[#allocation2 + $0x120] sm:$0xfc] }
 0x2c4   : > { %4822 = vmatmul.mubr.f32.gmra.mrb[54].mxu1 %v8020_v57  ;;  %v2903_v57 = vld [vmem:[#allocation2 + $0xb8] sm:$0x3] }
 0x2c5   : > { %5850 = vmatmul.mubr.f32.gmra.mrb[54].mxu0 %v2809_v42  ;;  %4827 = vmatprep.mubr.f32.mxu1 %v1704_v62  ;;  %v7303_v42 = vpack.c.bf16 %v6298_v19, %v6297_v37  ;;  %v8027_v62 = vld [vmem:[#allocation2 + $0xa8] sm:$0xff]  ;;  %v3042_v0 = vrot.slane %v2903_v57, 2  ;;  %v3068_v19 = vrot.slane %v9824_v26, 2  ;;  %v2914_v57 = vld [vmem:[#allocation2 + $0x140] sm:$0x3] }
 0x2c6   : > { %5855 = vmatprep.mubr.f32.mxu0 %v2817_v25  ;;  %v3038_v38 = vrot.slane %v8027_v62, 2  ;;  %v3033_v25 = vsel %vm1422_vm2, %v3028_v60, %v3032_v43  ;;  %v3050_v60 = vrot.slane %v2906_v35, 2  ;;  %v6303_v43 = vld [vmem:[#allocation8 + $0x70] sm:$0xff]  ;;  %v3065_v62 = vrot.slane %v9828_v39, 2  ;;  %v2923_v35 = vld [vmem:[#allocation2 + $0x1a8] sm:$0x3] }
 0x2c7   : > { %7304 = vmatpush1.bf16.msra.mxu1 %v7303_v42  ;;  %v2915_v42 = vld [vmem:[#allocation2 + $0x148] sm:$0x3]  ;;  %v2917_v26 = vld [vmem:[#allocation2 + $0x158] sm:$0xfc] }
 0x2c8   : > { %4828 = vmatmul.mubr.f32.gmra.mrb[56].mxu1 %v1703_v12  ;;  %7305 = vmatprep.subr.bf16.mxu1 %v8217_v54  ;;  %v3035_v12 = vrot.slane %v8028_v49, 2  ;;  %v3051_v58 = vsel %vm1422_vm2, %v3045_v1, %v3050_v60  ;;  %v3072_v11 = vrot.slane %v2915_v42, 2  ;;  %v6305_v49 = vld [vmem:[#allocation8 + $0x80] sm:$0xff]  ;;  %v3092_v60 = vrot.slane %v2923_v35, 2  ;;  %v6312_v42 = vld [vmem:[#allocation8 + $0xb8] sm:$0xff] }
 0x2c9   : > { %5856 = vmatmul.mubr.f32.gmra.mrb[56].mxu0 %v2814_v59  ;;  %4833 = vmatprep.mubr.f32.mxu1 %v8021_v30  ;;  %v3039_v59 = vsel %vm1422_vm2, %v3037_v3, %v3038_v38  ;;  %v3040_v30 = vrot.slane %v2902_v56, 2  ;;  %v3077_v56 = vrot.slane %v2917_v26, 2 }
 0x2ca   : > { %5861 = vmatprep.mubr.f32.mxu0 %v2821_v8  ;;  %v6299_v8 = vld [vmem:[#allocation8 + $0x50] sm:$0xff]  ;;  %v3036_v46 = vsel %vm1422_vm2, %v3034_v22, %v3035_v12  ;;  %v3073_v39 = vsel %vm1422_vm2, %v3068_v19, %v3072_v11 }
 0x2cb   : > { %v7306_v31 = vpack.c.bf16 %v6300_v24, %v6299_v8  ;;  %v2919_v8 = vld [vmem:[#allocation2 + $0x178] sm:$0x3]  ;;  %v3075_v24 = vrot.slane %v9838_v40, 2 }
 0x2cc   : > { %4834 = vmatmul.mubr.f32.gmra.mrb[58].mxu1 %v8022_v2  ;;  %v3041_v2 = vsel %vm1422_vm2, %v3035_v12, %v3040_v30  ;;  %v6306_v12 = vld [vmem:[#allocation8 + $0x88] sm:$0xff] }
 0x2cd   : > { %5862 = vmatmul.mubr.f32.gmra.mrb[58].mxu0 %v2819_v55  ;;  %4839 = vmatprep.mubr.f32.mxu1 %v1708_v48  ;;  %v3048_v55 = vrot.slane %v9804_v36, 2  ;;  %v3043_v48 = vsel %vm1422_vm2, %v3038_v38, %v3042_v0  ;;  %v2909_v36 = vld [vmem:[#allocation2 + $0xf8] sm:$0xfc]  ;;  %v3078_v0 = vrot.slane %v9834_v5, 2  ;;  %v2921_v5 = vld [vmem:[#allocation2 + $0x188] sm:$0xfc] }
 0x2ce   : > { %5867 = vmatprep.mubr.f32.mxu0 %v2827_v33  ;;  %v2904_v33 = vld [vmem:[#allocation2 + $0xc0] sm:$0xfc]  ;;  %7307 = vmatpush1.bf16.msra.mxu1 %v7306_v31  ;;  %v3057_v29 = vrot.slane %v2909_v36, 2  ;;  %v8029_v36 = vld [vmem:[#allocation2 + $0x190] sm:$0xff] }
 0x2cf   : > { %7308 = vmatprep.subr.bf16.mxu1 %v8217_v54  ;;  %v3044_v53 = vrot.slane %v2904_v33, 2  ;;  %v3053_v10 = vsel %vm1422_vm2, %v3048_v55, %v3052_v20  ;;  %v3079_v30 = vsel %vm1422_vm2, %v3077_v56, %v3078_v0  ;;  %v6308_v33 = vld [vmem:[#allocation8 + $0x98] sm:$0xff] }
 0x2d0   : > { %4840 = vmatmul.mubr.f32.gmra.mrb[60].mxu1 %v1707_v47  ;;  %v3049_v47 = vsel %vm1422_vm2, %v3047_v17, %v3048_v55  ;;  %v3082_v55 = vrot.slane %v2919_v8, 2  ;;  %v6307_v17 = vld [vmem:[#allocation8 + $0x90] sm:$0xff]  ;;  %v2920_v20 = vld [vmem:[#allocation2 + $0x180] sm:$0xfc] }
 0x2d1   : > { %5868 = vmatmul.mubr.f32.gmra.mrb[60].mxu0 %v2824_v52  ;;  %4845 = vmatprep.mubr.f32.mxu1 %v8024_v28  ;;  %v6301_v52 = vld [vmem:[#allocation8 + $0x60] sm:$0xff]  ;;  %v3046_v27 = vsel %vm1422_vm2, %v3044_v53, %v3045_v1  ;;  %v3055_v28 = vrot.slane %v9818_v63, 2  ;;  %v7318_v44 = vpack.c.bf16 %v6308_v33, %v6307_v17  ;;  %v3088_v53 = vrot.slane %v9844_v41, 2  ;;  %v2925_v41 = vld [vmem:[#allocation2 + $0x1b8] sm:$0xfc] }
 0x2d2   : > { %5873 = vmatprep.mubr.f32.mxu0 %v2831_v14  ;;  %v7309_v50 = vpack.c.bf16 %v6302_v16, %v6301_v52  ;;  %v3058_v14 = vrot.slane %v9814_v51, 2  ;;  %v2913_v51 = vld [vmem:[#allocation2 + $0x128] sm:$0xfc]  ;;  %v3083_v40 = vsel %vm1422_vm2, %v3078_v0, %v3082_v55  ;;  %v3085_v52 = vrot.slane %v8029_v36, 2  ;;  %v2933_v8 = vld [vmem:[#allocation2 + $0x218] sm:$0xfc] }
 0x2d3   : > { %v3056_v7 = vsel %vm1422_vm2, %v3054_v34, %v3055_v28  ;;  %v3117_v33 = vrot.slane %v2933_v8, 2  ;;  %v2934_v36 = vld [vmem:[#allocation2 + $0x230] sm:$0x3] }
 0x2d4   : > { %4846 = vmatmul.mubr.f32.gmra.mrb[62].mxu1 %v8026_v9  ;;  %v7312_v9 = vpack.c.bf16 %v6304_v21, %v6303_v43  ;;  %v3063_v63 = vsel %vm1422_vm2, %v3058_v14, %v3062_v18  ;;  %v3097_v18 = vrot.slane %v2925_v41, 2  ;;  %v8031_v43 = vld [vmem:[#allocation2 + $0x1c0] sm:$0xff]  ;;  %v8036_v41 = vld [vmem:[#allocation2 + $0x258] sm:$0xff] }
 0x2d5   : > { %5874 = vmatmul.mubr.f32.gmra.mrb[62].mxu0 %v2829_v45  ;;  %7310 = vmatpush1.bf16.msra.mxu1 %v7309_v50  ;;  %v3059_v45 = vsel %vm1422_vm2, %v3057_v29, %v3058_v14  ;;  %v3084_v50 = vrot.slane %v2920_v20, 2  ;;  %v2922_v14 = vld [vmem:[#allocation2 + $0x1a0] sm:$0x3]  ;;  %v6310_v29 = vld [vmem:[#allocation8 + $0xa8] sm:$0xff]  ;;  %v3095_v21 = vrot.slane %v8031_v43, 2 }
 0x2d6   : > { %5944 = vmatprep.mubr.f32.mxu0 %v3029_v15  ;;  %7311 = vmatprep.subr.bf16.mxu1 %v8217_v54  ;;  %v2910_v15 = vld [vmem:[#allocation2 + $0x110] sm:$0x3]  ;;  %v2938_v43 = vld [vmem:[#allocation2 + $0x260] sm:$0x3] }
 0x2d7   : > { %v3060_v37 = vrot.slane %v2910_v15, 2  ;;  %v3086_v32 = vsel %vm1422_vm2, %v3084_v50, %v3085_v52  ;;  %v2924_v15 = vld [vmem:[#allocation2 + $0x1b0] sm:$0xfc]  ;;  %v6316_v50 = vld [vmem:[#allocation8 + $0xd8] sm:$0xff] }
 0x2d9   : > { %5945 = vmatmul.mubr.f32.vlgmr.msra.gmra.mrb[0].mxu0 %v3026_v23  ;;  %v3067_v23 = vrot.slane %v2913_v51, 2  ;;  %7313 = vmatpush1.bf16.msra.mxu1 %v7312_v9  ;;  %v3061_v38 = vsel %vm1422_vm2, %v3055_v28, %v3060_v37  ;;  %v3090_v28 = vrot.slane %v2922_v14, 2  ;;  %v2927_v51 = vld [vmem:[#allocation2 + $0x1d8] sm:$0x3]  ;;  %v3120_v14 = vrot.slane %v2934_v36, 2 }
 0x2da   : > { %5950 = vmatprep.mubr.f32.mxu0 %v3033_v25  ;;  %7314 = vmatprep.subr.bf16.mxu1 %v8217_v54  ;;  %v3064_v25 = vrot.slane %v2912_v61, 2  ;;  %v6311_v61 = vld [vmem:[#allocation8 + $0xb0] sm:$0xff] }
 0x2db   : > { %v3069_v3 = vsel %vm1422_vm2, %v3067_v23, %v3068_v19  ;;  %v3091_v9 = vsel %vm1422_vm2, %v3085_v52, %v3090_v28  ;;  %v3102_v19 = vrot.slane %v2927_v51, 2  ;;  %v2929_v23 = vld [vmem:[#allocation2 + $0x1e8] sm:$0xfc]  ;;  %v2939_v28 = vld [vmem:[#allocation2 + $0x268] sm:$0x3] }
 0x2dc   : > { %v3066_v22 = vsel %vm1422_vm2, %v3064_v25, %v3065_v62  ;;  %v3107_v26 = vrot.slane %v2929_v23, 2  ;;  %v2937_v52 = vld [vmem:[#allocation2 + $0x248] sm:$0xfc]  ;;  %v3132_v51 = vrot.slane %v2939_v28, 2  ;;  %v2949_v36 = vld [vmem:[#allocation2 + $0x2d8] sm:$0xfc] }
 0x2dd   : > { %5951 = vmatmul.mubr.f32.gmra.mrb[2].mxu0 %v3031_v4  ;;  %v7315_v4 = vpack.c.bf16 %v6306_v12, %v6305_v49  ;;  %v2928_v49 = vld [vmem:[#allocation2 + $0x1e0] sm:$0xfc]  ;;  %v2931_v12 = vld [vmem:[#allocation2 + $0x208] sm:$0x3] }
 0x2de   : > { %5956 = vmatprep.mubr.f32.mxu0 %v3039_v59  ;;  %v3070_v59 = vrot.slane %v2914_v57, 2  ;;  %v3104_v0 = vrot.slane %v2928_v49, 2  ;;  %v3112_v56 = vrot.slane %v2931_v12, 2  ;;  %v8038_v23 = vld [vmem:[#allocation2 + $0x288] sm:$0xff] }
 0x2df   : > { %7316 = vmatpush1.bf16.msra.mxu1 %v7315_v4  ;;  %v8033_v4 = vld [vmem:[#allocation2 + $0x1f0] sm:$0xff] }
 0x2e0   : > { %7317 = vmatprep.subr.bf16.mxu1 %v8217_v54  ;;  %v3071_v31 = vsel %vm1422_vm2, %v3065_v62, %v3070_v59  ;;  %v7324_v62 = vpack.c.bf16 %v6312_v42, %v6311_v61  ;;  %v3138_v61 = vrot.slane %v8038_v23, 2 }
 0x2e1   : > { %5957 = vmatmul.mubr.f32.gmra.mrb[4].mxu0 %v3036_v46  ;;  %v3074_v46 = vrot.slane %v2916_v6, 2  ;;  %v2930_v6 = vld [vmem:[#allocation2 + $0x200] sm:$0x3] }
 0x2e2   : > { %5962 = vmatprep.mubr.f32.mxu0 %v3043_v48  ;;  %v2918_v48 = vld [vmem:[#allocation2 + $0x170] sm:$0x3]  ;;  %v3110_v55 = vrot.slane %v2930_v6, 2 }
 0x2e3   : > { %v3076_v1 = vsel %vm1422_vm2, %v3074_v46, %v3075_v24  ;;  %7319 = vmatpush1.bf16.msra.mxu1 %v7318_v44  ;;  %v2932_v44 = vld [vmem:[#allocation2 + $0x210] sm:$0xfc] }
 0x2e4   : > { %7320 = vmatprep.subr.bf16.mxu1 %v8217_v54 }
 0x2e5   : > { %5963 = vmatmul.mubr.f32.gmra.mrb[6].mxu0 %v3041_v2  ;;  %v3080_v2 = vrot.slane %v2918_v48, 2  ;;  %v8034_v48 = vld [vmem:[#allocation2 + $0x228] sm:$0xff] }
 0x2e6   : > { %5968 = vmatprep.mubr.f32.mxu0 %v3049_v47  ;;  %v3087_v47 = vrot.slane %v2921_v5, 2  ;;  %v3118_v5 = vrot.slane %v8034_v48, 2 }
 0x2e7   : > { %v3081_v16 = vsel %vm1422_vm2, %v3075_v24, %v3080_v2  ;;  %v6313_v24 = vld [vmem:[#allocation8 + $0xc0] sm:$0xff] }
 0x2e8   : > { %v8035_v2 = vld [vmem:[#allocation2 + $0x220] sm:$0xff]  ;;  %v3119_v20 = vsel %vm1422_vm2, %v3117_v33, %v3118_v5  ;;  %v8041_v33 = vld [vmem:[#allocation2 + $0x2b0] sm:$0xff] }
 0x2e9   : > { %5969 = vmatmul.mubr.f32.gmra.mrb[8].mxu0 %v3046_v27  ;;  %v3089_v27 = vsel %vm1422_vm2, %v3087_v47, %v3088_v53  ;;  %v3114_v47 = vrot.slane %v2932_v44, 2  ;;  %v3145_v44 = vrot.slane %v8041_v33, 2 }
 0x2ea   : > { %5974 = vmatprep.mubr.f32.mxu0 %v3053_v10  ;;  %v6309_v10 = vld [vmem:[#allocation8 + $0xa0] sm:$0xff] }
 0x2eb   : > { %v7321_v13 = vpack.c.bf16 %v6310_v29, %v6309_v10  ;;  %v3128_v10 = vrot.slane %v8036_v41, 2  ;;  %v3157_v41 = vrot.slane %v2949_v36, 2 }
 0x2ed   : > { %5975 = vmatmul.mubr.f32.gmra.mrb[10].mxu0 %v3051_v58  ;;  %v8030_v58 = vld [vmem:[#allocation2 + $0x1c8] sm:$0xff]  ;;  %7322 = vmatpush1.bf16.msra.mxu1 %v7321_v13  ;;  %v3127_v13 = vrot.slane %v2937_v52, 2  ;;  %v3133_v42 = vsel %vm1422_vm2, %v3128_v10, %v3132_v51  ;;  %v2950_v51 = vld [vmem:[#allocation2 + $0x2f0] sm:$0x3] }
 0x2ee   : > { %5980 = vmatprep.mubr.f32.mxu0 %v3059_v45  ;;  %v3098_v34 = vrot.slane %v8030_v58, 2  ;;  %v3093_v45 = vsel %vm1422_vm2, %v3088_v53, %v3092_v60  ;;  %7323 = vmatprep.subr.bf16.mxu1 %v8217_v54  ;;  %v3115_v53 = vrot.slane %v8035_v2, 2  ;;  %v8037_v58 = vld [vmem:[#allocation2 + $0x250] sm:$0xff] }
 0x2f0   : > { %v3099_v37 = vsel %vm1422_vm2, %v3097_v18, %v3098_v34  ;;  %v3103_v57 = vsel %vm1422_vm2, %v3098_v34, %v3102_v19  ;;  %v3116_v60 = vsel %vm1422_vm2, %v3114_v47, %v3115_v53  ;;  %v3125_v34 = vrot.slane %v8037_v58, 2 }
 0x2f1   : > { %5981 = vmatmul.mubr.f32.gmra.mrb[12].mxu0 %v3056_v7  ;;  %v3094_v7 = vrot.slane %v2924_v15, 2  ;;  %7325 = vmatpush1.bf16.msra.mxu1 %v7324_v62  ;;  %v3129_v15 = vsel %vm1422_vm2, %v3127_v13, %v3128_v10  ;;  %v2948_v10 = vld [vmem:[#allocation2 + $0x2d0] sm:$0xfc]  ;;  %v2951_v13 = vld [vmem:[#allocation2 + $0x2f8] sm:$0x3] }
 0x2f2   : > { %5986 = vmatprep.mubr.f32.mxu0 %v3063_v63  ;;  %v2926_v63 = vld [vmem:[#allocation2 + $0x1d0] sm:$0x3]  ;;  %7326 = vmatprep.subr.bf16.mxu1 %v8217_v54 }
 0x2f3   : > { %v3100_v25 = vrot.slane %v2926_v63, 2  ;;  %v3130_v63 = vrot.slane %v2938_v43, 2 }
 0x2f5   : > { %5987 = vmatmul.mubr.f32.gmra.mrb[14].mxu0 %v3061_v38  ;;  %v3096_v38 = vsel %vm1422_vm2, %v3094_v7, %v3095_v21  ;;  %v3101_v59 = vsel %vm1422_vm2, %v3095_v21, %v3100_v25  ;;  %v2941_v21 = vld [vmem:[#allocation2 + $0x278] sm:$0xfc]  ;;  %v6318_v7 = vld [vmem:[#allocation8 + $0xe8] sm:$0xff]  ;;  %v2943_v25 = vld [vmem:[#allocation2 + $0x298] sm:$0x3] }
 0x2f6   : > { %5992 = vmatprep.mubr.f32.mxu0 %v3069_v3  ;;  %v8032_v3 = vld [vmem:[#allocation2 + $0x1f8] sm:$0xff]  ;;  %v3137_v62 = vrot.slane %v2941_v21, 2  ;;  %v2953_v21 = vld [vmem:[#allocation2 + $0x308] sm:$0xfc] }
 0x2f7   : > { %v3108_v11 = vrot.slane %v8032_v3, 2  ;;  %v8039_v3 = vld [vmem:[#allocation2 + $0x280] sm:$0xff] }
 0x2f8   : > { %v3139_v12 = vsel %vm1422_vm2, %v3137_v62, %v3138_v61 }
 0x2f9   : > { %5993 = vmatmul.mubr.f32.gmra.mrb[16].mxu0 %v3066_v22  ;;  %v3105_v22 = vrot.slane %v8033_v4, 2  ;;  %v3113_v17 = vsel %vm1422_vm2, %v3108_v11, %v3112_v56  ;;  %v3142_v4 = vrot.slane %v2943_v25, 2  ;;  %v8045_v25 = vld [vmem:[#allocation2 + $0x310] sm:$0xff] }
 0x2fa   : > { %5998 = vmatprep.mubr.f32.mxu0 %v3073_v39  ;;  %v3109_v39 = vsel %vm1422_vm2, %v3107_v26, %v3108_v11  ;;  %v3135_v11 = vrot.slane %v8039_v3, 2  ;;  %v3165_v3 = vrot.slane %v8045_v25, 2 }
 0x2fd   : > { %5999 = vmatmul.mubr.f32.gmra.mrb[18].mxu0 %v3071_v31  ;;  %v6314_v31 = vld [vmem:[#allocation8 + $0xc8] sm:$0xff] }
 0x2fe   : > { %6004 = vmatprep.mubr.f32.mxu0 %v3079_v30  ;;  %v7327_v46 = vpack.c.bf16 %v6314_v31, %v6313_v24  ;;  %v3106_v30 = vsel %vm1422_vm2, %v3104_v0, %v3105_v22  ;;  %v2945_v0 = vld [vmem:[#allocation2 + $0x2a8] sm:$0xfc]  ;;  %v3143_v24 = vsel %vm1422_vm2, %v3138_v61, %v3142_v4  ;;  %v3167_v61 = vrot.slane %v2953_v21, 2 }
 0x2ff   : > { %v3147_v31 = vrot.slane %v2945_v0, 2 }
 0x300   : > { %7328 = vmatpush1.bf16.msra.mxu1 %v7327_v46  ;;  %v2944_v46 = vld [vmem:[#allocation2 + $0x2a0] sm:$0xfc] }
 0x301   : > { %6005 = vmatmul.mubr.f32.gmra.mrb[20].mxu0 %v3076_v1  ;;  %v2935_v1 = vld [vmem:[#allocation2 + $0x238] sm:$0x3]  ;;  %7329 = vmatprep.subr.bf16.mxu1 %v8217_v54  ;;  %v3144_v2 = vrot.slane %v2944_v46, 2 }
 0x302   : > { %6010 = vmatprep.mubr.f32.mxu0 %v3083_v40  ;;  %v3111_v40 = vsel %vm1422_vm2, %v3105_v22, %v3110_v55  ;;  %v3122_v35 = vrot.slane %v2935_v1, 2  ;;  %v2942_v22 = vld [vmem:[#allocation2 + $0x290] sm:$0x3]  ;;  %v6320_v55 = vld [vmem:[#allocation8 + $0xf8] sm:$0xff] }
 0x303   : > { %v3140_v6 = vrot.slane %v2942_v22, 2  ;;  %v3146_v52 = vsel %vm1422_vm2, %v3144_v2, %v3145_v44  ;;  %v2954_v22 = vld [vmem:[#allocation2 + $0x320] sm:$0x3] }
 0x304   : > { %v3123_v29 = vsel %vm1422_vm2, %v3118_v5, %v3122_v35  ;;  %v2947_v5 = vld [vmem:[#allocation2 + $0x2c8] sm:$0x3] }
 0x305   : > { %6011 = vmatmul.mubr.f32.gmra.mrb[22].mxu0 %v3081_v16  ;;  %v6315_v16 = vld [vmem:[#allocation8 + $0xd0] sm:$0xff]  ;;  %v3141_v1 = vsel %vm1422_vm2, %v3135_v11, %v3140_v6  ;;  %v3152_v47 = vrot.slane %v2947_v5, 2  ;;  %v8046_v6 = vld [vmem:[#allocation2 + $0x8] sm:$0xff] }
 0x306   : > { %6016 = vmatprep.mubr.f32.mxu0 %v3089_v27  ;;  %v7330_v27 = vpack.c.bf16 %v6316_v50, %v6315_v16  ;;  %v8042_v50 = vld [vmem:[#allocation2 + $0x2e8] sm:$0xff] }
 0x308   : > { %7331 = vmatpush1.bf16.msra.mxu1 %v7330_v27  ;;  %v3158_v27 = vrot.slane %v8042_v50, 2 }
 0x309   : > { %6017 = vmatmul.mubr.f32.gmra.mrb[24].mxu0 %v3086_v32  ;;  %v2936_v32 = vld [vmem:[#allocation2 + $0x240] sm:$0xfc]  ;;  %7332 = vmatprep.subr.bf16.mxu1 %v8217_v54 }
 0x30a   : > { %6022 = vmatprep.mubr.f32.mxu0 %v3093_v45  ;;  %v3121_v45 = vsel %vm1422_vm2, %v3115_v53, %v3120_v14  ;;  %v3124_v18 = vrot.slane %v2936_v32, 2  ;;  %v8043_v32 = vld [vmem:[#allocation2 + $0x2e0] sm:$0xff] }
 0x30b   : > { %v3155_v28 = vrot.slane %v8043_v32, 2 }
 0x30c   : > { %v3126_v19 = vsel %vm1422_vm2, %v3124_v18, %v3125_v34  ;;  %v3159_v18 = vsel %vm1422_vm2, %v3157_v41, %v3158_v27 }
 0x30d   : > { %6023 = vmatmul.mubr.f32.gmra.mrb[26].mxu0 %v3091_v9  ;;  %v6317_v9 = vld [vmem:[#allocation8 + $0xe0] sm:$0xff] }
 0x30e   : > { %6028 = vmatprep.mubr.f32.mxu0 %v3099_v37  ;;  %v7333_v37 = vpack.c.bf16 %v6318_v7, %v6317_v9  ;;  %v3160_v7 = vrot.slane %v2950_v51, 2 }
 0x310   : > { %7334 = vmatpush1.bf16.msra.mxu1 %v7333_v37  ;;  %v8044_v37 = vld [vmem:[#allocation2 + $0x318] sm:$0xff] }
 0x311   : > { %6029 = vmatmul.mubr.f32.gmra.mrb[28].mxu0 %v3096_v38  ;;  %v2940_v38 = vld [vmem:[#allocation2 + $0x270] sm:$0xfc]  ;;  %7335 = vmatprep.subr.bf16.mxu1 %v8217_v54 }
 0x312   : > { %6034 = vmatprep.mubr.f32.mxu0 %v3103_v57  ;;  %v3131_v57 = vsel %vm1422_vm2, %v3125_v34, %v3130_v63  ;;  %v3134_v26 = vrot.slane %v2940_v38, 2  ;;  %v3154_v34 = vrot.slane %v2948_v10, 2  ;;  %v2955_v38 = vld [vmem:[#allocation2 + $0x328] sm:$0x3] }
 0x313   : > { %v3172_v4 = vrot.slane %v2955_v38, 2 }
 0x314   : > { %v3136_v54 = vsel %vm1422_vm2, %v3134_v26, %v3135_v11  ;;  %v3156_v9 = vsel %vm1422_vm2, %v3154_v34, %v3155_v28  ;;  %v3161_v11 = vsel %vm1422_vm2, %v3155_v28, %v3160_v7 }
 0x315   : > { %6035 = vmatmul.mubr.f32.gmra.mrb[30].mxu0 %v3101_v59 }
 0x316   : > { %6040 = vmatprep.mubr.f32.mxu0 %v3109_v39  ;;  %v8040_v39 = vld [vmem:[#allocation2 + $0x2b8] sm:$0xff] }
 0x317   : > { %v3148_v56 = vrot.slane %v8040_v39, 2  ;;  %v2957_v39 = vld [vmem:[#allocation2 + $0x338] sm:$0xfc] }
 0x319   : > { %6041 = vmatmul.mubr.f32.gmra.mrb[32].mxu0 %v3106_v30  ;;  %v6319_v30 = vld [vmem:[#allocation8 + $0xf0] sm:$0xff]  ;;  %v3153_v14 = vsel %vm1422_vm2, %v3148_v56, %v3152_v47  ;;  %v2958_v47 = vld [vmem:[#allocation2 + $0x350] sm:$0x3] }
 0x31a   : > { %6046 = vmatprep.mubr.f32.mxu0 %v3113_v17  ;;  %v7336_v17 = vpack.c.bf16 %v6320_v55, %v6319_v30  ;;  %v3177_v30 = vrot.slane %v2957_v39, 2  ;;  %v2956_v55 = vld [vmem:[#allocation2 + $0x330] sm:$0xfc] }
 0x31c   : > { %7337 = vmatpush1.bf16.msra.mxu1 %v7336_v17  ;;  %v2959_v17 = vld [vmem:[#allocation2 + $0x358] sm:$0x3] }
 0x31d   : > { %6047 = vmatmul.mubr.f32.gmra.mrb[34].mxu0 %v3111_v40  ;;  %v3149_v40 = vsel %vm1422_vm2, %v3147_v31, %v3148_v56 }
 0x31e   : > { %6052 = vmatprep.mubr.f32.mxu0 %v3119_v20  ;;  %v2946_v20 = vld [vmem:[#allocation2 + $0x2c0] sm:$0x3] }
 0x31f   : > { %v3150_v16 = vrot.slane %v2946_v20, 2 }
 0x321   : > { %6053 = vmatmul.mubr.f32.gmra.mrb[36].mxu0 %v3116_v60  ;;  %v3151_v58 = vsel %vm1422_vm2, %v3145_v44, %v3150_v16  ;;  %v3174_v44 = vrot.slane %v2956_v55, 2 }
 0x322   : > { %6058 = vmatprep.mubr.f32.mxu0 %v3123_v29 }
 0x325   : > { %6059 = vmatmul.mubr.f32.gmra.mrb[38].mxu0 %v3121_v45 }
 0x326   : > { %6064 = vmatprep.mubr.f32.mxu0 %v3129_v15  ;;  %v3162_v15 = vrot.slane %v2951_v13, 2 }
 0x328   : > { %v3163_v23 = vsel %vm1422_vm2, %v3158_v27, %v3162_v15 }
 0x329   : > { %6065 = vmatmul.mubr.f32.gmra.mrb[40].mxu0 %v3126_v19  ;;  %v3168_v19 = vrot.slane %v8044_v37, 2 }
 0x32a   : > { %6070 = vmatprep.mubr.f32.mxu0 %v3133_v42  ;;  %v2952_v42 = vld [vmem:[#allocation2 + $0x300] sm:$0xfc] }
 0x32b   : > { %v9976_v49 = vpop.f32.mrb[0].mxu1  ;;  %v3173_v46 = vsel %vm1422_vm2, %v3168_v19, %v3172_v4 }
 0x32c   : > { %v9979_v59 = vpop.f32.mrb[1].mxu1 }
 0x32d   : > { %6071 = vmatmul.mubr.f32.gmra.mrb[42].mxu0 %v3131_v57  ;;  %v3164_v57 = vrot.slane %v2952_v42, 2 }
 0x32e   : > { %6076 = vmatprep.mubr.f32.mxu0 %v3139_v12  ;;  %v3169_v12 = vsel %vm1422_vm2, %v3167_v61, %v3168_v19 }
 0x32f   : > { %v9982_v8 = vpop.f32.mrb[2].mxu1  ;;  %v3166_v56 = vsel %vm1422_vm2, %v3164_v57, %v3165_v3 }
 0x330   : > { %v9985_v48 = vpop.f32.mrb[3].mxu1 }
 0x331   : > { %6077 = vmatmul.mubr.f32.gmra.mrb[44].mxu0 %v3136_v54  ;;  %v3170_v54 = vrot.slane %v2954_v22, 2 }
 0x332   : > { %6082 = vmatprep.mubr.f32.mxu0 %v3143_v24  ;;  %v3178_v24 = vrot.slane %v8046_v6, 2 }
 0x333   : > { %v9988_v53 = vpop.f32.mrb[4].mxu1  ;;  %v3171_v33 = vsel %vm1422_vm2, %v3165_v3, %v3170_v54 }
 0x334   : > { %v9991_v35 = vpop.f32.mrb[5].mxu1  ;;  %v3179_v2 = vsel %vm1422_vm2, %v3177_v30, %v3178_v24  ;;  %v3176_v36 = vsel %vm1422_vm2, %v3174_v44, %v3178_v24 }
 0x335   : > { %6083 = vmatmul.mubr.f32.gmra.mrb[46].mxu0 %v3141_v1 }
 0x336   : > { %6088 = vmatprep.mubr.f32.mxu0 %v3149_v40  ;;  %v3182_v40 = vrot.slane %v2959_v17, 2 }
 0x337   : > { %v9994_v60 = vpop.f32.mrb[6].mxu1 }
 0x338   : > { %v9997_v29 = vpop.f32.mrb[7].mxu1  ;;  %v3183_v50 = vsel %vm1422_vm2, %v3178_v24, %v3182_v40 }
 0x339   : > { %6089 = vmatmul.mubr.f32.gmra.mrb[48].mxu0 %v3146_v52  ;;  %v3180_v52 = vrot.slane %v2958_v47, 2  ;;  %v6139_v47 = vlaneseq }
 0x33a   : > { %6094 = vmatprep.mubr.f32.mxu0 %v3153_v14 }
 0x33b   : > { %v10000_v45 = vpop.f32.mrb[8].mxu1  ;;  %v3181_v14 = vsel %vm1422_vm2, %v3178_v24, %v3180_v52 }
 0x33c   : > { %v10003_v43 = vpop.f32.mrb[9].mxu1 }
 0x33d   : > { %6095 = vmatmul.mubr.f32.gmra.mrb[50].mxu0 %v3151_v58 }
 0x33e   : > { %6100 = vmatprep.mubr.f32.mxu0 %v3159_v18 }
 0x33f   : > { %v10006_v63 = vpop.f32.mrb[10].mxu1 }
 0x340   : > { %v10009_v62 = vpop.f32.mrb[11].mxu1 }
 0x341   : > { %6101 = vmatmul.mubr.f32.gmra.mrb[52].mxu0 %v3156_v9 }
 0x342   : > { %6106 = vmatprep.mubr.f32.mxu0 %v3163_v23 }
 0x343   : > { %v10012_v26 = vpop.f32.mrb[12].mxu1 }
 0x344   : > { %v10015_v0 = vpop.f32.mrb[13].mxu1 }
 0x345   : > { %6107 = vmatmul.mubr.f32.gmra.mrb[54].mxu0 %v3161_v11 }
 0x346   : > { %6112 = vmatprep.mubr.f32.mxu0 %v3169_v12 }
 0x347   : > { %v10018_v31 = vpop.f32.mrb[14].mxu1 }
 0x348   : > { %v10021_v5 = vpop.f32.mrb[15].mxu1 }
 0x349   : > { %6113 = vmatmul.mubr.f32.gmra.mrb[56].mxu0 %v3166_v56 }
 0x34a   : > { %6118 = vmatprep.mubr.f32.mxu0 %v3173_v46 }
 0x34b   : > { %v10024_v1 = vpop.f32.mrb[16].mxu1 }
 0x34c   : > { %v10027_v20 = vpop.f32.mrb[17].mxu1 }
 0x34d   : > { %6119 = vmatmul.mubr.f32.gmra.mrb[58].mxu0 %v3171_v33 }
 0x34e   : > { %6124 = vmatprep.mubr.f32.mxu0 %v3179_v2 }
 0x34f   : > { %v10030_v16 = vpop.f32.mrb[18].mxu1 }
 0x350   : > { %v10033_v27 = vpop.f32.mrb[19].mxu1 }
 0x351   : > { %6125 = vmatmul.mubr.f32.gmra.mrb[60].mxu0 %v3176_v36 }
 0x352   : > { %6130 = vmatprep.mubr.f32.mxu0 %v3183_v50  ;;  %v6140_v50 = vshrl.u32 %v6139_v47, 7 }
 0x353   : > { %v10036_v41 = vpop.f32.mrb[20].mxu1 }
 0x354   : > { %v10038_v10 = vpop.f32.mrb[21].mxu1 }
 0x355   : > { %6131 = vmatmul.mubr.f32.gmra.mrb[62].mxu0 %v3181_v14 }
 0x357   : > { %v10040_v13 = vpop.f32.mrb[22].mxu1 }
 0x358   : > { %v10042_v32 = vpop.f32.mrb[23].mxu1 }
 0x35b   : > { %v10044_v28 = vpop.f32.mrb[24].mxu1 }
 0x35c   : > { %v10046_v58 = vpop.f32.mrb[25].mxu1 }
 0x35f   : > { %v10048_v34 = vpop.f32.mrb[26].mxu1 }
 0x360   : > { %v10050_v18 = vpop.f32.mrb[27].mxu1 }
 0x363   : > { %v10052_v15 = vpop.f32.mrb[28].mxu1 }
 0x364   : > { %v10054_v51 = vpop.f32.mrb[29].mxu1 }
 0x367   : > { %v10056_v21 = vpop.f32.mrb[30].mxu1 }
 0x368   : > { %v10058_v9 = vpop.f32.mrb[31].mxu1 }
 0x36b   : > { %v10060_v7 = vpop.f32.mrb[32].mxu1 }
 0x36c   : > { %v10062_v37 = vpop.f32.mrb[33].mxu1 }
 0x36f   : > { %v10064_v19 = vpop.f32.mrb[34].mxu1 }
 0x370   : > { %v10066_v23 = vpop.f32.mrb[35].mxu1 }
 0x373   : > { %v10068_v61 = vpop.f32.mrb[36].mxu1 }
 0x374   : > { %v10070_v42 = vpop.f32.mrb[37].mxu1 }
 0x377   : > { %v10072_v38 = vpop.f32.mrb[38].mxu1 }
 0x378   : > { %v10074_v25 = vpop.f32.mrb[39].mxu1 }
 0x37b   : > { %v10076_v3 = vpop.f32.mrb[40].mxu1 }
 0x37c   : > { %v10078_v11 = vpop.f32.mrb[41].mxu1 }
 0x37f   : > { %v10080_v57 = vpop.f32.mrb[42].mxu1 }
 0x380   : > { %v10082_v12 = vpop.f32.mrb[43].mxu1 }
 0x383   : > { %v10084_v4 = vpop.f32.mrb[44].mxu1 }
 0x384   : > { %v10086_v22 = vpop.f32.mrb[45].mxu1 }
 0x387   : > { %v10088_v39 = vpop.f32.mrb[46].mxu1 }
 0x388   : > { %10432 = vst [vmem:[#allocation14_spill] sm:$0xff] %v10088_v39  ;;  %v10090_v56 = vpop.f32.mrb[47].mxu1 }
 0x389   : > { %10433 = vst [vmem:[#allocation15_spill] sm:$0xff] %v10090_v56 }
 0x38b   : > { %v10092_v54 = vpop.f32.mrb[48].mxu1 }
 0x38c   : > { %10434 = vst [vmem:[#allocation16_spill] sm:$0xff] %v10092_v54  ;;  %v10094_v6 = vpop.f32.mrb[49].mxu1 }
 0x38d   : > { %10435 = vst [vmem:[#allocation17_spill] sm:$0xff] %v10094_v6 }
 0x38f   : > { %v10096_v24 = vpop.f32.mrb[50].mxu1 }
 0x390   : > { %10436 = vst [vmem:[#allocation18_spill] sm:$0xff] %v10096_v24  ;;  %v10098_v46 = vpop.f32.mrb[51].mxu1 }
 0x391   : > { %10437 = vst [vmem:[#allocation19_spill] sm:$0xff] %v10098_v46  ;;  %v6145_v46 = vsub.s32 1, %v6140_v50 }
 0x393   : > { %v10100_v30 = vpop.f32.mrb[52].mxu1 }
 0x394   : > { %10438 = vst [vmem:[#allocation20_spill] sm:$0xff] %v10100_v30  ;;  %v10102_v55 = vpop.f32.mrb[53].mxu1 }
 0x395   : > { %10439 = vst [vmem:[#allocation21_spill] sm:$0xff] %v10102_v55  ;;  %v6141_v55 = vsub.s32 0, %v6140_v50 }
 0x397   : > { %v10104_v17 = vpop.f32.mrb[54].mxu1 }
 0x398   : > { %10440 = vst [vmem:[#allocation22_spill] sm:$0xff] %v10104_v17  ;;  %v10106_v33 = vpop.f32.mrb[55].mxu1 }
 0x399   : > { %10441 = vst [vmem:[#allocation23_spill] sm:$0xff] %v10106_v33  ;;  %v6137_v33 = vld [vmem:[#allocation5] sm:$0x3] }
 0x39b   : > { %v10108_v44 = vpop.f32.mrb[56].mxu1 }
 0x39c   : > { %10442 = vst [vmem:[#allocation24_spill] sm:$0xff] %v10108_v44  ;;  %v10110_v2 = vpop.f32.mrb[57].mxu1  ;;  %v10124_v44 = vrot.slane %v6137_v33, %v6141_v55 }
 0x39d   : > { %10443 = vst [vmem:[#allocation25_spill] sm:$0xff] %v10110_v2  ;;  %v6213_v2 = vld [vmem:[#allocation7] sm:$0x3] }
 0x39f   : > { %v10112_v40 = vpop.f32.mrb[58].mxu1 }
 0x3a0   : > { %10444 = vst [vmem:[#allocation26_spill] sm:$0xff] %v10112_v40  ;;  %v10114_v36 = vpop.f32.mrb[59].mxu1  ;;  %v10126_v40 = vrot.slane %v6137_v33, %v6145_v46 }
 0x3a1   : > { %10445 = vst [vmem:[#allocation27_spill] sm:$0xff] %v10114_v36 }
 0x3a3   : > { %v10116_v52 = vpop.f32.mrb[60].mxu1 }
 0x3a4   : > { %10446 = vst [vmem:[#allocation28_spill] sm:$0xff] %v10116_v52  ;;  %v10118_v14 = vpop.f32.mrb[61].mxu1  ;;  %v10130_v52 = vrot.slane %v6213_v2, %v6145_v46 }
 0x3a5   : > { %10447 = vst [vmem:[#allocation29_spill] sm:$0xff] %v10118_v14  ;;  %v10133_v14 = vrot.slane %v6213_v2, %v6141_v55 }
 0x3a7   : > { %v10120_v30 = vpop.f32.mrb[62].mxu1 }
 0x3a8   : > { %10448 = vst [vmem:[#allocation30_spill] sm:$0xff] %v10120_v30  ;;  %v10122_v17 = vpop.f32.mrb[63].mxu1 }
 0x3a9   : > { %10449 = vst [vmem:[#allocation31_spill] sm:$0xff] %v10122_v17 }
 0x3ac   : > { %v5946_v24 = vpop.f32.mrb[0].mxu0 }
 0x3ad   : > { %v7338_v36 = vadd.f32 %v5946_v24, %v9976_v49  ;;  %v5948_v6 = vpop.f32.mrb[1].mxu0 }
 0x3ae   : > { %v7339_v47 = vadd.f32 %v5948_v6, %v9979_v59 }
 0x3af   : > { %v6149_v30 = vmul.f32 %v7338_v36, %v10124_v44 }
 0x3b0   : > { %v6150_v17 = vmul.f32 %v7339_v47, %v10126_v40  ;;  %v5952_v50 = vpop.f32.mrb[2].mxu0 }
 0x3b1   : > { %v7340_v54 = vadd.f32 %v5952_v50, %v9982_v8  ;;  %v5954_v56 = vpop.f32.mrb[3].mxu0  ;;  %v6225_v49 = vadd.f32 %v10133_v14, %v6149_v30 }
 0x3b2   : > { %v7341_v33 = vadd.f32 %v5954_v56, %v9985_v48  ;;  %v6226_v39 = vadd.f32 %v10130_v52, %v6150_v17 }
 0x3b3   : > { %v6151_v59 = vmul.f32 %v7340_v54, %v10124_v44 }
 0x3b4   : > { %v6152_v6 = vmul.f32 %v7341_v33, %v10126_v40  ;;  %v5958_v24 = vpop.f32.mrb[4].mxu0  ;;  %6392 = vmatprep.mubr.f32.mxu1 %v6226_v39 }
 0x3b5   : > { %v7342_v46 = vadd.f32 %v5958_v24, %v9988_v53  ;;  %v5960_v55 = vpop.f32.mrb[5].mxu0  ;;  %6393 = vmatmul.mubr.f32.vlgmr.msra.gmra.mrb[64].mxu1 %v6225_v49  ;;  %v6227_v56 = vadd.f32 %v10133_v14, %v6151_v59 }
 0x3b6   : > { %v7343_v2 = vadd.f32 %v5960_v55, %v9991_v35  ;;  %v6228_v8 = vadd.f32 %v10130_v52, %v6152_v6 }
 0x3b7   : > { %v6153_v48 = vmul.f32 %v7342_v46, %v10124_v44 }
 0x3b8   : > { %v6154_v30 = vmul.f32 %v7343_v2, %v10126_v40  ;;  %v5964_v17 = vpop.f32.mrb[6].mxu0  ;;  %6397 = vmatprep.mubr.f32.mxu1 %v6228_v8 }
 0x3b9   : > { %v7344_v54 = vadd.f32 %v5964_v17, %v9994_v60  ;;  %v5966_v36 = vpop.f32.mrb[7].mxu0  ;;  %6398 = vmatmul.mubr.f32.gmra.mrb[66].mxu1 %v6227_v56  ;;  %v6229_v47 = vadd.f32 %v10133_v14, %v6153_v48 }
 0x3ba   : > { %v7345_v53 = vadd.f32 %v5966_v36, %v9997_v29  ;;  %v6230_v39 = vadd.f32 %v10130_v52, %v6154_v30 }
 0x3bb   : > { %v6155_v35 = vmul.f32 %v7344_v54, %v10124_v44 }
 0x3bc   : > { %v6156_v50 = vmul.f32 %v7345_v53, %v10126_v40  ;;  %v5970_v33 = vpop.f32.mrb[8].mxu0  ;;  %6402 = vmatprep.mubr.f32.mxu1 %v6230_v39 }
 0x3bd   : > { %v7346_v49 = vadd.f32 %v5970_v33, %v10000_v45  ;;  %v5972_v59 = vpop.f32.mrb[9].mxu0  ;;  %6403 = vmatmul.mubr.f32.gmra.mrb[68].mxu1 %v6229_v47  ;;  %v6231_v24 = vadd.f32 %v10133_v14, %v6155_v35 }
 0x3be   : > { %v7347_v60 = vadd.f32 %v5972_v59, %v10003_v43  ;;  %v6232_v6 = vadd.f32 %v10130_v52, %v6156_v50 }
 0x3bf   : > { %v6157_v29 = vmul.f32 %v7346_v49, %v10124_v44 }
 0x3c0   : > { %v6158_v46 = vmul.f32 %v7347_v60, %v10126_v40  ;;  %v5976_v55 = vpop.f32.mrb[10].mxu0  ;;  %6407 = vmatprep.mubr.f32.mxu1 %v6232_v6 }
 0x3c1   : > { %v7348_v2 = vadd.f32 %v5976_v55, %v10006_v63  ;;  %v5978_v8 = vpop.f32.mrb[11].mxu0  ;;  %6408 = vmatmul.mubr.f32.gmra.mrb[70].mxu1 %v6231_v24  ;;  %v6233_v56 = vadd.f32 %v10133_v14, %v6157_v29 }
 0x3c2   : > { %v7349_v45 = vadd.f32 %v5978_v8, %v10009_v62  ;;  %v6234_v48 = vadd.f32 %v10130_v52, %v6158_v46 }
 0x3c3   : > { %v6159_v43 = vmul.f32 %v7348_v2, %v10124_v44 }
 0x3c4   : > { %v6160_v30 = vmul.f32 %v7349_v45, %v10126_v40  ;;  %v5982_v17 = vpop.f32.mrb[12].mxu0  ;;  %6412 = vmatprep.mubr.f32.mxu1 %v6234_v48 }
 0x3c5   : > { %v7350_v54 = vadd.f32 %v5982_v17, %v10012_v26  ;;  %v5984_v36 = vpop.f32.mrb[13].mxu0  ;;  %6413 = vmatmul.mubr.f32.gmra.mrb[72].mxu1 %v6233_v56  ;;  %v6235_v39 = vadd.f32 %v10133_v14, %v6159_v43 }
 0x3c6   : > { %v7351_v63 = vadd.f32 %v5984_v36, %v10015_v0  ;;  %v6236_v53 = vadd.f32 %v10130_v52, %v6160_v30 }
 0x3c7   : > { %v6161_v62 = vmul.f32 %v7350_v54, %v10124_v44 }
 0x3c8   : > { %v6162_v35 = vmul.f32 %v7351_v63, %v10126_v40  ;;  %v5988_v47 = vpop.f32.mrb[14].mxu0  ;;  %6417 = vmatprep.mubr.f32.mxu1 %v6236_v53 }
 0x3c9   : > { %v7352_v50 = vadd.f32 %v5988_v47, %v10018_v31  ;;  %v5990_v33 = vpop.f32.mrb[15].mxu0  ;;  %6418 = vmatmul.mubr.f32.gmra.mrb[74].mxu1 %v6235_v39  ;;  %v6237_v59 = vadd.f32 %v10133_v14, %v6161_v62 }
 0x3ca   : > { %v7353_v26 = vadd.f32 %v5990_v33, %v10021_v5  ;;  %v6238_v49 = vadd.f32 %v10130_v52, %v6162_v35 }
 0x3cb   : > { %v6163_v0 = vmul.f32 %v7352_v50, %v10124_v44 }
 0x3cc   : > { %v6164_v60 = vmul.f32 %v7353_v26, %v10126_v40  ;;  %v5994_v6 = vpop.f32.mrb[16].mxu0  ;;  %6422 = vmatprep.mubr.f32.mxu1 %v6238_v49 }
 0x3cd   : > { %v7354_v29 = vadd.f32 %v5994_v6, %v10024_v1  ;;  %v5996_v24 = vpop.f32.mrb[17].mxu0  ;;  %6423 = vmatmul.mubr.f32.gmra.mrb[76].mxu1 %v6237_v59  ;;  %v6239_v55 = vadd.f32 %v10133_v14, %v6163_v0 }
 0x3ce   : > { %v7355_v31 = vadd.f32 %v5996_v24, %v10027_v20  ;;  %v6240_v46 = vadd.f32 %v10130_v52, %v6164_v60 }
 0x3cf   : > { %v6165_v5 = vmul.f32 %v7354_v29, %v10124_v44 }
 0x3d0   : > { %v6166_v2 = vmul.f32 %v7355_v31, %v10126_v40  ;;  %v6000_v8 = vpop.f32.mrb[18].mxu0  ;;  %6427 = vmatprep.mubr.f32.mxu1 %v6240_v46 }
 0x3d1   : > { %v7356_v45 = vadd.f32 %v6000_v8, %v10030_v16  ;;  %v6002_v48 = vpop.f32.mrb[19].mxu0  ;;  %6428 = vmatmul.mubr.f32.gmra.mrb[78].mxu1 %v6239_v55  ;;  %v6241_v56 = vadd.f32 %v10133_v14, %v6165_v5 }
 0x3d2   : > { %v7357_v1 = vadd.f32 %v6002_v48, %v10033_v27  ;;  %v6242_v43 = vadd.f32 %v10130_v52, %v6166_v2 }
 0x3d3   : > { %v6167_v20 = vmul.f32 %v7356_v45, %v10124_v44 }
 0x3d4   : > { %v6168_v30 = vmul.f32 %v7357_v1, %v10126_v40  ;;  %v6006_v17 = vpop.f32.mrb[20].mxu0  ;;  %6432 = vmatprep.mubr.f32.mxu1 %v6242_v43 }
 0x3d5   : > { %v7358_v54 = vadd.f32 %v6006_v17, %v10036_v41  ;;  %v6008_v36 = vpop.f32.mrb[21].mxu0  ;;  %6433 = vmatmul.mubr.f32.gmra.mrb[80].mxu1 %v6241_v56  ;;  %v6243_v53 = vadd.f32 %v10133_v14, %v6167_v20 }
 0x3d6   : > { %v7359_v16 = vadd.f32 %v6008_v36, %v10038_v10  ;;  %v6244_v63 = vadd.f32 %v10130_v52, %v6168_v30 }
 0x3d7   : > { %v6169_v27 = vmul.f32 %v7358_v54, %v10124_v44 }
 0x3d8   : > { %v6170_v62 = vmul.f32 %v7359_v16, %v10126_v40  ;;  %v6012_v39 = vpop.f32.mrb[22].mxu0  ;;  %6437 = vmatprep.mubr.f32.mxu1 %v6244_v63 }
 0x3d9   : > { %v7360_v35 = vadd.f32 %v6012_v39, %v10040_v13  ;;  %v6014_v47 = vpop.f32.mrb[23].mxu0  ;;  %6438 = vmatmul.mubr.f32.gmra.mrb[82].mxu1 %v6243_v53  ;;  %v6245_v33 = vadd.f32 %v10133_v14, %v6169_v27 }
 0x3da   : > { %v7361_v41 = vadd.f32 %v6014_v47, %v10042_v32  ;;  %v6246_v50 = vadd.f32 %v10130_v52, %v6170_v62 }
 0x3db   : > { %v6171_v10 = vmul.f32 %v7360_v35, %v10124_v44 }
 0x3dc   : > { %v6172_v26 = vmul.f32 %v7361_v41, %v10126_v40  ;;  %v6018_v49 = vpop.f32.mrb[24].mxu0  ;;  %6442 = vmatprep.mubr.f32.mxu1 %v6246_v50 }
 0x3dd   : > { %v7362_v0 = vadd.f32 %v6018_v49, %v10044_v28  ;;  %v6020_v59 = vpop.f32.mrb[25].mxu0  ;;  %6443 = vmatmul.mubr.f32.gmra.mrb[84].mxu1 %v6245_v33  ;;  %v6247_v6 = vadd.f32 %v10133_v14, %v6171_v10 }
 0x3de   : > { %v7363_v13 = vadd.f32 %v6020_v59, %v10046_v58  ;;  %v6248_v60 = vadd.f32 %v10130_v52, %v6172_v26 }
 0x3df   : > { %v6173_v32 = vmul.f32 %v7362_v0, %v10124_v44 }
 0x3e0   : > { %v6174_v29 = vmul.f32 %v7363_v13, %v10126_v40  ;;  %v6024_v24 = vpop.f32.mrb[26].mxu0  ;;  %6447 = vmatprep.mubr.f32.mxu1 %v6248_v60 }
 0x3e1   : > { %v7364_v31 = vadd.f32 %v6024_v24, %v10048_v34  ;;  %v6026_v46 = vpop.f32.mrb[27].mxu0  ;;  %6448 = vmatmul.mubr.f32.gmra.mrb[86].mxu1 %v6247_v6  ;;  %v6249_v55 = vadd.f32 %v10133_v14, %v6173_v32 }
 0x3e2   : > { %v7365_v28 = vadd.f32 %v6026_v46, %v10050_v18  ;;  %v6250_v5 = vadd.f32 %v10130_v52, %v6174_v29 }
 0x3e3   : > { %v6175_v58 = vmul.f32 %v7364_v31, %v10124_v44 }
 0x3e4   : > { %v6176_v2 = vmul.f32 %v7365_v28, %v10126_v40  ;;  %v6030_v8 = vpop.f32.mrb[28].mxu0  ;;  %6452 = vmatprep.mubr.f32.mxu1 %v6250_v5 }
 0x3e5   : > { %v7366_v45 = vadd.f32 %v6030_v8, %v10052_v15  ;;  %v6032_v48 = vpop.f32.mrb[29].mxu0  ;;  %6453 = vmatmul.mubr.f32.gmra.mrb[88].mxu1 %v6249_v55  ;;  %v6251_v43 = vadd.f32 %v10133_v14, %v6175_v58 }
 0x3e6   : > { %v7367_v34 = vadd.f32 %v6032_v48, %v10054_v51  ;;  %v6252_v1 = vadd.f32 %v10130_v52, %v6176_v2 }
 0x3e7   : > { %v6177_v18 = vmul.f32 %v7366_v45, %v10124_v44 }
 0x3e8   : > { %v6178_v20 = vmul.f32 %v7367_v34, %v10126_v40  ;;  %v6036_v56 = vpop.f32.mrb[30].mxu0  ;;  %6457 = vmatprep.mubr.f32.mxu1 %v6252_v1 }
 0x3e9   : > { %v7368_v30 = vadd.f32 %v6036_v56, %v10056_v21  ;;  %v6038_v17 = vpop.f32.mrb[31].mxu0  ;;  %6458 = vmatmul.mubr.f32.gmra.mrb[90].mxu1 %v6251_v43  ;;  %v6253_v36 = vadd.f32 %v10133_v14, %v6177_v18 }
 0x3ea   : > { %v7369_v15 = vadd.f32 %v6038_v17, %v10058_v9  ;;  %v6254_v54 = vadd.f32 %v10130_v52, %v6178_v20 }
 0x3eb   : > { %v6179_v51 = vmul.f32 %v7368_v30, %v10124_v44 }
 0x3ec   : > { %v6180_v16 = vmul.f32 %v7369_v15, %v10126_v40  ;;  %v6042_v63 = vpop.f32.mrb[32].mxu0  ;;  %6462 = vmatprep.mubr.f32.mxu1 %v6254_v54 }
 0x3ed   : > { %v7370_v27 = vadd.f32 %v6042_v63, %v10060_v7  ;;  %v6044_v53 = vpop.f32.mrb[33].mxu0  ;;  %6463 = vmatmul.mubr.f32.gmra.mrb[92].mxu1 %v6253_v36  ;;  %v6255_v39 = vadd.f32 %v10133_v14, %v6179_v51 }
 0x3ee   : > { %v7371_v21 = vadd.f32 %v6044_v53, %v10062_v37  ;;  %v6256_v62 = vadd.f32 %v10130_v52, %v6180_v16  ;;  %v10450_v16 = vld [vmem:[#allocation14_spill] sm:$0xff]  ;;  %v10451_v53 = vld [vmem:[#allocation15_spill] sm:$0xff] }
 0x3ef   : > { %v6181_v9 = vmul.f32 %v7370_v27, %v10124_v44 }
 0x3f0   : > { %v6182_v35 = vmul.f32 %v7371_v21, %v10126_v40  ;;  %v6048_v47 = vpop.f32.mrb[34].mxu0  ;;  %6467 = vmatprep.mubr.f32.mxu1 %v6256_v62 }
 0x3f1   : > { %v7372_v41 = vadd.f32 %v6048_v47, %v10064_v19  ;;  %v6050_v50 = vpop.f32.mrb[35].mxu0  ;;  %6468 = vmatmul.mubr.f32.gmra.mrb[94].mxu1 %v6255_v39  ;;  %v6257_v33 = vadd.f32 %v10133_v14, %v6181_v9 }
 0x3f2   : > { %v7373_v7 = vadd.f32 %v6050_v50, %v10066_v23  ;;  %v6258_v10 = vadd.f32 %v10130_v52, %v6182_v35  ;;  %v10452_v35 = vld [vmem:[#allocation16_spill] sm:$0xff]  ;;  %v10453_v50 = vld [vmem:[#allocation17_spill] sm:$0xff] }
 0x3f3   : > { %v6183_v37 = vmul.f32 %v7372_v41, %v10124_v44 }
 0x3f4   : > { %v6184_v26 = vmul.f32 %v7373_v7, %v10126_v40  ;;  %v6054_v49 = vpop.f32.mrb[36].mxu0  ;;  %6472 = vmatprep.mubr.f32.mxu1 %v6258_v10 }
 0x3f5   : > { %v7374_v0 = vadd.f32 %v6054_v49, %v10068_v61  ;;  %v6056_v59 = vpop.f32.mrb[37].mxu0  ;;  %6473 = vmatmul.mubr.f32.gmra.mrb[96].mxu1 %v6257_v33  ;;  %v6259_v60 = vadd.f32 %v10133_v14, %v6183_v37 }
 0x3f6   : > { %v7375_v19 = vadd.f32 %v6056_v59, %v10070_v42  ;;  %v6260_v13 = vadd.f32 %v10130_v52, %v6184_v26 }
 0x3f7   : > { %v6185_v23 = vmul.f32 %v7374_v0, %v10124_v44  ;;  %v10454_v0 = vld [vmem:[#allocation18_spill] sm:$0xff] }
 0x3f8   : > { %v6186_v32 = vmul.f32 %v7375_v19, %v10126_v40  ;;  %v6060_v6 = vpop.f32.mrb[38].mxu0  ;;  %6477 = vmatprep.mubr.f32.mxu1 %v6260_v13  ;;  %v10455_v13 = vld [vmem:[#allocation19_spill] sm:$0xff] }
 0x3f9   : > { %v7376_v29 = vadd.f32 %v6060_v6, %v10072_v38  ;;  %v6062_v24 = vpop.f32.mrb[39].mxu0  ;;  %6478 = vmatmul.mubr.f32.gmra.mrb[98].mxu1 %v6259_v60  ;;  %v6261_v46 = vadd.f32 %v10133_v14, %v6185_v23 }
 0x3fa   : > { %v7377_v61 = vadd.f32 %v6062_v24, %v10074_v25  ;;  %v6262_v31 = vadd.f32 %v10130_v52, %v6186_v32 }
 0x3fb   : > { %v6187_v42 = vmul.f32 %v7376_v29, %v10124_v44 }
 0x3fc   : > { %v6188_v28 = vmul.f32 %v7377_v61, %v10126_v40  ;;  %v6066_v5 = vpop.f32.mrb[40].mxu0  ;;  %6482 = vmatprep.mubr.f32.mxu1 %v6262_v31  ;;  %v10456_v61 = vld [vmem:[#allocation20_spill] sm:$0xff] }
 0x3fd   : > { %v7378_v58 = vadd.f32 %v6066_v5, %v10076_v3  ;;  %v6068_v55 = vpop.f32.mrb[41].mxu0  ;;  %6483 = vmatmul.mubr.f32.gmra.mrb[100].mxu1 %v6261_v46  ;;  %v6263_v8 = vadd.f32 %v10133_v14, %v6187_v42  ;;  %v10457_v46 = vld [vmem:[#allocation21_spill] sm:$0xff] }
 0x3fe   : > { %v7379_v38 = vadd.f32 %v6068_v55, %v10078_v11  ;;  %v6264_v2 = vadd.f32 %v10130_v52, %v6188_v28 }
 0x3ff   : > { %v6189_v25 = vmul.f32 %v7378_v58, %v10124_v44 }
 0x400   : > { %v6190_v45 = vmul.f32 %v7379_v38, %v10126_v40  ;;  %v6072_v48 = vpop.f32.mrb[42].mxu0  ;;  %6487 = vmatprep.mubr.f32.mxu1 %v6264_v2 }
 0x401   : > { %v7380_v34 = vadd.f32 %v6072_v48, %v10080_v57  ;;  %v6074_v1 = vpop.f32.mrb[43].mxu0  ;;  %6488 = vmatmul.mubr.f32.gmra.mrb[102].mxu1 %v6263_v8  ;;  %v6265_v43 = vadd.f32 %v10133_v14, %v6189_v25  ;;  %v10458_v25 = vld [vmem:[#allocation22_spill] sm:$0xff]  ;;  %v10459_v48 = vld [vmem:[#allocation23_spill] sm:$0xff] }
 0x402   : > { %v7381_v3 = vadd.f32 %v6074_v1, %v10082_v12  ;;  %v6266_v18 = vadd.f32 %v10130_v52, %v6190_v45 }
 0x403   : > { %v6191_v11 = vmul.f32 %v7380_v34, %v10124_v44 }
 0x404   : > { %v6192_v20 = vmul.f32 %v7381_v3, %v10126_v40  ;;  %v6078_v56 = vpop.f32.mrb[44].mxu0  ;;  %6492 = vmatprep.mubr.f32.mxu1 %v6266_v18 }
 0x405   : > { %v7382_v30 = vadd.f32 %v6078_v56, %v10084_v4  ;;  %v6080_v17 = vpop.f32.mrb[45].mxu0  ;;  %6493 = vmatmul.mubr.f32.gmra.mrb[104].mxu1 %v6265_v43  ;;  %v6267_v54 = vadd.f32 %v10133_v14, %v6191_v11 }
 0x406   : > { %v7383_v57 = vadd.f32 %v6080_v17, %v10086_v22  ;;  %v6268_v15 = vadd.f32 %v10130_v52, %v6192_v20  ;;  %v10460_v20 = vld [vmem:[#allocation24_spill] sm:$0xff]  ;;  %v10461_v17 = vld [vmem:[#allocation25_spill] sm:$0xff] }
 0x407   : > { %v6193_v12 = vmul.f32 %v7382_v30, %v10124_v44 }
 0x408   : > { %v6194_v51 = vmul.f32 %v7383_v57, %v10126_v40  ;;  %v6084_v36 = vpop.f32.mrb[46].mxu0  ;;  %6497 = vmatprep.mubr.f32.mxu1 %v6268_v15 }
 0x409   : > { %v7384_v63 = vadd.f32 %v6084_v36, %v10450_v16  ;;  %v6086_v27 = vpop.f32.mrb[47].mxu0  ;;  %6498 = vmatmul.mubr.f32.gmra.mrb[106].mxu1 %v6267_v54  ;;  %v6269_v62 = vadd.f32 %v10133_v14, %v6193_v12  ;;  %v10462_v16 = vld [vmem:[#allocation26_spill] sm:$0xff] }
 0x40a   : > { %v7385_v4 = vadd.f32 %v6086_v27, %v10451_v53  ;;  %v6270_v21 = vadd.f32 %v10130_v52, %v6194_v51  ;;  %v10463_v53 = vld [vmem:[#allocation27_spill] sm:$0xff] }
 0x40b   : > { %v6195_v22 = vmul.f32 %v7384_v63, %v10124_v44 }
 0x40c   : > { %v6196_v9 = vmul.f32 %v7385_v4, %v10126_v40  ;;  %v6090_v39 = vpop.f32.mrb[48].mxu0  ;;  %6502 = vmatprep.mubr.f32.mxu1 %v6270_v21 }
 0x40d   : > { %v7386_v47 = vadd.f32 %v6090_v39, %v10452_v35  ;;  %v6092_v41 = vpop.f32.mrb[49].mxu0  ;;  %6503 = vmatmul.mubr.f32.gmra.mrb[108].mxu1 %v6269_v62  ;;  %v6271_v33 = vadd.f32 %v10133_v14, %v6195_v22  ;;  %v10464_v35 = vld [vmem:[#allocation28_spill] sm:$0xff] }
 0x40e   : > { %v7387_v7 = vadd.f32 %v6092_v41, %v10453_v50  ;;  %v6272_v10 = vadd.f32 %v10130_v52, %v6196_v9  ;;  %v10465_v50 = vld [vmem:[#allocation29_spill] sm:$0xff] }
 0x40f   : > { %v6197_v37 = vmul.f32 %v7386_v47, %v10124_v44 }
 0x410   : > { %v6198_v26 = vmul.f32 %v7387_v7, %v10126_v40  ;;  %v6096_v49 = vpop.f32.mrb[50].mxu0  ;;  %6507 = vmatprep.mubr.f32.mxu1 %v6272_v10 }
 0x411   : > { %v7388_v59 = vadd.f32 %v6096_v49, %v10454_v0  ;;  %v6098_v19 = vpop.f32.mrb[51].mxu0  ;;  %6508 = vmatmul.mubr.f32.gmra.mrb[110].mxu1 %v6271_v33  ;;  %v6273_v6 = vadd.f32 %v10133_v14, %v6197_v37  ;;  %v10466_v0 = vld [vmem:[#allocation30_spill] sm:$0xff] }
 0x412   : > { %v7389_v23 = vadd.f32 %v6098_v19, %v10455_v13  ;;  %v6274_v60 = vadd.f32 %v10130_v52, %v6198_v26  ;;  %v10467_v13 = vld [vmem:[#allocation31_spill] sm:$0xff] }
 0x413   : > { %v6199_v32 = vmul.f32 %v7388_v59, %v10124_v44 }
 0x414   : > { %v6200_v29 = vmul.f32 %v7389_v23, %v10126_v40  ;;  %v6102_v24 = vpop.f32.mrb[52].mxu0  ;;  %6512 = vmatprep.mubr.f32.mxu1 %v6274_v60 }
 0x415   : > { %v7390_v31 = vadd.f32 %v6102_v24, %v10456_v61  ;;  %v6104_v42 = vpop.f32.mrb[53].mxu0  ;;  %6513 = vmatmul.mubr.f32.gmra.mrb[112].mxu1 %v6273_v6  ;;  %v6275_v55 = vadd.f32 %v10133_v14, %v6199_v32 }
 0x416   : > { %v7391_v28 = vadd.f32 %v6104_v42, %v10457_v46  ;;  %v6276_v5 = vadd.f32 %v10130_v52, %v6200_v29 }
 0x417   : > { %v6201_v58 = vmul.f32 %v7390_v31, %v10124_v44  ;;  %v10325_v31 = vld [vmem:[#allocation10] ss:$0 sm:$0xff] }
 0x418   : > { %v6202_v38 = vmul.f32 %v7391_v28, %v10126_v40  ;;  %v6108_v2 = vpop.f32.mrb[54].mxu0  ;;  %6517 = vmatprep.mubr.f32.mxu1 %v6276_v5 }
 0x419   : > { %v7392_v8 = vadd.f32 %v6108_v2, %v10458_v25  ;;  %v6110_v45 = vpop.f32.mrb[55].mxu0  ;;  %6518 = vmatmul.mubr.f32.gmra.mrb[114].mxu1 %v6275_v55  ;;  %v6277_v18 = vadd.f32 %v10133_v14, %v6201_v58 }
 0x41a   : > { %v7393_v34 = vadd.f32 %v6110_v45, %v10459_v48  ;;  %v6278_v1 = vadd.f32 %v10130_v52, %v6202_v38 }
 0x41b   : > { %v6203_v3 = vmul.f32 %v7392_v8, %v10124_v44 }
 0x41c   : > { %v6204_v11 = vmul.f32 %v7393_v34, %v10126_v40  ;;  %v6114_v43 = vpop.f32.mrb[56].mxu0  ;;  %6522 = vmatprep.mubr.f32.mxu1 %v6278_v1 }
 0x41d   : > { %v7394_v56 = vadd.f32 %v6114_v43, %v10460_v20  ;;  %v6116_v30 = vpop.f32.mrb[57].mxu0  ;;  %6523 = vmatmul.mubr.f32.gmra.mrb[116].mxu1 %v6277_v18  ;;  %v6279_v54 = vadd.f32 %v10133_v14, %v6203_v3 }
 0x41e   : > { %v7395_v57 = vadd.f32 %v6116_v30, %v10461_v17  ;;  %v6280_v15 = vadd.f32 %v10130_v52, %v6204_v11 }
 0x41f   : > { %v6205_v12 = vmul.f32 %v7394_v56, %v10124_v44 }
 0x420   : > { %v6206_v51 = vmul.f32 %v7395_v57, %v10126_v40  ;;  %v6120_v36 = vpop.f32.mrb[58].mxu0  ;;  %6527 = vmatprep.mubr.f32.mxu1 %v6280_v15 }
 0x421   : > { %v7396_v63 = vadd.f32 %v6120_v36, %v10462_v16  ;;  %v6122_v27 = vpop.f32.mrb[59].mxu0  ;;  %6528 = vmatmul.mubr.f32.gmra.mrb[118].mxu1 %v6279_v54  ;;  %v6281_v62 = vadd.f32 %v10133_v14, %v6205_v12 }
 0x422   : > { %v7397_v4 = vadd.f32 %v6122_v27, %v10463_v53  ;;  %v6282_v21 = vadd.f32 %v10130_v52, %v6206_v51 }
 0x423   : > { %v6207_v22 = vmul.f32 %v7396_v63, %v10124_v44 }
 0x424   : > { %v6208_v9 = vmul.f32 %v7397_v4, %v10126_v40  ;;  %v6126_v39 = vpop.f32.mrb[60].mxu0  ;;  %6532 = vmatprep.mubr.f32.mxu1 %v6282_v21 }
 0x425   : > { %v7398_v47 = vadd.f32 %v6126_v39, %v10464_v35  ;;  %v6128_v41 = vpop.f32.mrb[61].mxu0  ;;  %6533 = vmatmul.mubr.f32.gmra.mrb[120].mxu1 %v6281_v62  ;;  %v6283_v33 = vadd.f32 %v10133_v14, %v6207_v22 }
 0x426   : > { %v7399_v7 = vadd.f32 %v6128_v41, %v10465_v50  ;;  %v6284_v10 = vadd.f32 %v10130_v52, %v6208_v9 }
 0x427   : > { %v6209_v37 = vmul.f32 %v7398_v47, %v10124_v44 }
 0x428   : > { %v6210_v26 = vmul.f32 %v7399_v7, %v10126_v40  ;;  %v6132_v49 = vpop.f32.mrb[62].mxu0  ;;  %6537 = vmatprep.mubr.f32.mxu1 %v6284_v10 }
 0x429   : > { %v7400_v59 = vadd.f32 %v6132_v49, %v10466_v0  ;;  %v6134_v19 = vpop.f32.mrb[63].mxu0  ;;  %6538 = vmatmul.mubr.f32.gmra.mrb[122].mxu1 %v6283_v33  ;;  %v6285_v6 = vadd.f32 %v10133_v14, %v6209_v37 }
 0x42a   : > { %v7401_v23 = vadd.f32 %v6134_v19, %v10467_v13  ;;  %v6286_v60 = vadd.f32 %v10130_v52, %v6210_v26 }
 0x42b   : > { %v6211_v32 = vmul.f32 %v7400_v59, %v10124_v44 }
 0x42c   : > { %v6212_v29 = vmul.f32 %v7401_v23, %v10126_v40  ;;  %6542 = vmatprep.mubr.f32.mxu1 %v6286_v60 }
 0x42d   : > { %6543 = vmatmul.mubr.f32.gmra.mrb[124].mxu1 %v6285_v6  ;;  %v6287_v61 = vadd.f32 %v10133_v14, %v6211_v32 }
 0x42e   : > { %v6288_v24 = vadd.f32 %v10130_v52, %v6212_v29 }
 0x430   : > { %6547 = vmatprep.mubr.f32.mxu1 %v6288_v24 }
 0x431   : > { %6548 = vmatmul.mubr.f32.gmra.mrb[126].mxu1 %v6287_v61 }
 0x488   : > { %v6394_v44 = vpop.f32.mrb[64].mxu1 }
 0x489   : > { %v6395_v40 = vadd.f32 %v10325_v31, %v6394_v44  ;;  %v6396_v52 = vpop.f32.mrb[65].mxu1 }
 0x48b   : > { %6553 = vst [vmem:[%s10330_s30] sm:$0xff] %v6395_v40 }
 0x48c   : > { %v6399_v14 = vpop.f32.mrb[66].mxu1 }
 0x48d   : > { %v6400_v42 = vadd.f32 %v10325_v31, %v6399_v14  ;;  %v6401_v46 = vpop.f32.mrb[67].mxu1 }
 0x48f   : > { %6554 = vst [vmem:[%s10330_s30 + $0x8] sm:$0xff] %v6400_v42 }
 0x490   : > { %v6404_v28 = vpop.f32.mrb[68].mxu1 }
 0x491   : > { %v6405_v5 = vadd.f32 %v10325_v31, %v6404_v28  ;;  %v6406_v58 = vpop.f32.mrb[69].mxu1 }
 0x493   : > { %6555 = vst [vmem:[%s10330_s30 + $0x10] sm:$0xff] %v6405_v5 }
 0x494   : > { %v6409_v55 = vpop.f32.mrb[70].mxu1 }
 0x495   : > { %v6410_v38 = vadd.f32 %v10325_v31, %v6409_v55  ;;  %v6411_v2 = vpop.f32.mrb[71].mxu1 }
 0x497   : > { %6556 = vst [vmem:[%s10330_s30 + $0x18] sm:$0xff] %v6410_v38 }
 0x498   : > { %v6414_v25 = vpop.f32.mrb[72].mxu1 }
 0x499   : > { %v6415_v8 = vadd.f32 %v10325_v31, %v6414_v25  ;;  %v6416_v45 = vpop.f32.mrb[73].mxu1 }
 0x49b   : > { %6557 = vst [vmem:[%s10330_s30 + $0x20] sm:$0xff] %v6415_v8 }
 0x49c   : > { %v6419_v48 = vpop.f32.mrb[74].mxu1 }
 0x49d   : > { %v6420_v34 = vadd.f32 %v10325_v31, %v6419_v48  ;;  %v6421_v1 = vpop.f32.mrb[75].mxu1 }
 0x49f   : > { %6558 = vst [vmem:[%s10330_s30 + $0x28] sm:$0xff] %v6420_v34 }
 0x4a0   : > { %v6424_v3 = vpop.f32.mrb[76].mxu1 }
 0x4a1   : > { %v6425_v18 = vadd.f32 %v10325_v31, %v6424_v3  ;;  %v6426_v11 = vpop.f32.mrb[77].mxu1 }
 0x4a3   : > { %6559 = vst [vmem:[%s10330_s30 + $0x30] sm:$0xff] %v6425_v18 }
 0x4a4   : > { %v6429_v43 = vpop.f32.mrb[78].mxu1 }
 0x4a5   : > { %v6430_v20 = vadd.f32 %v10325_v31, %v6429_v43  ;;  %v6431_v56 = vpop.f32.mrb[79].mxu1 }
 0x4a7   : > { %6560 = vst [vmem:[%s10330_s30 + $0x38] sm:$0xff] %v6430_v20 }
 0x4a8   : > { %v6434_v30 = vpop.f32.mrb[80].mxu1 }
 0x4a9   : > { %v6435_v17 = vadd.f32 %v10325_v31, %v6434_v30  ;;  %v6436_v57 = vpop.f32.mrb[81].mxu1 }
 0x4ab   : > { %6561 = vst [vmem:[%s10330_s30 + $0x40] sm:$0xff] %v6435_v17 }
 0x4ac   : > { %v6439_v15 = vpop.f32.mrb[82].mxu1 }
 0x4ad   : > { %v6440_v12 = vadd.f32 %v10325_v31, %v6439_v15  ;;  %v6441_v54 = vpop.f32.mrb[83].mxu1 }
 0x4af   : > { %6562 = vst [vmem:[%s10330_s30 + $0x48] sm:$0xff] %v6440_v12 }
 0x4b0   : > { %v6444_v51 = vpop.f32.mrb[84].mxu1 }
 0x4b1   : > { %v6445_v36 = vadd.f32 %v10325_v31, %v6444_v51  ;;  %v6446_v16 = vpop.f32.mrb[85].mxu1 }
 0x4b3   : > { %6563 = vst [vmem:[%s10330_s30 + $0x50] sm:$0xff] %v6445_v36 }
 0x4b4   : > { %v6449_v63 = vpop.f32.mrb[86].mxu1 }
 0x4b5   : > { %v6450_v27 = vadd.f32 %v10325_v31, %v6449_v63  ;;  %v6451_v53 = vpop.f32.mrb[87].mxu1 }
 0x4b7   : > { %6564 = vst [vmem:[%s10330_s30 + $0x58] sm:$0xff] %v6450_v27 }
 0x4b8   : > { %v6454_v4 = vpop.f32.mrb[88].mxu1 }
 0x4b9   : > { %v6455_v21 = vadd.f32 %v10325_v31, %v6454_v4  ;;  %v6456_v22 = vpop.f32.mrb[89].mxu1 }
 0x4bb   : > { %6565 = vst [vmem:[%s10330_s30 + $0x60] sm:$0xff] %v6455_v21 }
 0x4bc   : > { %v6459_v62 = vpop.f32.mrb[90].mxu1 }
 0x4bd   : > { %v6460_v9 = vadd.f32 %v10325_v31, %v6459_v62  ;;  %v6461_v39 = vpop.f32.mrb[91].mxu1 }
 0x4bf   : > { %6566 = vst [vmem:[%s10330_s30 + $0x68] sm:$0xff] %v6460_v9 }
 0x4c0   : > { %v6464_v35 = vpop.f32.mrb[92].mxu1 }
 0x4c1   : > { %v6465_v47 = vadd.f32 %v10325_v31, %v6464_v35  ;;  %v6466_v41 = vpop.f32.mrb[93].mxu1 }
 0x4c3   : > { %6567 = vst [vmem:[%s10330_s30 + $0x70] sm:$0xff] %v6465_v47 }
 0x4c4   : > { %v6469_v50 = vpop.f32.mrb[94].mxu1 }
 0x4c5   : > { %v6470_v7 = vadd.f32 %v10325_v31, %v6469_v50  ;;  %v6471_v10 = vpop.f32.mrb[95].mxu1 }
 0x4c7   : > { %6568 = vst [vmem:[%s10330_s30 + $0x78] sm:$0xff] %v6470_v7 }
 0x4c8   : > { %v6474_v37 = vpop.f32.mrb[96].mxu1 }
 0x4c9   : > { %v6475_v33 = vadd.f32 %v10325_v31, %v6474_v37  ;;  %v6476_v26 = vpop.f32.mrb[97].mxu1 }
 0x4cb   : > { %6569 = vst [vmem:[%s10330_s30 + $0x80] sm:$0xff] %v6475_v33 }
 0x4cc   : > { %v6479_v49 = vpop.f32.mrb[98].mxu1 }
 0x4cd   : > { %v6480_v0 = vadd.f32 %v10325_v31, %v6479_v49  ;;  %v6481_v59 = vpop.f32.mrb[99].mxu1 }
 0x4cf   : > { %6570 = vst [vmem:[%s10330_s30 + $0x88] sm:$0xff] %v6480_v0 }
 0x4d0   : > { %v6484_v19 = vpop.f32.mrb[100].mxu1 }
 0x4d1   : > { %v6485_v13 = vadd.f32 %v10325_v31, %v6484_v19  ;;  %v6486_v23 = vpop.f32.mrb[101].mxu1 }
 0x4d3   : > { %6571 = vst [vmem:[%s10330_s30 + $0x90] sm:$0xff] %v6485_v13 }
 0x4d4   : > { %v6489_v60 = vpop.f32.mrb[102].mxu1 }
 0x4d5   : > { %v6490_v32 = vadd.f32 %v10325_v31, %v6489_v60  ;;  %v6491_v6 = vpop.f32.mrb[103].mxu1 }
 0x4d7   : > { %6572 = vst [vmem:[%s10330_s30 + $0x98] sm:$0xff] %v6490_v32 }
 0x4d8   : > { %v6494_v29 = vpop.f32.mrb[104].mxu1 }
 0x4d9   : > { %v6495_v24 = vadd.f32 %v10325_v31, %v6494_v29  ;;  %v6496_v61 = vpop.f32.mrb[105].mxu1 }
 0x4db   : > { %6573 = vst [vmem:[%s10330_s30 + $0xa0] sm:$0xff] %v6495_v24 }
 0x4dc   : > { %v6499_v44 = vpop.f32.mrb[106].mxu1 }
 0x4dd   : > { %v6500_v40 = vadd.f32 %v10325_v31, %v6499_v44  ;;  %v6501_v52 = vpop.f32.mrb[107].mxu1 }
 0x4df   : > { %6574 = vst [vmem:[%s10330_s30 + $0xa8] sm:$0xff] %v6500_v40 }
 0x4e0   : > { %v6504_v14 = vpop.f32.mrb[108].mxu1 }
 0x4e1   : > { %v6505_v42 = vadd.f32 %v10325_v31, %v6504_v14  ;;  %v6506_v46 = vpop.f32.mrb[109].mxu1 }
 0x4e3   : > { %6575 = vst [vmem:[%s10330_s30 + $0xb0] sm:$0xff] %v6505_v42 }
 0x4e4   : > { %v6509_v28 = vpop.f32.mrb[110].mxu1 }
 0x4e5   : > { %v6510_v5 = vadd.f32 %v10325_v31, %v6509_v28  ;;  %v6511_v58 = vpop.f32.mrb[111].mxu1 }
 0x4e7   : > { %6576 = vst [vmem:[%s10330_s30 + $0xb8] sm:$0xff] %v6510_v5 }
 0x4e8   : > { %v6514_v55 = vpop.f32.mrb[112].mxu1 }
 0x4e9   : > { %v6515_v38 = vadd.f32 %v10325_v31, %v6514_v55  ;;  %v6516_v2 = vpop.f32.mrb[113].mxu1 }
 0x4eb   : > { %6577 = vst [vmem:[%s10330_s30 + $0xc0] sm:$0xff] %v6515_v38 }
 0x4ec   : > { %v6519_v25 = vpop.f32.mrb[114].mxu1 }
 0x4ed   : > { %v6520_v8 = vadd.f32 %v10325_v31, %v6519_v25  ;;  %v6521_v45 = vpop.f32.mrb[115].mxu1 }
 0x4ef   : > { %6578 = vst [vmem:[%s10330_s30 + $0xc8] sm:$0xff] %v6520_v8 }
 0x4f0   : > { %v6524_v48 = vpop.f32.mrb[116].mxu1 }
 0x4f1   : > { %v6525_v34 = vadd.f32 %v10325_v31, %v6524_v48  ;;  %v6526_v1 = vpop.f32.mrb[117].mxu1 }
 0x4f3   : > { %6579 = vst [vmem:[%s10330_s30 + $0xd0] sm:$0xff] %v6525_v34 }
 0x4f4   : > { %v6529_v3 = vpop.f32.mrb[118].mxu1 }
 0x4f5   : > { %v6530_v18 = vadd.f32 %v10325_v31, %v6529_v3  ;;  %v6531_v11 = vpop.f32.mrb[119].mxu1 }
 0x4f7   : > { %6580 = vst [vmem:[%s10330_s30 + $0xd8] sm:$0xff] %v6530_v18 }
 0x4f8   : > { %v6534_v43 = vpop.f32.mrb[120].mxu1 }
 0x4f9   : > { %v6535_v20 = vadd.f32 %v10325_v31, %v6534_v43  ;;  %v6536_v56 = vpop.f32.mrb[121].mxu1 }
 0x4fb   : > { %6581 = vst [vmem:[%s10330_s30 + $0xe0] sm:$0xff] %v6535_v20 }
 0x4fc   : > { %v6539_v30 = vpop.f32.mrb[122].mxu1 }
 0x4fd   : > { %v6540_v17 = vadd.f32 %v10325_v31, %v6539_v30  ;;  %v6541_v57 = vpop.f32.mrb[123].mxu1 }
 0x4ff   : > { %6582 = vst [vmem:[%s10330_s30 + $0xe8] sm:$0xff] %v6540_v17 }
 0x500   : > { %v6544_v15 = vpop.f32.mrb[124].mxu1 }
 0x501   : > { %v6545_v12 = vadd.f32 %v10325_v31, %v6544_v15  ;;  %v6546_v54 = vpop.f32.mrb[125].mxu1 }
 0x503   : > { %6583 = vst [vmem:[%s10330_s30 + $0xf0] sm:$0xff] %v6545_v12 }
 0x504   : > { %v6549_v51 = vpop.f32.mrb[126].mxu1 }
 0x505   : > { %v6550_v36 = vadd.f32 %v10325_v31, %v6549_v51  ;;  %v6551_v16 = vpop.f32.mrb[127].mxu1 }
 0x507   : > { %6584 = vst [vmem:[%s10330_s30 + $0xf8] sm:$0xff] %v6550_v36 }
 0x508 PF: > { %s19_s21 = sadd.s32 1, %s8205_s21  }
 0x509   : > { %p16_p11 = scmp.ge.s32.totalorder %s19_s21, 4  }
 0x50b   :  { %18 = sbr.rel (!%p16_p11) target bundleno = 3 (0x3), region = 97 }
 0x512   :  { %6606 = vsyncpa [#allocation4], 1 }
 0x513   :  { %6608 = vsyncpa [#allocation4 + $0x1], 1 }
 0x514   :  { %6609 = vsyncpa [#allocation6], 1 }
 0x515   :  { %6610 = vsyncpa [#allocation9], 1 }

</bundles_post_ra>
